<compile_context>
chip_gen: v7x
topology: tpu7x:2x2x1
jax: 0.10.0
libtpu: 0.0.40
codegen_flags: <defaults>
</compile_context>

<pallas_src>
import functools

import jax
import jax.numpy as jnp
from jax.experimental import pallas as pl
from jax.experimental.pallas import tpu as pltpu


def _round_up(x, m):
    return ((x + m - 1) // m) * m


# ---------------------------------------------------------------------------
# Pallas kernel: fused 3x3 conv block (in-kernel im2col as 9 shifted matmuls)
#   y = ReLU(conv3x3(xp) + b) * scale + shift          (BatchNorm2d eval folded)
# ---------------------------------------------------------------------------
def _conv3x3_kernel(xp_ref, w_ref, b_ref, scale_ref, shift_ref, o_ref):
    # xp_ref: (Wp, Hp, NBT, Cin) reflection-padded activations (one batch tile)
    # w_ref : (9, Cin, Cout) tap-major weights, tap index = kh*3 + kw
    # o_ref : (Wo, Ho, NBT, Cout)
    Wp, Hp, NBT, Cin = xp_ref.shape
    Wo, Ho = Wp - 2, Hp - 2
    Cout = o_ref.shape[-1]
    M = Wo * Ho * NBT

    acc = jnp.zeros((M, Cout), jnp.float32)
    for kh in range(3):
        for kw in range(3):
            tap = xp_ref[kw:kw + Wo, kh:kh + Ho, :, :].reshape(M, Cin)
            acc = acc + jnp.dot(tap, w_ref[kh * 3 + kw],
                                preferred_element_type=jnp.float32)

    y = acc + b_ref[...]
    y = jnp.maximum(y, 0.0)                        # ReLU(inplace=True) before BN
    y = y * scale_ref[...] + shift_ref[...]        # BatchNorm2d(eval) folded affine
    # Dropout2d(p=0.2) in eval mode is identity.
    o_ref[...] = y.reshape(Wo, Ho, NBT, Cout).astype(o_ref.dtype)


def _conv_block(x_whnc, p):
    """ReflectionPad2d(1) -> Conv2d(3x3) -> ReLU -> BatchNorm2d(eval) -> Dropout2d(eval).

    x_whnc: (W, H, NB, Cin) with NB a multiple of 8.  Returns (W, H, NB, Cout).
    """
    xp = jnp.pad(x_whnc, ((1, 1), (1, 1), (0, 0), (0, 0)), mode="reflect")
    Wp, Hp, NB, Cin = xp.shape
    Wo, Ho = Wp - 2, Hp - 2
    w = p["w"]                                      # (Cout, Cin, 3, 3), PyTorch layout
    Cout = w.shape[0]
    # tap-major weights: w9[kh*3+kw, ci, co] = w[co, ci, kh, kw]   (tiny, done in-jit)
    w9 = jnp.transpose(w, (2, 3, 1, 0)).reshape(9, Cin, Cout)
    inv_std = 1.0 / jnp.sqrt(p["rvar"] + 1e-5)
    scale = p["gamma"] * inv_std
    shift = p["beta"] - p["rmean"] * scale

    NBT = 8                                         # batch tile (sublane aligned)
    assert NB % NBT == 0
    grid = (NB // NBT,)

    return pl.pallas_call(
        _conv3x3_kernel,
        out_shape=jax.ShapeDtypeStruct((Wo, Ho, NB, Cout), jnp.float32),
        grid=grid,
        in_specs=[
            pl.BlockSpec((Wp, Hp, NBT, Cin), lambda i: (0, 0, i, 0)),   # padded acts
            pl.BlockSpec((9, Cin, Cout), lambda i: (0, 0, 0)),          # weights (resident)
            pl.BlockSpec((1, Cout), lambda i: (0, 0)),                  # bias
            pl.BlockSpec((1, Cout), lambda i: (0, 0)),                  # BN scale
            pl.BlockSpec((1, Cout), lambda i: (0, 0)),                  # BN shift
        ],
        out_specs=pl.BlockSpec((Wo, Ho, NBT, Cout), lambda i: (0, 0, i, 0)),
        compiler_params=pltpu.CompilerParams(dimension_semantics=("parallel",)),
    )(xp, w9,
      p["b"].reshape(1, Cout).astype(jnp.float32),
      scale.reshape(1, Cout).astype(jnp.float32),
      shift.reshape(1, Cout).astype(jnp.float32))


# ---------------------------------------------------------------------------
# Pallas kernel: K-tiled linear  y = x @ w + b ; optional ReLU  (no BN affine)
# ---------------------------------------------------------------------------
def _linear_kernel(x_ref, w_ref, b_ref, o_ref, acc_ref, *, relu):
    @pl.when(pl.program_id(1) == 0)
    def _():
        acc_ref[...] = jnp.zeros_like(acc_ref)

    acc_ref[...] += jnp.dot(x_ref[...], w_ref[...],
                            preferred_element_type=jnp.float32)

    @pl.when(pl.program_id(1) == pl.num_programs(1) - 1)
    def _():
        y = acc_ref[...] + b_ref[...]
        if relu:
            y = jnp.maximum(y, 0.0)
        o_ref[...] = y.astype(o_ref.dtype)


def linear(x, w, b, *, relu=False, tm=256, tk=512):
    """x: (M, K), w: (K, N) pre-transposed with N a multiple of 128, b: (N,)."""
    M, K = x.shape
    Kw, N = w.shape
    assert K == Kw and N % 128 == 0

    tm = min(tm, _round_up(M, 8))
    tk = min(tk, _round_up(K, 128))
    Mp = _round_up(M, tm)
    Kp = _round_up(K, tk)
    if (Mp, Kp) != (M, K):
        x = jnp.pad(x, ((0, Mp - M), (0, Kp - K)))
    if Kp != K:
        w = jnp.pad(w, ((0, Kp - K), (0, 0)))

    grid = (Mp // tm, Kp // tk)                     # reduction axis last
    kernel = functools.partial(_linear_kernel, relu=relu)
    out = pl.pallas_call(
        kernel,
        out_shape=jax.ShapeDtypeStruct((Mp, N), jnp.float32),
        grid=grid,
        in_specs=[
            pl.BlockSpec((tm, tk), lambda i, k: (i, k)),    # activations
            pl.BlockSpec((tk, N), lambda i, k: (k, 0)),     # weight K-tile
            pl.BlockSpec((1, N), lambda i, k: (0, 0)),      # bias
        ],
        out_specs=pl.BlockSpec((tm, N), lambda i, k: (i, 0)),
        scratch_shapes=[pltpu.VMEM((tm, N), jnp.float32)],
        compiler_params=pltpu.CompilerParams(
            dimension_semantics=("parallel", "arbitrary")),
    )(x, w, b.reshape(1, N).astype(jnp.float32))
    if Mp != M:
        out = out[:M]
    return out


# ---------------------------------------------------------------------------
# Forward pass
# ---------------------------------------------------------------------------
def siamese_forward(params, input1, input2):
    B = input1.shape[0]
    # Shared-weight branches: one batched cnn1 pass over [input1; input2].
    x = jnp.concatenate([input1, input2], axis=0)            # (2B, C, H, W), NCHW
    x = jnp.transpose(x, (3, 2, 0, 1))                       # -> (W, H, 2B, C)
    NB = x.shape[2]
    NBp = _round_up(NB, 8)
    if NBp != NB:
        x = jnp.pad(x, ((0, 0), (0, 0), (0, NBp - NB), (0, 0)))

    x = _conv_block(x, params["conv1"])
    x = _conv_block(x, params["conv2"])
    x = _conv_block(x, params["conv3"])

    # (W, H, NBp, 32) -> (NB, 32, H, W) -> flatten in PyTorch (c, h, w) order.
    x = jnp.transpose(x, (2, 3, 1, 0))[:NB]
    feats = x.reshape(NB, -1)                                # (2B, 32*H*W)
    o = jnp.concatenate([feats[:B], feats[B:NB]], axis=1)    # torch.cat((o1, o2), 1)

    o = linear(o, params["fc1_w"], params["fc1_b"], relu=True)    # relu(fc1(.))
    o = linear(o, params["fc2_w"], params["fc2_b"], relu=True)    # relu(fc2(.))
    o = linear(o, params["fc3_w"], params["fc3_b"], relu=False)   # fc3(.)
    return o[:, :2]                                          # strip lane padding (2 of 128)


# ---------------------------------------------------------------------------
# Deterministic parameter init (shapes from SiameseNetwork.__init__).
# FC weights are stored pre-transposed (K, N) and zero-padded to lane multiples.
# ---------------------------------------------------------------------------
def init_params(key, H, W):
    def conv_params(k, cin, cout):
        kw_, kb_, kg_, kbe_, km_, kv_ = jax.random.split(k, 6)
        return dict(
            w=0.1 * jax.random.normal(kw_, (cout, cin, 3, 3), jnp.float32),
            b=0.1 * jax.random.normal(kb_, (cout,), jnp.float32),
            gamma=1.0 + 0.1 * jax.random.normal(kg_, (cout,), jnp.float32),
            beta=0.1 * jax.random.normal(kbe_, (cout,), jnp.float32),
            rmean=0.1 * jax.random.normal(km_, (cout,), jnp.float32),
            rvar=0.5 + jax.random.uniform(kv_, (cout,), jnp.float32),
        )

    def fc_params(k, k_in, n_out, k_pad, n_pad):
        kw_, kb_ = jax.random.split(k)
        w = 0.02 * jax.random.normal(kw_, (k_in, n_out), jnp.float32)   # (K, N) layout
        b = 0.02 * jax.random.normal(kb_, (n_out,), jnp.float32)
        return (jnp.pad(w, ((0, k_pad - k_in), (0, n_pad - n_out))),
                jnp.pad(b, (0, n_pad - n_out)))

    k1, k2, k3, k4, k5, k6 = jax.random.split(key, 6)
    fc_in = 2 * 32 * H * W                         # 2 * 32 * 100 * 100 in the original
    fc1_w, fc1_b = fc_params(k4, fc_in, 500, fc_in, 512)
    fc2_w, fc2_b = fc_params(k5, 500, 500, 512, 512)
    fc3_w, fc3_b = fc_params(k6, 500, 2, 512, 128)
    return dict(
        conv1=conv_params(k1, 3, 64),
        conv2=conv_params(k2, 64, 64),
        conv3=conv_params(k3, 64, 32),
        fc1_w=fc1_w, fc1_b=fc1_b,
        fc2_w=fc2_w, fc2_b=fc2_b,
        fc3_w=fc3_w, fc3_b=fc3_b,
    )


if __name__ == "__main__":
    B, C, H, W = 2, 3, 8, 8                        # original uses 100x100; toy size here
    key = jax.random.PRNGKey(0)
    k_in1, k_in2, k_par = jax.random.split(key, 3)
    input1 = jax.random.normal(k_in1, (B, C, H, W), jnp.float32)
    input2 = jax.random.normal(k_in2, (B, C, H, W), jnp.float32)
    params = init_params(k_par, H, W)

    out = jax.jit(siamese_forward)(params, input1, input2)
    out = jax.block_until_ready(out)
    assert out.shape == (B, 2) and out.dtype == jnp.float32
    print("KERNEL_OK")
</pallas_src>

<mosaic_0001>
module attributes {stable_mosaic.version = 11 : i64} {
  func.func @_conv3x3_kernel(%arg0: i32, %arg1: memref<10x10x8x3xf32, #tpu.memory_space<vmem>>, %arg2: memref<9x3x64xf32, #tpu.memory_space<vmem>>, %arg3: memref<1x64xf32, #tpu.memory_space<vmem>>, %arg4: memref<1x64xf32, #tpu.memory_space<vmem>>, %arg5: memref<1x64xf32, #tpu.memory_space<vmem>>, %arg6: memref<8x8x8x64xf32, #tpu.memory_space<vmem>>) attributes {dimension_semantics = [#tpu.dimension_semantics<parallel>], iteration_bounds = array<i64: 1>, scalar_prefetch = 0 : i64, scratch_operands = 0 : i64, tpu.core_type = #tpu.core_type<tc>, window_params = [{transform_indices = @transform_0, window_bounds = array<i64: 10, 10, 8, 3>}, {pipeline_mode = #tpu.pipeline_mode<synchronous>, transform_indices = @transform_1, window_bounds = array<i64: 9, 3, 64>}, {pipeline_mode = #tpu.pipeline_mode<synchronous>, transform_indices = @transform_2, window_bounds = array<i64: 1, 64>}, {pipeline_mode = #tpu.pipeline_mode<synchronous>, transform_indices = @transform_3, window_bounds = array<i64: 1, 64>}, {pipeline_mode = #tpu.pipeline_mode<synchronous>, transform_indices = @transform_4, window_bounds = array<i64: 1, 64>}, {transform_indices = @transform_5, window_bounds = array<i64: 8, 8, 8, 64>}]} {
    %cst = arith.constant 0.000000e+00 : f32
    %0 = vector.broadcast %cst : f32 to vector<512x64xf32>
    %c0 = arith.constant 0 : index
    %c0_0 = arith.constant 0 : index
    %c0_1 = arith.constant 0 : index
    %c0_2 = arith.constant 0 : index
    %1 = vector.load %arg1[%c0, %c0_0, %c0_1, %c0_2] : memref<10x10x8x3xf32, #tpu.memory_space<vmem>>, vector<8x8x8x3xf32>
    %2 = vector.shape_cast %1 : vector<8x8x8x3xf32> to vector<512x3xf32>
    %c0_3 = arith.constant 0 : index
    %c0_4 = arith.constant 0 : index
    %c0_5 = arith.constant 0 : index
    %3 = vector.load %arg2[%c0_3, %c0_4, %c0_5] : memref<9x3x64xf32, #tpu.memory_space<vmem>>, vector<1x3x64xf32>
    %4 = vector.shape_cast %3 : vector<1x3x64xf32> to vector<3x64xf32>
    %cst_6 = arith.constant dense<0.000000e+00> : vector<512x64xf32>
    %5 = tpu.matmul %2, %4, %cst_6 {dimension_numbers = #tpu.dot_dimension_numbers<[1], [0], [0], [1], [0, 0, 1, 1], [], []>} : vector<512x3xf32>, vector<3x64xf32>, vector<512x64xf32> -> vector<512x64xf32>
    %6 = arith.addf %0, %5 : vector<512x64xf32>
    %c1 = arith.constant 1 : index
    %c0_7 = arith.constant 0 : index
    %c0_8 = arith.constant 0 : index
    %c0_9 = arith.constant 0 : index
    %7 = vector.load %arg1[%c1, %c0_7, %c0_8, %c0_9] : memref<10x10x8x3xf32, #tpu.memory_space<vmem>>, vector<8x8x8x3xf32>
    %8 = vector.shape_cast %7 : vector<8x8x8x3xf32> to vector<512x3xf32>
    %c1_10 = arith.constant 1 : index
    %c0_11 = arith.constant 0 : index
    %c0_12 = arith.constant 0 : index
    %9 = vector.load %arg2[%c1_10, %c0_11, %c0_12] : memref<9x3x64xf32, #tpu.memory_space<vmem>>, vector<1x3x64xf32>
    %10 = vector.shape_cast %9 : vector<1x3x64xf32> to vector<3x64xf32>
    %cst_13 = arith.constant dense<0.000000e+00> : vector<512x64xf32>
    %11 = tpu.matmul %8, %10, %cst_13 {dimension_numbers = #tpu.dot_dimension_numbers<[1], [0], [0], [1], [0, 0, 1, 1], [], []>} : vector<512x3xf32>, vector<3x64xf32>, vector<512x64xf32> -> vector<512x64xf32>
    %12 = arith.addf %6, %11 : vector<512x64xf32>
    %c2 = arith.constant 2 : index
    %c0_14 = arith.constant 0 : index
    %c0_15 = arith.constant 0 : index
    %c0_16 = arith.constant 0 : index
    %13 = vector.load %arg1[%c2, %c0_14, %c0_15, %c0_16] : memref<10x10x8x3xf32, #tpu.memory_space<vmem>>, vector<8x8x8x3xf32>
    %14 = vector.shape_cast %13 : vector<8x8x8x3xf32> to vector<512x3xf32>
    %c2_17 = arith.constant 2 : index
    %c0_18 = arith.constant 0 : index
    %c0_19 = arith.constant 0 : index
    %15 = vector.load %arg2[%c2_17, %c0_18, %c0_19] : memref<9x3x64xf32, #tpu.memory_space<vmem>>, vector<1x3x64xf32>
    %16 = vector.shape_cast %15 : vector<1x3x64xf32> to vector<3x64xf32>
    %cst_20 = arith.constant dense<0.000000e+00> : vector<512x64xf32>
    %17 = tpu.matmul %14, %16, %cst_20 {dimension_numbers = #tpu.dot_dimension_numbers<[1], [0], [0], [1], [0, 0, 1, 1], [], []>} : vector<512x3xf32>, vector<3x64xf32>, vector<512x64xf32> -> vector<512x64xf32>
    %18 = arith.addf %12, %17 : vector<512x64xf32>
    %c0_21 = arith.constant 0 : index
    %c1_22 = arith.constant 1 : index
    %c0_23 = arith.constant 0 : index
    %c0_24 = arith.constant 0 : index
    %19 = vector.load %arg1[%c0_21, %c1_22, %c0_23, %c0_24] : memref<10x10x8x3xf32, #tpu.memory_space<vmem>>, vector<8x8x8x3xf32>
    %20 = vector.shape_cast %19 : vector<8x8x8x3xf32> to vector<512x3xf32>
    %c3 = arith.constant 3 : index
    %c0_25 = arith.constant 0 : index
    %c0_26 = arith.constant 0 : index
    %21 = vector.load %arg2[%c3, %c0_25, %c0_26] : memref<9x3x64xf32, #tpu.memory_space<vmem>>, vector<1x3x64xf32>
    %22 = vector.shape_cast %21 : vector<1x3x64xf32> to vector<3x64xf32>
    %cst_27 = arith.constant dense<0.000000e+00> : vector<512x64xf32>
    %23 = tpu.matmul %20, %22, %cst_27 {dimension_numbers = #tpu.dot_dimension_numbers<[1], [0], [0], [1], [0, 0, 1, 1], [], []>} : vector<512x3xf32>, vector<3x64xf32>, vector<512x64xf32> -> vector<512x64xf32>
    %24 = arith.addf %18, %23 : vector<512x64xf32>
    %c1_28 = arith.constant 1 : index
    %c1_29 = arith.constant 1 : index
    %c0_30 = arith.constant 0 : index
    %c0_31 = arith.constant 0 : index
    %25 = vector.load %arg1[%c1_28, %c1_29, %c0_30, %c0_31] : memref<10x10x8x3xf32, #tpu.memory_space<vmem>>, vector<8x8x8x3xf32>
    %26 = vector.shape_cast %25 : vector<8x8x8x3xf32> to vector<512x3xf32>
    %c4 = arith.constant 4 : index
    %c0_32 = arith.constant 0 : index
    %c0_33 = arith.constant 0 : index
    %27 = vector.load %arg2[%c4, %c0_32, %c0_33] : memref<9x3x64xf32, #tpu.memory_space<vmem>>, vector<1x3x64xf32>
    %28 = vector.shape_cast %27 : vector<1x3x64xf32> to vector<3x64xf32>
    %cst_34 = arith.constant dense<0.000000e+00> : vector<512x64xf32>
    %29 = tpu.matmul %26, %28, %cst_34 {dimension_numbers = #tpu.dot_dimension_numbers<[1], [0], [0], [1], [0, 0, 1, 1], [], []>} : vector<512x3xf32>, vector<3x64xf32>, vector<512x64xf32> -> vector<512x64xf32>
    %30 = arith.addf %24, %29 : vector<512x64xf32>
    %c2_35 = arith.constant 2 : index
    %c1_36 = arith.constant 1 : index
    %c0_37 = arith.constant 0 : index
    %c0_38 = arith.constant 0 : index
    %31 = vector.load %arg1[%c2_35, %c1_36, %c0_37, %c0_38] : memref<10x10x8x3xf32, #tpu.memory_space<vmem>>, vector<8x8x8x3xf32>
    %32 = vector.shape_cast %31 : vector<8x8x8x3xf32> to vector<512x3xf32>
    %c5 = arith.constant 5 : index
    %c0_39 = arith.constant 0 : index
    %c0_40 = arith.constant 0 : index
    %33 = vector.load %arg2[%c5, %c0_39, %c0_40] : memref<9x3x64xf32, #tpu.memory_space<vmem>>, vector<1x3x64xf32>
    %34 = vector.shape_cast %33 : vector<1x3x64xf32> to vector<3x64xf32>
    %cst_41 = arith.constant dense<0.000000e+00> : vector<512x64xf32>
    %35 = tpu.matmul %32, %34, %cst_41 {dimension_numbers = #tpu.dot_dimension_numbers<[1], [0], [0], [1], [0, 0, 1, 1], [], []>} : vector<512x3xf32>, vector<3x64xf32>, vector<512x64xf32> -> vector<512x64xf32>
    %36 = arith.addf %30, %35 : vector<512x64xf32>
    %c0_42 = arith.constant 0 : index
    %c2_43 = arith.constant 2 : index
    %c0_44 = arith.constant 0 : index
    %c0_45 = arith.constant 0 : index
    %37 = vector.load %arg1[%c0_42, %c2_43, %c0_44, %c0_45] : memref<10x10x8x3xf32, #tpu.memory_space<vmem>>, vector<8x8x8x3xf32>
    %38 = vector.shape_cast %37 : vector<8x8x8x3xf32> to vector<512x3xf32>
    %c6 = arith.constant 6 : index
    %c0_46 = arith.constant 0 : index
    %c0_47 = arith.constant 0 : index
    %39 = vector.load %arg2[%c6, %c0_46, %c0_47] : memref<9x3x64xf32, #tpu.memory_space<vmem>>, vector<1x3x64xf32>
    %40 = vector.shape_cast %39 : vector<1x3x64xf32> to vector<3x64xf32>
    %cst_48 = arith.constant dense<0.000000e+00> : vector<512x64xf32>
    %41 = tpu.matmul %38, %40, %cst_48 {dimension_numbers = #tpu.dot_dimension_numbers<[1], [0], [0], [1], [0, 0, 1, 1], [], []>} : vector<512x3xf32>, vector<3x64xf32>, vector<512x64xf32> -> vector<512x64xf32>
    %42 = arith.addf %36, %41 : vector<512x64xf32>
    %c1_49 = arith.constant 1 : index
    %c2_50 = arith.constant 2 : index
    %c0_51 = arith.constant 0 : index
    %c0_52 = arith.constant 0 : index
    %43 = vector.load %arg1[%c1_49, %c2_50, %c0_51, %c0_52] : memref<10x10x8x3xf32, #tpu.memory_space<vmem>>, vector<8x8x8x3xf32>
    %44 = vector.shape_cast %43 : vector<8x8x8x3xf32> to vector<512x3xf32>
    %c7 = arith.constant 7 : index
    %c0_53 = arith.constant 0 : index
    %c0_54 = arith.constant 0 : index
    %45 = vector.load %arg2[%c7, %c0_53, %c0_54] : memref<9x3x64xf32, #tpu.memory_space<vmem>>, vector<1x3x64xf32>
    %46 = vector.shape_cast %45 : vector<1x3x64xf32> to vector<3x64xf32>
    %cst_55 = arith.constant dense<0.000000e+00> : vector<512x64xf32>
    %47 = tpu.matmul %44, %46, %cst_55 {dimension_numbers = #tpu.dot_dimension_numbers<[1], [0], [0], [1], [0, 0, 1, 1], [], []>} : vector<512x3xf32>, vector<3x64xf32>, vector<512x64xf32> -> vector<512x64xf32>
    %48 = arith.addf %42, %47 : vector<512x64xf32>
    %c2_56 = arith.constant 2 : index
    %c2_57 = arith.constant 2 : index
    %c0_58 = arith.constant 0 : index
    %c0_59 = arith.constant 0 : index
    %49 = vector.load %arg1[%c2_56, %c2_57, %c0_58, %c0_59] : memref<10x10x8x3xf32, #tpu.memory_space<vmem>>, vector<8x8x8x3xf32>
    %50 = vector.shape_cast %49 : vector<8x8x8x3xf32> to vector<512x3xf32>
    %c8 = arith.constant 8 : index
    %c0_60 = arith.constant 0 : index
    %c0_61 = arith.constant 0 : index
    %51 = vector.load %arg2[%c8, %c0_60, %c0_61] : memref<9x3x64xf32, #tpu.memory_space<vmem>>, vector<1x3x64xf32>
    %52 = vector.shape_cast %51 : vector<1x3x64xf32> to vector<3x64xf32>
    %cst_62 = arith.constant dense<0.000000e+00> : vector<512x64xf32>
    %53 = tpu.matmul %50, %52, %cst_62 {dimension_numbers = #tpu.dot_dimension_numbers<[1], [0], [0], [1], [0, 0, 1, 1], [], []>} : vector<512x3xf32>, vector<3x64xf32>, vector<512x64xf32> -> vector<512x64xf32>
    %54 = arith.addf %48, %53 : vector<512x64xf32>
    %c0_63 = arith.constant 0 : index
    %c0_64 = arith.constant 0 : index
    %55 = vector.load %arg3[%c0_63, %c0_64] : memref<1x64xf32, #tpu.memory_space<vmem>>, vector<1x64xf32>
    %56 = vector.broadcast %55 : vector<1x64xf32> to vector<512x64xf32>
    %57 = arith.addf %54, %56 : vector<512x64xf32>
    %cst_65 = arith.constant 0.000000e+00 : f32
    %58 = vector.broadcast %cst_65 : f32 to vector<512x64xf32>
    %59 = arith.maximumf %57, %58 : vector<512x64xf32>
    %c0_66 = arith.constant 0 : index
    %c0_67 = arith.constant 0 : index
    %60 = vector.load %arg4[%c0_66, %c0_67] : memref<1x64xf32, #tpu.memory_space<vmem>>, vector<1x64xf32>
    %61 = vector.broadcast %60 : vector<1x64xf32> to vector<512x64xf32>
    %62 = arith.mulf %59, %61 : vector<512x64xf32>
    %c0_68 = arith.constant 0 : index
    %c0_69 = arith.constant 0 : index
    %63 = vector.load %arg5[%c0_68, %c0_69] : memref<1x64xf32, #tpu.memory_space<vmem>>, vector<1x64xf32>
    %64 = vector.broadcast %63 : vector<1x64xf32> to vector<512x64xf32>
    %65 = arith.addf %62, %64 : vector<512x64xf32>
    %66 = vector.shape_cast %65 : vector<512x64xf32> to vector<8x8x8x64xf32>
    %c0_70 = arith.constant 0 : index
    %c0_71 = arith.constant 0 : index
    %c0_72 = arith.constant 0 : index
    %c0_73 = arith.constant 0 : index
    %67 = vector.load %arg6[%c0_70, %c0_71, %c0_72, %c0_73] : memref<8x8x8x64xf32, #tpu.memory_space<vmem>>, vector<8x8x8x64xf32>
    tpu.vector_store %arg6[%c0_70, %c0_71, %c0_72, %c0_73], %66 {strides = array<i32>} : memref<8x8x8x64xf32, #tpu.memory_space<vmem>>, vector<8x8x8x64xf32>,
    return
  }
  func.func @transform_0(%arg0: i32) -> (i32, i32, i32, i32) {
    %c0_i32 = arith.constant 0 : i32
    %c0_i32_0 = arith.constant 0 : i32
    %c0_i32_1 = arith.constant 0 : i32
    %c0_i32_2 = arith.constant 0 : i32
    return %c0_i32, %c0_i32_0, %arg0, %c0_i32_1 : i32, i32, i32, i32
  }
  func.func @transform_1(%arg0: i32) -> (i32, i32, i32) {
    %c0_i32 = arith.constant 0 : i32
    %c0_i32_0 = arith.constant 0 : i32
    %c0_i32_1 = arith.constant 0 : i32
    %c0_i32_2 = arith.constant 0 : i32
    return %c0_i32, %c0_i32_0, %c0_i32_1 : i32, i32, i32
  }
  func.func @transform_2(%arg0: i32) -> (i32, i32) {
    %c0_i32 = arith.constant 0 : i32
    %c0_i32_0 = arith.constant 0 : i32
    %c0_i32_1 = arith.constant 0 : i32
    return %c0_i32, %c0_i32_0 : i32, i32
  }
  func.func @transform_3(%arg0: i32) -> (i32, i32) {
    %c0_i32 = arith.constant 0 : i32
    %c0_i32_0 = arith.constant 0 : i32
    %c0_i32_1 = arith.constant 0 : i32
    return %c0_i32, %c0_i32_0 : i32, i32
  }
  func.func @transform_4(%arg0: i32) -> (i32, i32) {
    %c0_i32 = arith.constant 0 : i32
    %c0_i32_0 = arith.constant 0 : i32
    %c0_i32_1 = arith.constant 0 : i32
    return %c0_i32, %c0_i32_0 : i32, i32
  }
  func.func @transform_5(%arg0: i32) -> (i32, i32, i32, i32) {
    %c0_i32 = arith.constant 0 : i32
    %c0_i32_0 = arith.constant 0 : i32
    %c0_i32_1 = arith.constant 0 : i32
    %c0_i32_2 = arith.constant 0 : i32
    return %c0_i32, %c0_i32_0, %arg0, %c0_i32_1 : i32, i32, i32, i32
  }
}

module attributes {stable_mosaic.version = 11 : i64} {
  func.func @_conv3x3_kernel(%arg0: i32, %arg1: memref<10x10x8x64xf32, #tpu.memory_space<vmem>>, %arg2: memref<9x64x64xf32, #tpu.memory_space<vmem>>, %arg3: memref<1x64xf32, #tpu.memory_space<vmem>>, %arg4: memref<1x64xf32, #tpu.memory_space<vmem>>, %arg5: memref<1x64xf32, #tpu.memory_space<vmem>>, %arg6: memref<8x8x8x64xf32, #tpu.memory_space<vmem>>) attributes {dimension_semantics = [#tpu.dimension_semantics<parallel>], iteration_bounds = array<i64: 1>, scalar_prefetch = 0 : i64, scratch_operands = 0 : i64, tpu.core_type = #tpu.core_type<tc>, window_params = [{transform_indices = @transform_0, window_bounds = array<i64: 10, 10, 8, 64>}, {pipeline_mode = #tpu.pipeline_mode<synchronous>, transform_indices = @transform_1, window_bounds = array<i64: 9, 64, 64>}, {pipeline_mode = #tpu.pipeline_mode<synchronous>, transform_indices = @transform_2, window_bounds = array<i64: 1, 64>}, {pipeline_mode = #tpu.pipeline_mode<synchronous>, transform_indices = @transform_3, window_bounds = array<i64: 1, 64>}, {pipeline_mode = #tpu.pipeline_mode<synchronous>, transform_indices = @transform_4, window_bounds = array<i64: 1, 64>}, {transform_indices = @transform_5, window_bounds = array<i64: 8, 8, 8, 64>}]} {
    %cst = arith.constant 0.000000e+00 : f32
    %0 = vector.broadcast %cst : f32 to vector<512x64xf32>
    %c0 = arith.constant 0 : index
    %c0_0 = arith.constant 0 : index
    %c0_1 = arith.constant 0 : index
    %c0_2 = arith.constant 0 : index
    %1 = vector.load %arg1[%c0, %c0_0, %c0_1, %c0_2] : memref<10x10x8x64xf32, #tpu.memory_space<vmem>>, vector<8x8x8x64xf32>
    %2 = vector.shape_cast %1 : vector<8x8x8x64xf32> to vector<512x64xf32>
    %c0_3 = arith.constant 0 : index
    %c0_4 = arith.constant 0 : index
    %c0_5 = arith.constant 0 : index
    %3 = vector.load %arg2[%c0_3, %c0_4, %c0_5] : memref<9x64x64xf32, #tpu.memory_space<vmem>>, vector<1x64x64xf32>
    %4 = vector.shape_cast %3 : vector<1x64x64xf32> to vector<64x64xf32>
    %cst_6 = arith.constant dense<0.000000e+00> : vector<512x64xf32>
    %5 = tpu.matmul %2, %4, %cst_6 {dimension_numbers = #tpu.dot_dimension_numbers<[1], [0], [0], [1], [0, 0, 1, 1], [], []>} : vector<512x64xf32>, vector<64x64xf32>, vector<512x64xf32> -> vector<512x64xf32>
    %6 = arith.addf %0, %5 : vector<512x64xf32>
    %c1 = arith.constant 1 : index
    %c0_7 = arith.constant 0 : index
    %c0_8 = arith.constant 0 : index
    %c0_9 = arith.constant 0 : index
    %7 = vector.load %arg1[%c1, %c0_7, %c0_8, %c0_9] : memref<10x10x8x64xf32, #tpu.memory_space<vmem>>, vector<8x8x8x64xf32>
    %8 = vector.shape_cast %7 : vector<8x8x8x64xf32> to vector<512x64xf32>
    %c1_10 = arith.constant 1 : index
    %c0_11 = arith.constant 0 : index
    %c0_12 = arith.constant 0 : index
    %9 = vector.load %arg2[%c1_10, %c0_11, %c0_12] : memref<9x64x64xf32, #tpu.memory_space<vmem>>, vector<1x64x64xf32>
    %10 = vector.shape_cast %9 : vector<1x64x64xf32> to vector<64x64xf32>
    %cst_13 = arith.constant dense<0.000000e+00> : vector<512x64xf32>
    %11 = tpu.matmul %8, %10, %cst_13 {dimension_numbers = #tpu.dot_dimension_numbers<[1], [0], [0], [1], [0, 0, 1, 1], [], []>} : vector<512x64xf32>, vector<64x64xf32>, vector<512x64xf32> -> vector<512x64xf32>
    %12 = arith.addf %6, %11 : vector<512x64xf32>
    %c2 = arith.constant 2 : index
    %c0_14 = arith.constant 0 : index
    %c0_15 = arith.constant 0 : index
    %c0_16 = arith.constant 0 : index
    %13 = vector.load %arg1[%c2, %c0_14, %c0_15, %c0_16] : memref<10x10x8x64xf32, #tpu.memory_space<vmem>>, vector<8x8x8x64xf32>
    %14 = vector.shape_cast %13 : vector<8x8x8x64xf32> to vector<512x64xf32>
    %c2_17 = arith.constant 2 : index
    %c0_18 = arith.constant 0 : index
    %c0_19 = arith.constant 0 : index
    %15 = vector.load %arg2[%c2_17, %c0_18, %c0_19] : memref<9x64x64xf32, #tpu.memory_space<vmem>>, vector<1x64x64xf32>
    %16 = vector.shape_cast %15 : vector<1x64x64xf32> to vector<64x64xf32>
    %cst_20 = arith.constant dense<0.000000e+00> : vector<512x64xf32>
    %17 = tpu.matmul %14, %16, %cst_20 {dimension_numbers = #tpu.dot_dimension_numbers<[1], [0], [0], [1], [0, 0, 1, 1], [], []>} : vector<512x64xf32>, vector<64x64xf32>, vector<512x64xf32> -> vector<512x64xf32>
    %18 = arith.addf %12, %17 : vector<512x64xf32>
    %c0_21 = arith.constant 0 : index
    %c1_22 = arith.constant 1 : index
    %c0_23 = arith.constant 0 : index
    %c0_24 = arith.constant 0 : index
    %19 = vector.load %arg1[%c0_21, %c1_22, %c0_23, %c0_24] : memref<10x10x8x64xf32, #tpu.memory_space<vmem>>, vector<8x8x8x64xf32>
    %20 = vector.shape_cast %19 : vector<8x8x8x64xf32> to vector<512x64xf32>
    %c3 = arith.constant 3 : index
    %c0_25 = arith.constant 0 : index
    %c0_26 = arith.constant 0 : index
    %21 = vector.load %arg2[%c3, %c0_25, %c0_26] : memref<9x64x64xf32, #tpu.memory_space<vmem>>, vector<1x64x64xf32>
    %22 = vector.shape_cast %21 : vector<1x64x64xf32> to vector<64x64xf32>
    %cst_27 = arith.constant dense<0.000000e+00> : vector<512x64xf32>
    %23 = tpu.matmul %20, %22, %cst_27 {dimension_numbers = #tpu.dot_dimension_numbers<[1], [0], [0], [1], [0, 0, 1, 1], [], []>} : vector<512x64xf32>, vector<64x64xf32>, vector<512x64xf32> -> vector<512x64xf32>
    %24 = arith.addf %18, %23 : vector<512x64xf32>
    %c1_28 = arith.constant 1 : index
    %c1_29 = arith.constant 1 : index
    %c0_30 = arith.constant 0 : index
    %c0_31 = arith.constant 0 : index
    %25 = vector.load %arg1[%c1_28, %c1_29, %c0_30, %c0_31] : memref<10x10x8x64xf32, #tpu.memory_space<vmem>>, vector<8x8x8x64xf32>
    %26 = vector.shape_cast %25 : vector<8x8x8x64xf32> to vector<512x64xf32>
    %c4 = arith.constant 4 : index
    %c0_32 = arith.constant 0 : index
    %c0_33 = arith.constant 0 : index
    %27 = vector.load %arg2[%c4, %c0_32, %c0_33] : memref<9x64x64xf32, #tpu.memory_space<vmem>>, vector<1x64x64xf32>
    %28 = vector.shape_cast %27 : vector<1x64x64xf32> to vector<64x64xf32>
    %cst_34 = arith.constant dense<0.000000e+00> : vector<512x64xf32>
    %29 = tpu.matmul %26, %28, %cst_34 {dimension_numbers = #tpu.dot_dimension_numbers<[1], [0], [0], [1], [0, 0, 1, 1], [], []>} : vector<512x64xf32>, vector<64x64xf32>, vector<512x64xf32> -> vector<512x64xf32>
    %30 = arith.addf %24, %29 : vector<512x64xf32>
    %c2_35 = arith.constant 2 : index
    %c1_36 = arith.constant 1 : index
    %c0_37 = arith.constant 0 : index
    %c0_38 = arith.constant 0 : index
    %31 = vector.load %arg1[%c2_35, %c1_36, %c0_37, %c0_38] : memref<10x10x8x64xf32, #tpu.memory_space<vmem>>, vector<8x8x8x64xf32>
    %32 = vector.shape_cast %31 : vector<8x8x8x64xf32> to vector<512x64xf32>
    %c5 = arith.constant 5 : index
    %c0_39 = arith.constant 0 : index
    %c0_40 = arith.constant 0 : index
    %33 = vector.load %arg2[%c5, %c0_39, %c0_40] : memref<9x64x64xf32, #tpu.memory_space<vmem>>, vector<1x64x64xf32>
    %34 = vector.shape_cast %33 : vector<1x64x64xf32> to vector<64x64xf32>
    %cst_41 = arith.constant dense<0.000000e+00> : vector<512x64xf32>
    %35 = tpu.matmul %32, %34, %cst_41 {dimension_numbers = #tpu.dot_dimension_numbers<[1], [0], [0], [1], [0, 0, 1, 1], [], []>} : vector<512x64xf32>, vector<64x64xf32>, vector<512x64xf32> -> vector<512x64xf32>
    %36 = arith.addf %30, %35 : vector<512x64xf32>
    %c0_42 = arith.constant 0 : index
    %c2_43 = arith.constant 2 : index
    %c0_44 = arith.constant 0 : index
    %c0_45 = arith.constant 0 : index
    %37 = vector.load %arg1[%c0_42, %c2_43, %c0_44, %c0_45] : memref<10x10x8x64xf32, #tpu.memory_space<vmem>>, vector<8x8x8x64xf32>
    %38 = vector.shape_cast %37 : vector<8x8x8x64xf32> to vector<512x64xf32>
    %c6 = arith.constant 6 : index
    %c0_46 = arith.constant 0 : index
    %c0_47 = arith.constant 0 : index
    %39 = vector.load %arg2[%c6, %c0_46, %c0_47] : memref<9x64x64xf32, #tpu.memory_space<vmem>>, vector<1x64x64xf32>
    %40 = vector.shape_cast %39 : vector<1x64x64xf32> to vector<64x64xf32>
    %cst_48 = arith.constant dense<0.000000e+00> : vector<512x64xf32>
    %41 = tpu.matmul %38, %40, %cst_48 {dimension_numbers = #tpu.dot_dimension_numbers<[1], [0], [0], [1], [0, 0, 1, 1], [], []>} : vector<512x64xf32>, vector<64x64xf32>, vector<512x64xf32> -> vector<512x64xf32>
    %42 = arith.addf %36, %41 : vector<512x64xf32>
    %c1_49 = arith.constant 1 : index
    %c2_50 = arith.constant 2 : index
    %c0_51 = arith.constant 0 : index
    %c0_52 = arith.constant 0 : index
    %43 = vector.load %arg1[%c1_49, %c2_50, %c0_51, %c0_52] : memref<10x10x8x64xf32, #tpu.memory_space<vmem>>, vector<8x8x8x64xf32>
    %44 = vector.shape_cast %43 : vector<8x8x8x64xf32> to vector<512x64xf32>
    %c7 = arith.constant 7 : index
    %c0_53 = arith.constant 0 : index
    %c0_54 = arith.constant 0 : index
    %45 = vector.load %arg2[%c7, %c0_53, %c0_54] : memref<9x64x64xf32, #tpu.memory_space<vmem>>, vector<1x64x64xf32>
    %46 = vector.shape_cast %45 : vector<1x64x64xf32> to vector<64x64xf32>
    %cst_55 = arith.constant dense<0.000000e+00> : vector<512x64xf32>
    %47 = tpu.matmul %44, %46, %cst_55 {dimension_numbers = #tpu.dot_dimension_numbers<[1], [0], [0], [1], [0, 0, 1, 1], [], []>} : vector<512x64xf32>, vector<64x64xf32>, vector<512x64xf32> -> vector<512x64xf32>
    %48 = arith.addf %42, %47 : vector<512x64xf32>
    %c2_56 = arith.constant 2 : index
    %c2_57 = arith.constant 2 : index
    %c0_58 = arith.constant 0 : index
    %c0_59 = arith.constant 0 : index
    %49 = vector.load %arg1[%c2_56, %c2_57, %c0_58, %c0_59] : memref<10x10x8x64xf32, #tpu.memory_space<vmem>>, vector<8x8x8x64xf32>
    %50 = vector.shape_cast %49 : vector<8x8x8x64xf32> to vector<512x64xf32>
    %c8 = arith.constant 8 : index
    %c0_60 = arith.constant 0 : index
    %c0_61 = arith.constant 0 : index
    %51 = vector.load %arg2[%c8, %c0_60, %c0_61] : memref<9x64x64xf32, #tpu.memory_space<vmem>>, vector<1x64x64xf32>
    %52 = vector.shape_cast %51 : vector<1x64x64xf32> to vector<64x64xf32>
    %cst_62 = arith.constant dense<0.000000e+00> : vector<512x64xf32>
    %53 = tpu.matmul %50, %52, %cst_62 {dimension_numbers = #tpu.dot_dimension_numbers<[1], [0], [0], [1], [0, 0, 1, 1], [], []>} : vector<512x64xf32>, vector<64x64xf32>, vector<512x64xf32> -> vector<512x64xf32>
    %54 = arith.addf %48, %53 : vector<512x64xf32>
    %c0_63 = arith.constant 0 : index
    %c0_64 = arith.constant 0 : index
    %55 = vector.load %arg3[%c0_63, %c0_64] : memref<1x64xf32, #tpu.memory_space<vmem>>, vector<1x64xf32>
    %56 = vector.broadcast %55 : vector<1x64xf32> to vector<512x64xf32>
    %57 = arith.addf %54, %56 : vector<512x64xf32>
    %cst_65 = arith.constant 0.000000e+00 : f32
    %58 = vector.broadcast %cst_65 : f32 to vector<512x64xf32>
    %59 = arith.maximumf %57, %58 : vector<512x64xf32>
    %c0_66 = arith.constant 0 : index
    %c0_67 = arith.constant 0 : index
    %60 = vector.load %arg4[%c0_66, %c0_67] : memref<1x64xf32, #tpu.memory_space<vmem>>, vector<1x64xf32>
    %61 = vector.broadcast %60 : vector<1x64xf32> to vector<512x64xf32>
    %62 = arith.mulf %59, %61 : vector<512x64xf32>
    %c0_68 = arith.constant 0 : index
    %c0_69 = arith.constant 0 : index
    %63 = vector.load %arg5[%c0_68, %c0_69] : memref<1x64xf32, #tpu.memory_space<vmem>>, vector<1x64xf32>
    %64 = vector.broadcast %63 : vector<1x64xf32> to vector<512x64xf32>
    %65 = arith.addf %62, %64 : vector<512x64xf32>
    %66 = vector.shape_cast %65 : vector<512x64xf32> to vector<8x8x8x64xf32>
    %c0_70 = arith.constant 0 : index
    %c0_71 = arith.constant 0 : index
    %c0_72 = arith.constant 0 : index
    %c0_73 = arith.constant 0 : index
    %67 = vector.load %arg6[%c0_70, %c0_71, %c0_72, %c0_73] : memref<8x8x8x64xf32, #tpu.memory_space<vmem>>, vector<8x8x8x64xf32>
    tpu.vector_store %arg6[%c0_70, %c0_71, %c0_72, %c0_73], %66 {strides = array<i32>} : memref<8x8x8x64xf32, #tpu.memory_space<vmem>>, vector<8x8x8x64xf32>,
    return
  }
  func.func @transform_0(%arg0: i32) -> (i32, i32, i32, i32) {
    %c0_i32 = arith.constant 0 : i32
    %c0_i32_0 = arith.constant 0 : i32
    %c0_i32_1 = arith.constant 0 : i32
    %c0_i32_2 = arith.constant 0 : i32
    return %c0_i32, %c0_i32_0, %arg0, %c0_i32_1 : i32, i32, i32, i32
  }
  func.func @transform_1(%arg0: i32) -> (i32, i32, i32) {
    %c0_i32 = arith.constant 0 : i32
    %c0_i32_0 = arith.constant 0 : i32
    %c0_i32_1 = arith.constant 0 : i32
    %c0_i32_2 = arith.constant 0 : i32
    return %c0_i32, %c0_i32_0, %c0_i32_1 : i32, i32, i32
  }
  func.func @transform_2(%arg0: i32) -> (i32, i32) {
    %c0_i32 = arith.constant 0 : i32
    %c0_i32_0 = arith.constant 0 : i32
    %c0_i32_1 = arith.constant 0 : i32
    return %c0_i32, %c0_i32_0 : i32, i32
  }
  func.func @transform_3(%arg0: i32) -> (i32, i32) {
    %c0_i32 = arith.constant 0 : i32
    %c0_i32_0 = arith.constant 0 : i32
    %c0_i32_1 = arith.constant 0 : i32
    return %c0_i32, %c0_i32_0 : i32, i32
  }
  func.func @transform_4(%arg0: i32) -> (i32, i32) {
    %c0_i32 = arith.constant 0 : i32
    %c0_i32_0 = arith.constant 0 : i32
    %c0_i32_1 = arith.constant 0 : i32
    return %c0_i32, %c0_i32_0 : i32, i32
  }
  func.func @transform_5(%arg0: i32) -> (i32, i32, i32, i32) {
    %c0_i32 = arith.constant 0 : i32
    %c0_i32_0 = arith.constant 0 : i32
    %c0_i32_1 = arith.constant 0 : i32
    %c0_i32_2 = arith.constant 0 : i32
    return %c0_i32, %c0_i32_0, %arg0, %c0_i32_1 : i32, i32, i32, i32
  }
}

module attributes {stable_mosaic.version = 11 : i64} {
  func.func @_conv3x3_kernel(%arg0: i32, %arg1: memref<10x10x8x64xf32, #tpu.memory_space<vmem>>, %arg2: memref<9x64x32xf32, #tpu.memory_space<vmem>>, %arg3: memref<1x32xf32, #tpu.memory_space<vmem>>, %arg4: memref<1x32xf32, #tpu.memory_space<vmem>>, %arg5: memref<1x32xf32, #tpu.memory_space<vmem>>, %arg6: memref<8x8x8x32xf32, #tpu.memory_space<vmem>>) attributes {dimension_semantics = [#tpu.dimension_semantics<parallel>], iteration_bounds = array<i64: 1>, scalar_prefetch = 0 : i64, scratch_operands = 0 : i64, tpu.core_type = #tpu.core_type<tc>, window_params = [{transform_indices = @transform_0, window_bounds = array<i64: 10, 10, 8, 64>}, {pipeline_mode = #tpu.pipeline_mode<synchronous>, transform_indices = @transform_1, window_bounds = array<i64: 9, 64, 32>}, {pipeline_mode = #tpu.pipeline_mode<synchronous>, transform_indices = @transform_2, window_bounds = array<i64: 1, 32>}, {pipeline_mode = #tpu.pipeline_mode<synchronous>, transform_indices = @transform_3, window_bounds = array<i64: 1, 32>}, {pipeline_mode = #tpu.pipeline_mode<synchronous>, transform_indices = @transform_4, window_bounds = array<i64: 1, 32>}, {transform_indices = @transform_5, window_bounds = array<i64: 8, 8, 8, 32>}]} {
    %cst = arith.constant 0.000000e+00 : f32
    %0 = vector.broadcast %cst : f32 to vector<512x32xf32>
    %c0 = arith.constant 0 : index
    %c0_0 = arith.constant 0 : index
    %c0_1 = arith.constant 0 : index
    %c0_2 = arith.constant 0 : index
    %1 = vector.load %arg1[%c0, %c0_0, %c0_1, %c0_2] : memref<10x10x8x64xf32, #tpu.memory_space<vmem>>, vector<8x8x8x64xf32>
    %2 = vector.shape_cast %1 : vector<8x8x8x64xf32> to vector<512x64xf32>
    %c0_3 = arith.constant 0 : index
    %c0_4 = arith.constant 0 : index
    %c0_5 = arith.constant 0 : index
    %3 = vector.load %arg2[%c0_3, %c0_4, %c0_5] : memref<9x64x32xf32, #tpu.memory_space<vmem>>, vector<1x64x32xf32>
    %4 = vector.shape_cast %3 : vector<1x64x32xf32> to vector<64x32xf32>
    %cst_6 = arith.constant dense<0.000000e+00> : vector<512x32xf32>
    %5 = tpu.matmul %2, %4, %cst_6 {dimension_numbers = #tpu.dot_dimension_numbers<[1], [0], [0], [1], [0, 0, 1, 1], [], []>} : vector<512x64xf32>, vector<64x32xf32>, vector<512x32xf32> -> vector<512x32xf32>
    %6 = arith.addf %0, %5 : vector<512x32xf32>
    %c1 = arith.constant 1 : index
    %c0_7 = arith.constant 0 : index
    %c0_8 = arith.constant 0 : index
    %c0_9 = arith.constant 0 : index
    %7 = vector.load %arg1[%c1, %c0_7, %c0_8, %c0_9] : memref<10x10x8x64xf32, #tpu.memory_space<vmem>>, vector<8x8x8x64xf32>
    %8 = vector.shape_cast %7 : vector<8x8x8x64xf32> to vector<512x64xf32>
    %c1_10 = arith.constant 1 : index
    %c0_11 = arith.constant 0 : index
    %c0_12 = arith.constant 0 : index
    %9 = vector.load %arg2[%c1_10, %c0_11, %c0_12] : memref<9x64x32xf32, #tpu.memory_space<vmem>>, vector<1x64x32xf32>
    %10 = vector.shape_cast %9 : vector<1x64x32xf32> to vector<64x32xf32>
    %cst_13 = arith.constant dense<0.000000e+00> : vector<512x32xf32>
    %11 = tpu.matmul %8, %10, %cst_13 {dimension_numbers = #tpu.dot_dimension_numbers<[1], [0], [0], [1], [0, 0, 1, 1], [], []>} : vector<512x64xf32>, vector<64x32xf32>, vector<512x32xf32> -> vector<512x32xf32>
    %12 = arith.addf %6, %11 : vector<512x32xf32>
    %c2 = arith.constant 2 : index
    %c0_14 = arith.constant 0 : index
    %c0_15 = arith.constant 0 : index
    %c0_16 = arith.constant 0 : index
    %13 = vector.load %arg1[%c2, %c0_14, %c0_15, %c0_16] : memref<10x10x8x64xf32, #tpu.memory_space<vmem>>, vector<8x8x8x64xf32>
    %14 = vector.shape_cast %13 : vector<8x8x8x64xf32> to vector<512x64xf32>
    %c2_17 = arith.constant 2 : index
    %c0_18 = arith.constant 0 : index
    %c0_19 = arith.constant 0 : index
    %15 = vector.load %arg2[%c2_17, %c0_18, %c0_19] : memref<9x64x32xf32, #tpu.memory_space<vmem>>, vector<1x64x32xf32>
    %16 = vector.shape_cast %15 : vector<1x64x32xf32> to vector<64x32xf32>
    %cst_20 = arith.constant dense<0.000000e+00> : vector<512x32xf32>
    %17 = tpu.matmul %14, %16, %cst_20 {dimension_numbers = #tpu.dot_dimension_numbers<[1], [0], [0], [1], [0, 0, 1, 1], [], []>} : vector<512x64xf32>, vector<64x32xf32>, vector<512x32xf32> -> vector<512x32xf32>
    %18 = arith.addf %12, %17 : vector<512x32xf32>
    %c0_21 = arith.constant 0 : index
    %c1_22 = arith.constant 1 : index
    %c0_23 = arith.constant 0 : index
    %c0_24 = arith.constant 0 : index
    %19 = vector.load %arg1[%c0_21, %c1_22, %c0_23, %c0_24] : memref<10x10x8x64xf32, #tpu.memory_space<vmem>>, vector<8x8x8x64xf32>
    %20 = vector.shape_cast %19 : vector<8x8x8x64xf32> to vector<512x64xf32>
    %c3 = arith.constant 3 : index
    %c0_25 = arith.constant 0 : index
    %c0_26 = arith.constant 0 : index
    %21 = vector.load %arg2[%c3, %c0_25, %c0_26] : memref<9x64x32xf32, #tpu.memory_space<vmem>>, vector<1x64x32xf32>
    %22 = vector.shape_cast %21 : vector<1x64x32xf32> to vector<64x32xf32>
    %cst_27 = arith.constant dense<0.000000e+00> : vector<512x32xf32>
    %23 = tpu.matmul %20, %22, %cst_27 {dimension_numbers = #tpu.dot_dimension_numbers<[1], [0], [0], [1], [0, 0, 1, 1], [], []>} : vector<512x64xf32>, vector<64x32xf32>, vector<512x32xf32> -> vector<512x32xf32>
    %24 = arith.addf %18, %23 : vector<512x32xf32>
    %c1_28 = arith.constant 1 : index
    %c1_29 = arith.constant 1 : index
    %c0_30 = arith.constant 0 : index
    %c0_31 = arith.constant 0 : index
    %25 = vector.load %arg1[%c1_28, %c1_29, %c0_30, %c0_31] : memref<10x10x8x64xf32, #tpu.memory_space<vmem>>, vector<8x8x8x64xf32>
    %26 = vector.shape_cast %25 : vector<8x8x8x64xf32> to vector<512x64xf32>
    %c4 = arith.constant 4 : index
    %c0_32 = arith.constant 0 : index
    %c0_33 = arith.constant 0 : index
    %27 = vector.load %arg2[%c4, %c0_32, %c0_33] : memref<9x64x32xf32, #tpu.memory_space<vmem>>, vector<1x64x32xf32>
    %28 = vector.shape_cast %27 : vector<1x64x32xf32> to vector<64x32xf32>
    %cst_34 = arith.constant dense<0.000000e+00> : vector<512x32xf32>
    %29 = tpu.matmul %26, %28, %cst_34 {dimension_numbers = #tpu.dot_dimension_numbers<[1], [0], [0], [1], [0, 0, 1, 1], [], []>} : vector<512x64xf32>, vector<64x32xf32>, vector<512x32xf32> -> vector<512x32xf32>
    %30 = arith.addf %24, %29 : vector<512x32xf32>
    %c2_35 = arith.constant 2 : index
    %c1_36 = arith.constant 1 : index
    %c0_37 = arith.constant 0 : index
    %c0_38 = arith.constant 0 : index
    %31 = vector.load %arg1[%c2_35, %c1_36, %c0_37, %c0_38] : memref<10x10x8x64xf32, #tpu.memory_space<vmem>>, vector<8x8x8x64xf32>
    %32 = vector.shape_cast %31 : vector<8x8x8x64xf32> to vector<512x64xf32>
    %c5 = arith.constant 5 : index
    %c0_39 = arith.constant 0 : index
    %c0_40 = arith.constant 0 : index
    %33 = vector.load %arg2[%c5, %c0_39, %c0_40] : memref<9x64x32xf32, #tpu.memory_space<vmem>>, vector<1x64x32xf32>
    %34 = vector.shape_cast %33 : vector<1x64x32xf32> to vector<64x32xf32>
    %cst_41 = arith.constant dense<0.000000e+00> : vector<512x32xf32>
    %35 = tpu.matmul %32, %34, %cst_41 {dimension_numbers = #tpu.dot_dimension_numbers<[1], [0], [0], [1], [0, 0, 1, 1], [], []>} : vector<512x64xf32>, vector<64x32xf32>, vector<512x32xf32> -> vector<512x32xf32>
    %36 = arith.addf %30, %35 : vector<512x32xf32>
    %c0_42 = arith.constant 0 : index
    %c2_43 = arith.constant 2 : index
    %c0_44 = arith.constant 0 : index
    %c0_45 = arith.constant 0 : index
    %37 = vector.load %arg1[%c0_42, %c2_43, %c0_44, %c0_45] : memref<10x10x8x64xf32, #tpu.memory_space<vmem>>, vector<8x8x8x64xf32>
    %38 = vector.shape_cast %37 : vector<8x8x8x64xf32> to vector<512x64xf32>
    %c6 = arith.constant 6 : index
    %c0_46 = arith.constant 0 : index
    %c0_47 = arith.constant 0 : index
    %39 = vector.load %arg2[%c6, %c0_46, %c0_47] : memref<9x64x32xf32, #tpu.memory_space<vmem>>, vector<1x64x32xf32>
    %40 = vector.shape_cast %39 : vector<1x64x32xf32> to vector<64x32xf32>
    %cst_48 = arith.constant dense<0.000000e+00> : vector<512x32xf32>
    %41 = tpu.matmul %38, %40, %cst_48 {dimension_numbers = #tpu.dot_dimension_numbers<[1], [0], [0], [1], [0, 0, 1, 1], [], []>} : vector<512x64xf32>, vector<64x32xf32>, vector<512x32xf32> -> vector<512x32xf32>
    %42 = arith.addf %36, %41 : vector<512x32xf32>
    %c1_49 = arith.constant 1 : index
    %c2_50 = arith.constant 2 : index
    %c0_51 = arith.constant 0 : index
    %c0_52 = arith.constant 0 : index
    %43 = vector.load %arg1[%c1_49, %c2_50, %c0_51, %c0_52] : memref<10x10x8x64xf32, #tpu.memory_space<vmem>>, vector<8x8x8x64xf32>
    %44 = vector.shape_cast %43 : vector<8x8x8x64xf32> to vector<512x64xf32>
    %c7 = arith.constant 7 : index
    %c0_53 = arith.constant 0 : index
    %c0_54 = arith.constant 0 : index
    %45 = vector.load %arg2[%c7, %c0_53, %c0_54] : memref<9x64x32xf32, #tpu.memory_space<vmem>>, vector<1x64x32xf32>
    %46 = vector.shape_cast %45 : vector<1x64x32xf32> to vector<64x32xf32>
    %cst_55 = arith.constant dense<0.000000e+00> : vector<512x32xf32>
    %47 = tpu.matmul %44, %46, %cst_55 {dimension_numbers = #tpu.dot_dimension_numbers<[1], [0], [0], [1], [0, 0, 1, 1], [], []>} : vector<512x64xf32>, vector<64x32xf32>, vector<512x32xf32> -> vector<512x32xf32>
    %48 = arith.addf %42, %47 : vector<512x32xf32>
    %c2_56 = arith.constant 2 : index
    %c2_57 = arith.constant 2 : index
    %c0_58 = arith.constant 0 : index
    %c0_59 = arith.constant 0 : index
    %49 = vector.load %arg1[%c2_56, %c2_57, %c0_58, %c0_59] : memref<10x10x8x64xf32, #tpu.memory_space<vmem>>, vector<8x8x8x64xf32>
    %50 = vector.shape_cast %49 : vector<8x8x8x64xf32> to vector<512x64xf32>
    %c8 = arith.constant 8 : index
    %c0_60 = arith.constant 0 : index
    %c0_61 = arith.constant 0 : index
    %51 = vector.load %arg2[%c8, %c0_60, %c0_61] : memref<9x64x32xf32, #tpu.memory_space<vmem>>, vector<1x64x32xf32>
    %52 = vector.shape_cast %51 : vector<1x64x32xf32> to vector<64x32xf32>
    %cst_62 = arith.constant dense<0.000000e+00> : vector<512x32xf32>
    %53 = tpu.matmul %50, %52, %cst_62 {dimension_numbers = #tpu.dot_dimension_numbers<[1], [0], [0], [1], [0, 0, 1, 1], [], []>} : vector<512x64xf32>, vector<64x32xf32>, vector<512x32xf32> -> vector<512x32xf32>
    %54 = arith.addf %48, %53 : vector<512x32xf32>
    %c0_63 = arith.constant 0 : index
    %c0_64 = arith.constant 0 : index
    %55 = vector.load %arg3[%c0_63, %c0_64] : memref<1x32xf32, #tpu.memory_space<vmem>>, vector<1x32xf32>
    %56 = vector.broadcast %55 : vector<1x32xf32> to vector<512x32xf32>
    %57 = arith.addf %54, %56 : vector<512x32xf32>
    %cst_65 = arith.constant 0.000000e+00 : f32
    %58 = vector.broadcast %cst_65 : f32 to vector<512x32xf32>
    %59 = arith.maximumf %57, %58 : vector<512x32xf32>
    %c0_66 = arith.constant 0 : index
    %c0_67 = arith.constant 0 : index
    %60 = vector.load %arg4[%c0_66, %c0_67] : memref<1x32xf32, #tpu.memory_space<vmem>>, vector<1x32xf32>
    %61 = vector.broadcast %60 : vector<1x32xf32> to vector<512x32xf32>
    %62 = arith.mulf %59, %61 : vector<512x32xf32>
    %c0_68 = arith.constant 0 : index
    %c0_69 = arith.constant 0 : index
    %63 = vector.load %arg5[%c0_68, %c0_69] : memref<1x32xf32, #tpu.memory_space<vmem>>, vector<1x32xf32>
    %64 = vector.broadcast %63 : vector<1x32xf32> to vector<512x32xf32>
    %65 = arith.addf %62, %64 : vector<512x32xf32>
    %66 = vector.shape_cast %65 : vector<512x32xf32> to vector<8x8x8x32xf32>
    %c0_70 = arith.constant 0 : index
    %c0_71 = arith.constant 0 : index
    %c0_72 = arith.constant 0 : index
    %c0_73 = arith.constant 0 : index
    %67 = vector.load %arg6[%c0_70, %c0_71, %c0_72, %c0_73] : memref<8x8x8x32xf32, #tpu.memory_space<vmem>>, vector<8x8x8x32xf32>
    tpu.vector_store %arg6[%c0_70, %c0_71, %c0_72, %c0_73], %66 {strides = array<i32>} : memref<8x8x8x32xf32, #tpu.memory_space<vmem>>, vector<8x8x8x32xf32>,
    return
  }
  func.func @transform_0(%arg0: i32) -> (i32, i32, i32, i32) {
    %c0_i32 = arith.constant 0 : i32
    %c0_i32_0 = arith.constant 0 : i32
    %c0_i32_1 = arith.constant 0 : i32
    %c0_i32_2 = arith.constant 0 : i32
    return %c0_i32, %c0_i32_0, %arg0, %c0_i32_1 : i32, i32, i32, i32
  }
  func.func @transform_1(%arg0: i32) -> (i32, i32, i32) {
    %c0_i32 = arith.constant 0 : i32
    %c0_i32_0 = arith.constant 0 : i32
    %c0_i32_1 = arith.constant 0 : i32
    %c0_i32_2 = arith.constant 0 : i32
    return %c0_i32, %c0_i32_0, %c0_i32_1 : i32, i32, i32
  }
  func.func @transform_2(%arg0: i32) -> (i32, i32) {
    %c0_i32 = arith.constant 0 : i32
    %c0_i32_0 = arith.constant 0 : i32
    %c0_i32_1 = arith.constant 0 : i32
    return %c0_i32, %c0_i32_0 : i32, i32
  }
  func.func @transform_3(%arg0: i32) -> (i32, i32) {
    %c0_i32 = arith.constant 0 : i32
    %c0_i32_0 = arith.constant 0 : i32
    %c0_i32_1 = arith.constant 0 : i32
    return %c0_i32, %c0_i32_0 : i32, i32
  }
  func.func @transform_4(%arg0: i32) -> (i32, i32) {
    %c0_i32 = arith.constant 0 : i32
    %c0_i32_0 = arith.constant 0 : i32
    %c0_i32_1 = arith.constant 0 : i32
    return %c0_i32, %c0_i32_0 : i32, i32
  }
  func.func @transform_5(%arg0: i32) -> (i32, i32, i32, i32) {
    %c0_i32 = arith.constant 0 : i32
    %c0_i32_0 = arith.constant 0 : i32
    %c0_i32_1 = arith.constant 0 : i32
    %c0_i32_2 = arith.constant 0 : i32
    return %c0_i32, %c0_i32_0, %arg0, %c0_i32_1 : i32, i32, i32, i32
  }
}

module attributes {stable_mosaic.version = 11 : i64} {
  func.func @_linear_kernel(%arg0: i32, %arg1: i32, %arg2: memref<8x512xf32, #tpu.memory_space<vmem>>, %arg3: memref<512x512xf32, #tpu.memory_space<vmem>>, %arg4: memref<1x512xf32, #tpu.memory_space<vmem>>, %arg5: memref<8x512xf32, #tpu.memory_space<vmem>>, %arg6: memref<8x512xf32, #tpu.memory_space<vmem>>) attributes {dimension_semantics = [#tpu.dimension_semantics<parallel>, #tpu.dimension_semantics<arbitrary>], iteration_bounds = array<i64: 1, 1>, scalar_prefetch = 0 : i64, scratch_operands = 1 : i64, tpu.core_type = #tpu.core_type<tc>, window_params = [{transform_indices = @transform_0, window_bounds = array<i64: 8, 512>}, {transform_indices = @transform_1, window_bounds = array<i64: 512, 512>}, {pipeline_mode = #tpu.pipeline_mode<synchronous>, transform_indices = @transform_2, window_bounds = array<i64: 1, 512>}, {transform_indices = @transform_3, window_bounds = array<i64: 8, 512>}]} {
    %c0_i32 = arith.constant 0 : i32
    %0 = arith.cmpi eq, %arg1, %c0_i32 : i32
    %1 = arith.extui %0 : i1 to i32
    %c0_i32_0 = arith.constant 0 : i32
    %2 = arith.cmpi ne, %1, %c0_i32_0 : i32
    scf.if %2 {
      %cst_10 = arith.constant 0.000000e+00 : f32
      %12 = vector.broadcast %cst_10 : f32 to vector<8x512xf32>
      %c0_11 = arith.constant 0 : index
      %c0_12 = arith.constant 0 : index
      %13 = vector.load %arg6[%c0_11, %c0_12] : memref<8x512xf32, #tpu.memory_space<vmem>>, vector<8x512xf32>
      tpu.vector_store %arg6[%c0_11, %c0_12], %12 {strides = array<i32>} : memref<8x512xf32, #tpu.memory_space<vmem>>, vector<8x512xf32>,
    } else {
    }
    %c0 = arith.constant 0 : index
    %c0_1 = arith.constant 0 : index
    %3 = vector.load %arg6[%c0, %c0_1] : memref<8x512xf32, #tpu.memory_space<vmem>>, vector<8x512xf32>
    %c0_2 = arith.constant 0 : index
    %c0_3 = arith.constant 0 : index
    %4 = vector.load %arg2[%c0_2, %c0_3] : memref<8x512xf32, #tpu.memory_space<vmem>>, vector<8x512xf32>
    %c0_4 = arith.constant 0 : index
    %c0_5 = arith.constant 0 : index
    %5 = vector.load %arg3[%c0_4, %c0_5] : memref<512x512xf32, #tpu.memory_space<vmem>>, vector<512x512xf32>
    %cst = arith.constant dense<0.000000e+00> : vector<8x512xf32>
    %6 = tpu.matmul %4, %5, %cst {dimension_numbers = #tpu.dot_dimension_numbers<[1], [0], [0], [1], [0, 0, 1, 1], [], []>} : vector<8x512xf32>, vector<512x512xf32>, vector<8x512xf32> -> vector<8x512xf32>
    %7 = arith.addf %3, %6 : vector<8x512xf32>
    %c0_6 = arith.constant 0 : index
    %c0_7 = arith.constant 0 : index
    %8 = vector.load %arg6[%c0_6, %c0_7] : memref<8x512xf32, #tpu.memory_space<vmem>>, vector<8x512xf32>
    tpu.vector_store %arg6[%c0_6, %c0_7], %7 {strides = array<i32>} : memref<8x512xf32, #tpu.memory_space<vmem>>, vector<8x512xf32>,
    %c0_i32_8 = arith.constant 0 : i32
    %9 = arith.cmpi eq, %arg1, %c0_i32_8 : i32
    %10 = arith.extui %9 : i1 to i32
    %c0_i32_9 = arith.constant 0 : i32
    %11 = arith.cmpi ne, %10, %c0_i32_9 : i32
    scf.if %11 {
      %c0_10 = arith.constant 0 : index
      %c0_11 = arith.constant 0 : index
      %12 = vector.load %arg6[%c0_10, %c0_11] : memref<8x512xf32, #tpu.memory_space<vmem>>, vector<8x512xf32>
      %c0_12 = arith.constant 0 : index
      %c0_13 = arith.constant 0 : index
      %13 = vector.load %arg4[%c0_12, %c0_13] : memref<1x512xf32, #tpu.memory_space<vmem>>, vector<1x512xf32>
      %14 = vector.broadcast %13 : vector<1x512xf32> to vector<8x512xf32>
      %15 = arith.addf %12, %14 : vector<8x512xf32>
      %cst_14 = arith.constant 0.000000e+00 : f32
      %16 = vector.broadcast %cst_14 : f32 to vector<8x512xf32>
      %17 = arith.maximumf %15, %16 : vector<8x512xf32>
      %c0_15 = arith.constant 0 : index
      %c0_16 = arith.constant 0 : index
      %18 = vector.load %arg5[%c0_15, %c0_16] : memref<8x512xf32, #tpu.memory_space<vmem>>, vector<8x512xf32>
      tpu.vector_store %arg5[%c0_15, %c0_16], %17 {strides = array<i32>} : memref<8x512xf32, #tpu.memory_space<vmem>>, vector<8x512xf32>,
    } else {
    }
    return
  }
  func.func @transform_0(%arg0: i32, %arg1: i32) -> (i32, i32) {
    %c0_i32 = arith.constant 0 : i32
    return %arg0, %arg1 : i32, i32
  }
  func.func @transform_1(%arg0: i32, %arg1: i32) -> (i32, i32) {
    %c0_i32 = arith.constant 0 : i32
    %c0_i32_0 = arith.constant 0 : i32
    return %arg1, %c0_i32 : i32, i32
  }
  func.func @transform_2(%arg0: i32, %arg1: i32) -> (i32, i32) {
    %c0_i32 = arith.constant 0 : i32
    %c0_i32_0 = arith.constant 0 : i32
    %c0_i32_1 = arith.constant 0 : i32
    return %c0_i32, %c0_i32_0 : i32, i32
  }
  func.func @transform_3(%arg0: i32, %arg1: i32) -> (i32, i32) {
    %c0_i32 = arith.constant 0 : i32
    %c0_i32_0 = arith.constant 0 : i32
    return %arg0, %c0_i32 : i32, i32
  }
}

module attributes {stable_mosaic.version = 11 : i64} {
  func.func @_linear_kernel(%arg0: i32, %arg1: i32, %arg2: memref<8x512xf32, #tpu.memory_space<vmem>>, %arg3: memref<512x128xf32, #tpu.memory_space<vmem>>, %arg4: memref<1x128xf32, #tpu.memory_space<vmem>>, %arg5: memref<8x128xf32, #tpu.memory_space<vmem>>, %arg6: memref<8x128xf32, #tpu.memory_space<vmem>>) attributes {dimension_semantics = [#tpu.dimension_semantics<parallel>, #tpu.dimension_semantics<arbitrary>], iteration_bounds = array<i64: 1, 1>, scalar_prefetch = 0 : i64, scratch_operands = 1 : i64, tpu.core_type = #tpu.core_type<tc>, window_params = [{transform_indices = @transform_0, window_bounds = array<i64: 8, 512>}, {transform_indices = @transform_1, window_bounds = array<i64: 512, 128>}, {pipeline_mode = #tpu.pipeline_mode<synchronous>, transform_indices = @transform_2, window_bounds = array<i64: 1, 128>}, {transform_indices = @transform_3, window_bounds = array<i64: 8, 128>}]} {
    %c0_i32 = arith.constant 0 : i32
    %0 = arith.cmpi eq, %arg1, %c0_i32 : i32
    %1 = arith.extui %0 : i1 to i32
    %c0_i32_0 = arith.constant 0 : i32
    %2 = arith.cmpi ne, %1, %c0_i32_0 : i32
    scf.if %2 {
      %cst_10 = arith.constant 0.000000e+00 : f32
      %12 = vector.broadcast %cst_10 : f32 to vector<8x128xf32>
      %c0_11 = arith.constant 0 : index
      %c0_12 = arith.constant 0 : index
      %13 = vector.load %arg6[%c0_11, %c0_12] : memref<8x128xf32, #tpu.memory_space<vmem>>, vector<8x128xf32>
      tpu.vector_store %arg6[%c0_11, %c0_12], %12 {strides = array<i32>} : memref<8x128xf32, #tpu.memory_space<vmem>>, vector<8x128xf32>,
    } else {
    }
    %c0 = arith.constant 0 : index
    %c0_1 = arith.constant 0 : index
    %3 = vector.load %arg6[%c0, %c0_1] : memref<8x128xf32, #tpu.memory_space<vmem>>, vector<8x128xf32>
    %c0_2 = arith.constant 0 : index
    %c0_3 = arith.constant 0 : index
    %4 = vector.load %arg2[%c0_2, %c0_3] : memref<8x512xf32, #tpu.memory_space<vmem>>, vector<8x512xf32>
    %c0_4 = arith.constant 0 : index
    %c0_5 = arith.constant 0 : index
    %5 = vector.load %arg3[%c0_4, %c0_5] : memref<512x128xf32, #tpu.memory_space<vmem>>, vector<512x128xf32>
    %cst = arith.constant dense<0.000000e+00> : vector<8x128xf32>
    %6 = tpu.matmul %4, %5, %cst {dimension_numbers = #tpu.dot_dimension_numbers<[1], [0], [0], [1], [0, 0, 1, 1], [], []>} : vector<8x512xf32>, vector<512x128xf32>, vector<8x128xf32> -> vector<8x128xf32>
    %7 = arith.addf %3, %6 : vector<8x128xf32>
    %c0_6 = arith.constant 0 : index
    %c0_7 = arith.constant 0 : index
    %8 = vector.load %arg6[%c0_6, %c0_7] : memref<8x128xf32, #tpu.memory_space<vmem>>, vector<8x128xf32>
    tpu.vector_store %arg6[%c0_6, %c0_7], %7 {strides = array<i32>} : memref<8x128xf32, #tpu.memory_space<vmem>>, vector<8x128xf32>,
    %c0_i32_8 = arith.constant 0 : i32
    %9 = arith.cmpi eq, %arg1, %c0_i32_8 : i32
    %10 = arith.extui %9 : i1 to i32
    %c0_i32_9 = arith.constant 0 : i32
    %11 = arith.cmpi ne, %10, %c0_i32_9 : i32
    scf.if %11 {
      %c0_10 = arith.constant 0 : index
      %c0_11 = arith.constant 0 : index
      %12 = vector.load %arg6[%c0_10, %c0_11] : memref<8x128xf32, #tpu.memory_space<vmem>>, vector<8x128xf32>
      %c0_12 = arith.constant 0 : index
      %c0_13 = arith.constant 0 : index
      %13 = vector.load %arg4[%c0_12, %c0_13] : memref<1x128xf32, #tpu.memory_space<vmem>>, vector<1x128xf32>
      %14 = vector.broadcast %13 : vector<1x128xf32> to vector<8x128xf32>
      %15 = arith.addf %12, %14 : vector<8x128xf32>
      %c0_14 = arith.constant 0 : index
      %c0_15 = arith.constant 0 : index
      %16 = vector.load %arg5[%c0_14, %c0_15] : memref<8x128xf32, #tpu.memory_space<vmem>>, vector<8x128xf32>
      tpu.vector_store %arg5[%c0_14, %c0_15], %15 {strides = array<i32>} : memref<8x128xf32, #tpu.memory_space<vmem>>, vector<8x128xf32>,
    } else {
    }
    return
  }
  func.func @transform_0(%arg0: i32, %arg1: i32) -> (i32, i32) {
    %c0_i32 = arith.constant 0 : i32
    return %arg0, %arg1 : i32, i32
  }
  func.func @transform_1(%arg0: i32, %arg1: i32) -> (i32, i32) {
    %c0_i32 = arith.constant 0 : i32
    %c0_i32_0 = arith.constant 0 : i32
    return %arg1, %c0_i32 : i32, i32
  }
  func.func @transform_2(%arg0: i32, %arg1: i32) -> (i32, i32) {
    %c0_i32 = arith.constant 0 : i32
    %c0_i32_0 = arith.constant 0 : i32
    %c0_i32_1 = arith.constant 0 : i32
    return %c0_i32, %c0_i32_0 : i32, i32
  }
  func.func @transform_3(%arg0: i32, %arg1: i32) -> (i32, i32) {
    %c0_i32 = arith.constant 0 : i32
    %c0_i32_0 = arith.constant 0 : i32
    return %arg0, %c0_i32 : i32, i32
  }
}

module attributes {stable_mosaic.version = 11 : i64} {
  func.func @_linear_kernel(%arg0: i32, %arg1: i32, %arg2: memref<8x512xf32, #tpu.memory_space<vmem>>, %arg3: memref<512x512xf32, #tpu.memory_space<vmem>>, %arg4: memref<1x512xf32, #tpu.memory_space<vmem>>, %arg5: memref<8x512xf32, #tpu.memory_space<vmem>>, %arg6: memref<8x512xf32, #tpu.memory_space<vmem>>) attributes {dimension_semantics = [#tpu.dimension_semantics<parallel>, #tpu.dimension_semantics<arbitrary>], iteration_bounds = array<i64: 1, 8>, scalar_prefetch = 0 : i64, scratch_operands = 1 : i64, tpu.core_type = #tpu.core_type<tc>, window_params = [{transform_indices = @transform_0, window_bounds = array<i64: 8, 512>}, {transform_indices = @transform_1, window_bounds = array<i64: 512, 512>}, {pipeline_mode = #tpu.pipeline_mode<synchronous>, transform_indices = @transform_2, window_bounds = array<i64: 1, 512>}, {transform_indices = @transform_3, window_bounds = array<i64: 8, 512>}]} {
    %c0_i32 = arith.constant 0 : i32
    %0 = arith.cmpi eq, %arg1, %c0_i32 : i32
    %1 = arith.extui %0 : i1 to i32
    %c0_i32_0 = arith.constant 0 : i32
    %2 = arith.cmpi ne, %1, %c0_i32_0 : i32
    scf.if %2 {
      %cst_9 = arith.constant 0.000000e+00 : f32
      %12 = vector.broadcast %cst_9 : f32 to vector<8x512xf32>
      %c0_10 = arith.constant 0 : index
      %c0_11 = arith.constant 0 : index
      %13 = vector.load %arg6[%c0_10, %c0_11] : memref<8x512xf32, #tpu.memory_space<vmem>>, vector<8x512xf32>
      tpu.vector_store %arg6[%c0_10, %c0_11], %12 {strides = array<i32>} : memref<8x512xf32, #tpu.memory_space<vmem>>, vector<8x512xf32>,
    } else {
    }
    %c0 = arith.constant 0 : index
    %c0_1 = arith.constant 0 : index
    %3 = vector.load %arg6[%c0, %c0_1] : memref<8x512xf32, #tpu.memory_space<vmem>>, vector<8x512xf32>
    %c0_2 = arith.constant 0 : index
    %c0_3 = arith.constant 0 : index
    %4 = vector.load %arg2[%c0_2, %c0_3] : memref<8x512xf32, #tpu.memory_space<vmem>>, vector<8x512xf32>
    %c0_4 = arith.constant 0 : index
    %c0_5 = arith.constant 0 : index
    %5 = vector.load %arg3[%c0_4, %c0_5] : memref<512x512xf32, #tpu.memory_space<vmem>>, vector<512x512xf32>
    %cst = arith.constant dense<0.000000e+00> : vector<8x512xf32>
    %6 = tpu.matmul %4, %5, %cst {dimension_numbers = #tpu.dot_dimension_numbers<[1], [0], [0], [1], [0, 0, 1, 1], [], []>} : vector<8x512xf32>, vector<512x512xf32>, vector<8x512xf32> -> vector<8x512xf32>
    %7 = arith.addf %3, %6 : vector<8x512xf32>
    %c0_6 = arith.constant 0 : index
    %c0_7 = arith.constant 0 : index
    %8 = vector.load %arg6[%c0_6, %c0_7] : memref<8x512xf32, #tpu.memory_space<vmem>>, vector<8x512xf32>
    tpu.vector_store %arg6[%c0_6, %c0_7], %7 {strides = array<i32>} : memref<8x512xf32, #tpu.memory_space<vmem>>, vector<8x512xf32>,
    %c7_i32 = arith.constant 7 : i32
    %9 = arith.cmpi eq, %arg1, %c7_i32 : i32
    %10 = arith.extui %9 : i1 to i32
    %c0_i32_8 = arith.constant 0 : i32
    %11 = arith.cmpi ne, %10, %c0_i32_8 : i32
    scf.if %11 {
      %c0_9 = arith.constant 0 : index
      %c0_10 = arith.constant 0 : index
      %12 = vector.load %arg6[%c0_9, %c0_10] : memref<8x512xf32, #tpu.memory_space<vmem>>, vector<8x512xf32>
      %c0_11 = arith.constant 0 : index
      %c0_12 = arith.constant 0 : index
      %13 = vector.load %arg4[%c0_11, %c0_12] : memref<1x512xf32, #tpu.memory_space<vmem>>, vector<1x512xf32>
      %14 = vector.broadcast %13 : vector<1x512xf32> to vector<8x512xf32>
      %15 = arith.addf %12, %14 : vector<8x512xf32>
      %cst_13 = arith.constant 0.000000e+00 : f32
      %16 = vector.broadcast %cst_13 : f32 to vector<8x512xf32>
      %17 = arith.maximumf %15, %16 : vector<8x512xf32>
      %c0_14 = arith.constant 0 : index
      %c0_15 = arith.constant 0 : index
      %18 = vector.load %arg5[%c0_14, %c0_15] : memref<8x512xf32, #tpu.memory_space<vmem>>, vector<8x512xf32>
      tpu.vector_store %arg5[%c0_14, %c0_15], %17 {strides = array<i32>} : memref<8x512xf32, #tpu.memory_space<vmem>>, vector<8x512xf32>,
    } else {
    }
    return
  }
  func.func @transform_0(%arg0: i32, %arg1: i32) -> (i32, i32) {
    %c0_i32 = arith.constant 0 : i32
    return %arg0, %arg1 : i32, i32
  }
  func.func @transform_1(%arg0: i32, %arg1: i32) -> (i32, i32) {
    %c0_i32 = arith.constant 0 : i32
    %c0_i32_0 = arith.constant 0 : i32
    return %arg1, %c0_i32 : i32, i32
  }
  func.func @transform_2(%arg0: i32, %arg1: i32) -> (i32, i32) {
    %c0_i32 = arith.constant 0 : i32
    %c0_i32_0 = arith.constant 0 : i32
    %c0_i32_1 = arith.constant 0 : i32
    return %c0_i32, %c0_i32_0 : i32, i32
  }
  func.func @transform_3(%arg0: i32, %arg1: i32) -> (i32, i32) {
    %c0_i32 = arith.constant 0 : i32
    %c0_i32_0 = arith.constant 0 : i32
    return %arg0, %c0_i32 : i32, i32
  }
}

</mosaic_0001>

<bundles_post_ra>
// kernel: siamese_forward.6
= control target key start
LH: loop header
LB: loop body
LE: loop exit
PB: predicated region body
PF: predicated region fallthrough
CT: control target
= control target key end

     0   :  { %10 = vsyncpa [#allocation3], 0  ;;  %s9765_s18 = smov [#allocation2]   ;;  %s12373_s0 = inlined_call_operand.vmem [shape: f32[10,10,8,3], index: 0, kind: input, shape index: {}]   ;;  %s12374_s1 = inlined_call_operand.vmem [shape: f32[9,3,64], index: 1, kind: input, shape index: {}]   ;;  %s12375_s2 = inlined_call_operand.hbm [shape: f32[1,64], index: 2, kind: input, shape index: {}]   ;;  %s12376_s3 = inlined_call_operand.vmem [shape: f32[1,64], index: 3, kind: input, shape index: {}]   ;;  %s12377_s4 = inlined_call_operand.vmem [shape: f32[1,64], index: 4, kind: input, shape index: {}]   ;;  %s12378_s5 = inlined_call_operand.vmem [shape: f32[8,8,8,64], index: 5, kind: output, shape index: {}]  }
   0x1   :  { %s21_s19 = sshll.u32 %s9765_s18, 4  ;;  %s9741_s22 = scalar_lea.hbm %s12375_s2, 16  ;;  %s22_s19 = int_to_ptr.vmem [resolvable:$true] %s21_s19 }
   0x2   :  { %p9742_p0 = scmp.ne.s32.totalorder %s12375_s2, %s9741_s22  ;;  %p9745_p1 = scmp.lt.u32.totalorder %s9741_s22, %s12375_s2 }
   0x4   :  { %p9747_p2 = pnand %p9745_p1, %p9742_p0 }
   0x6   :  { %9750 = shalt.err (!%p9747_p2)
}
   0x7   :  { %s9751_s27 = scalar_lea.vmem %s22_s19, 16  ;;  %s9755_s28 = scalar_lea.vmem %s22_s19, 32 }
   0x8   :  { %p9752_p3 = scmp.ne.s32.totalorder %s22_s19, %s9751_s27  ;;  %p9756_p4 = scmp.lt.s32.totalorder %s22_s19, %s22_s19 }
   0x9   :  { %p9757_p5 = scmp.lt.s32.totalorder %s9755_s28, %s9751_s27 }
   0xb   :  { %p9758_p6 = por %p9757_p5, %p9756_p4 }
   0xd   :  { %p9759_p7 = pnand %p9758_p6, %p9752_p3 }
   0xf   :  { %9762 = shalt.err (!%p9759_p7)
}
  0x10   :  { %24 = dma.hbm_to_vmem [thread:$0]  %s12375_s2, 16, %s22_s19, [#allocation3]  }
  0x11   :  { %9763 = dma.done.wait [#allocation3], 16  }
  0x12   :  { %9764 = vsyncadd [#allocation3], 4294967280  ;;  %vm357_vm0 = vcmask 1042432   ;;  %vm164_vm1 = vcmask 23552   ;;  %v6714_v0 = vld [vmem:[%s12374_s1 + $0x4] sm:$0x7] }
  0x13   :  { %v9814_v1 = vld [vmem:[%s12374_s1 + $0x10] sm:$0x7]  ;;  %8343 = vmatprep.subr.msk.mxu1 %vm357_vm0, %v6714_v0  ;;  %v9827_v3 = vld [vmem:[%s12373_s0 + $0x58] sm:$0xff]  ;;  %v96_v4 = vld [vmem:[%s12374_s1] sm:$0x7]  ;;  %vm6580_vm2 = vcmask 523264  }
  0x14   :  { %12409 = vst [vmem:[#allocation5_spill] sm:$0xff] %v9814_v1  ;;  %v9819_v2 = vld [vmem:[%s12373_s0 + $0x50] sm:$0xff]  ;;  %8735 = vmatprep.subr.msk.mxu0 %vm357_vm0, %v9814_v1  ;;  %8344 = vmatpush3.msk.msra.mxu1 %vm357_vm0, %v6714_v0  ;;  %v9838_v5 = vld [vmem:[%s12373_s0 + $0x60] sm:$0xff]  ;;  %v9853_v7 = vld [vmem:[%s12373_s0 + $0x68] sm:$0xff] }
  0x15   :  { %8345 = vmatprep.mubr.msk.f32.mxu1 %vm164_vm1, %v9819_v2  ;;  %v7299_v6 = vld [vmem:[%s12374_s1 + $0x14] sm:$0x7]  ;;  %8736 = vmatpush3.msk.msra.mxu0 %vm357_vm0, %v9814_v1  ;;  %v9872_v9 = vld [vmem:[%s12373_s0 + $0x78] sm:$0xff]  ;;  %v9885_v10 = vld [vmem:[%s12373_s0 + $0x80] sm:$0xff] }
  0x16   :  { %8737 = vmatprep.mubr.msk.f32.mxu0 %vm164_vm1, %v9827_v3  ;;  %8346 = vmatmul.mubr.msk.f32.vlgmr.msra.gmra.mrb[0].mxu1 %vm164_vm1, %v9827_v3  ;;  %v9863_v8 = vld [vmem:[%s12373_s0 + $0x70] sm:$0xff]  ;;  %v9890_v11 = vld [vmem:[%s12373_s0 + $0x88] sm:$0xff]  ;;  %v9908_v13 = vld [vmem:[%s12373_s0 + $0xa0] sm:$0xff] }
  0x17   :  { %8441 = vmatprep.subr.msk.mxu1 %vm357_vm0, %v96_v4  ;;  %8738 = vmatmul.mubr.msk.f32.vlgmr.msra.gmra.mrb[0].mxu0 %vm164_vm1, %v9838_v5  ;;  %v9903_v12 = vld [vmem:[%s12373_s0 + $0x90] sm:$0xff]  ;;  %v9913_v14 = vld [vmem:[%s12374_s1 + $0x18] sm:$0x7]  ;;  %v9918_v15 = vld [vmem:[%s12373_s0 + $0xa8] sm:$0xff] }
  0x18   :  { %8833 = vmatprep.subr.msk.mxu0 %vm357_vm0, %v7299_v6  ;;  %8442 = vmatpush3.msk.msra.mxu1 %vm357_vm0, %v96_v4  ;;  %12410 = vst [vmem:[#allocation6_spill] sm:$0xff] %v9903_v12  ;;  %v9933_v16 = vld [vmem:[%s12373_s0 + $0xb0] sm:$0xff]  ;;  %v9938_v17 = vld [vmem:[%s12373_s0 + $0xb8] sm:$0xff]  ;;  %v9951_v18 = vld [vmem:[%s12373_s0 + $0xc0] sm:$0xff] }
  0x19   :  { %8834 = vmatpush3.msk.msra.mxu0 %vm357_vm0, %v7299_v6  ;;  %8348 = vmatprep.mubr.msk.f32.mxu1 %vm164_vm1, %v9838_v5  ;;  %v9956_v19 = vld [vmem:[%s12373_s0 + $0xc8] sm:$0xff]  ;;  %v9974_v21 = vld [vmem:[%s12373_s0 + $0xd0] sm:$0xff]  ;;  %v9981_v22 = vld [vmem:[%s12373_s0 + $0xd8] sm:$0xff] }
  0x1a   :  { %8740 = vmatprep.mubr.msk.f32.mxu0 %vm164_vm1, %v9853_v7  ;;  %8349 = vmatmul.mubr.msk.f32.gmra.mrb[2].mxu1 %vm164_vm1, %v9853_v7  ;;  %v9967_v20 = vld [vmem:[%s12374_s1 + $0x8] sm:$0x7]  ;;  %v9994_v23 = vld [vmem:[%s12373_s0 + $0xe0] sm:$0xff]  ;;  %v9999_v24 = vld [vmem:[%s12373_s0 + $0xf0] sm:$0xff] }
  0x1b   :  { %8741 = vmatmul.mubr.msk.f32.gmra.mrb[2].mxu0 %vm164_vm1, %v9863_v8  ;;  %8351 = vmatprep.mubr.msk.f32.mxu1 %vm164_vm1, %v9863_v8  ;;  %12411 = vst [vmem:[#allocation7_spill] sm:$0xff] %v9994_v23  ;;  %v10004_v25 = vld [vmem:[%s12373_s0 + $0xf8] sm:$0xff]  ;;  %v10017_v26 = vld [vmem:[%s12373_s0 + $0x100] sm:$0xff]  ;;  %v10022_v27 = vld [vmem:[%s12373_s0 + $0x108] sm:$0xff] }
  0x1c   :  { %8743 = vmatprep.mubr.msk.f32.mxu0 %vm164_vm1, %v9872_v9  ;;  %8931 = vmatprep.subr.msk.mxu0 %vm357_vm0, %v9913_v14  ;;  %v10035_v28 = vld [vmem:[%s12373_s0 + $0x110] sm:$0xff]  ;;  %v10040_v29 = vld [vmem:[%s12373_s0 + $0x118] sm:$0xff]  ;;  %v10053_v30 = vld [vmem:[%s12373_s0 + $0x120] sm:$0xff] }
  0x1d   :  { %8539 = vmatprep.subr.msk.mxu1 %vm357_vm0, %v9967_v20  ;;  %v10058_v31 = vld [vmem:[%s12373_s0 + $0x128] sm:$0xff]  ;;  %v10071_v32 = vld [vmem:[%s12373_s0 + $0x130] sm:$0xff]  ;;  %v10076_v33 = vld [vmem:[%s12373_s0 + $0x140] sm:$0xff] }
  0x1e   :  { %8352 = vmatmul.mubr.msk.f32.gmra.mrb[4].mxu1 %vm164_vm1, %v9872_v9  ;;  %12412 = vst [vmem:[#allocation8_spill] sm:$0xff] %v10071_v32  ;;  %v10081_v34 = vld [vmem:[%s12373_s0 + $0x148] sm:$0xff]  ;;  %v10094_v35 = vld [vmem:[%s12373_s0 + $0x150] sm:$0xff]  ;;  %v10099_v36 = vld [vmem:[%s12373_s0 + $0x158] sm:$0xff] }
  0x1f   :  { %8744 = vmatmul.mubr.msk.f32.gmra.mrb[4].mxu0 %vm164_vm1, %v9885_v10  ;;  %8354 = vmatprep.mubr.msk.f32.mxu1 %vm164_vm1, %v9885_v10  ;;  %v10112_v37 = vld [vmem:[%s12373_s0 + $0x160] sm:$0xff]  ;;  %v10117_v38 = vld [vmem:[%s12373_s0 + $0x168] sm:$0xff]  ;;  %v10130_v39 = vld [vmem:[%s12373_s0 + $0x170] sm:$0xff] }
  0x20   :  { %8746 = vmatprep.mubr.msk.f32.mxu0 %vm164_vm1, %v9890_v11  ;;  %v10135_v40 = vld [vmem:[%s12373_s0 + $0x178] sm:$0xff]  ;;  %v10148_v41 = vld [vmem:[%s12373_s0 + $0x180] sm:$0xff]  ;;  %v10153_v42 = vld [vmem:[%s12373_s0 + $0x190] sm:$0xff] }
  0x21   :  { %12413 = vst [vmem:[#allocation9_spill] sm:$0xff] %v10148_v41  ;;  %v10164_v43 = vld [vmem:[%s12373_s0 + $0x198] sm:$0xff]  ;;  %v10171_v44 = vld [vmem:[%s12373_s0 + $0x1a0] sm:$0xff]  ;;  %v10182_v45 = vld [vmem:[%s12373_s0 + $0x1a8] sm:$0xff] }
  0x22   :  { %8355 = vmatmul.mubr.msk.f32.gmra.mrb[6].mxu1 %vm164_vm1, %v9890_v11  ;;  %v10187_v46 = vld [vmem:[%s12374_s1 + $0x1c] sm:$0x7]  ;;  %v10196_v47 = vld [vmem:[%s12373_s0 + $0x1b0] sm:$0xff]  ;;  %v10216_v49 = vld [vmem:[%s12373_s0 + $0x1c0] sm:$0xff] }
  0x23   :  { %8747 = vmatmul.mubr.msk.f32.gmra.mrb[6].mxu0 %vm164_vm1, %v9903_v12  ;;  %8357 = vmatprep.mubr.msk.f32.mxu1 %vm164_vm1, %v9908_v13  ;;  %v10209_v48 = vld [vmem:[%s12373_s0 + $0x1b8] sm:$0xff]  ;;  %12415 = vst [vmem:[#allocation11_spill] sm:$0xff] %v10216_v49  ;;  %v10227_v50 = vld [vmem:[%s12373_s0 + $0x1c8] sm:$0xff]  ;;  %v10234_v51 = vld [vmem:[%s12373_s0 + $0x1e0] sm:$0xff] }
  0x24   :  { %8749 = vmatprep.mubr.msk.f32.mxu0 %vm164_vm1, %v9918_v15  ;;  %12414 = vst [vmem:[#allocation10_spill] sm:$0xff] %v10209_v48  ;;  %12416 = vst [vmem:[#allocation12_spill] sm:$0xff] %v10227_v50  ;;  %v10245_v52 = vld [vmem:[%s12373_s0 + $0x1e8] sm:$0xff]  ;;  %v10252_v53 = vld [vmem:[%s12373_s0 + $0x1f0] sm:$0xff] }
  0x25   :  { %12417 = vst [vmem:[#allocation13_spill] sm:$0xff] %v10234_v51  ;;  %v10263_v54 = vld [vmem:[%s12373_s0 + $0x1f8] sm:$0xff]  ;;  %v10270_v55 = vld [vmem:[%s12373_s0 + $0x200] sm:$0xff]  ;;  %v10281_v56 = vld [vmem:[%s12373_s0 + $0x208] sm:$0xff] }
  0x26   :  { %8358 = vmatmul.mubr.msk.f32.gmra.mrb[8].mxu1 %vm164_vm1, %v9918_v15  ;;  %12418 = vst [vmem:[#allocation14_spill] sm:$0xff] %v10270_v55  ;;  %12419 = vst [vmem:[#allocation15_spill] sm:$0xff] %v10281_v56  ;;  %v10288_v57 = vld [vmem:[%s12373_s0 + $0x210] sm:$0xff]  ;;  %v10299_v58 = vld [vmem:[%s12373_s0 + $0x218] sm:$0xff] }
  0x27   :  { %8750 = vmatmul.mubr.msk.f32.gmra.mrb[8].mxu0 %vm164_vm1, %v9933_v16  ;;  %8360 = vmatprep.mubr.msk.f32.mxu1 %vm164_vm1, %v9933_v16  ;;  %v10306_v59 = vld [vmem:[%s12373_s0 + $0x230] sm:$0xff]  ;;  %v10317_v60 = vld [vmem:[%s12373_s0 + $0x238] sm:$0xff]  ;;  %v10324_v61 = vld [vmem:[%s12373_s0 + $0x240] sm:$0xff] }
  0x28   :  { %8752 = vmatprep.mubr.msk.f32.mxu0 %vm164_vm1, %v9938_v17  ;;  %12420 = vst [vmem:[#allocation16_spill] sm:$0xff] %v10306_v59  ;;  %v10335_v62 = vld [vmem:[%s12373_s0 + $0x248] sm:$0xff]  ;;  %v10342_v63 = vld [vmem:[%s12373_s0 + $0x250] sm:$0xff]  ;;  %v10353_v0 = vld [vmem:[%s12373_s0 + $0x258] sm:$0xff] }
  0x29   :  { %v10360_v4 = vld [vmem:[%s12373_s0 + $0x260] sm:$0xff]  ;;  %v10371_v6 = vld [vmem:[%s12373_s0 + $0x268] sm:$0xff]  ;;  %v10450_v12 = vld [vmem:[%s12373_s0 + $0x1d0] sm:$0xff] }
  0x2a   :  { %8361 = vmatmul.mubr.msk.f32.gmra.mrb[10].mxu1 %vm164_vm1, %v9938_v17  ;;  %v10389_v1 = vld [vmem:[%s12373_s0 + $0x288] sm:$0xff]  ;;  %12425 = vst [vmem:[#allocation21_spill] sm:$0xff] %v10450_v12 }
  0x2b   :  { %8753 = vmatmul.mubr.msk.f32.gmra.mrb[10].mxu0 %vm164_vm1, %v9951_v18  ;;  %8363 = vmatprep.mubr.msk.f32.mxu1 %vm164_vm1, %v9951_v18 }
  0x2c   :  { %8755 = vmatprep.mubr.msk.f32.mxu0 %vm164_vm1, %v9956_v19 }
  0x2e   :  { %8364 = vmatmul.mubr.msk.f32.gmra.mrb[12].mxu1 %vm164_vm1, %v9956_v19 }
  0x2f   :  { %8756 = vmatmul.mubr.msk.f32.gmra.mrb[12].mxu0 %vm164_vm1, %v9974_v21  ;;  %8366 = vmatprep.mubr.msk.f32.mxu1 %vm164_vm1, %v9974_v21 }
  0x30   :  { %8758 = vmatprep.mubr.msk.f32.mxu0 %vm164_vm1, %v9981_v22 }
  0x32   :  { %8367 = vmatmul.mubr.msk.f32.gmra.mrb[14].mxu1 %vm164_vm1, %v9981_v22 }
  0x33   :  { %8759 = vmatmul.mubr.msk.f32.gmra.mrb[14].mxu0 %vm164_vm1, %v9994_v23  ;;  %8369 = vmatprep.mubr.msk.f32.mxu1 %vm164_vm1, %v9999_v24 }
  0x34   :  { %8761 = vmatprep.mubr.msk.f32.mxu0 %vm164_vm1, %v10004_v25 }
  0x36   :  { %8370 = vmatmul.mubr.msk.f32.gmra.mrb[16].mxu1 %vm164_vm1, %v10004_v25 }
  0x37   :  { %8762 = vmatmul.mubr.msk.f32.gmra.mrb[16].mxu0 %vm164_vm1, %v10017_v26  ;;  %8372 = vmatprep.mubr.msk.f32.mxu1 %vm164_vm1, %v10017_v26 }
  0x38   :  { %8764 = vmatprep.mubr.msk.f32.mxu0 %vm164_vm1, %v10022_v27 }
  0x3a   :  { %8373 = vmatmul.mubr.msk.f32.gmra.mrb[18].mxu1 %vm164_vm1, %v10022_v27 }
  0x3b   :  { %8765 = vmatmul.mubr.msk.f32.gmra.mrb[18].mxu0 %vm164_vm1, %v10035_v28  ;;  %8375 = vmatprep.mubr.msk.f32.mxu1 %vm164_vm1, %v10035_v28 }
  0x3c   :  { %8767 = vmatprep.mubr.msk.f32.mxu0 %vm164_vm1, %v10040_v29 }
  0x3e   :  { %8376 = vmatmul.mubr.msk.f32.gmra.mrb[20].mxu1 %vm164_vm1, %v10040_v29 }
  0x3f   :  { %8768 = vmatmul.mubr.msk.f32.gmra.mrb[20].mxu0 %vm164_vm1, %v10053_v30  ;;  %8378 = vmatprep.mubr.msk.f32.mxu1 %vm164_vm1, %v10053_v30 }
  0x40   :  { %8770 = vmatprep.mubr.msk.f32.mxu0 %vm164_vm1, %v10058_v31 }
  0x42   :  { %8379 = vmatmul.mubr.msk.f32.gmra.mrb[22].mxu1 %vm164_vm1, %v10058_v31 }
  0x43   :  { %8771 = vmatmul.mubr.msk.f32.gmra.mrb[22].mxu0 %vm164_vm1, %v10071_v32  ;;  %8381 = vmatprep.mubr.msk.f32.mxu1 %vm164_vm1, %v10076_v33 }
  0x44   :  { %8773 = vmatprep.mubr.msk.f32.mxu0 %vm164_vm1, %v10081_v34 }
  0x46   :  { %8382 = vmatmul.mubr.msk.f32.gmra.mrb[24].mxu1 %vm164_vm1, %v10081_v34 }
  0x47   :  { %8774 = vmatmul.mubr.msk.f32.gmra.mrb[24].mxu0 %vm164_vm1, %v10094_v35  ;;  %8384 = vmatprep.mubr.msk.f32.mxu1 %vm164_vm1, %v10094_v35 }
  0x48   :  { %8776 = vmatprep.mubr.msk.f32.mxu0 %vm164_vm1, %v10099_v36 }
  0x4a   :  { %8385 = vmatmul.mubr.msk.f32.gmra.mrb[26].mxu1 %vm164_vm1, %v10099_v36 }
  0x4b   :  { %8777 = vmatmul.mubr.msk.f32.gmra.mrb[26].mxu0 %vm164_vm1, %v10112_v37  ;;  %8387 = vmatprep.mubr.msk.f32.mxu1 %vm164_vm1, %v10112_v37 }
  0x4c   :  { %8779 = vmatprep.mubr.msk.f32.mxu0 %vm164_vm1, %v10117_v38 }
  0x4e   :  { %8388 = vmatmul.mubr.msk.f32.gmra.mrb[28].mxu1 %vm164_vm1, %v10117_v38 }
  0x4f   :  { %8780 = vmatmul.mubr.msk.f32.gmra.mrb[28].mxu0 %vm164_vm1, %v10130_v39  ;;  %8390 = vmatprep.mubr.msk.f32.mxu1 %vm164_vm1, %v10130_v39 }
  0x50   :  { %8782 = vmatprep.mubr.msk.f32.mxu0 %vm164_vm1, %v10135_v40 }
  0x52   :  { %8391 = vmatmul.mubr.msk.f32.gmra.mrb[30].mxu1 %vm164_vm1, %v10135_v40 }
  0x53   :  { %8783 = vmatmul.mubr.msk.f32.gmra.mrb[30].mxu0 %vm164_vm1, %v10148_v41  ;;  %8393 = vmatprep.mubr.msk.f32.mxu1 %vm164_vm1, %v10153_v42 }
  0x54   :  { %8835 = vmatprep.mubr.msk.f32.mxu0 %vm164_vm1, %v9918_v15 }
  0x56   :  { %8394 = vmatmul.mubr.msk.f32.gmra.mrb[32].mxu1 %vm164_vm1, %v10164_v43 }
  0x57   :  { %8836 = vmatmul.mubr.msk.f32.vlgmr.msra.gmra.mrb[0].mxu0 %vm164_vm1, %v9933_v16  ;;  %8396 = vmatprep.mubr.msk.f32.mxu1 %vm164_vm1, %v10171_v44 }
  0x58   :  { %8932 = vmatpush3.msk.msra.mxu0 %vm357_vm0, %v9913_v14  ;;  %8838 = vmatprep.mubr.msk.f32.mxu0 %vm164_vm1, %v9938_v17  ;;  %v10378_v14 = vld [vmem:[%s12373_s0 + $0x280] sm:$0xff] }
  0x59   :  { %9029 = vmatprep.subr.msk.mxu0 %vm357_vm0, %v10187_v46  ;;  %12421 = vst [vmem:[#allocation17_spill] sm:$0xff] %v10378_v14 }
  0x5a   :  { %8397 = vmatmul.mubr.msk.f32.gmra.mrb[34].mxu1 %vm164_vm1, %v10182_v45 }
  0x5b   :  { %8839 = vmatmul.mubr.msk.f32.gmra.mrb[2].mxu0 %vm164_vm1, %v9951_v18  ;;  %8399 = vmatprep.mubr.msk.f32.mxu1 %vm164_vm1, %v10196_v47 }
  0x5c   :  { %8841 = vmatprep.mubr.msk.f32.mxu0 %vm164_vm1, %v9956_v19 }
  0x5e   :  { %8400 = vmatmul.mubr.msk.f32.gmra.mrb[36].mxu1 %vm164_vm1, %v10209_v48 }
  0x5f   :  { %8842 = vmatmul.mubr.msk.f32.gmra.mrb[4].mxu0 %vm164_vm1, %v9974_v21  ;;  %8402 = vmatprep.mubr.msk.f32.mxu1 %vm164_vm1, %v10216_v49 }
  0x60   :  { %8844 = vmatprep.mubr.msk.f32.mxu0 %vm164_vm1, %v9981_v22 }
  0x62   :  { %8403 = vmatmul.mubr.msk.f32.gmra.mrb[38].mxu1 %vm164_vm1, %v10227_v50 }
  0x63   :  { %8845 = vmatmul.mubr.msk.f32.gmra.mrb[6].mxu0 %vm164_vm1, %v9994_v23  ;;  %8405 = vmatprep.mubr.msk.f32.mxu1 %vm164_vm1, %v10234_v51  ;;  %v10432_v23 = vld [vmem:[%s12373_s0 + $0x2b0] sm:$0xff]  ;;  %v10443_v51 = vld [vmem:[%s12373_s0 + $0x2b8] sm:$0xff] }
  0x64   :  { %8847 = vmatprep.mubr.msk.f32.mxu0 %vm164_vm1, %v10004_v25  ;;  %12423 = vst [vmem:[#allocation19_spill] sm:$0xff] %v10432_v23  ;;  %12424 = vst [vmem:[#allocation20_spill] sm:$0xff] %v10443_v51 }
  0x66   :  { %8406 = vmatmul.mubr.msk.f32.gmra.mrb[40].mxu1 %vm164_vm1, %v10245_v52 }
  0x67   :  { %8848 = vmatmul.mubr.msk.f32.gmra.mrb[8].mxu0 %vm164_vm1, %v10017_v26  ;;  %8408 = vmatprep.mubr.msk.f32.mxu1 %vm164_vm1, %v10252_v53 }
  0x68   :  { %8850 = vmatprep.mubr.msk.f32.mxu0 %vm164_vm1, %v10022_v27 }
  0x6a   :  { %8409 = vmatmul.mubr.msk.f32.gmra.mrb[42].mxu1 %vm164_vm1, %v10263_v54 }
  0x6b   :  { %8851 = vmatmul.mubr.msk.f32.gmra.mrb[10].mxu0 %vm164_vm1, %v10035_v28  ;;  %8411 = vmatprep.mubr.msk.f32.mxu1 %vm164_vm1, %v10270_v55 }
  0x6c   :  { %8853 = vmatprep.mubr.msk.f32.mxu0 %vm164_vm1, %v10040_v29 }
  0x6e   :  { %8412 = vmatmul.mubr.msk.f32.gmra.mrb[44].mxu1 %vm164_vm1, %v10281_v56 }
  0x6f   :  { %8854 = vmatmul.mubr.msk.f32.gmra.mrb[12].mxu0 %vm164_vm1, %v10053_v30  ;;  %8414 = vmatprep.mubr.msk.f32.mxu1 %vm164_vm1, %v10288_v57 }
  0x70   :  { %8856 = vmatprep.mubr.msk.f32.mxu0 %vm164_vm1, %v10058_v31 }
  0x72   :  { %8415 = vmatmul.mubr.msk.f32.gmra.mrb[46].mxu1 %vm164_vm1, %v10299_v58 }
  0x73   :  { %8857 = vmatmul.mubr.msk.f32.gmra.mrb[14].mxu0 %vm164_vm1, %v10071_v32  ;;  %8417 = vmatprep.mubr.msk.f32.mxu1 %vm164_vm1, %v10306_v59  ;;  %v10396_v32 = vld [vmem:[%s12373_s0 + $0x290] sm:$0xff]  ;;  %v10425_v59 = vld [vmem:[%s12373_s0 + $0x2a8] sm:$0xff] }
  0x74   :  { %8859 = vmatprep.mubr.msk.f32.mxu0 %vm164_vm1, %v10081_v34  ;;  %12422 = vst [vmem:[#allocation18_spill] sm:$0xff] %v10425_v59 }
  0x76   :  { %8418 = vmatmul.mubr.msk.f32.gmra.mrb[48].mxu1 %vm164_vm1, %v10317_v60 }
  0x77   :  { %8860 = vmatmul.mubr.msk.f32.gmra.mrb[16].mxu0 %vm164_vm1, %v10094_v35  ;;  %8420 = vmatprep.mubr.msk.f32.mxu1 %vm164_vm1, %v10324_v61 }
  0x78   :  { %8862 = vmatprep.mubr.msk.f32.mxu0 %vm164_vm1, %v10099_v36 }
  0x7a   :  { %8421 = vmatmul.mubr.msk.f32.gmra.mrb[50].mxu1 %vm164_vm1, %v10335_v62 }
  0x7b   :  { %8863 = vmatmul.mubr.msk.f32.gmra.mrb[18].mxu0 %vm164_vm1, %v10112_v37  ;;  %8423 = vmatprep.mubr.msk.f32.mxu1 %vm164_vm1, %v10342_v63 }
  0x7c   :  { %8865 = vmatprep.mubr.msk.f32.mxu0 %vm164_vm1, %v10117_v38 }
  0x7e   :  { %8424 = vmatmul.mubr.msk.f32.gmra.mrb[52].mxu1 %vm164_vm1, %v10353_v0 }
  0x7f   :  { %8866 = vmatmul.mubr.msk.f32.gmra.mrb[20].mxu0 %vm164_vm1, %v10130_v39  ;;  %8426 = vmatprep.mubr.msk.f32.mxu1 %vm164_vm1, %v10360_v4 }
  0x80   :  { %8868 = vmatprep.mubr.msk.f32.mxu0 %vm164_vm1, %v10135_v40 }
  0x82   :  { %8427 = vmatmul.mubr.msk.f32.gmra.mrb[54].mxu1 %vm164_vm1, %v10371_v6 }
  0x83   :  { %8869 = vmatmul.mubr.msk.f32.gmra.mrb[22].mxu0 %vm164_vm1, %v10148_v41  ;;  %8429 = vmatprep.mubr.msk.f32.mxu1 %vm164_vm1, %v10378_v14  ;;  %v10407_v14 = vld [vmem:[%s12373_s0 + $0x298] sm:$0xff]  ;;  %v10414_v41 = vld [vmem:[%s12373_s0 + $0x2a0] sm:$0xff] }
  0x84   :  { %8871 = vmatprep.mubr.msk.f32.mxu0 %vm164_vm1, %v10164_v43 }
  0x86   :  { %8430 = vmatmul.mubr.msk.f32.gmra.mrb[56].mxu1 %vm164_vm1, %v10389_v1 }
  0x87   :  { %8872 = vmatmul.mubr.msk.f32.gmra.mrb[24].mxu0 %vm164_vm1, %v10171_v44  ;;  %8432 = vmatprep.mubr.msk.f32.mxu1 %vm164_vm1, %v10396_v32 }
  0x88   :  { %8874 = vmatprep.mubr.msk.f32.mxu0 %vm164_vm1, %v10182_v45 }
  0x8a   :  { %8433 = vmatmul.mubr.msk.f32.gmra.mrb[58].mxu1 %vm164_vm1, %v10407_v14 }
  0x8b   :  { %8875 = vmatmul.mubr.msk.f32.gmra.mrb[26].mxu0 %vm164_vm1, %v10196_v47  ;;  %8435 = vmatprep.mubr.msk.f32.mxu1 %vm164_vm1, %v10414_v41 }
  0x8c   :  { %8877 = vmatprep.mubr.msk.f32.mxu0 %vm164_vm1, %v10209_v48  ;;  %v10468_v48 = vld [vmem:[%s12373_s0 + $0x10] sm:$0xff] }
  0x8e   :  { %8436 = vmatmul.mubr.msk.f32.gmra.mrb[60].mxu1 %vm164_vm1, %v10425_v59 }
  0x8f   :  { %8878 = vmatmul.mubr.msk.f32.gmra.mrb[28].mxu0 %vm164_vm1, %v10216_v49  ;;  %8438 = vmatprep.mubr.msk.f32.mxu1 %vm164_vm1, %v10432_v23  ;;  %v32_v49 = vld [vmem:[%s12373_s0] sm:$0xff] }
  0x90   :  { %8880 = vmatprep.mubr.msk.f32.mxu0 %vm164_vm1, %v10227_v50  ;;  %v33_v50 = vld [vmem:[%s12373_s0 + $0x8] sm:$0xff] }
  0x92   :  { %8439 = vmatmul.mubr.msk.f32.gmra.mrb[62].mxu1 %vm164_vm1, %v10443_v51 }
  0x93   :  { %8881 = vmatmul.mubr.msk.f32.gmra.mrb[30].mxu0 %vm164_vm1, %v10450_v12  ;;  %8443 = vmatprep.mubr.msk.f32.mxu1 %vm164_vm1, %v32_v49  ;;  %v10474_v12 = vld [vmem:[%s12374_s1 + $0xc] sm:$0x7]  ;;  %v10483_v49 = vld [vmem:[%s12373_s0 + $0x18] sm:$0xff] }
  0x94   :  { %8883 = vmatprep.mubr.msk.f32.mxu0 %vm164_vm1, %v10245_v52  ;;  %12426 = vst [vmem:[#allocation22_spill] sm:$0xff] %v10474_v12 }
  0x96   :  { %8444 = vmatmul.mubr.msk.f32.vlgmr.msra.gmra.mrb[0].mxu1 %vm164_vm1, %v33_v50  ;;  %v10492_v50 = vld [vmem:[%s12373_s0 + $0x20] sm:$0xff] }
  0x97   :  { %8884 = vmatmul.mubr.msk.f32.gmra.mrb[32].mxu0 %vm164_vm1, %v10252_v53  ;;  %8540 = vmatpush3.msk.msra.mxu1 %vm357_vm0, %v9967_v20  ;;  %v10505_v20 = vld [vmem:[%s12373_s0 + $0x28] sm:$0xff] }
  0x98   :  { %8446 = vmatprep.mubr.msk.f32.mxu1 %vm164_vm1, %v10468_v48  ;;  %8886 = vmatprep.mubr.msk.f32.mxu0 %vm164_vm1, %v10263_v54 }
  0x99   :  { %8637 = vmatprep.subr.msk.mxu1 %vm357_vm0, %v10474_v12  ;;  %v10512_v12 = vld [vmem:[%s12373_s0 + $0x30] sm:$0xff] }
  0x9a   :  { %8447 = vmatmul.mubr.msk.f32.gmra.mrb[2].mxu1 %vm164_vm1, %v10483_v49 }
  0x9b   :  { %8887 = vmatmul.mubr.msk.f32.gmra.mrb[34].mxu0 %vm164_vm1, %v10270_v55  ;;  %8449 = vmatprep.mubr.msk.f32.mxu1 %vm164_vm1, %v10492_v50  ;;  %v10523_v55 = vld [vmem:[%s12373_s0 + $0x38] sm:$0xff] }
  0x9c   :  { %8889 = vmatprep.mubr.msk.f32.mxu0 %vm164_vm1, %v10281_v56  ;;  %v10530_v56 = vld [vmem:[%s12373_s0 + $0x220] sm:$0xff] }
  0x9e   :  { %8450 = vmatmul.mubr.msk.f32.gmra.mrb[4].mxu1 %vm164_vm1, %v10505_v20 }
  0x9f   :  { %8890 = vmatmul.mubr.msk.f32.gmra.mrb[36].mxu0 %vm164_vm1, %v10288_v57  ;;  %8452 = vmatprep.mubr.msk.f32.mxu1 %vm164_vm1, %v10512_v12 }
  0xa0   :  { %8892 = vmatprep.mubr.msk.f32.mxu0 %vm164_vm1, %v10299_v58 }
  0xa2   :  { %8453 = vmatmul.mubr.msk.f32.gmra.mrb[6].mxu1 %vm164_vm1, %v10523_v55 }
  0xa3   :  { %8893 = vmatmul.mubr.msk.f32.gmra.mrb[38].mxu0 %vm164_vm1, %v10530_v56  ;;  %8455 = vmatprep.mubr.msk.f32.mxu1 %vm164_vm1, %v9819_v2  ;;  %v10567_v2 = vld [vmem:[%s12373_s0 + $0x270] sm:$0xff] }
  0xa4   :  { %8895 = vmatprep.mubr.msk.f32.mxu0 %vm164_vm1, %v10317_v60 }
  0xa6   :  { %8456 = vmatmul.mubr.msk.f32.gmra.mrb[8].mxu1 %vm164_vm1, %v9827_v3  ;;  %v7290_v3 = vld [vmem:[%s12373_s0 + $0x2c0] sm:$0xff] }
  0xa7   :  { %8896 = vmatmul.mubr.msk.f32.gmra.mrb[40].mxu0 %vm164_vm1, %v10324_v61  ;;  %8458 = vmatprep.mubr.msk.f32.mxu1 %vm164_vm1, %v9838_v5 }
  0xa8   :  { %8898 = vmatprep.mubr.msk.f32.mxu0 %vm164_vm1, %v10335_v62 }
  0xaa   :  { %8459 = vmatmul.mubr.msk.f32.gmra.mrb[10].mxu1 %vm164_vm1, %v9853_v7 }
  0xab   :  { %8899 = vmatmul.mubr.msk.f32.gmra.mrb[42].mxu0 %vm164_vm1, %v10342_v63  ;;  %8461 = vmatprep.mubr.msk.f32.mxu1 %vm164_vm1, %v9863_v8 }
  0xac   :  { %8901 = vmatprep.mubr.msk.f32.mxu0 %vm164_vm1, %v10353_v0 }
  0xae   :  { %8462 = vmatmul.mubr.msk.f32.gmra.mrb[12].mxu1 %vm164_vm1, %v9872_v9 }
  0xaf   :  { %8902 = vmatmul.mubr.msk.f32.gmra.mrb[44].mxu0 %vm164_vm1, %v10360_v4  ;;  %8464 = vmatprep.mubr.msk.f32.mxu1 %vm164_vm1, %v9885_v10 }
  0xb0   :  { %8904 = vmatprep.mubr.msk.f32.mxu0 %vm164_vm1, %v10371_v6 }
  0xb2   :  { %8465 = vmatmul.mubr.msk.f32.gmra.mrb[14].mxu1 %vm164_vm1, %v9890_v11 }
  0xb3   :  { %8905 = vmatmul.mubr.msk.f32.gmra.mrb[46].mxu0 %vm164_vm1, %v10567_v2  ;;  %8467 = vmatprep.mubr.msk.f32.mxu1 %vm164_vm1, %v9908_v13 }
  0xb4   :  { %8907 = vmatprep.mubr.msk.f32.mxu0 %vm164_vm1, %v10389_v1 }
  0xb6   :  { %8468 = vmatmul.mubr.msk.f32.gmra.mrb[16].mxu1 %vm164_vm1, %v9918_v15 }
  0xb7   :  { %8908 = vmatmul.mubr.msk.f32.gmra.mrb[48].mxu0 %vm164_vm1, %v10396_v32  ;;  %8470 = vmatprep.mubr.msk.f32.mxu1 %vm164_vm1, %v9933_v16 }
  0xb8   :  { %8910 = vmatprep.mubr.msk.f32.mxu0 %vm164_vm1, %v10407_v14 }
  0xba   :  { %8471 = vmatmul.mubr.msk.f32.gmra.mrb[18].mxu1 %vm164_vm1, %v9938_v17 }
  0xbb   :  { %8911 = vmatmul.mubr.msk.f32.gmra.mrb[50].mxu0 %vm164_vm1, %v10414_v41  ;;  %8473 = vmatprep.mubr.msk.f32.mxu1 %vm164_vm1, %v9951_v18 }
  0xbc   :  { %8913 = vmatprep.mubr.msk.f32.mxu0 %vm164_vm1, %v10425_v59  ;;  %v10607_v59 = vld [vmem:[%s12373_s0 + $0x2d8] sm:$0xff] }
  0xbd   :  { %12427 = vst [vmem:[#allocation23_spill] sm:$0xff] %v10607_v59 }
  0xbe   :  { %8474 = vmatmul.mubr.msk.f32.gmra.mrb[20].mxu1 %vm164_vm1, %v9956_v19 }
  0xbf   :  { %8914 = vmatmul.mubr.msk.f32.gmra.mrb[52].mxu0 %vm164_vm1, %v10432_v23  ;;  %8476 = vmatprep.mubr.msk.f32.mxu1 %vm164_vm1, %v9974_v21  ;;  %v10624_v23 = vld [vmem:[%s12373_s0 + $0x2e8] sm:$0xff] }
  0xc0   :  { %8916 = vmatprep.mubr.msk.f32.mxu0 %vm164_vm1, %v10443_v51  ;;  %v10619_v51 = vld [vmem:[%s12373_s0 + $0x2e0] sm:$0xff]  ;;  %12429 = vst [vmem:[#allocation25_spill] sm:$0xff] %v10624_v23 }
  0xc1   :  { %12428 = vst [vmem:[#allocation24_spill] sm:$0xff] %v10619_v51 }
  0xc2   :  { %8477 = vmatmul.mubr.msk.f32.gmra.mrb[22].mxu1 %vm164_vm1, %v9981_v22 }
  0xc3   :  { %8917 = vmatmul.mubr.msk.f32.gmra.mrb[54].mxu0 %vm164_vm1, %v7290_v3  ;;  %8479 = vmatprep.mubr.msk.f32.mxu1 %vm164_vm1, %v9999_v24  ;;  %v10637_v3 = vld [vmem:[%s12373_s0 + $0x2f0] sm:$0xff] }
  0xc4   :  { %8919 = vmatprep.mubr.msk.f32.mxu0 %vm164_vm1, %v10607_v59  ;;  %v10642_v59 = vld [vmem:[%s12373_s0 + $0x2f8] sm:$0xff] }
  0xc5   :  { %12430 = vst [vmem:[#allocation26_spill] sm:$0xff] %v10642_v59 }
  0xc6   :  { %8480 = vmatmul.mubr.msk.f32.gmra.mrb[24].mxu1 %vm164_vm1, %v10004_v25 }
  0xc7   :  { %8920 = vmatmul.mubr.msk.f32.gmra.mrb[56].mxu0 %vm164_vm1, %v10619_v51  ;;  %8482 = vmatprep.mubr.msk.f32.mxu1 %vm164_vm1, %v10017_v26  ;;  %v10660_v51 = vld [vmem:[%s12373_s0 + $0x308] sm:$0xff] }
  0xc8   :  { %8922 = vmatprep.mubr.msk.f32.mxu0 %vm164_vm1, %v10624_v23  ;;  %v10655_v23 = vld [vmem:[%s12373_s0 + $0x300] sm:$0xff]  ;;  %12431 = vst [vmem:[#allocation27_spill] sm:$0xff] %v10660_v51 }
  0xca   :  { %8483 = vmatmul.mubr.msk.f32.gmra.mrb[26].mxu1 %vm164_vm1, %v10022_v27 }
  0xcb   :  { %8923 = vmatmul.mubr.msk.f32.gmra.mrb[58].mxu0 %vm164_vm1, %v10637_v3  ;;  %8485 = vmatprep.mubr.msk.f32.mxu1 %vm164_vm1, %v10035_v28 }
  0xcc   :  { %8925 = vmatprep.mubr.msk.f32.mxu0 %vm164_vm1, %v10642_v59  ;;  %v7298_v59 = vld [vmem:[%s12373_s0 + $0x310] sm:$0xff] }
  0xce   :  { %8486 = vmatmul.mubr.msk.f32.gmra.mrb[28].mxu1 %vm164_vm1, %v10040_v29 }
  0xcf   :  { %8926 = vmatmul.mubr.msk.f32.gmra.mrb[60].mxu0 %vm164_vm1, %v10655_v23  ;;  %8488 = vmatprep.mubr.msk.f32.mxu1 %vm164_vm1, %v10053_v30 }
  0xd0   :  { %8928 = vmatprep.mubr.msk.f32.mxu0 %vm164_vm1, %v10660_v51  ;;  %v10689_v51 = vld [vmem:[%s12374_s1 + $0x20] sm:$0x7] }
  0xd2   :  { %8489 = vmatmul.mubr.msk.f32.gmra.mrb[30].mxu1 %vm164_vm1, %v10058_v31 }
  0xd3   :  { %8929 = vmatmul.mubr.msk.f32.gmra.mrb[62].mxu0 %vm164_vm1, %v7298_v59  ;;  %8491 = vmatprep.mubr.msk.f32.mxu1 %vm164_vm1, %v10076_v33  ;;  %v12439_v59 = vld [vmem:[#allocation7_spill] sm:$0xff] }
  0xd4   :  { %8933 = vmatprep.mubr.msk.f32.mxu0 %vm164_vm1, %v10468_v48  ;;  %v12435_v48 = vld [vmem:[#allocation12_spill] sm:$0xff] }
  0xd6   :  { %8492 = vmatmul.mubr.msk.f32.gmra.mrb[32].mxu1 %vm164_vm1, %v10081_v34 }
  0xd7   :  { %8934 = vmatmul.mubr.msk.f32.vlgmr.msra.gmra.mrb[0].mxu0 %vm164_vm1, %v10483_v49  ;;  %8494 = vmatprep.mubr.msk.f32.mxu1 %vm164_vm1, %v10094_v35  ;;  %v10792_v49 = vld [vmem:[%s12373_s0 + $0xe8] sm:$0xff] }
  0xd8   :  { %9030 = vmatpush3.msk.msra.mxu0 %vm357_vm0, %v10187_v46  ;;  %8936 = vmatprep.mubr.msk.f32.mxu0 %vm164_vm1, %v10492_v50  ;;  %v10708_v46 = vld [vmem:[%s12373_s0 + $0x40] sm:$0xff] }
  0xd9   :  { %9127 = vmatprep.subr.msk.mxu0 %vm357_vm0, %v10689_v51  ;;  %v12440_v50 = vld [vmem:[#allocation16_spill] sm:$0xff] }
  0xda   :  { %8495 = vmatmul.mubr.msk.f32.gmra.mrb[34].mxu1 %vm164_vm1, %v10099_v36 }
  0xdb   :  { %8937 = vmatmul.mubr.msk.f32.gmra.mrb[2].mxu0 %vm164_vm1, %v10505_v20  ;;  %8497 = vmatprep.mubr.msk.f32.mxu1 %vm164_vm1, %v10112_v37  ;;  %v12441_v20 = vld [vmem:[#allocation8_spill] sm:$0xff] }
  0xdc   :  { %8939 = vmatprep.mubr.msk.f32.mxu0 %vm164_vm1, %v10512_v12  ;;  %v7372_v12 = vld [vmem:[%s12373_s0 + $0x48] sm:$0xff] }
  0xde   :  { %8498 = vmatmul.mubr.msk.f32.gmra.mrb[36].mxu1 %vm164_vm1, %v10117_v38 }
  0xdf   :  { %8940 = vmatmul.mubr.msk.f32.gmra.mrb[4].mxu0 %vm164_vm1, %v10523_v55  ;;  %8500 = vmatprep.mubr.msk.f32.mxu1 %vm164_vm1, %v10130_v39  ;;  %v12438_v55 = vld [vmem:[#allocation15_spill] sm:$0xff] }
  0xe0   :  { %8942 = vmatprep.mubr.msk.f32.mxu0 %vm164_vm1, %v10708_v46 }
  0xe2   :  { %8501 = vmatmul.mubr.msk.f32.gmra.mrb[38].mxu1 %vm164_vm1, %v10135_v40 }
  0xe3   :  { %8943 = vmatmul.mubr.msk.f32.gmra.mrb[6].mxu0 %vm164_vm1, %v7372_v12  ;;  %8503 = vmatprep.mubr.msk.f32.mxu1 %vm164_vm1, %v10153_v42  ;;  %v10829_v12 = vld [vmem:[%s12373_s0 + $0x138] sm:$0xff] }
  0xe4   :  { %8945 = vmatprep.mubr.msk.f32.mxu0 %vm164_vm1, %v9838_v5  ;;  %v12432_v5 = vld [vmem:[#allocation10_spill] sm:$0xff] }
  0xe6   :  { %8504 = vmatmul.mubr.msk.f32.gmra.mrb[40].mxu1 %vm164_vm1, %v10164_v43 }
  0xe7   :  { %8946 = vmatmul.mubr.msk.f32.gmra.mrb[8].mxu0 %vm164_vm1, %v9853_v7  ;;  %8506 = vmatprep.mubr.msk.f32.mxu1 %vm164_vm1, %v10171_v44  ;;  %v12433_v7 = vld [vmem:[#allocation11_spill] sm:$0xff] }
  0xe8   :  { %8948 = vmatprep.mubr.msk.f32.mxu0 %vm164_vm1, %v9863_v8  ;;  %v12434_v8 = vld [vmem:[#allocation6_spill] sm:$0xff] }
  0xea   :  { %8507 = vmatmul.mubr.msk.f32.gmra.mrb[42].mxu1 %vm164_vm1, %v10182_v45 }
  0xeb   :  { %8949 = vmatmul.mubr.msk.f32.gmra.mrb[10].mxu0 %vm164_vm1, %v9872_v9  ;;  %8509 = vmatprep.mubr.msk.f32.mxu1 %vm164_vm1, %v10196_v47  ;;  %v10755_v9 = vld [vmem:[%s12373_s0 + $0x98] sm:$0xff] }
  0xec   :  { %8951 = vmatprep.mubr.msk.f32.mxu0 %vm164_vm1, %v9885_v10  ;;  %v12436_v10 = vld [vmem:[#allocation13_spill] sm:$0xff] }
  0xee   :  { %8510 = vmatmul.mubr.msk.f32.gmra.mrb[44].mxu1 %vm164_vm1, %v12432_v5 }
  0xef   :  { %8952 = vmatmul.mubr.msk.f32.gmra.mrb[12].mxu0 %vm164_vm1, %v9890_v11  ;;  %8512 = vmatprep.mubr.msk.f32.mxu1 %vm164_vm1, %v12433_v7  ;;  %v12437_v11 = vld [vmem:[#allocation14_spill] sm:$0xff] }
  0xf0   :  { %8954 = vmatprep.mubr.msk.f32.mxu0 %vm164_vm1, %v12434_v8  ;;  %v12442_v8 = vld [vmem:[#allocation22_spill] sm:$0xff] }
  0xf2   :  { %8513 = vmatmul.mubr.msk.f32.gmra.mrb[46].mxu1 %vm164_vm1, %v12435_v48 }
  0xf3   :  { %8955 = vmatmul.mubr.msk.f32.gmra.mrb[14].mxu0 %vm164_vm1, %v10755_v9  ;;  %8515 = vmatprep.mubr.msk.f32.mxu1 %vm164_vm1, %v12436_v10 }
  0xf4   :  { %8957 = vmatprep.mubr.msk.f32.mxu0 %vm164_vm1, %v9933_v16 }
  0xf6   :  { %8516 = vmatmul.mubr.msk.f32.gmra.mrb[48].mxu1 %vm164_vm1, %v10245_v52 }
  0xf7   :  { %8958 = vmatmul.mubr.msk.f32.gmra.mrb[16].mxu0 %vm164_vm1, %v9938_v17  ;;  %8518 = vmatprep.mubr.msk.f32.mxu1 %vm164_vm1, %v10252_v53 }
  0xf8   :  { %8960 = vmatprep.mubr.msk.f32.mxu0 %vm164_vm1, %v9951_v18 }
  0xfa   :  { %8519 = vmatmul.mubr.msk.f32.gmra.mrb[50].mxu1 %vm164_vm1, %v10263_v54 }
  0xfb   :  { %8961 = vmatmul.mubr.msk.f32.gmra.mrb[18].mxu0 %vm164_vm1, %v9956_v19  ;;  %8521 = vmatprep.mubr.msk.f32.mxu1 %vm164_vm1, %v12437_v11 }
  0xfc   :  { %8963 = vmatprep.mubr.msk.f32.mxu0 %vm164_vm1, %v9974_v21 }
  0xfe   :  { %8522 = vmatmul.mubr.msk.f32.gmra.mrb[52].mxu1 %vm164_vm1, %v12438_v55 }
  0xff   :  { %8964 = vmatmul.mubr.msk.f32.gmra.mrb[20].mxu0 %vm164_vm1, %v9981_v22  ;;  %8524 = vmatprep.mubr.msk.f32.mxu1 %vm164_vm1, %v10288_v57 }
 0x100   :  { %8966 = vmatprep.mubr.msk.f32.mxu0 %vm164_vm1, %v12439_v59  ;;  %v12443_v59 = vld [vmem:[#allocation5_spill] sm:$0xff] }
 0x102   :  { %8525 = vmatmul.mubr.msk.f32.gmra.mrb[54].mxu1 %vm164_vm1, %v10299_v58 }
 0x103   :  { %8967 = vmatmul.mubr.msk.f32.gmra.mrb[22].mxu0 %vm164_vm1, %v10792_v49  ;;  %8527 = vmatprep.mubr.msk.f32.mxu1 %vm164_vm1, %v12440_v50 }
 0x104   :  { %8969 = vmatprep.mubr.msk.f32.mxu0 %vm164_vm1, %v10017_v26 }
 0x106   :  { %8528 = vmatmul.mubr.msk.f32.gmra.mrb[56].mxu1 %vm164_vm1, %v10317_v60 }
 0x107   :  { %8970 = vmatmul.mubr.msk.f32.gmra.mrb[24].mxu0 %vm164_vm1, %v10022_v27  ;;  %8530 = vmatprep.mubr.msk.f32.mxu1 %vm164_vm1, %v10324_v61 }
 0x108   :  { %8972 = vmatprep.mubr.msk.f32.mxu0 %vm164_vm1, %v10035_v28 }
 0x10a   :  { %8531 = vmatmul.mubr.msk.f32.gmra.mrb[58].mxu1 %vm164_vm1, %v10335_v62 }
 0x10b   :  { %8973 = vmatmul.mubr.msk.f32.gmra.mrb[26].mxu0 %vm164_vm1, %v10040_v29  ;;  %8533 = vmatprep.mubr.msk.f32.mxu1 %vm164_vm1, %v10342_v63 }
 0x10c   :  { %8975 = vmatprep.mubr.msk.f32.mxu0 %vm164_vm1, %v10053_v30 }
 0x10e   :  { %8534 = vmatmul.mubr.msk.f32.gmra.mrb[60].mxu1 %vm164_vm1, %v10353_v0 }
 0x10f   :  { %8976 = vmatmul.mubr.msk.f32.gmra.mrb[28].mxu0 %vm164_vm1, %v10058_v31  ;;  %8536 = vmatprep.mubr.msk.f32.mxu1 %vm164_vm1, %v10360_v4 }
 0x110   :  { %8978 = vmatprep.mubr.msk.f32.mxu0 %vm164_vm1, %v12441_v20  ;;  %v11332_v20 = vld [vmem:[%s12373_s0 + $0x1d0] sm:$0xff] }
 0x112   :  { %8537 = vmatmul.mubr.msk.f32.gmra.mrb[62].mxu1 %vm164_vm1, %v10371_v6 }
 0x113   :  { %8979 = vmatmul.mubr.msk.f32.gmra.mrb[30].mxu0 %vm164_vm1, %v10829_v12  ;;  %8541 = vmatprep.mubr.msk.f32.mxu1 %vm164_vm1, %v9908_v13  ;;  %v12444_v13 = vld [vmem:[#allocation9_spill] sm:$0xff] }
 0x114   :  { %8981 = vmatprep.mubr.msk.f32.mxu0 %vm164_vm1, %v10094_v35 }
 0x116   :  { %8542 = vmatmul.mubr.msk.f32.vlgmr.msra.gmra.mrb[0].mxu1 %vm164_vm1, %v9918_v15  ;;  %v10870_v15 = vld [vmem:[%s12373_s0 + $0x188] sm:$0xff] }
 0x117   :  { %8982 = vmatmul.mubr.msk.f32.gmra.mrb[32].mxu0 %vm164_vm1, %v10099_v36  ;;  %8638 = vmatpush3.msk.msra.mxu1 %vm357_vm0, %v12442_v8  ;;  %v6983_v8 = vld [vmem:[%s12373_s0 + $0x58] sm:$0xff] }
 0x118   :  { %8544 = vmatprep.mubr.msk.f32.mxu1 %vm164_vm1, %v9933_v16  ;;  %8984 = vmatprep.mubr.msk.f32.mxu0 %vm164_vm1, %v10112_v37  ;;  %v12445_v16 = vld [vmem:[#allocation21_spill] sm:$0xff] }
 0x119   :  { %9225 = vmatprep.subr.msk.mxu1 %vm357_vm0, %v12443_v59  ;;  %v11346_v59 = vld [vmem:[%s12373_s0 + $0x1f0] sm:$0xff] }
 0x11a   :  { %8545 = vmatmul.mubr.msk.f32.gmra.mrb[2].mxu1 %vm164_vm1, %v9938_v17  ;;  %v10907_v17 = vld [vmem:[%s12373_s0 + $0x1d8] sm:$0xff] }
 0x11b   :  { %8985 = vmatmul.mubr.msk.f32.gmra.mrb[34].mxu0 %vm164_vm1, %v10117_v38  ;;  %8547 = vmatprep.mubr.msk.f32.mxu1 %vm164_vm1, %v9951_v18  ;;  %v10944_v18 = vld [vmem:[%s12373_s0 + $0x228] sm:$0xff] }
 0x11c   :  { %8987 = vmatprep.mubr.msk.f32.mxu0 %vm164_vm1, %v10130_v39 }
 0x11e   :  { %8548 = vmatmul.mubr.msk.f32.gmra.mrb[4].mxu1 %vm164_vm1, %v9956_v19  ;;  %v10981_v19 = vld [vmem:[%s12373_s0 + $0x278] sm:$0xff] }
 0x11f   :  { %8988 = vmatmul.mubr.msk.f32.gmra.mrb[36].mxu0 %vm164_vm1, %v10135_v40  ;;  %8550 = vmatprep.mubr.msk.f32.mxu1 %vm164_vm1, %v9974_v21  ;;  %v10986_v21 = vld [vmem:[%s12373_s0 + $0x60] sm:$0xff] }
 0x120   :  { %8990 = vmatprep.mubr.msk.f32.mxu0 %vm164_vm1, %v12444_v13  ;;  %v11358_v13 = vld [vmem:[%s12373_s0 + $0x1f8] sm:$0xff] }
 0x122   :  { %8551 = vmatmul.mubr.msk.f32.gmra.mrb[6].mxu1 %vm164_vm1, %v9981_v22  ;;  %v10999_v22 = vld [vmem:[%s12373_s0 + $0x68] sm:$0xff] }
 0x123   :  { %8991 = vmatmul.mubr.msk.f32.gmra.mrb[38].mxu0 %vm164_vm1, %v10870_v15  ;;  %8553 = vmatprep.mubr.msk.f32.mxu1 %vm164_vm1, %v9999_v24  ;;  %v11004_v24 = vld [vmem:[%s12373_s0 + $0x70] sm:$0xff] }
 0x124   :  { %8993 = vmatprep.mubr.msk.f32.mxu0 %vm164_vm1, %v10171_v44 }
 0x126   :  { %8554 = vmatmul.mubr.msk.f32.gmra.mrb[8].mxu1 %vm164_vm1, %v10004_v25  ;;  %v11019_v25 = vld [vmem:[%s12373_s0 + $0x78] sm:$0xff] }
 0x127   :  { %8994 = vmatmul.mubr.msk.f32.gmra.mrb[40].mxu0 %vm164_vm1, %v10182_v45  ;;  %8556 = vmatprep.mubr.msk.f32.mxu1 %vm164_vm1, %v10017_v26  ;;  %v11024_v26 = vld [vmem:[%s12373_s0 + $0x80] sm:$0xff] }
 0x128   :  { %8996 = vmatprep.mubr.msk.f32.mxu0 %vm164_vm1, %v10196_v47 }
 0x12a   :  { %8557 = vmatmul.mubr.msk.f32.gmra.mrb[10].mxu1 %vm164_vm1, %v10022_v27  ;;  %v11037_v27 = vld [vmem:[%s12373_s0 + $0x88] sm:$0xff] }
 0x12b   :  { %8997 = vmatmul.mubr.msk.f32.gmra.mrb[42].mxu0 %vm164_vm1, %v12432_v5  ;;  %8559 = vmatprep.mubr.msk.f32.mxu1 %vm164_vm1, %v10035_v28  ;;  %v11042_v28 = vld [vmem:[%s12373_s0 + $0x90] sm:$0xff] }
 0x12c   :  { %8999 = vmatprep.mubr.msk.f32.mxu0 %vm164_vm1, %v12433_v7 }
 0x12e   :  { %8560 = vmatmul.mubr.msk.f32.gmra.mrb[12].mxu1 %vm164_vm1, %v10040_v29  ;;  %v11055_v29 = vld [vmem:[%s12373_s0 + $0xb0] sm:$0xff] }
 0x12f   :  { %9000 = vmatmul.mubr.msk.f32.gmra.mrb[44].mxu0 %vm164_vm1, %v12435_v48  ;;  %8562 = vmatprep.mubr.msk.f32.mxu1 %vm164_vm1, %v10053_v30  ;;  %v11068_v30 = vld [vmem:[%s12373_s0 + $0xb8] sm:$0xff] }
 0x130   :  { %9002 = vmatprep.mubr.msk.f32.mxu0 %vm164_vm1, %v12445_v16  ;;  %v11363_v16 = vld [vmem:[%s12373_s0 + $0x200] sm:$0xff] }
 0x132   :  { %8563 = vmatmul.mubr.msk.f32.gmra.mrb[14].mxu1 %vm164_vm1, %v10058_v31  ;;  %v11073_v31 = vld [vmem:[%s12373_s0 + $0xc0] sm:$0xff] }
 0x133   :  { %9003 = vmatmul.mubr.msk.f32.gmra.mrb[46].mxu0 %vm164_vm1, %v10907_v17  ;;  %8565 = vmatprep.mubr.msk.f32.mxu1 %vm164_vm1, %v10076_v33  ;;  %v11086_v33 = vld [vmem:[%s12373_s0 + $0xc8] sm:$0xff] }
 0x134   :  { %9005 = vmatprep.mubr.msk.f32.mxu0 %vm164_vm1, %v10252_v53 }
 0x136   :  { %8566 = vmatmul.mubr.msk.f32.gmra.mrb[16].mxu1 %vm164_vm1, %v10081_v34  ;;  %v11091_v34 = vld [vmem:[%s12373_s0 + $0xd0] sm:$0xff] }
 0x137   :  { %9006 = vmatmul.mubr.msk.f32.gmra.mrb[48].mxu0 %vm164_vm1, %v10263_v54  ;;  %8568 = vmatprep.mubr.msk.f32.mxu1 %vm164_vm1, %v10094_v35  ;;  %v11104_v35 = vld [vmem:[%s12373_s0 + $0xd8] sm:$0xff] }
 0x138   :  { %9008 = vmatprep.mubr.msk.f32.mxu0 %vm164_vm1, %v12437_v11 }
 0x13a   :  { %8569 = vmatmul.mubr.msk.f32.gmra.mrb[18].mxu1 %vm164_vm1, %v10099_v36  ;;  %v11109_v36 = vld [vmem:[%s12373_s0 + $0xe0] sm:$0xff] }
 0x13b   :  { %9009 = vmatmul.mubr.msk.f32.gmra.mrb[50].mxu0 %vm164_vm1, %v12438_v55  ;;  %8571 = vmatprep.mubr.msk.f32.mxu1 %vm164_vm1, %v10112_v37  ;;  %v11122_v37 = vld [vmem:[%s12373_s0 + $0x100] sm:$0xff] }
 0x13c   :  { %9011 = vmatprep.mubr.msk.f32.mxu0 %vm164_vm1, %v10288_v57 }
 0x13e   :  { %8572 = vmatmul.mubr.msk.f32.gmra.mrb[20].mxu1 %vm164_vm1, %v10117_v38  ;;  %v12446_v38 = vld [vmem:[#allocation17_spill] sm:$0xff] }
 0x13f   :  { %9012 = vmatmul.mubr.msk.f32.gmra.mrb[52].mxu0 %vm164_vm1, %v10299_v58  ;;  %8574 = vmatprep.mubr.msk.f32.mxu1 %vm164_vm1, %v10130_v39  ;;  %v11135_v39 = vld [vmem:[%s12373_s0 + $0x108] sm:$0xff] }
 0x140   :  { %9014 = vmatprep.mubr.msk.f32.mxu0 %vm164_vm1, %v10530_v56  ;;  %v12451_v56 = vld [vmem:[#allocation24_spill] sm:$0xff] }
 0x142   :  { %8575 = vmatmul.mubr.msk.f32.gmra.mrb[22].mxu1 %vm164_vm1, %v10135_v40  ;;  %v11140_v40 = vld [vmem:[%s12373_s0 + $0x110] sm:$0xff] }
 0x143   :  { %9015 = vmatmul.mubr.msk.f32.gmra.mrb[54].mxu0 %vm164_vm1, %v10944_v18  ;;  %8577 = vmatprep.mubr.msk.f32.mxu1 %vm164_vm1, %v10153_v42  ;;  %v11153_v42 = vld [vmem:[%s12373_s0 + $0x118] sm:$0xff] }
 0x144   :  { %9017 = vmatprep.mubr.msk.f32.mxu0 %vm164_vm1, %v10324_v61 }
 0x146   :  { %8578 = vmatmul.mubr.msk.f32.gmra.mrb[24].mxu1 %vm164_vm1, %v10164_v43  ;;  %v11158_v43 = vld [vmem:[%s12373_s0 + $0x120] sm:$0xff] }
 0x147   :  { %9018 = vmatmul.mubr.msk.f32.gmra.mrb[56].mxu0 %vm164_vm1, %v10335_v62  ;;  %8580 = vmatprep.mubr.msk.f32.mxu1 %vm164_vm1, %v10171_v44  ;;  %v12447_v44 = vld [vmem:[#allocation18_spill] sm:$0xff] }
 0x148   :  { %9020 = vmatprep.mubr.msk.f32.mxu0 %vm164_vm1, %v10342_v63 }
 0x14a   :  { %8581 = vmatmul.mubr.msk.f32.gmra.mrb[26].mxu1 %vm164_vm1, %v10182_v45  ;;  %v6901_v45 = vld [vmem:[%s12373_s0 + $0x2d0] sm:$0xff] }
 0x14b   :  { %9021 = vmatmul.mubr.msk.f32.gmra.mrb[58].mxu0 %vm164_vm1, %v10353_v0  ;;  %8583 = vmatprep.mubr.msk.f32.mxu1 %vm164_vm1, %v10196_v47  ;;  %v11192_v47 = vld [vmem:[%s12373_s0 + $0x150] sm:$0xff] }
 0x14c   :  { %9023 = vmatprep.mubr.msk.f32.mxu0 %vm164_vm1, %v10360_v4 }
 0x14e   :  { %8584 = vmatmul.mubr.msk.f32.gmra.mrb[28].mxu1 %vm164_vm1, %v12432_v5  ;;  %v9740_v5 = vld [vmem:[%s12374_s1 + $0x10] sm:$0x7] }
 0x14f   :  { %9024 = vmatmul.mubr.msk.f32.gmra.mrb[60].mxu0 %vm164_vm1, %v10371_v6  ;;  %8586 = vmatprep.mubr.msk.f32.mxu1 %vm164_vm1, %v12433_v7  ;;  %v6978_v7 = vld [vmem:[%s12373_s0 + $0x20] sm:$0xff] }
 0x150   :  { %9026 = vmatprep.mubr.msk.f32.mxu0 %vm164_vm1, %v10567_v2  ;;  %v6977_v2 = vld [vmem:[%s12373_s0 + $0x18] sm:$0xff] }
 0x152   :  { %8587 = vmatmul.mubr.msk.f32.gmra.mrb[30].mxu1 %vm164_vm1, %v12435_v48  ;;  %v6979_v48 = vld [vmem:[%s12373_s0 + $0x28] sm:$0xff] }
 0x153   :  { %9027 = vmatmul.mubr.msk.f32.gmra.mrb[62].mxu0 %vm164_vm1, %v10981_v19  ;;  %8589 = vmatprep.mubr.msk.f32.mxu1 %vm164_vm1, %v12436_v10  ;;  %v11310_v10 = vld [vmem:[%s12373_s0 + $0x1c0] sm:$0xff] }
 0x154   :  { %9031 = vmatprep.mubr.msk.f32.mxu0 %vm164_vm1, %v10986_v21 }
 0x156   :  { %8590 = vmatmul.mubr.msk.f32.gmra.mrb[32].mxu1 %vm164_vm1, %v10245_v52  ;;  %v11204_v52 = vld [vmem:[%s12373_s0 + $0x158] sm:$0xff] }
 0x157   :  { %9032 = vmatmul.mubr.msk.f32.vlgmr.msra.gmra.mrb[0].mxu0 %vm164_vm1, %v10999_v22  ;;  %8592 = vmatprep.mubr.msk.f32.mxu1 %vm164_vm1, %v10252_v53  ;;  %v11209_v53 = vld [vmem:[%s12373_s0 + $0x160] sm:$0xff] }
 0x158   :  { %9128 = vmatpush3.msk.msra.mxu0 %vm357_vm0, %v10689_v51  ;;  %9034 = vmatprep.mubr.msk.f32.mxu0 %vm164_vm1, %v11004_v24  ;;  %v12449_v51 = vld [vmem:[#allocation20_spill] sm:$0xff] }
 0x15a   :  { %8593 = vmatmul.mubr.msk.f32.gmra.mrb[34].mxu1 %vm164_vm1, %v10263_v54  ;;  %v12450_v54 = vld [vmem:[#allocation23_spill] sm:$0xff] }
 0x15b   :  { %9035 = vmatmul.mubr.msk.f32.gmra.mrb[2].mxu0 %vm164_vm1, %v11019_v25  ;;  %8595 = vmatprep.mubr.msk.f32.mxu1 %vm164_vm1, %v12437_v11  ;;  %v6980_v11 = vld [vmem:[%s12373_s0 + $0x30] sm:$0xff] }
 0x15c   :  { %9037 = vmatprep.mubr.msk.f32.mxu0 %vm164_vm1, %v11024_v26 }
 0x15e   :  { %8596 = vmatmul.mubr.msk.f32.gmra.mrb[36].mxu1 %vm164_vm1, %v12438_v55  ;;  %v11324_v55 = vld [vmem:[%s12373_s0 + $0x1c8] sm:$0xff] }
 0x15f   :  { %9038 = vmatmul.mubr.msk.f32.gmra.mrb[4].mxu0 %vm164_vm1, %v11037_v27  ;;  %8598 = vmatprep.mubr.msk.f32.mxu1 %vm164_vm1, %v10288_v57  ;;  %v11222_v57 = vld [vmem:[%s12373_s0 + $0x168] sm:$0xff] }
 0x160   :  { %9040 = vmatprep.mubr.msk.f32.mxu0 %vm164_vm1, %v11042_v28 }
 0x162   :  { %8599 = vmatmul.mubr.msk.f32.gmra.mrb[38].mxu1 %vm164_vm1, %v10299_v58  ;;  %v11227_v58 = vld [vmem:[%s12373_s0 + $0x170] sm:$0xff] }
 0x163   :  { %9041 = vmatmul.mubr.msk.f32.gmra.mrb[6].mxu0 %vm164_vm1, %v10755_v9  ;;  %8601 = vmatprep.mubr.msk.f32.mxu1 %vm164_vm1, %v12440_v50  ;;  %v11302_v9 = vld [vmem:[%s12373_s0 + $0x1b8] sm:$0xff] }
 0x164   :  { %9043 = vmatprep.mubr.msk.f32.mxu0 %vm164_vm1, %v11055_v29  ;;  %v6981_v50 = vld [vmem:[%s12373_s0 + $0x38] sm:$0xff] }
 0x166   :  { %8602 = vmatmul.mubr.msk.f32.gmra.mrb[40].mxu1 %vm164_vm1, %v10317_v60  ;;  %v12452_v60 = vld [vmem:[#allocation25_spill] sm:$0xff] }
 0x167   :  { %9044 = vmatmul.mubr.msk.f32.gmra.mrb[8].mxu0 %vm164_vm1, %v11068_v30  ;;  %8604 = vmatprep.mubr.msk.f32.mxu1 %vm164_vm1, %v10324_v61  ;;  %v11240_v61 = vld [vmem:[%s12373_s0 + $0x178] sm:$0xff] }
 0x168   :  { %9046 = vmatprep.mubr.msk.f32.mxu0 %vm164_vm1, %v11073_v31 }
 0x16a   :  { %8605 = vmatmul.mubr.msk.f32.gmra.mrb[42].mxu1 %vm164_vm1, %v10335_v62  ;;  %v11245_v62 = vld [vmem:[%s12373_s0 + $0x180] sm:$0xff] }
 0x16b   :  { %9047 = vmatmul.mubr.msk.f32.gmra.mrb[10].mxu0 %vm164_vm1, %v11086_v33  ;;  %8607 = vmatprep.mubr.msk.f32.mxu1 %vm164_vm1, %v10342_v63  ;;  %v12453_v63 = vld [vmem:[#allocation26_spill] sm:$0xff] }
 0x16c   :  { %9049 = vmatprep.mubr.msk.f32.mxu0 %vm164_vm1, %v11091_v34 }
 0x16e   :  { %8608 = vmatmul.mubr.msk.f32.gmra.mrb[44].mxu1 %vm164_vm1, %v10353_v0  ;;  %v6975_v0 = vld [vmem:[%s12373_s0 + $0x8] sm:$0xff] }
 0x16f   :  { %9050 = vmatmul.mubr.msk.f32.gmra.mrb[12].mxu0 %vm164_vm1, %v11104_v35  ;;  %8610 = vmatprep.mubr.msk.f32.mxu1 %vm164_vm1, %v10360_v4  ;;  %v11261_v4 = vld [vmem:[%s12373_s0 + $0x1a0] sm:$0xff] }
 0x170   :  { %9052 = vmatprep.mubr.msk.f32.mxu0 %vm164_vm1, %v11109_v36 }
 0x172   :  { %8611 = vmatmul.mubr.msk.f32.gmra.mrb[46].mxu1 %vm164_vm1, %v10371_v6  ;;  %v12454_v6 = vld [vmem:[#allocation27_spill] sm:$0xff] }
 0x173   :  { %9053 = vmatmul.mubr.msk.f32.gmra.mrb[14].mxu0 %vm164_vm1, %v10792_v49  ;;  %8613 = vmatprep.mubr.msk.f32.mxu1 %vm164_vm1, %v12446_v38  ;;  %v11381_v38 = vld [vmem:[%s12373_s0 + $0x210] sm:$0xff] }
 0x174   :  { %9055 = vmatprep.mubr.msk.f32.mxu0 %vm164_vm1, %v11122_v37 }
 0x176   :  { %8614 = vmatmul.mubr.msk.f32.gmra.mrb[48].mxu1 %vm164_vm1, %v10389_v1  ;;  %v11171_v1 = vld [vmem:[%s12373_s0 + $0x128] sm:$0xff] }
 0x177   :  { %9056 = vmatmul.mubr.msk.f32.gmra.mrb[16].mxu0 %vm164_vm1, %v11135_v39  ;;  %8616 = vmatprep.mubr.msk.f32.mxu1 %vm164_vm1, %v10396_v32  ;;  %v11176_v32 = vld [vmem:[%s12373_s0 + $0x130] sm:$0xff] }
 0x178   :  { %9058 = vmatprep.mubr.msk.f32.mxu0 %vm164_vm1, %v11140_v40 }
 0x17a   :  { %8617 = vmatmul.mubr.msk.f32.gmra.mrb[50].mxu1 %vm164_vm1, %v10407_v14  ;;  %v11276_v14 = vld [vmem:[%s12373_s0 + $0x1a8] sm:$0xff] }
 0x17b   :  { %9059 = vmatmul.mubr.msk.f32.gmra.mrb[18].mxu0 %vm164_vm1, %v11153_v42  ;;  %8619 = vmatprep.mubr.msk.f32.mxu1 %vm164_vm1, %v10414_v41  ;;  %v12448_v41 = vld [vmem:[#allocation19_spill] sm:$0xff] }
 0x17c   :  { %9061 = vmatprep.mubr.msk.f32.mxu0 %vm164_vm1, %v11158_v43 }
 0x17e   :  { %8620 = vmatmul.mubr.msk.f32.gmra.mrb[52].mxu1 %vm164_vm1, %v12447_v44  ;;  %v11450_v44 = vld [vmem:[%s12373_s0 + $0x260] sm:$0xff] }
 0x17f   :  { %9062 = vmatmul.mubr.msk.f32.gmra.mrb[20].mxu0 %vm164_vm1, %v11171_v1  ;;  %8622 = vmatprep.mubr.msk.f32.mxu1 %vm164_vm1, %v12448_v41  ;;  %v11463_v41 = vld [vmem:[%s12373_s0 + $0x268] sm:$0xff] }
 0x180   :  { %9064 = vmatprep.mubr.msk.f32.mxu0 %vm164_vm1, %v11176_v32 }
 0x182   :  { %8623 = vmatmul.mubr.msk.f32.gmra.mrb[54].mxu1 %vm164_vm1, %v12449_v51  ;;  %v6999_v51 = vld [vmem:[%s12373_s0 + $0xf8] sm:$0xff] }
 0x183   :  { %9065 = vmatmul.mubr.msk.f32.gmra.mrb[22].mxu0 %vm164_vm1, %v10829_v12  ;;  %8625 = vmatprep.mubr.msk.f32.mxu1 %vm164_vm1, %v6901_v45  ;;  %v11468_v45 = vld [vmem:[%s12373_s0 + $0x270] sm:$0xff] }
 0x184   :  { %9067 = vmatprep.mubr.msk.f32.mxu0 %vm164_vm1, %v11192_v47 }
 0x186   :  { %8626 = vmatmul.mubr.msk.f32.gmra.mrb[56].mxu1 %vm164_vm1, %v12450_v54  ;;  %v11484_v54 = vld [vmem:[%s12373_s0 + $0x290] sm:$0xff] }
 0x187   :  { %9068 = vmatmul.mubr.msk.f32.gmra.mrb[24].mxu0 %vm164_vm1, %v11204_v52  ;;  %8628 = vmatprep.mubr.msk.f32.mxu1 %vm164_vm1, %v12451_v56  ;;  %v11496_v56 = vld [vmem:[%s12373_s0 + $0x298] sm:$0xff] }
 0x188   :  { %9070 = vmatprep.mubr.msk.f32.mxu0 %vm164_vm1, %v11209_v53 }
 0x18a   :  { %8629 = vmatmul.mubr.msk.f32.gmra.mrb[58].mxu1 %vm164_vm1, %v12452_v60  ;;  %v11501_v60 = vld [vmem:[%s12373_s0 + $0x2a0] sm:$0xff] }
 0x18b   :  { %9071 = vmatmul.mubr.msk.f32.gmra.mrb[26].mxu0 %vm164_vm1, %v11222_v57  ;;  %8631 = vmatprep.mubr.msk.f32.mxu1 %vm164_vm1, %v10637_v3  ;;  %v11284_v3 = vld [vmem:[%s12373_s0 + $0x1b0] sm:$0xff] }
 0x18c   :  { %9073 = vmatprep.mubr.msk.f32.mxu0 %vm164_vm1, %v11227_v58 }
 0x18e   :  { %8632 = vmatmul.mubr.msk.f32.gmra.mrb[60].mxu1 %vm164_vm1, %v12453_v63  ;;  %v11514_v63 = vld [vmem:[%s12373_s0 + $0x2a8] sm:$0xff] }
 0x18f   :  { %9074 = vmatmul.mubr.msk.f32.gmra.mrb[28].mxu0 %vm164_vm1, %v11240_v61  ;;  %8634 = vmatprep.mubr.msk.f32.mxu1 %vm164_vm1, %v10655_v23  ;;  %v6976_v23 = vld [vmem:[%s12373_s0 + $0x10] sm:$0xff] }
 0x190   :  { %9076 = vmatprep.mubr.msk.f32.mxu0 %vm164_vm1, %v11245_v62 }
 0x192   :  { %8635 = vmatmul.mubr.msk.f32.gmra.mrb[62].mxu1 %vm164_vm1, %v12454_v6  ;;  %v11532_v6 = vld [vmem:[%s12373_s0 + $0x2b8] sm:$0xff] }
 0x193   :  { %9077 = vmatmul.mubr.msk.f32.gmra.mrb[30].mxu0 %vm164_vm1, %v10870_v15  ;;  %8639 = vmatprep.mubr.msk.f32.mxu1 %vm164_vm1, %v6975_v0  ;;  %v11519_v0 = vld [vmem:[%s12373_s0 + $0x2b0] sm:$0xff] }
 0x194   :  { %9079 = vmatprep.mubr.msk.f32.mxu0 %vm164_vm1, %v11261_v4 }
 0x196   :  { %8640 = vmatmul.mubr.msk.f32.vlgmr.msra.gmra.mrb[0].mxu1 %vm164_vm1, %v6976_v23  ;;  %v11537_v23 = vld [vmem:[%s12373_s0 + $0x2c0] sm:$0xff] }
 0x197   :  { %9080 = vmatmul.mubr.msk.f32.gmra.mrb[32].mxu0 %vm164_vm1, %v11276_v14  ;;  %9226 = vmatpush3.msk.msra.mxu1 %vm357_vm0, %v9740_v5  ;;  %v7007_v5 = vld [vmem:[%s12373_s0 + $0x148] sm:$0xff] }
 0x198   :  { %8642 = vmatprep.mubr.msk.f32.mxu1 %vm164_vm1, %v6977_v2  ;;  %9082 = vmatprep.mubr.msk.f32.mxu0 %vm164_vm1, %v11284_v3  ;;  %v11550_v2 = vld [vmem:[%s12373_s0 + $0x2c8] sm:$0xff] }
 0x19a   :  { %8643 = vmatmul.mubr.msk.f32.gmra.mrb[2].mxu1 %vm164_vm1, %v6978_v7 }
 0x19b   :  { %9083 = vmatmul.mubr.msk.f32.gmra.mrb[34].mxu0 %vm164_vm1, %v11302_v9  ;;  %8645 = vmatprep.mubr.msk.f32.mxu1 %vm164_vm1, %v6979_v48 }
 0x19c   :  { %9085 = vmatprep.mubr.msk.f32.mxu0 %vm164_vm1, %v11310_v10 }
 0x19e   :  { %8646 = vmatmul.mubr.msk.f32.gmra.mrb[4].mxu1 %vm164_vm1, %v6980_v11 }
 0x19f   :  { %9086 = vmatmul.mubr.msk.f32.gmra.mrb[36].mxu0 %vm164_vm1, %v11324_v55  ;;  %8648 = vmatprep.mubr.msk.f32.mxu1 %vm164_vm1, %v6981_v50 }
 0x1a0   :  { %9088 = vmatprep.mubr.msk.f32.mxu0 %vm164_vm1, %v11332_v20 }
 0x1a2   :  { %8649 = vmatmul.mubr.msk.f32.gmra.mrb[6].mxu1 %vm164_vm1, %v10708_v46  ;;  %v11376_v46 = vld [vmem:[%s12373_s0 + $0x208] sm:$0xff] }
 0x1a3   :  { %9089 = vmatmul.mubr.msk.f32.gmra.mrb[38].mxu0 %vm164_vm1, %v10907_v17  ;;  %8651 = vmatprep.mubr.msk.f32.mxu1 %vm164_vm1, %v6983_v8 }
 0x1a4   :  { %9091 = vmatprep.mubr.msk.f32.mxu0 %vm164_vm1, %v11346_v59 }
 0x1a6   :  { %8652 = vmatmul.mubr.msk.f32.gmra.mrb[8].mxu1 %vm164_vm1, %v10986_v21  ;;  %v11394_v21 = vld [vmem:[%s12373_s0 + $0x218] sm:$0xff] }
 0x1a7   :  { %9092 = vmatmul.mubr.msk.f32.gmra.mrb[40].mxu0 %vm164_vm1, %v11358_v13  ;;  %8654 = vmatprep.mubr.msk.f32.mxu1 %vm164_vm1, %v10999_v22  ;;  %v11399_v22 = vld [vmem:[%s12373_s0 + $0x220] sm:$0xff] }
 0x1a8   :  { %9094 = vmatprep.mubr.msk.f32.mxu0 %vm164_vm1, %v11363_v16 }
 0x1aa   :  { %8655 = vmatmul.mubr.msk.f32.gmra.mrb[10].mxu1 %vm164_vm1, %v11004_v24  ;;  %v6991_v24 = vld [vmem:[%s12373_s0 + $0xa8] sm:$0xff] }
 0x1ab   :  { %9095 = vmatmul.mubr.msk.f32.gmra.mrb[42].mxu0 %vm164_vm1, %v11376_v46  ;;  %8657 = vmatprep.mubr.msk.f32.mxu1 %vm164_vm1, %v11019_v25  ;;  %v11415_v25 = vld [vmem:[%s12373_s0 + $0x240] sm:$0xff] }
 0x1ac   :  { %9097 = vmatprep.mubr.msk.f32.mxu0 %vm164_vm1, %v11381_v38 }
 0x1ae   :  { %8658 = vmatmul.mubr.msk.f32.gmra.mrb[12].mxu1 %vm164_vm1, %v11024_v26  ;;  %v11427_v26 = vld [vmem:[%s12373_s0 + $0x248] sm:$0xff] }
 0x1af   :  { %9098 = vmatmul.mubr.msk.f32.gmra.mrb[44].mxu0 %vm164_vm1, %v11394_v21  ;;  %8660 = vmatprep.mubr.msk.f32.mxu1 %vm164_vm1, %v11037_v27  ;;  %v11432_v27 = vld [vmem:[%s12373_s0 + $0x250] sm:$0xff] }
 0x1b0   :  { %9100 = vmatprep.mubr.msk.f32.mxu0 %vm164_vm1, %v11399_v22 }
 0x1b2   :  { %8661 = vmatmul.mubr.msk.f32.gmra.mrb[14].mxu1 %vm164_vm1, %v11042_v28  ;;  %v11445_v28 = vld [vmem:[%s12373_s0 + $0x258] sm:$0xff] }
 0x1b3   :  { %9101 = vmatmul.mubr.msk.f32.gmra.mrb[46].mxu0 %vm164_vm1, %v10944_v18  ;;  %8663 = vmatprep.mubr.msk.f32.mxu1 %vm164_vm1, %v6991_v24 }
 0x1b4   :  { %9103 = vmatprep.mubr.msk.f32.mxu0 %vm164_vm1, %v11415_v25 }
 0x1b6   :  { %8664 = vmatmul.mubr.msk.f32.gmra.mrb[16].mxu1 %vm164_vm1, %v11055_v29 }
 0x1b7   :  { %9104 = vmatmul.mubr.msk.f32.gmra.mrb[48].mxu0 %vm164_vm1, %v11427_v26  ;;  %8666 = vmatprep.mubr.msk.f32.mxu1 %vm164_vm1, %v11068_v30 }
 0x1b8   :  { %9106 = vmatprep.mubr.msk.f32.mxu0 %vm164_vm1, %v11432_v27 }
 0x1ba   :  { %8667 = vmatmul.mubr.msk.f32.gmra.mrb[18].mxu1 %vm164_vm1, %v11073_v31 }
 0x1bb   :  { %9107 = vmatmul.mubr.msk.f32.gmra.mrb[50].mxu0 %vm164_vm1, %v11445_v28  ;;  %8669 = vmatprep.mubr.msk.f32.mxu1 %vm164_vm1, %v11086_v33 }
 0x1bc   :  { %9109 = vmatprep.mubr.msk.f32.mxu0 %vm164_vm1, %v11450_v44 }
 0x1be   :  { %8670 = vmatmul.mubr.msk.f32.gmra.mrb[20].mxu1 %vm164_vm1, %v11091_v34 }
 0x1bf   :  { %9110 = vmatmul.mubr.msk.f32.gmra.mrb[52].mxu0 %vm164_vm1, %v11463_v41  ;;  %8672 = vmatprep.mubr.msk.f32.mxu1 %vm164_vm1, %v11104_v35 }
 0x1c0   :  { %9112 = vmatprep.mubr.msk.f32.mxu0 %vm164_vm1, %v11468_v45 }
 0x1c2   :  { %8673 = vmatmul.mubr.msk.f32.gmra.mrb[22].mxu1 %vm164_vm1, %v11109_v36 }
 0x1c3   :  { %9113 = vmatmul.mubr.msk.f32.gmra.mrb[54].mxu0 %vm164_vm1, %v10981_v19  ;;  %8675 = vmatprep.mubr.msk.f32.mxu1 %vm164_vm1, %v6999_v51 }
 0x1c4   :  { %9115 = vmatprep.mubr.msk.f32.mxu0 %vm164_vm1, %v11484_v54 }
 0x1c6   :  { %8676 = vmatmul.mubr.msk.f32.gmra.mrb[24].mxu1 %vm164_vm1, %v11122_v37 }
 0x1c7   :  { %9116 = vmatmul.mubr.msk.f32.gmra.mrb[56].mxu0 %vm164_vm1, %v11496_v56  ;;  %8678 = vmatprep.mubr.msk.f32.mxu1 %vm164_vm1, %v11135_v39 }
 0x1c8   :  { %9118 = vmatprep.mubr.msk.f32.mxu0 %vm164_vm1, %v11501_v60 }
 0x1ca   :  { %8679 = vmatmul.mubr.msk.f32.gmra.mrb[26].mxu1 %vm164_vm1, %v11140_v40 }
 0x1cb   :  { %9119 = vmatmul.mubr.msk.f32.gmra.mrb[58].mxu0 %vm164_vm1, %v11514_v63  ;;  %8681 = vmatprep.mubr.msk.f32.mxu1 %vm164_vm1, %v11153_v42 }
 0x1cc   :  { %9121 = vmatprep.mubr.msk.f32.mxu0 %vm164_vm1, %v11519_v0 }
 0x1ce   :  { %8682 = vmatmul.mubr.msk.f32.gmra.mrb[28].mxu1 %vm164_vm1, %v11158_v43 }
 0x1cf   :  { %9122 = vmatmul.mubr.msk.f32.gmra.mrb[60].mxu0 %vm164_vm1, %v11532_v6  ;;  %8684 = vmatprep.mubr.msk.f32.mxu1 %vm164_vm1, %v11171_v1 }
 0x1d0   :  { %9124 = vmatprep.mubr.msk.f32.mxu0 %vm164_vm1, %v11537_v23 }
 0x1d2   :  { %8685 = vmatmul.mubr.msk.f32.gmra.mrb[30].mxu1 %vm164_vm1, %v11176_v32 }
 0x1d3   :  { %9125 = vmatmul.mubr.msk.f32.gmra.mrb[62].mxu0 %vm164_vm1, %v11550_v2  ;;  %8687 = vmatprep.mubr.msk.f32.mxu1 %vm164_vm1, %v7007_v5 }
 0x1d4   :  { %9129 = vmatprep.mubr.msk.f32.mxu0 %vm164_vm1, %v11055_v29  ;;  %v7015_v29 = vld [vmem:[%s12373_s0 + $0x198] sm:$0xff] }
 0x1d6   :  { %8688 = vmatmul.mubr.msk.f32.gmra.mrb[32].mxu1 %vm164_vm1, %v11192_v47 }
 0x1d7   :  { %9130 = vmatmul.mubr.msk.f32.vlgmr.msra.gmra.mrb[0].mxu0 %vm164_vm1, %v11068_v30  ;;  %8690 = vmatprep.mubr.msk.f32.mxu1 %vm164_vm1, %v11204_v52  ;;  %v7684_v30 = vld [vmem:[%s12373_s0 + $0x2f8] sm:$0xff] }
 0x1d8   :  { %9132 = vmatprep.mubr.msk.f32.mxu0 %vm164_vm1, %v11073_v31  ;;  %v7685_v31 = vld [vmem:[%s12373_s0 + $0x300] sm:$0xff] }
 0x1da   :  { %8691 = vmatmul.mubr.msk.f32.gmra.mrb[34].mxu1 %vm164_vm1, %v11209_v53 }
 0x1db   :  { %9133 = vmatmul.mubr.msk.f32.gmra.mrb[2].mxu0 %vm164_vm1, %v11086_v33  ;;  %8693 = vmatprep.mubr.msk.f32.mxu1 %vm164_vm1, %v11222_v57  ;;  %v7686_v33 = vld [vmem:[%s12373_s0 + $0x308] sm:$0xff] }
 0x1dc   :  { %9135 = vmatprep.mubr.msk.f32.mxu0 %vm164_vm1, %v11091_v34  ;;  %v7687_v34 = vld [vmem:[%s12373_s0 + $0x310] sm:$0xff] }
 0x1de   :  { %8694 = vmatmul.mubr.msk.f32.gmra.mrb[36].mxu1 %vm164_vm1, %v11227_v58 }
 0x1df   :  { %9136 = vmatmul.mubr.msk.f32.gmra.mrb[4].mxu0 %vm164_vm1, %v11104_v35  ;;  %8696 = vmatprep.mubr.msk.f32.mxu1 %vm164_vm1, %v11240_v61  ;;  %v7688_v35 = vld [vmem:[%s12373_s0 + $0x318] sm:$0xff] }
 0x1e0   :  { %9138 = vmatprep.mubr.msk.f32.mxu0 %vm164_vm1, %v11109_v36 }
 0x1e2   :  { %8697 = vmatmul.mubr.msk.f32.gmra.mrb[38].mxu1 %vm164_vm1, %v11245_v62 }
 0x1e3   :  { %9139 = vmatmul.mubr.msk.f32.gmra.mrb[6].mxu0 %vm164_vm1, %v10792_v49  ;;  %8699 = vmatprep.mubr.msk.f32.mxu1 %vm164_vm1, %v7015_v29  ;;  %v7023_v49 = vld [vmem:[%s12373_s0 + $0x1e8] sm:$0xff] }
 0x1e4   :  { %9141 = vmatprep.mubr.msk.f32.mxu0 %vm164_vm1, %v11122_v37 }
 0x1e6   :  { %8700 = vmatmul.mubr.msk.f32.gmra.mrb[40].mxu1 %vm164_vm1, %v11261_v4 }
 0x1e7   :  { %9142 = vmatmul.mubr.msk.f32.gmra.mrb[8].mxu0 %vm164_vm1, %v11135_v39  ;;  %8702 = vmatprep.mubr.msk.f32.mxu1 %vm164_vm1, %v11276_v14 }
 0x1e8   :  { %9144 = vmatprep.mubr.msk.f32.mxu0 %vm164_vm1, %v11140_v40 }
 0x1ea   :  { %8703 = vmatmul.mubr.msk.f32.gmra.mrb[42].mxu1 %vm164_vm1, %v11284_v3 }
 0x1eb   :  { %9145 = vmatmul.mubr.msk.f32.gmra.mrb[10].mxu0 %vm164_vm1, %v11153_v42  ;;  %8705 = vmatprep.mubr.msk.f32.mxu1 %vm164_vm1, %v11302_v9 }
 0x1ec   :  { %9147 = vmatprep.mubr.msk.f32.mxu0 %vm164_vm1, %v11158_v43 }
 0x1ee   :  { %8706 = vmatmul.mubr.msk.f32.gmra.mrb[44].mxu1 %vm164_vm1, %v11310_v10 }
 0x1ef   :  { %9148 = vmatmul.mubr.msk.f32.gmra.mrb[12].mxu0 %vm164_vm1, %v11171_v1  ;;  %8708 = vmatprep.mubr.msk.f32.mxu1 %vm164_vm1, %v11324_v55 }
 0x1f0   :  { %9150 = vmatprep.mubr.msk.f32.mxu0 %vm164_vm1, %v11176_v32 }
 0x1f2   :  { %8709 = vmatmul.mubr.msk.f32.gmra.mrb[46].mxu1 %vm164_vm1, %v11332_v20 }
 0x1f3   :  { %9151 = vmatmul.mubr.msk.f32.gmra.mrb[14].mxu0 %vm164_vm1, %v10829_v12  ;;  %8711 = vmatprep.mubr.msk.f32.mxu1 %vm164_vm1, %v7023_v49  ;;  %v7031_v12 = vld [vmem:[%s12373_s0 + $0x238] sm:$0xff] }
 0x1f4   :  { %9153 = vmatprep.mubr.msk.f32.mxu0 %vm164_vm1, %v11192_v47 }
 0x1f6   :  { %8712 = vmatmul.mubr.msk.f32.gmra.mrb[48].mxu1 %vm164_vm1, %v11346_v59 }
 0x1f7   :  { %9154 = vmatmul.mubr.msk.f32.gmra.mrb[16].mxu0 %vm164_vm1, %v11204_v52  ;;  %8714 = vmatprep.mubr.msk.f32.mxu1 %vm164_vm1, %v11358_v13 }
 0x1f8   :  { %9156 = vmatprep.mubr.msk.f32.mxu0 %vm164_vm1, %v11209_v53 }
 0x1fa   :  { %8715 = vmatmul.mubr.msk.f32.gmra.mrb[50].mxu1 %vm164_vm1, %v11363_v16 }
 0x1fb   :  { %9157 = vmatmul.mubr.msk.f32.gmra.mrb[18].mxu0 %vm164_vm1, %v11222_v57  ;;  %8717 = vmatprep.mubr.msk.f32.mxu1 %vm164_vm1, %v11376_v46 }
 0x1fc   :  { %9159 = vmatprep.mubr.msk.f32.mxu0 %vm164_vm1, %v11227_v58 }
 0x1fe   :  { %8718 = vmatmul.mubr.msk.f32.gmra.mrb[52].mxu1 %vm164_vm1, %v11381_v38 }
 0x1ff   :  { %9160 = vmatmul.mubr.msk.f32.gmra.mrb[20].mxu0 %vm164_vm1, %v11240_v61  ;;  %8720 = vmatprep.mubr.msk.f32.mxu1 %vm164_vm1, %v11394_v21 }
 0x200   :  { %9162 = vmatprep.mubr.msk.f32.mxu0 %vm164_vm1, %v11245_v62 }
 0x202   :  { %8721 = vmatmul.mubr.msk.f32.gmra.mrb[54].mxu1 %vm164_vm1, %v11399_v22 }
 0x203   :  { %9163 = vmatmul.mubr.msk.f32.gmra.mrb[22].mxu0 %vm164_vm1, %v10870_v15  ;;  %8723 = vmatprep.mubr.msk.f32.mxu1 %vm164_vm1, %v7031_v12  ;;  %v7161_v15 = vld [vmem:[%s12373_s0 + $0x288] sm:$0xff] }
 0x204   :  { %9165 = vmatprep.mubr.msk.f32.mxu0 %vm164_vm1, %v11261_v4 }
 0x206   :  { %8724 = vmatmul.mubr.msk.f32.gmra.mrb[56].mxu1 %vm164_vm1, %v11415_v25 }
 0x207   :  { %9166 = vmatmul.mubr.msk.f32.gmra.mrb[24].mxu0 %vm164_vm1, %v11276_v14  ;;  %8726 = vmatprep.mubr.msk.f32.mxu1 %vm164_vm1, %v11427_v26 }
 0x208   :  { %9168 = vmatprep.mubr.msk.f32.mxu0 %vm164_vm1, %v11284_v3 }
 0x20a   :  { %8727 = vmatmul.mubr.msk.f32.gmra.mrb[58].mxu1 %vm164_vm1, %v11432_v27 }
 0x20b   :  { %9169 = vmatmul.mubr.msk.f32.gmra.mrb[26].mxu0 %vm164_vm1, %v11302_v9  ;;  %8729 = vmatprep.mubr.msk.f32.mxu1 %vm164_vm1, %v11445_v28 }
 0x20c   :  { %9171 = vmatprep.mubr.msk.f32.mxu0 %vm164_vm1, %v11310_v10 }
 0x20e   :  { %8730 = vmatmul.mubr.msk.f32.gmra.mrb[60].mxu1 %vm164_vm1, %v11450_v44 }
 0x20f   :  { %9172 = vmatmul.mubr.msk.f32.gmra.mrb[28].mxu0 %vm164_vm1, %v11324_v55  ;;  %8732 = vmatprep.mubr.msk.f32.mxu1 %vm164_vm1, %v11463_v41 }
 0x210   :  { %9174 = vmatprep.mubr.msk.f32.mxu0 %vm164_vm1, %v11332_v20 }
 0x212   :  { %8733 = vmatmul.mubr.msk.f32.gmra.mrb[62].mxu1 %vm164_vm1, %v11468_v45 }
 0x213   :  { %9175 = vmatmul.mubr.msk.f32.gmra.mrb[30].mxu0 %vm164_vm1, %v10907_v17  ;;  %8785 = vmatprep.mubr.msk.f32.mxu1 %vm164_vm1, %v7015_v29  ;;  %v7681_v17 = vld [vmem:[%s12373_s0 + $0x2e0] sm:$0xff] }
 0x214   :  { %9177 = vmatprep.mubr.msk.f32.mxu0 %vm164_vm1, %v11346_v59 }
 0x216   :  { %8786 = vmatmul.mubr.msk.f32.vlgmr.msra.gmra.mrb[32].mxu1 %vm164_vm1, %v11261_v4 }
 0x217   :  { %9178 = vmatmul.mubr.msk.f32.gmra.mrb[32].mxu0 %vm164_vm1, %v11358_v13  ;;  %8788 = vmatprep.mubr.msk.f32.mxu1 %vm164_vm1, %v11276_v14 }
 0x218   :  { %9180 = vmatprep.mubr.msk.f32.mxu0 %vm164_vm1, %v11363_v16 }
 0x21a   :  { %8789 = vmatmul.mubr.msk.f32.gmra.mrb[34].mxu1 %vm164_vm1, %v11284_v3 }
 0x21b   :  { %9181 = vmatmul.mubr.msk.f32.gmra.mrb[34].mxu0 %vm164_vm1, %v11376_v46  ;;  %8791 = vmatprep.mubr.msk.f32.mxu1 %vm164_vm1, %v11302_v9 }
 0x21c   :  { %9183 = vmatprep.mubr.msk.f32.mxu0 %vm164_vm1, %v11381_v38 }
 0x21e   :  { %8792 = vmatmul.mubr.msk.f32.gmra.mrb[36].mxu1 %vm164_vm1, %v11310_v10 }
 0x21f   :  { %9184 = vmatmul.mubr.msk.f32.gmra.mrb[36].mxu0 %vm164_vm1, %v11394_v21  ;;  %8794 = vmatprep.mubr.msk.f32.mxu1 %vm164_vm1, %v11324_v55 }
 0x220   :  { %9186 = vmatprep.mubr.msk.f32.mxu0 %vm164_vm1, %v11399_v22 }
 0x222   :  { %8795 = vmatmul.mubr.msk.f32.gmra.mrb[38].mxu1 %vm164_vm1, %v11332_v20 }
 0x223   :  { %9187 = vmatmul.mubr.msk.f32.gmra.mrb[38].mxu0 %vm164_vm1, %v10944_v18  ;;  %8797 = vmatprep.mubr.msk.f32.mxu1 %vm164_vm1, %v7023_v49  ;;  %v7682_v18 = vld [vmem:[%s12373_s0 + $0x2e8] sm:$0xff] }
 0x224   :  { %9189 = vmatprep.mubr.msk.f32.mxu0 %vm164_vm1, %v11415_v25 }
 0x226   :  { %8798 = vmatmul.mubr.msk.f32.gmra.mrb[40].mxu1 %vm164_vm1, %v11346_v59 }
 0x227   :  { %9190 = vmatmul.mubr.msk.f32.gmra.mrb[40].mxu0 %vm164_vm1, %v11427_v26  ;;  %8800 = vmatprep.mubr.msk.f32.mxu1 %vm164_vm1, %v11358_v13 }
 0x228   :  { %9192 = vmatprep.mubr.msk.f32.mxu0 %vm164_vm1, %v11432_v27 }
 0x22a   :  { %8801 = vmatmul.mubr.msk.f32.gmra.mrb[42].mxu1 %vm164_vm1, %v11363_v16 }
 0x22b   :  { %9193 = vmatmul.mubr.msk.f32.gmra.mrb[42].mxu0 %vm164_vm1, %v11445_v28  ;;  %8803 = vmatprep.mubr.msk.f32.mxu1 %vm164_vm1, %v11376_v46 }
 0x22c   :  { %9195 = vmatprep.mubr.msk.f32.mxu0 %vm164_vm1, %v11450_v44 }
 0x22e   :  { %8804 = vmatmul.mubr.msk.f32.gmra.mrb[44].mxu1 %vm164_vm1, %v11381_v38 }
 0x22f   :  { %9196 = vmatmul.mubr.msk.f32.gmra.mrb[44].mxu0 %vm164_vm1, %v11463_v41  ;;  %8806 = vmatprep.mubr.msk.f32.mxu1 %vm164_vm1, %v11394_v21 }
 0x230   :  { %9198 = vmatprep.mubr.msk.f32.mxu0 %vm164_vm1, %v11468_v45 }
 0x232   :  { %8807 = vmatmul.mubr.msk.f32.gmra.mrb[46].mxu1 %vm164_vm1, %v11399_v22  ;;  %v11887_v22 = vld [vmem:[#allocation2] ss:$0 sm:$0xff] }
 0x233   :  { %9199 = vmatmul.mubr.msk.f32.gmra.mrb[46].mxu0 %vm164_vm1, %v10981_v19  ;;  %8809 = vmatprep.mubr.msk.f32.mxu1 %vm164_vm1, %v7031_v12  ;;  %v7683_v19 = vld [vmem:[%s12373_s0 + $0x2f0] sm:$0xff] }
 0x234   :  { %9201 = vmatprep.mubr.msk.f32.mxu0 %vm164_vm1, %v11484_v54 }
 0x236   :  { %8810 = vmatmul.mubr.msk.f32.gmra.mrb[48].mxu1 %vm164_vm1, %v11415_v25 }
 0x237   :  { %9202 = vmatmul.mubr.msk.f32.gmra.mrb[48].mxu0 %vm164_vm1, %v11496_v56  ;;  %8812 = vmatprep.mubr.msk.f32.mxu1 %vm164_vm1, %v11427_v26 }
 0x238   :  { %9204 = vmatprep.mubr.msk.f32.mxu0 %vm164_vm1, %v11501_v60 }
 0x23a   :  { %8813 = vmatmul.mubr.msk.f32.gmra.mrb[50].mxu1 %vm164_vm1, %v11432_v27 }
 0x23b   :  { %9205 = vmatmul.mubr.msk.f32.gmra.mrb[50].mxu0 %vm164_vm1, %v11514_v63  ;;  %8815 = vmatprep.mubr.msk.f32.mxu1 %vm164_vm1, %v11445_v28  ;;  %v11893_v28 = vld [vmem:[%s12376_s3] ss:$0 sm:$0xff] }
 0x23c   :  { %9207 = vmatprep.mubr.msk.f32.mxu0 %vm164_vm1, %v11519_v0 }
 0x23e   :  { %8816 = vmatmul.mubr.msk.f32.gmra.mrb[52].mxu1 %vm164_vm1, %v11450_v44 }
 0x23f   :  { %9208 = vmatmul.mubr.msk.f32.gmra.mrb[52].mxu0 %vm164_vm1, %v11532_v6  ;;  %8818 = vmatprep.mubr.msk.f32.mxu1 %vm164_vm1, %v11463_v41 }
 0x240   :  { %9210 = vmatprep.mubr.msk.f32.mxu0 %vm164_vm1, %v11537_v23 }
 0x242   :  { %8819 = vmatmul.mubr.msk.f32.gmra.mrb[54].mxu1 %vm164_vm1, %v11468_v45 }
 0x243   :  { %9211 = vmatmul.mubr.msk.f32.gmra.mrb[54].mxu0 %vm164_vm1, %v11550_v2  ;;  %8821 = vmatprep.mubr.msk.f32.mxu1 %vm164_vm1, %v7161_v15 }
 0x244   :  { %9213 = vmatprep.mubr.msk.f32.mxu0 %vm164_vm1, %v7681_v17 }
 0x246   :  { %8822 = vmatmul.mubr.msk.f32.gmra.mrb[56].mxu1 %vm164_vm1, %v11484_v54 }
 0x247   :  { %9214 = vmatmul.mubr.msk.f32.gmra.mrb[56].mxu0 %vm164_vm1, %v7682_v18  ;;  %8824 = vmatprep.mubr.msk.f32.mxu1 %vm164_vm1, %v11496_v56  ;;  %v11899_v56 = vld [vmem:[%s12377_s4] ss:$0 sm:$0xff] }
 0x248   :  { %9216 = vmatprep.mubr.msk.f32.mxu0 %vm164_vm1, %v7683_v19 }
 0x24a   :  { %8825 = vmatmul.mubr.msk.f32.gmra.mrb[58].mxu1 %vm164_vm1, %v11501_v60 }
 0x24b   :  { %9217 = vmatmul.mubr.msk.f32.gmra.mrb[58].mxu0 %vm164_vm1, %v7684_v30  ;;  %8827 = vmatprep.mubr.msk.f32.mxu1 %vm164_vm1, %v11514_v63 }
 0x24c   :  { %9219 = vmatprep.mubr.msk.f32.mxu0 %vm164_vm1, %v7685_v31 }
 0x24e   :  { %8828 = vmatmul.mubr.msk.f32.gmra.mrb[60].mxu1 %vm164_vm1, %v11519_v0 }
 0x24f   :  { %9220 = vmatmul.mubr.msk.f32.gmra.mrb[60].mxu0 %vm164_vm1, %v7686_v33  ;;  %8830 = vmatprep.mubr.msk.f32.mxu1 %vm164_vm1, %v11532_v6 }
 0x250   :  { %9222 = vmatprep.mubr.msk.f32.mxu0 %vm164_vm1, %v7687_v34 }
 0x252   :  { %8831 = vmatmul.mubr.msk.f32.gmra.mrb[62].mxu1 %vm164_vm1, %v11537_v23 }
 0x253   :  { %9223 = vmatmul.mubr.msk.f32.gmra.mrb[62].mxu0 %vm164_vm1, %v7688_v35 }
 0x269   :  { %v8641_v36 = vpop.f32.mrb[0].mxu1 }
 0x26a   :  { %v2365_v37 = vpop.f32.mrb[1].mxu1 }
 0x26d   :  { %v8644_v39 = vpop.f32.mrb[2].mxu1 }
 0x26e   :  { %v2375_v40 = vpop.f32.mrb[3].mxu1 }
 0x271   :  { %v8647_v42 = vpop.f32.mrb[4].mxu1 }
 0x272   :  { %v2385_v43 = vpop.f32.mrb[5].mxu1 }
 0x275   :  { %v11835_v1 = vpop.f32.mrb[6].mxu1 }
 0x276   :  { %v11837_v32 = vpop.f32.mrb[7].mxu1 }
 0x279   :  { %v11839_v47 = vpop.f32.mrb[8].mxu1 }
 0x27a   :  { %v11841_v52 = vpop.f32.mrb[9].mxu1 }
 0x27d   :  { %v11843_v53 = vpop.f32.mrb[10].mxu1 }
 0x27e   :  { %v11845_v57 = vpop.f32.mrb[11].mxu1 }
 0x281   :  { %v11847_v58 = vpop.f32.mrb[12].mxu1 }
 0x282   :  { %v11849_v61 = vpop.f32.mrb[13].mxu1 }
 0x285   :  { %v11851_v62 = vpop.f32.mrb[14].mxu1 }
 0x286   :  { %v11853_v4 = vpop.f32.mrb[15].mxu1 }
 0x289   :  { %v11855_v14 = vpop.f32.mrb[16].mxu1 }
 0x28a   :  { %v11857_v3 = vpop.f32.mrb[17].mxu1 }
 0x28d   :  { %v11859_v7 = vpop.f32.mrb[18].mxu1 }
 0x28e   :  { %v11861_v9 = vpop.f32.mrb[19].mxu1 }
 0x291   :  { %v11863_v48 = vpop.f32.mrb[20].mxu1 }
 0x292   :  { %v11865_v10 = vpop.f32.mrb[21].mxu1 }
 0x295   :  { %v11867_v11 = vpop.f32.mrb[22].mxu1 }
 0x296   :  { %v11869_v55 = vpop.f32.mrb[23].mxu1 }
 0x299   :  { %v11871_v50 = vpop.f32.mrb[24].mxu1 }
 0x29a   :  { %v11873_v20 = vpop.f32.mrb[25].mxu1 }
 0x29d   :  { %v11875_v8 = vpop.f32.mrb[26].mxu1 }
 0x29e   :  { %v11877_v59 = vpop.f32.mrb[27].mxu1 }
 0x2a1   :  { %v11879_v13 = vpop.f32.mrb[28].mxu1 }
 0x2a2   :  { %v11881_v16 = vpop.f32.mrb[29].mxu1 }
 0x2a5   :  { %v11883_v46 = vpop.f32.mrb[30].mxu1 }
 0x2a6   :  { %v11885_v38 = vpop.f32.mrb[31].mxu1 }
 0x2aa   :  { %v9131_v21 = vpop.f32.mrb[0].mxu0 }
 0x2ab   :  { %v9227_v24 = vadd.f32 %v9131_v21, %v8641_v36  ;;  %v5920_v25 = vpop.f32.mrb[1].mxu0 }
 0x2ac   :  { %v9228_v26 = vadd.f32 %v5920_v25, %v2365_v37 }
 0x2ad   :  { %v6311_v27 = vadd.f32 %v9227_v24, %v11887_v22 }
 0x2ae   :  { %v6310_v44 = vadd.f32 %v9228_v26, %v11887_v22  ;;  %v9134_v41 = vpop.f32.mrb[2].mxu0 }
 0x2af   :  { %v6375_v45 = vmax.f32 %v6311_v27, 0.0  ;;  %v9229_v51 = vadd.f32 %v9134_v41, %v8644_v39  ;;  %v5930_v54 = vpop.f32.mrb[3].mxu0 }
 0x2b0   :  { %v6374_v60 = vmax.f32 %v6310_v44, 0.0  ;;  %v9230_v63 = vadd.f32 %v5930_v54, %v2375_v40 }
 0x2b1   :  { %v6446_v0 = vmul.f32 %v11893_v28, %v6375_v45  ;;  %v6313_v6 = vadd.f32 %v9229_v51, %v11887_v22 }
 0x2b2   :  { %v6445_v23 = vmul.f32 %v11893_v28, %v6374_v60  ;;  %v6312_v2 = vadd.f32 %v9230_v63, %v11887_v22  ;;  %v9137_v5 = vpop.f32.mrb[4].mxu0 }
 0x2b3   :  { %v6517_v29 = vadd.f32 %v11899_v56, %v6446_v0  ;;  %v6377_v49 = vmax.f32 %v6313_v6, 0.0  ;;  %v9231_v12 = vadd.f32 %v9137_v5, %v8647_v42  ;;  %v5940_v15 = vpop.f32.mrb[5].mxu0 }
 0x2b4   :  { %v6516_v17 = vadd.f32 %v11899_v56, %v6445_v23  ;;  %v6376_v18 = vmax.f32 %v6312_v2, 0.0  ;;  %v9232_v19 = vadd.f32 %v5940_v15, %v2385_v43 }
 0x2b5   :  { %6582 = vst.msk [vmem:[%s12378_s5 + $0x8] sm:$0xff] %vm6580_vm2, %v6517_v29  ;;  %v6448_v30 = vmul.f32 %v11893_v28, %v6377_v49  ;;  %v6315_v31 = vadd.f32 %v9231_v12, %v11887_v22 }
 0x2b6   :  { %6581 = vst.msk [vmem:[%s12378_s5] sm:$0xff] %vm6580_vm2, %v6516_v17  ;;  %v6447_v33 = vmul.f32 %v11893_v28, %v6376_v18  ;;  %v6314_v34 = vadd.f32 %v9232_v19, %v11887_v22  ;;  %v9140_v35 = vpop.f32.mrb[6].mxu0 }
 0x2b7   :  { %v6519_v36 = vadd.f32 %v11899_v56, %v6448_v30  ;;  %v6379_v37 = vmax.f32 %v6315_v31, 0.0  ;;  %v9233_v39 = vadd.f32 %v9140_v35, %v11835_v1  ;;  %v5950_v40 = vpop.f32.mrb[7].mxu0 }
 0x2b8   :  { %v6518_v42 = vadd.f32 %v11899_v56, %v6447_v33  ;;  %v6378_v43 = vmax.f32 %v6314_v34, 0.0  ;;  %v9234_v21 = vadd.f32 %v5950_v40, %v11837_v32 }
 0x2b9   :  { %6584 = vst.msk [vmem:[%s12378_s5 + $0x18] sm:$0xff] %vm6580_vm2, %v6519_v36  ;;  %v6450_v24 = vmul.f32 %v11893_v28, %v6379_v37  ;;  %v6317_v25 = vadd.f32 %v9233_v39, %v11887_v22 }
 0x2ba   :  { %6583 = vst.msk [vmem:[%s12378_s5 + $0x10] sm:$0xff] %vm6580_vm2, %v6518_v42  ;;  %v6449_v1 = vmul.f32 %v11893_v28, %v6378_v43  ;;  %v6316_v26 = vadd.f32 %v9234_v21, %v11887_v22  ;;  %v9143_v27 = vpop.f32.mrb[8].mxu0 }
 0x2bb   :  { %v6521_v32 = vadd.f32 %v11899_v56, %v6450_v24  ;;  %v6381_v44 = vmax.f32 %v6317_v25, 0.0  ;;  %v9235_v41 = vadd.f32 %v9143_v27, %v11839_v47  ;;  %v5960_v45 = vpop.f32.mrb[9].mxu0 }
 0x2bc   :  { %v6520_v51 = vadd.f32 %v11899_v56, %v6449_v1  ;;  %v6380_v54 = vmax.f32 %v6316_v26, 0.0  ;;  %v9236_v60 = vadd.f32 %v5960_v45, %v11841_v52 }
 0x2bd   :  { %6586 = vst.msk [vmem:[%s12378_s5 + $0x28] sm:$0xff] %vm6580_vm2, %v6521_v32  ;;  %v6452_v63 = vmul.f32 %v11893_v28, %v6381_v44  ;;  %v6319_v0 = vadd.f32 %v9235_v41, %v11887_v22 }
 0x2be   :  { %6585 = vst.msk [vmem:[%s12378_s5 + $0x20] sm:$0xff] %vm6580_vm2, %v6520_v51  ;;  %v6451_v47 = vmul.f32 %v11893_v28, %v6380_v54  ;;  %v6318_v6 = vadd.f32 %v9236_v60, %v11887_v22  ;;  %v9146_v23 = vpop.f32.mrb[10].mxu0 }
 0x2bf   :  { %v6523_v52 = vadd.f32 %v11899_v56, %v6452_v63  ;;  %v6383_v2 = vmax.f32 %v6319_v0, 0.0  ;;  %v9237_v5 = vadd.f32 %v9146_v23, %v11843_v53  ;;  %v5970_v29 = vpop.f32.mrb[11].mxu0 }
 0x2c0   :  { %v6522_v49 = vadd.f32 %v11899_v56, %v6451_v47  ;;  %v6382_v12 = vmax.f32 %v6318_v6, 0.0  ;;  %v9238_v15 = vadd.f32 %v5970_v29, %v11845_v57 }
 0x2c1   :  { %6588 = vst.msk [vmem:[%s12378_s5 + $0x38] sm:$0xff] %vm6580_vm2, %v6523_v52  ;;  %v6454_v17 = vmul.f32 %v11893_v28, %v6383_v2  ;;  %v6321_v18 = vadd.f32 %v9237_v5, %v11887_v22 }
 0x2c2   :  { %6587 = vst.msk [vmem:[%s12378_s5 + $0x30] sm:$0xff] %vm6580_vm2, %v6522_v49  ;;  %v6453_v53 = vmul.f32 %v11893_v28, %v6382_v12  ;;  %v6320_v19 = vadd.f32 %v9238_v15, %v11887_v22  ;;  %v9149_v30 = vpop.f32.mrb[12].mxu0 }
 0x2c3   :  { %v6525_v57 = vadd.f32 %v11899_v56, %v6454_v17  ;;  %v6385_v31 = vmax.f32 %v6321_v18, 0.0  ;;  %v9239_v33 = vadd.f32 %v9149_v30, %v11847_v58  ;;  %v5980_v34 = vpop.f32.mrb[13].mxu0 }
 0x2c4   :  { %v6524_v35 = vadd.f32 %v11899_v56, %v6453_v53  ;;  %v6384_v36 = vmax.f32 %v6320_v19, 0.0  ;;  %v9240_v37 = vadd.f32 %v5980_v34, %v11849_v61 }
 0x2c5   :  { %6590 = vst.msk [vmem:[%s12378_s5 + $0x48] sm:$0xff] %vm6580_vm2, %v6525_v57  ;;  %v6456_v39 = vmul.f32 %v11893_v28, %v6385_v31  ;;  %v6323_v40 = vadd.f32 %v9239_v33, %v11887_v22 }
 0x2c6   :  { %6589 = vst.msk [vmem:[%s12378_s5 + $0x40] sm:$0xff] %vm6580_vm2, %v6524_v35  ;;  %v6455_v58 = vmul.f32 %v11893_v28, %v6384_v36  ;;  %v6322_v42 = vadd.f32 %v9240_v37, %v11887_v22  ;;  %v9152_v43 = vpop.f32.mrb[14].mxu0 }
 0x2c7   :  { %v6527_v61 = vadd.f32 %v11899_v56, %v6456_v39  ;;  %v6387_v21 = vmax.f32 %v6323_v40, 0.0  ;;  %v9241_v24 = vadd.f32 %v9152_v43, %v11851_v62  ;;  %v5990_v25 = vpop.f32.mrb[15].mxu0 }
 0x2c8   :  { %v6526_v1 = vadd.f32 %v11899_v56, %v6455_v58  ;;  %v6386_v26 = vmax.f32 %v6322_v42, 0.0  ;;  %v9242_v27 = vadd.f32 %v5990_v25, %v11853_v4 }
 0x2c9   :  { %6592 = vst.msk [vmem:[%s12378_s5 + $0x58] sm:$0xff] %vm6580_vm2, %v6527_v61  ;;  %v6458_v32 = vmul.f32 %v11893_v28, %v6387_v21  ;;  %v6325_v44 = vadd.f32 %v9241_v24, %v11887_v22 }
 0x2ca   :  { %6591 = vst.msk [vmem:[%s12378_s5 + $0x50] sm:$0xff] %vm6580_vm2, %v6526_v1  ;;  %v6457_v62 = vmul.f32 %v11893_v28, %v6386_v26  ;;  %v6324_v41 = vadd.f32 %v9242_v27, %v11887_v22  ;;  %v9155_v45 = vpop.f32.mrb[16].mxu0 }
 0x2cb   :  { %v6529_v4 = vadd.f32 %v11899_v56, %v6458_v32  ;;  %v6389_v51 = vmax.f32 %v6325_v44, 0.0  ;;  %v9243_v54 = vadd.f32 %v9155_v45, %v11855_v14  ;;  %v6000_v60 = vpop.f32.mrb[17].mxu0 }
 0x2cc   :  { %v6528_v63 = vadd.f32 %v11899_v56, %v6457_v62  ;;  %v6388_v0 = vmax.f32 %v6324_v41, 0.0  ;;  %v9244_v47 = vadd.f32 %v6000_v60, %v11857_v3 }
 0x2cd   :  { %6594 = vst.msk [vmem:[%s12378_s5 + $0x68] sm:$0xff] %vm6580_vm2, %v6529_v4  ;;  %v6460_v6 = vmul.f32 %v11893_v28, %v6389_v51  ;;  %v6327_v23 = vadd.f32 %v9243_v54, %v11887_v22 }
 0x2ce   :  { %6593 = vst.msk [vmem:[%s12378_s5 + $0x60] sm:$0xff] %vm6580_vm2, %v6528_v63  ;;  %v6459_v14 = vmul.f32 %v11893_v28, %v6388_v0  ;;  %v6326_v52 = vadd.f32 %v9244_v47, %v11887_v22  ;;  %v9158_v2 = vpop.f32.mrb[18].mxu0 }
 0x2cf   :  { %v6531_v3 = vadd.f32 %v11899_v56, %v6460_v6  ;;  %v6391_v5 = vmax.f32 %v6327_v23, 0.0  ;;  %v9245_v29 = vadd.f32 %v9158_v2, %v11859_v7  ;;  %v6010_v49 = vpop.f32.mrb[19].mxu0 }
 0x2d0   :  { %v6530_v12 = vadd.f32 %v11899_v56, %v6459_v14  ;;  %v6390_v15 = vmax.f32 %v6326_v52, 0.0  ;;  %v9246_v17 = vadd.f32 %v6010_v49, %v11861_v9 }
 0x2d1   :  { %6596 = vst.msk [vmem:[%s12378_s5 + $0x78] sm:$0xff] %vm6580_vm2, %v6531_v3  ;;  %v6462_v18 = vmul.f32 %v11893_v28, %v6391_v5  ;;  %v6329_v53 = vadd.f32 %v9245_v29, %v11887_v22 }
 0x2d2   :  { %6595 = vst.msk [vmem:[%s12378_s5 + $0x70] sm:$0xff] %vm6580_vm2, %v6530_v12  ;;  %v6461_v7 = vmul.f32 %v11893_v28, %v6390_v15  ;;  %v6328_v19 = vadd.f32 %v9246_v17, %v11887_v22  ;;  %v9161_v30 = vpop.f32.mrb[20].mxu0 }
 0x2d3   :  { %v6533_v9 = vadd.f32 %v11899_v56, %v6462_v18  ;;  %v6393_v57 = vmax.f32 %v6329_v53, 0.0  ;;  %v9247_v31 = vadd.f32 %v9161_v30, %v11863_v48  ;;  %v6020_v33 = vpop.f32.mrb[21].mxu0 }
 0x2d4   :  { %v6532_v34 = vadd.f32 %v11899_v56, %v6461_v7  ;;  %v6392_v35 = vmax.f32 %v6328_v19, 0.0  ;;  %v9248_v36 = vadd.f32 %v6020_v33, %v11865_v10 }
 0x2d5   :  { %6598 = vst.msk [vmem:[%s12378_s5 + $0x88] sm:$0xff] %vm6580_vm2, %v6533_v9  ;;  %v6464_v37 = vmul.f32 %v11893_v28, %v6393_v57  ;;  %v6331_v39 = vadd.f32 %v9247_v31, %v11887_v22 }
 0x2d6   :  { %6597 = vst.msk [vmem:[%s12378_s5 + $0x80] sm:$0xff] %vm6580_vm2, %v6532_v34  ;;  %v6463_v48 = vmul.f32 %v11893_v28, %v6392_v35  ;;  %v6330_v40 = vadd.f32 %v9248_v36, %v11887_v22  ;;  %v9164_v58 = vpop.f32.mrb[22].mxu0 }
 0x2d7   :  { %v6535_v10 = vadd.f32 %v11899_v56, %v6464_v37  ;;  %v6395_v42 = vmax.f32 %v6331_v39, 0.0  ;;  %v9249_v43 = vadd.f32 %v9164_v58, %v11867_v11  ;;  %v6030_v61 = vpop.f32.mrb[23].mxu0 }
 0x2d8   :  { %v6534_v21 = vadd.f32 %v11899_v56, %v6463_v48  ;;  %v6394_v24 = vmax.f32 %v6330_v40, 0.0  ;;  %v9250_v25 = vadd.f32 %v6030_v61, %v11869_v55 }
 0x2d9   :  { %6600 = vst.msk [vmem:[%s12378_s5 + $0x98] sm:$0xff] %vm6580_vm2, %v6535_v10  ;;  %v6466_v1 = vmul.f32 %v11893_v28, %v6395_v42  ;;  %v6333_v26 = vadd.f32 %v9249_v43, %v11887_v22 }
 0x2da   :  { %6599 = vst.msk [vmem:[%s12378_s5 + $0x90] sm:$0xff] %vm6580_vm2, %v6534_v21  ;;  %v6465_v11 = vmul.f32 %v11893_v28, %v6394_v24  ;;  %v6332_v27 = vadd.f32 %v9250_v25, %v11887_v22  ;;  %v9167_v32 = vpop.f32.mrb[24].mxu0 }
 0x2db   :  { %v6537_v55 = vadd.f32 %v11899_v56, %v6466_v1  ;;  %v6397_v44 = vmax.f32 %v6333_v26, 0.0  ;;  %v9251_v62 = vadd.f32 %v9167_v32, %v11871_v50  ;;  %v6040_v41 = vpop.f32.mrb[25].mxu0 }
 0x2dc   :  { %v6536_v45 = vadd.f32 %v11899_v56, %v6465_v11  ;;  %v6396_v4 = vmax.f32 %v6332_v27, 0.0  ;;  %v9252_v51 = vadd.f32 %v6040_v41, %v11873_v20 }
 0x2dd   :  { %6602 = vst.msk [vmem:[%s12378_s5 + $0xa8] sm:$0xff] %vm6580_vm2, %v6537_v55  ;;  %v6468_v54 = vmul.f32 %v11893_v28, %v6397_v44  ;;  %v6335_v60 = vadd.f32 %v9251_v62, %v11887_v22 }
 0x2de   :  { %6601 = vst.msk [vmem:[%s12378_s5 + $0xa0] sm:$0xff] %vm6580_vm2, %v6536_v45  ;;  %v6467_v50 = vmul.f32 %v11893_v28, %v6396_v4  ;;  %v6334_v63 = vadd.f32 %v9252_v51, %v11887_v22  ;;  %v9170_v0 = vpop.f32.mrb[26].mxu0 }
 0x2df   :  { %v6539_v20 = vadd.f32 %v11899_v56, %v6468_v54  ;;  %v6399_v47 = vmax.f32 %v6335_v60, 0.0  ;;  %v9253_v6 = vadd.f32 %v9170_v0, %v11875_v8  ;;  %v6050_v23 = vpop.f32.mrb[27].mxu0 }
 0x2e0   :  { %v6538_v14 = vadd.f32 %v11899_v56, %v6467_v50  ;;  %v6398_v52 = vmax.f32 %v6334_v63, 0.0  ;;  %v9254_v2 = vadd.f32 %v6050_v23, %v11877_v59 }
 0x2e1   :  { %6604 = vst.msk [vmem:[%s12378_s5 + $0xb8] sm:$0xff] %vm6580_vm2, %v6539_v20  ;;  %v6470_v3 = vmul.f32 %v11893_v28, %v6399_v47  ;;  %v6337_v5 = vadd.f32 %v9253_v6, %v11887_v22 }
 0x2e2   :  { %6603 = vst.msk [vmem:[%s12378_s5 + $0xb0] sm:$0xff] %vm6580_vm2, %v6538_v14  ;;  %v6469_v8 = vmul.f32 %v11893_v28, %v6398_v52  ;;  %v6336_v29 = vadd.f32 %v9254_v2, %v11887_v22  ;;  %v9173_v49 = vpop.f32.mrb[28].mxu0 }
 0x2e3   :  { %v6541_v59 = vadd.f32 %v11899_v56, %v6470_v3  ;;  %v6401_v12 = vmax.f32 %v6337_v5, 0.0  ;;  %v9255_v15 = vadd.f32 %v9173_v49, %v11879_v13  ;;  %v6060_v17 = vpop.f32.mrb[29].mxu0 }
 0x2e4   :  { %v6540_v18 = vadd.f32 %v11899_v56, %v6469_v8  ;;  %v6400_v53 = vmax.f32 %v6336_v29, 0.0  ;;  %v9256_v7 = vadd.f32 %v6060_v17, %v11881_v16 }
 0x2e5   :  { %6606 = vst.msk [vmem:[%s12378_s5 + $0xc8] sm:$0xff] %vm6580_vm2, %v6541_v59  ;;  %v6472_v19 = vmul.f32 %v11893_v28, %v6401_v12  ;;  %v6339_v30 = vadd.f32 %v9255_v15, %v11887_v22 }
 0x2e6   :  { %6605 = vst.msk [vmem:[%s12378_s5 + $0xc0] sm:$0xff] %vm6580_vm2, %v6540_v18  ;;  %v6471_v13 = vmul.f32 %v11893_v28, %v6400_v53  ;;  %v6338_v9 = vadd.f32 %v9256_v7, %v11887_v22  ;;  %v9176_v57 = vpop.f32.mrb[30].mxu0 }
 0x2e7   :  { %v6543_v16 = vadd.f32 %v11899_v56, %v6472_v19  ;;  %v6403_v31 = vmax.f32 %v6339_v30, 0.0  ;;  %v9257_v33 = vadd.f32 %v9176_v57, %v11883_v46  ;;  %v6070_v34 = vpop.f32.mrb[31].mxu0 }
 0x2e8   :  { %v6542_v35 = vadd.f32 %v11899_v56, %v6471_v13  ;;  %v6402_v36 = vmax.f32 %v6338_v9, 0.0  ;;  %v9258_v37 = vadd.f32 %v6070_v34, %v11885_v38 }
 0x2e9   :  { %6608 = vst.msk [vmem:[%s12378_s5 + $0xd8] sm:$0xff] %vm6580_vm2, %v6543_v16  ;;  %v6474_v39 = vmul.f32 %v11893_v28, %v6403_v31  ;;  %v6341_v48 = vadd.f32 %v9257_v33, %v11887_v22  ;;  %v8787_v40 = vpop.f32.mrb[32].mxu1 }
 0x2ea   :  { %6607 = vst.msk [vmem:[%s12378_s5 + $0xd0] sm:$0xff] %vm6580_vm2, %v6542_v35  ;;  %v6473_v46 = vmul.f32 %v11893_v28, %v6402_v36  ;;  %v6340_v58 = vadd.f32 %v9258_v37, %v11887_v22  ;;  %v9179_v38 = vpop.f32.mrb[32].mxu0  ;;  %v3236_v10 = vpop.f32.mrb[33].mxu1 }
 0x2eb   :  { %v6545_v42 = vadd.f32 %v11899_v56, %v6474_v39  ;;  %v6405_v43 = vmax.f32 %v6341_v48, 0.0  ;;  %v9259_v61 = vadd.f32 %v9179_v38, %v8787_v40  ;;  %v6080_v21 = vpop.f32.mrb[33].mxu0 }
 0x2ec   :  { %v6544_v24 = vadd.f32 %v11899_v56, %v6473_v46  ;;  %v6404_v25 = vmax.f32 %v6340_v58, 0.0  ;;  %v9260_v1 = vadd.f32 %v6080_v21, %v3236_v10 }
 0x2ed   :  { %6610 = vst.msk [vmem:[%s12378_s5 + $0xe8] sm:$0xff] %vm6580_vm2, %v6545_v42  ;;  %v6476_v26 = vmul.f32 %v11893_v28, %v6405_v43  ;;  %v6343_v11 = vadd.f32 %v9259_v61, %v11887_v22  ;;  %v8790_v27 = vpop.f32.mrb[34].mxu1 }
 0x2ee   :  { %6609 = vst.msk [vmem:[%s12378_s5 + $0xe0] sm:$0xff] %vm6580_vm2, %v6544_v24  ;;  %v6475_v32 = vmul.f32 %v11893_v28, %v6404_v25  ;;  %v6342_v55 = vadd.f32 %v9260_v1, %v11887_v22  ;;  %v9182_v44 = vpop.f32.mrb[34].mxu0  ;;  %v3246_v62 = vpop.f32.mrb[35].mxu1 }
 0x2ef   :  { %v6547_v41 = vadd.f32 %v11899_v56, %v6476_v26  ;;  %v6407_v45 = vmax.f32 %v6343_v11, 0.0  ;;  %v9261_v4 = vadd.f32 %v9182_v44, %v8790_v27  ;;  %v6090_v51 = vpop.f32.mrb[35].mxu0 }
 0x2f0   :  { %v6546_v54 = vadd.f32 %v11899_v56, %v6475_v32  ;;  %v6406_v60 = vmax.f32 %v6342_v55, 0.0  ;;  %v9262_v50 = vadd.f32 %v6090_v51, %v3246_v62 }
 0x2f1   :  { %6612 = vst.msk [vmem:[%s12378_s5 + $0xf8] sm:$0xff] %vm6580_vm2, %v6547_v41  ;;  %v6478_v63 = vmul.f32 %v11893_v28, %v6407_v45  ;;  %v6345_v0 = vadd.f32 %v9261_v4, %v11887_v22  ;;  %v8793_v20 = vpop.f32.mrb[36].mxu1 }
 0x2f2   :  { %6611 = vst.msk [vmem:[%s12378_s5 + $0xf0] sm:$0xff] %vm6580_vm2, %v6546_v54  ;;  %v6477_v47 = vmul.f32 %v11893_v28, %v6406_v60  ;;  %v6344_v6 = vadd.f32 %v9262_v50, %v11887_v22  ;;  %v9185_v23 = vpop.f32.mrb[36].mxu0  ;;  %v3256_v14 = vpop.f32.mrb[37].mxu1 }
 0x2f3   :  { %v6549_v52 = vadd.f32 %v11899_v56, %v6478_v63  ;;  %v6409_v2 = vmax.f32 %v6345_v0, 0.0  ;;  %v9263_v3 = vadd.f32 %v9185_v23, %v8793_v20  ;;  %v6100_v5 = vpop.f32.mrb[37].mxu0 }
 0x2f4   :  { %v6548_v8 = vadd.f32 %v11899_v56, %v6477_v47  ;;  %v6408_v29 = vmax.f32 %v6344_v6, 0.0  ;;  %v9264_v49 = vadd.f32 %v6100_v5, %v3256_v14 }
 0x2f5   :  { %6614 = vst.msk [vmem:[%s12378_s5 + $0x108] sm:$0xff] %vm6580_vm2, %v6549_v52  ;;  %v6480_v59 = vmul.f32 %v11893_v28, %v6409_v2  ;;  %v6347_v12 = vadd.f32 %v9263_v3, %v11887_v22  ;;  %v8796_v15 = vpop.f32.mrb[38].mxu1 }
 0x2f6   :  { %6613 = vst.msk [vmem:[%s12378_s5 + $0x100] sm:$0xff] %vm6580_vm2, %v6548_v8  ;;  %v6479_v17 = vmul.f32 %v11893_v28, %v6408_v29  ;;  %v6346_v18 = vadd.f32 %v9264_v49, %v11887_v22  ;;  %v9188_v53 = vpop.f32.mrb[38].mxu0  ;;  %v3266_v7 = vpop.f32.mrb[39].mxu1 }
 0x2f7   :  { %v6551_v19 = vadd.f32 %v11899_v56, %v6480_v59  ;;  %v6411_v30 = vmax.f32 %v6347_v12, 0.0  ;;  %v9265_v13 = vadd.f32 %v9188_v53, %v8796_v15  ;;  %v6110_v9 = vpop.f32.mrb[39].mxu0 }
 0x2f8   :  { %v6550_v57 = vadd.f32 %v11899_v56, %v6479_v17  ;;  %v6410_v16 = vmax.f32 %v6346_v18, 0.0  ;;  %v9266_v31 = vadd.f32 %v6110_v9, %v3266_v7 }
 0x2f9   :  { %6616 = vst.msk [vmem:[%s12378_s5 + $0x118] sm:$0xff] %vm6580_vm2, %v6551_v19  ;;  %v6482_v33 = vmul.f32 %v11893_v28, %v6411_v30  ;;  %v6349_v34 = vadd.f32 %v9265_v13, %v11887_v22  ;;  %v8799_v35 = vpop.f32.mrb[40].mxu1 }
 0x2fa   :  { %6615 = vst.msk [vmem:[%s12378_s5 + $0x110] sm:$0xff] %vm6580_vm2, %v6550_v57  ;;  %v6481_v36 = vmul.f32 %v11893_v28, %v6410_v16  ;;  %v6348_v37 = vadd.f32 %v9266_v31, %v11887_v22  ;;  %v9191_v39 = vpop.f32.mrb[40].mxu0  ;;  %v3276_v48 = vpop.f32.mrb[41].mxu1 }
 0x2fb   :  { %v6553_v40 = vadd.f32 %v11899_v56, %v6482_v33  ;;  %v6413_v46 = vmax.f32 %v6349_v34, 0.0  ;;  %v9267_v58 = vadd.f32 %v9191_v39, %v8799_v35  ;;  %v6120_v38 = vpop.f32.mrb[41].mxu0 }
 0x2fc   :  { %v6552_v10 = vadd.f32 %v11899_v56, %v6481_v36  ;;  %v6412_v42 = vmax.f32 %v6348_v37, 0.0  ;;  %v9268_v43 = vadd.f32 %v6120_v38, %v3276_v48 }
 0x2fd   :  { %6618 = vst.msk [vmem:[%s12378_s5 + $0x128] sm:$0xff] %vm6580_vm2, %v6553_v40  ;;  %v6484_v61 = vmul.f32 %v11893_v28, %v6413_v46  ;;  %v6351_v21 = vadd.f32 %v9267_v58, %v11887_v22  ;;  %v8802_v24 = vpop.f32.mrb[42].mxu1 }
 0x2fe   :  { %6617 = vst.msk [vmem:[%s12378_s5 + $0x120] sm:$0xff] %vm6580_vm2, %v6552_v10  ;;  %v6483_v25 = vmul.f32 %v11893_v28, %v6412_v42  ;;  %v6350_v1 = vadd.f32 %v9268_v43, %v11887_v22  ;;  %v9194_v26 = vpop.f32.mrb[42].mxu0  ;;  %v3286_v11 = vpop.f32.mrb[43].mxu1 }
 0x2ff   :  { %v6555_v27 = vadd.f32 %v11899_v56, %v6484_v61  ;;  %v6415_v32 = vmax.f32 %v6351_v21, 0.0  ;;  %v9269_v55 = vadd.f32 %v9194_v26, %v8802_v24  ;;  %v6130_v44 = vpop.f32.mrb[43].mxu0 }
 0x300   :  { %v6554_v62 = vadd.f32 %v11899_v56, %v6483_v25  ;;  %v6414_v41 = vmax.f32 %v6350_v1, 0.0  ;;  %v9270_v45 = vadd.f32 %v6130_v44, %v3286_v11 }
 0x301   :  { %6620 = vst.msk [vmem:[%s12378_s5 + $0x138] sm:$0xff] %vm6580_vm2, %v6555_v27  ;;  %v6486_v4 = vmul.f32 %v11893_v28, %v6415_v32  ;;  %v6353_v51 = vadd.f32 %v9269_v55, %v11887_v22  ;;  %v8805_v54 = vpop.f32.mrb[44].mxu1 }
 0x302   :  { %6619 = vst.msk [vmem:[%s12378_s5 + $0x130] sm:$0xff] %vm6580_vm2, %v6554_v62  ;;  %v6485_v60 = vmul.f32 %v11893_v28, %v6414_v41  ;;  %v6352_v50 = vadd.f32 %v9270_v45, %v11887_v22  ;;  %v9197_v63 = vpop.f32.mrb[44].mxu0  ;;  %v3296_v0 = vpop.f32.mrb[45].mxu1 }
 0x303   :  { %v6557_v20 = vadd.f32 %v11899_v56, %v6486_v4  ;;  %v6417_v47 = vmax.f32 %v6353_v51, 0.0  ;;  %v9271_v6 = vadd.f32 %v9197_v63, %v8805_v54  ;;  %v6140_v23 = vpop.f32.mrb[45].mxu0 }
 0x304   :  { %v6556_v14 = vadd.f32 %v11899_v56, %v6485_v60  ;;  %v6416_v52 = vmax.f32 %v6352_v50, 0.0  ;;  %v9272_v2 = vadd.f32 %v6140_v23, %v3296_v0 }
 0x305   :  { %6622 = vst.msk [vmem:[%s12378_s5 + $0x148] sm:$0xff] %vm6580_vm2, %v6557_v20  ;;  %v6488_v3 = vmul.f32 %v11893_v28, %v6417_v47  ;;  %v6355_v5 = vadd.f32 %v9271_v6, %v11887_v22  ;;  %v8808_v8 = vpop.f32.mrb[46].mxu1 }
 0x306   :  { %6621 = vst.msk [vmem:[%s12378_s5 + $0x140] sm:$0xff] %vm6580_vm2, %v6556_v14  ;;  %v6487_v29 = vmul.f32 %v11893_v28, %v6416_v52  ;;  %v6354_v49 = vadd.f32 %v9272_v2, %v11887_v22  ;;  %v9200_v59 = vpop.f32.mrb[46].mxu0  ;;  %v3306_v12 = vpop.f32.mrb[47].mxu1 }
 0x307   :  { %v6559_v15 = vadd.f32 %v11899_v56, %v6488_v3  ;;  %v6419_v17 = vmax.f32 %v6355_v5, 0.0  ;;  %v9273_v18 = vadd.f32 %v9200_v59, %v8808_v8  ;;  %v6150_v53 = vpop.f32.mrb[47].mxu0 }
 0x308   :  { %v6558_v7 = vadd.f32 %v11899_v56, %v6487_v29  ;;  %v6418_v19 = vmax.f32 %v6354_v49, 0.0  ;;  %v9274_v30 = vadd.f32 %v6150_v53, %v3306_v12 }
 0x309   :  { %6624 = vst.msk [vmem:[%s12378_s5 + $0x158] sm:$0xff] %vm6580_vm2, %v6559_v15  ;;  %v6490_v13 = vmul.f32 %v11893_v28, %v6419_v17  ;;  %v6357_v9 = vadd.f32 %v9273_v18, %v11887_v22  ;;  %v8811_v57 = vpop.f32.mrb[48].mxu1 }
 0x30a   :  { %6623 = vst.msk [vmem:[%s12378_s5 + $0x150] sm:$0xff] %vm6580_vm2, %v6558_v7  ;;  %v6489_v16 = vmul.f32 %v11893_v28, %v6418_v19  ;;  %v6356_v31 = vadd.f32 %v9274_v30, %v11887_v22  ;;  %v9203_v33 = vpop.f32.mrb[48].mxu0  ;;  %v3316_v34 = vpop.f32.mrb[49].mxu1 }
 0x30b   :  { %v6561_v35 = vadd.f32 %v11899_v56, %v6490_v13  ;;  %v6421_v36 = vmax.f32 %v6357_v9, 0.0  ;;  %v9275_v37 = vadd.f32 %v9203_v33, %v8811_v57  ;;  %v6160_v39 = vpop.f32.mrb[49].mxu0 }
 0x30c   :  { %v6560_v48 = vadd.f32 %v11899_v56, %v6489_v16  ;;  %v6420_v40 = vmax.f32 %v6356_v31, 0.0  ;;  %v9276_v46 = vadd.f32 %v6160_v39, %v3316_v34 }
 0x30d   :  { %6626 = vst.msk [vmem:[%s12378_s5 + $0x168] sm:$0xff] %vm6580_vm2, %v6561_v35  ;;  %v6492_v58 = vmul.f32 %v11893_v28, %v6421_v36  ;;  %v6359_v38 = vadd.f32 %v9275_v37, %v11887_v22  ;;  %v8814_v10 = vpop.f32.mrb[50].mxu1 }
 0x30e   :  { %6625 = vst.msk [vmem:[%s12378_s5 + $0x160] sm:$0xff] %vm6580_vm2, %v6560_v48  ;;  %v6491_v42 = vmul.f32 %v11893_v28, %v6420_v40  ;;  %v6358_v43 = vadd.f32 %v9276_v46, %v11887_v22  ;;  %v9206_v61 = vpop.f32.mrb[50].mxu0  ;;  %v3326_v21 = vpop.f32.mrb[51].mxu1 }
 0x30f   :  { %v6563_v24 = vadd.f32 %v11899_v56, %v6492_v58  ;;  %v6423_v25 = vmax.f32 %v6359_v38, 0.0  ;;  %v9277_v1 = vadd.f32 %v9206_v61, %v8814_v10  ;;  %v6170_v26 = vpop.f32.mrb[51].mxu0 }
 0x310   :  { %v6562_v11 = vadd.f32 %v11899_v56, %v6491_v42  ;;  %v6422_v27 = vmax.f32 %v6358_v43, 0.0  ;;  %v9278_v32 = vadd.f32 %v6170_v26, %v3326_v21 }
 0x311   :  { %6628 = vst.msk [vmem:[%s12378_s5 + $0x178] sm:$0xff] %vm6580_vm2, %v6563_v24  ;;  %v6494_v55 = vmul.f32 %v11893_v28, %v6423_v25  ;;  %v6361_v44 = vadd.f32 %v9277_v1, %v11887_v22  ;;  %v8817_v62 = vpop.f32.mrb[52].mxu1 }
 0x312   :  { %6627 = vst.msk [vmem:[%s12378_s5 + $0x170] sm:$0xff] %vm6580_vm2, %v6562_v11  ;;  %v6493_v41 = vmul.f32 %v11893_v28, %v6422_v27  ;;  %v6360_v45 = vadd.f32 %v9278_v32, %v11887_v22  ;;  %v9209_v4 = vpop.f32.mrb[52].mxu0  ;;  %v3336_v51 = vpop.f32.mrb[53].mxu1 }
 0x313   :  { %v6565_v54 = vadd.f32 %v11899_v56, %v6494_v55  ;;  %v6425_v60 = vmax.f32 %v6361_v44, 0.0  ;;  %v9279_v50 = vadd.f32 %v9209_v4, %v8817_v62  ;;  %v6180_v63 = vpop.f32.mrb[53].mxu0 }
 0x314   :  { %v6564_v0 = vadd.f32 %v11899_v56, %v6493_v41  ;;  %v6424_v20 = vmax.f32 %v6360_v45, 0.0  ;;  %v9280_v47 = vadd.f32 %v6180_v63, %v3336_v51 }
 0x315   :  { %6630 = vst.msk [vmem:[%s12378_s5 + $0x188] sm:$0xff] %vm6580_vm2, %v6565_v54  ;;  %v6496_v6 = vmul.f32 %v11893_v28, %v6425_v60  ;;  %v6363_v23 = vadd.f32 %v9279_v50, %v11887_v22  ;;  %v8820_v14 = vpop.f32.mrb[54].mxu1 }
 0x316   :  { %6629 = vst.msk [vmem:[%s12378_s5 + $0x180] sm:$0xff] %vm6580_vm2, %v6564_v0  ;;  %v6495_v52 = vmul.f32 %v11893_v28, %v6424_v20  ;;  %v6362_v2 = vadd.f32 %v9280_v47, %v11887_v22  ;;  %v9212_v3 = vpop.f32.mrb[54].mxu0  ;;  %v3346_v5 = vpop.f32.mrb[55].mxu1 }
 0x317   :  { %v6567_v8 = vadd.f32 %v11899_v56, %v6496_v6  ;;  %v6427_v29 = vmax.f32 %v6363_v23, 0.0  ;;  %v9281_v49 = vadd.f32 %v9212_v3, %v8820_v14  ;;  %v6190_v59 = vpop.f32.mrb[55].mxu0 }
 0x318   :  { %v6566_v12 = vadd.f32 %v11899_v56, %v6495_v52  ;;  %v6426_v15 = vmax.f32 %v6362_v2, 0.0  ;;  %v9282_v17 = vadd.f32 %v6190_v59, %v3346_v5 }
 0x319   :  { %6632 = vst.msk [vmem:[%s12378_s5 + $0x198] sm:$0xff] %vm6580_vm2, %v6567_v8  ;;  %v6498_v18 = vmul.f32 %v11893_v28, %v6427_v29  ;;  %v6365_v53 = vadd.f32 %v9281_v49, %v11887_v22  ;;  %v8823_v7 = vpop.f32.mrb[56].mxu1 }
 0x31a   :  { %6631 = vst.msk [vmem:[%s12378_s5 + $0x190] sm:$0xff] %vm6580_vm2, %v6566_v12  ;;  %v6497_v19 = vmul.f32 %v11893_v28, %v6426_v15  ;;  %v6364_v30 = vadd.f32 %v9282_v17, %v11887_v22  ;;  %v9215_v13 = vpop.f32.mrb[56].mxu0  ;;  %v3356_v9 = vpop.f32.mrb[57].mxu1 }
 0x31b   :  { %v6569_v57 = vadd.f32 %v11899_v56, %v6498_v18  ;;  %v6429_v16 = vmax.f32 %v6365_v53, 0.0  ;;  %v9283_v31 = vadd.f32 %v9215_v13, %v8823_v7  ;;  %v6200_v33 = vpop.f32.mrb[57].mxu0 }
 0x31c   :  { %v6568_v34 = vadd.f32 %v11899_v56, %v6497_v19  ;;  %v6428_v35 = vmax.f32 %v6364_v30, 0.0  ;;  %v9284_v36 = vadd.f32 %v6200_v33, %v3356_v9 }
 0x31d   :  { %6634 = vst.msk [vmem:[%s12378_s5 + $0x1a8] sm:$0xff] %vm6580_vm2, %v6569_v57  ;;  %v6500_v37 = vmul.f32 %v11893_v28, %v6429_v16  ;;  %v6367_v39 = vadd.f32 %v9283_v31, %v11887_v22  ;;  %v8826_v48 = vpop.f32.mrb[58].mxu1 }
 0x31e   :  { %6633 = vst.msk [vmem:[%s12378_s5 + $0x1a0] sm:$0xff] %vm6580_vm2, %v6568_v34  ;;  %v6499_v40 = vmul.f32 %v11893_v28, %v6428_v35  ;;  %v6366_v46 = vadd.f32 %v9284_v36, %v11887_v22  ;;  %v9218_v58 = vpop.f32.mrb[58].mxu0  ;;  %v3366_v38 = vpop.f32.mrb[59].mxu1 }
 0x31f   :  { %v6571_v10 = vadd.f32 %v11899_v56, %v6500_v37  ;;  %v6431_v42 = vmax.f32 %v6367_v39, 0.0  ;;  %v9285_v43 = vadd.f32 %v9218_v58, %v8826_v48  ;;  %v6210_v61 = vpop.f32.mrb[59].mxu0 }
 0x320   :  { %v6570_v21 = vadd.f32 %v11899_v56, %v6499_v40  ;;  %v6430_v24 = vmax.f32 %v6366_v46, 0.0  ;;  %v9286_v25 = vadd.f32 %v6210_v61, %v3366_v38 }
 0x321   :  { %6636 = vst.msk [vmem:[%s12378_s5 + $0x1b8] sm:$0xff] %vm6580_vm2, %v6571_v10  ;;  %v6502_v1 = vmul.f32 %v11893_v28, %v6431_v42  ;;  %v6369_v26 = vadd.f32 %v9285_v43, %v11887_v22  ;;  %v8829_v11 = vpop.f32.mrb[60].mxu1 }
 0x322   :  { %6635 = vst.msk [vmem:[%s12378_s5 + $0x1b0] sm:$0xff] %vm6580_vm2, %v6570_v21  ;;  %v6501_v27 = vmul.f32 %v11893_v28, %v6430_v24  ;;  %v6368_v32 = vadd.f32 %v9286_v25, %v11887_v22  ;;  %v9221_v55 = vpop.f32.mrb[60].mxu0  ;;  %v3376_v44 = vpop.f32.mrb[61].mxu1 }
 0x323   :  { %v6573_v62 = vadd.f32 %v11899_v56, %v6502_v1  ;;  %v6433_v41 = vmax.f32 %v6369_v26, 0.0  ;;  %v9287_v45 = vadd.f32 %v9221_v55, %v8829_v11  ;;  %v6220_v4 = vpop.f32.mrb[61].mxu0 }
 0x324   :  { %v6572_v51 = vadd.f32 %v11899_v56, %v6501_v27  ;;  %v6432_v54 = vmax.f32 %v6368_v32, 0.0  ;;  %v9288_v60 = vadd.f32 %v6220_v4, %v3376_v44 }
 0x325   :  { %6638 = vst.msk [vmem:[%s12378_s5 + $0x1c8] sm:$0xff] %vm6580_vm2, %v6573_v62  ;;  %v6504_v50 = vmul.f32 %v11893_v28, %v6433_v41  ;;  %v6371_v63 = vadd.f32 %v9287_v45, %v11887_v22  ;;  %v8832_v0 = vpop.f32.mrb[62].mxu1 }
 0x326   :  { %6637 = vst.msk [vmem:[%s12378_s5 + $0x1c0] sm:$0xff] %vm6580_vm2, %v6572_v51  ;;  %v6503_v20 = vmul.f32 %v11893_v28, %v6432_v54  ;;  %v6370_v47 = vadd.f32 %v9288_v60, %v11887_v22  ;;  %v9224_v6 = vpop.f32.mrb[62].mxu0  ;;  %v3386_v23 = vpop.f32.mrb[63].mxu1 }
 0x327   :  { %v6575_v14 = vadd.f32 %v11899_v56, %v6504_v50  ;;  %v6435_v52 = vmax.f32 %v6371_v63, 0.0  ;;  %v9289_v2 = vadd.f32 %v9224_v6, %v8832_v0  ;;  %v6230_v3 = vpop.f32.mrb[63].mxu0 }
 0x328   :  { %v6574_v5 = vadd.f32 %v11899_v56, %v6503_v20  ;;  %v6434_v8 = vmax.f32 %v6370_v47, 0.0  ;;  %v9290_v29 = vadd.f32 %v6230_v3, %v3386_v23 }
 0x329   :  { %6640 = vst.msk [vmem:[%s12378_s5 + $0x1d8] sm:$0xff] %vm6580_vm2, %v6575_v14  ;;  %v6506_v49 = vmul.f32 %v11893_v28, %v6435_v52  ;;  %v6373_v59 = vadd.f32 %v9289_v2, %v11887_v22 }
 0x32a   :  { %6639 = vst.msk [vmem:[%s12378_s5 + $0x1d0] sm:$0xff] %vm6580_vm2, %v6574_v5  ;;  %v6505_v12 = vmul.f32 %v11893_v28, %v6434_v8  ;;  %v6372_v15 = vadd.f32 %v9290_v29, %v11887_v22 }
 0x32b   :  { %v6577_v17 = vadd.f32 %v11899_v56, %v6506_v49  ;;  %v6437_v18 = vmax.f32 %v6373_v59, 0.0 }
 0x32c   :  { %v6576_v53 = vadd.f32 %v11899_v56, %v6505_v12  ;;  %v6436_v7 = vmax.f32 %v6372_v15, 0.0 }
 0x32d   :  { %6642 = vst.msk [vmem:[%s12378_s5 + $0x1e8] sm:$0xff] %vm6580_vm2, %v6577_v17  ;;  %v6508_v19 = vmul.f32 %v11893_v28, %v6437_v18 }
 0x32e   :  { %6641 = vst.msk [vmem:[%s12378_s5 + $0x1e0] sm:$0xff] %vm6580_vm2, %v6576_v53  ;;  %v6507_v22 = vmul.f32 %v11893_v28, %v6436_v7 }
 0x32f   :  { %v6579_v30 = vadd.f32 %v11899_v56, %v6508_v19 }
 0x330   :  { %v6578_v13 = vadd.f32 %v11899_v56, %v6507_v22 }
 0x331   :  { %6644 = vst.msk [vmem:[%s12378_s5 + $0x1f8] sm:$0xff] %vm6580_vm2, %v6579_v30 }
 0x332   :  { %6643 = vst.msk [vmem:[%s12378_s5 + $0x1f0] sm:$0xff] %vm6580_vm2, %v6578_v13 }
 0x333   :  { %6649 = vsyncpa [#allocation3], 1 }

// kernel: siamese_forward.7
= control target key start
LH: loop header
LB: loop body
LE: loop exit
PB: predicated region body
PF: predicated region fallthrough
CT: control target
= control target key end

     0   :  { %10 = vsyncpa [#allocation3], 0  ;;  %s10184_s18 = smov [#allocation2]   ;;  %s13009_s0 = inlined_call_operand.vmem [shape: f32[10,10,8,64], index: 0, kind: input, shape index: {}]   ;;  %s13010_s1 = inlined_call_operand.vmem [shape: f32[9,64,64], index: 1, kind: input, shape index: {}]   ;;  %s13011_s2 = inlined_call_operand.hbm [shape: f32[1,64], index: 2, kind: input, shape index: {}]   ;;  %s13012_s3 = inlined_call_operand.vmem [shape: f32[1,64], index: 3, kind: input, shape index: {}]   ;;  %s13013_s4 = inlined_call_operand.vmem [shape: f32[1,64], index: 4, kind: input, shape index: {}]   ;;  %s13014_s5 = inlined_call_operand.vmem [shape: f32[8,8,8,64], index: 5, kind: output, shape index: {}]  }
   0x1   :  { %s21_s19 = sshll.u32 %s10184_s18, 4  ;;  %s10160_s22 = scalar_lea.hbm %s13011_s2, 16  ;;  %s22_s19 = int_to_ptr.vmem [resolvable:$true] %s21_s19 }
   0x2   :  { %p10161_p0 = scmp.ne.s32.totalorder %s13011_s2, %s10160_s22  ;;  %p10164_p1 = scmp.lt.u32.totalorder %s10160_s22, %s13011_s2 }
   0x4   :  { %p10166_p2 = pnand %p10164_p1, %p10161_p0 }
   0x6   :  { %10169 = shalt.err (!%p10166_p2)
}
   0x7   :  { %s10170_s27 = scalar_lea.vmem %s22_s19, 16  ;;  %s10174_s28 = scalar_lea.vmem %s22_s19, 32 }
   0x8   :  { %p10171_p3 = scmp.ne.s32.totalorder %s22_s19, %s10170_s27  ;;  %p10175_p4 = scmp.lt.s32.totalorder %s22_s19, %s22_s19 }
   0x9   :  { %p10176_p5 = scmp.lt.s32.totalorder %s10174_s28, %s10170_s27 }
   0xb   :  { %p10177_p6 = por %p10176_p5, %p10175_p4 }
   0xd   :  { %p10178_p7 = pnand %p10177_p6, %p10171_p3 }
   0xf   :  { %10181 = shalt.err (!%p10178_p7)
}
  0x10   :  { %24 = dma.hbm_to_vmem [thread:$0]  %s13011_s2, 16, %s22_s19, [#allocation3]  }
  0x11   :  { %10182 = dma.done.wait [#allocation3], 16  }
  0x12   :  { %10183 = vsyncadd [#allocation3], 4294967280  ;;  %v6748_v0 = vld [vmem:[%s13010_s1 + $0x40] sm:$0xff]  ;;  %v6749_v1 = vld [vmem:[%s13010_s1 + $0x48] sm:$0xff]  ;;  %vm178_vm0 = vcmask 523264  }
  0x13   :  { %v7220_v2 = vld [vmem:[%s13010_s1 + $0x100] sm:$0xff]  ;;  %v9495_v3 = vpack.c.bf16 %v6749_v1, %v6748_v0  ;;  %v7221_v4 = vld [vmem:[%s13010_s1 + $0x108] sm:$0xff]  ;;  %v6750_v5 = vld [vmem:[%s13010_s1 + $0x50] sm:$0xff] }
  0x14   :  { %v6751_v6 = vld [vmem:[%s13010_s1 + $0x58] sm:$0xff]  ;;  %v10245_v7 = vpack.c.bf16 %v7221_v4, %v7220_v2  ;;  %v7222_v9 = vld [vmem:[%s13010_s1 + $0x110] sm:$0xff]  ;;  %v6752_v11 = vld [vmem:[%s13010_s1 + $0x60] sm:$0xff] }
  0x15   :  { %v9499_v8 = vpack.c.bf16 %v6751_v6, %v6750_v5  ;;  %v7223_v10 = vld [vmem:[%s13010_s1 + $0x118] sm:$0xff]  ;;  %9496 = vmatprep.subr.bf16.mxu1 %v9495_v3  ;;  %v6753_v13 = vld [vmem:[%s13010_s1 + $0x68] sm:$0xff]  ;;  %v7224_v14 = vld [vmem:[%s13010_s1 + $0x120] sm:$0xff] }
  0x16   :  { %13066 = vst [vmem:[#allocation5_spill] sm:$0xff] %v10245_v7  ;;  %v10256_v12 = vpack.c.bf16 %v7223_v10, %v7222_v9  ;;  %v7225_v15 = vld [vmem:[%s13010_s1 + $0x128] sm:$0xff]  ;;  %9560 = vmatprep.subr.bf16.mxu0 %v10245_v7  ;;  %9498 = vmatpush3.bf16.msra.mxu1 %v9495_v3  ;;  %v9503_v16 = vpack.c.bf16 %v6753_v13, %v6752_v11  ;;  %v10272_v17 = vld [vmem:[%s13009_s0 + $0x50] sm:$0xff]  ;;  %v10277_v18 = vld [vmem:[%s13009_s0 + $0x58] sm:$0xff] }
  0x17   :  { %9562 = vmatpush3.bf16.msra.mxu0 %v10245_v7  ;;  %9500 = vmatprep.subr.bf16.mxu1 %v9499_v8  ;;  %v10280_v19 = vpack.c.bf16 %v7225_v15, %v7224_v14  ;;  %v6754_v20 = vld [vmem:[%s13010_s1 + $0x70] sm:$0xff]  ;;  %v6755_v21 = vld [vmem:[%s13010_s1 + $0x78] sm:$0xff]  ;;  %v96_v26 = vld [vmem:[%s13010_s1] sm:$0xff] }
  0x18   :  { %13067 = vst [vmem:[#allocation6_spill] sm:$0xff] %v10256_v12  ;;  %9564 = vmatprep.subr.bf16.mxu0 %v10256_v12  ;;  %8503 = vmatprep.mubr.msk.f32.mxu1 %vm178_vm0, %v10272_v17  ;;  %v7226_v22 = vld [vmem:[%s13010_s1 + $0x130] sm:$0xff]  ;;  %v7227_v23 = vld [vmem:[%s13010_s1 + $0x138] sm:$0xff]  ;;  %v9507_v24 = vpack.c.bf16 %v6755_v21, %v6754_v20  ;;  %v97_v27 = vld [vmem:[%s13010_s1 + $0x8] sm:$0xff] }
  0x19   :  { %13068 = vst [vmem:[#allocation7_spill] sm:$0xff] %v10280_v19  ;;  %8951 = vmatprep.mubr.msk.f32.mxu0 %vm178_vm0, %v10277_v18  ;;  %v10300_v25 = vpack.c.bf16 %v7227_v23, %v7226_v22  ;;  %v7356_v28 = vld [vmem:[%s13010_s1 + $0x140] sm:$0xff]  ;;  %v7357_v29 = vld [vmem:[%s13010_s1 + $0x148] sm:$0xff]  ;;  %v9511_v30 = vpack.c.bf16 %v97_v27, %v96_v26  ;;  %v7358_v32 = vld [vmem:[%s13010_s1 + $0x150] sm:$0xff] }
  0x1a   :  { %9502 = vmatpush3.bf16.msra.mxu1 %v9499_v8  ;;  %v9575_v31 = vpack.c.bf16 %v7357_v29, %v7356_v28  ;;  %v7359_v33 = vld [vmem:[%s13010_s1 + $0x158] sm:$0xff]  ;;  %v98_v34 = vld [vmem:[%s13010_s1 + $0x10] sm:$0xff]  ;;  %v10332_v36 = vld [vmem:[%s13009_s0 + $0x60] sm:$0xff] }
  0x1b   :  { %9566 = vmatpush3.bf16.msra.mxu0 %v10256_v12  ;;  %9504 = vmatprep.subr.bf16.mxu1 %v9503_v16  ;;  %13069 = vst [vmem:[#allocation8_spill] sm:$0xff] %v10300_v25  ;;  %v99_v35 = vld [vmem:[%s13010_s1 + $0x18] sm:$0xff]  ;;  %v9579_v37 = vpack.c.bf16 %v7359_v33, %v7358_v32  ;;  %v10339_v38 = vld [vmem:[%s13009_s0 + $0x68] sm:$0xff]  ;;  %v7360_v40 = vld [vmem:[%s13010_s1 + $0x160] sm:$0xff] }
  0x1c   :  { %9568 = vmatprep.subr.bf16.mxu0 %v10280_v19  ;;  %v9515_v39 = vpack.c.bf16 %v99_v35, %v98_v34  ;;  %v7361_v41 = vld [vmem:[%s13010_s1 + $0x168] sm:$0xff]  ;;  %v10354_v42 = vld [vmem:[%s13009_s0 + $0x70] sm:$0xff]  ;;  %v10361_v43 = vld [vmem:[%s13009_s0 + $0x78] sm:$0xff] }
  0x1d   :  { %v9583_v44 = vpack.c.bf16 %v7361_v41, %v7360_v40  ;;  %v100_v45 = vld [vmem:[%s13010_s1 + $0x20] sm:$0xff]  ;;  %v101_v46 = vld [vmem:[%s13010_s1 + $0x28] sm:$0xff]  ;;  %v7362_v47 = vld [vmem:[%s13010_s1 + $0x170] sm:$0xff] }
  0x1e   :  { %9506 = vmatpush3.bf16.msra.mxu1 %v9503_v16  ;;  %v7363_v48 = vld [vmem:[%s13010_s1 + $0x178] sm:$0xff]  ;;  %v9519_v49 = vpack.c.bf16 %v101_v46, %v100_v45  ;;  %v10386_v50 = vld [vmem:[%s13009_s0 + $0x80] sm:$0xff]  ;;  %v10391_v51 = vld [vmem:[%s13009_s0 + $0x88] sm:$0xff] }
  0x1f   :  { %9570 = vmatpush3.bf16.msra.mxu0 %v10280_v19  ;;  %9508 = vmatprep.subr.bf16.mxu1 %v9507_v24  ;;  %v9587_v52 = vpack.c.bf16 %v7363_v48, %v7362_v47  ;;  %v7492_v53 = vld [vmem:[%s13010_s1 + $0x180] sm:$0xff]  ;;  %v7493_v54 = vld [vmem:[%s13010_s1 + $0x188] sm:$0xff]  ;;  %v102_v55 = vld [vmem:[%s13010_s1 + $0x30] sm:$0xff] }
  0x20   :  { %9572 = vmatprep.subr.bf16.mxu0 %v10300_v25  ;;  %v10413_v56 = vld [vmem:[%s13009_s0 + $0x90] sm:$0xff]  ;;  %v10418_v57 = vld [vmem:[%s13009_s0 + $0xa0] sm:$0xff]  ;;  %v103_v58 = vld [vmem:[%s13010_s1 + $0x38] sm:$0xff]  ;;  %v10428_v60 = vpack.c.bf16 %v7493_v54, %v7492_v53 }
  0x21   :  { %13070 = vst [vmem:[#allocation9_spill] sm:$0xff] %v10413_v56  ;;  %v10426_v59 = vld [vmem:[%s13009_s0 + $0xa8] sm:$0xff]  ;;  %v9523_v61 = vpack.c.bf16 %v103_v58, %v102_v55  ;;  %v10441_v62 = vld [vmem:[%s13009_s0 + $0xb0] sm:$0xff]  ;;  %v10446_v63 = vld [vmem:[%s13009_s0 + $0xb8] sm:$0xff] }
  0x22   :  { %9510 = vmatpush3.bf16.msra.mxu1 %v9507_v24  ;;  %v6948_v0 = vld [vmem:[%s13010_s1 + $0x80] sm:$0xff]  ;;  %v6949_v1 = vld [vmem:[%s13010_s1 + $0x88] sm:$0xff]  ;;  %v10487_v5 = vld [vmem:[%s13009_s0 + $0xd0] sm:$0xff] }
  0x23   :  { %9574 = vmatpush3.bf16.msra.mxu0 %v10300_v25  ;;  %9512 = vmatprep.subr.bf16.mxu1 %v9511_v30  ;;  %v10466_v2 = vld [vmem:[%s13009_s0 + $0xc0] sm:$0xff]  ;;  %v10468_v3 = vpack.c.bf16 %v6949_v1, %v6948_v0  ;;  %v10473_v4 = vld [vmem:[%s13009_s0 + $0xc8] sm:$0xff]  ;;  %v10492_v6 = vld [vmem:[%s13009_s0 + $0xd8] sm:$0xff] }
  0x24   :  { %9576 = vmatprep.subr.bf16.mxu0 %v9575_v31  ;;  %v10505_v8 = vld [vmem:[%s13009_s0 + $0xe0] sm:$0xff]  ;;  %v10510_v9 = vld [vmem:[%s13009_s0 + $0xf0] sm:$0xff]  ;;  %v10515_v10 = vld [vmem:[%s13009_s0 + $0xf8] sm:$0xff] }
  0x25   :  { %8504 = vmatmul.mubr.msk.f32.vlgmr.msra.gmra.mrb[0].mxu1 %vm178_vm0, %v10277_v18  ;;  %13071 = vst [vmem:[#allocation10_spill] sm:$0xff] %v10505_v8  ;;  %v10528_v11 = vld [vmem:[%s13009_s0 + $0x100] sm:$0xff]  ;;  %v10533_v13 = vld [vmem:[%s13009_s0 + $0x108] sm:$0xff]  ;;  %v10546_v14 = vld [vmem:[%s13009_s0 + $0x110] sm:$0xff] }
  0x26   :  { %8952 = vmatmul.mubr.msk.f32.vlgmr.msra.gmra.mrb[0].mxu0 %vm178_vm0, %v10332_v36  ;;  %9514 = vmatpush3.bf16.msra.mxu1 %v9511_v30  ;;  %v10551_v15 = vld [vmem:[%s13009_s0 + $0x118] sm:$0xff]  ;;  %v10564_v16 = vld [vmem:[%s13009_s0 + $0x120] sm:$0xff]  ;;  %v10569_v20 = vld [vmem:[%s13009_s0 + $0x128] sm:$0xff] }
  0x27   :  { %9578 = vmatpush3.bf16.msra.mxu0 %v9575_v31  ;;  %8506 = vmatprep.mubr.msk.f32.mxu1 %vm178_vm0, %v10332_v36  ;;  %v10582_v21 = vld [vmem:[%s13009_s0 + $0x130] sm:$0xff]  ;;  %v10587_v22 = vld [vmem:[%s13009_s0 + $0x140] sm:$0xff]  ;;  %v10592_v23 = vld [vmem:[%s13009_s0 + $0x148] sm:$0xff] }
  0x28   :  { %8954 = vmatprep.mubr.msk.f32.mxu0 %vm178_vm0, %v10339_v38  ;;  %9580 = vmatprep.subr.bf16.mxu0 %v9579_v37  ;;  %13072 = vst [vmem:[#allocation11_spill] sm:$0xff] %v10582_v21  ;;  %v10605_v24 = vld [vmem:[%s13009_s0 + $0x150] sm:$0xff]  ;;  %v10610_v26 = vld [vmem:[%s13009_s0 + $0x158] sm:$0xff]  ;;  %v10623_v27 = vld [vmem:[%s13009_s0 + $0x160] sm:$0xff] }
  0x29   :  { %8507 = vmatmul.mubr.msk.f32.gmra.mrb[2].mxu1 %vm178_vm0, %v10339_v38  ;;  %9516 = vmatprep.subr.bf16.mxu1 %v9515_v39  ;;  %v10628_v28 = vld [vmem:[%s13009_s0 + $0x168] sm:$0xff]  ;;  %v10641_v29 = vld [vmem:[%s13009_s0 + $0x170] sm:$0xff]  ;;  %v10646_v30 = vld [vmem:[%s13009_s0 + $0x178] sm:$0xff] }
  0x2a   :  { %8955 = vmatmul.mubr.msk.f32.gmra.mrb[2].mxu0 %vm178_vm0, %v10354_v42  ;;  %8509 = vmatprep.mubr.msk.f32.mxu1 %vm178_vm0, %v10354_v42  ;;  %v10659_v31 = vld [vmem:[%s13009_s0 + $0x180] sm:$0xff]  ;;  %v10664_v32 = vld [vmem:[%s13009_s0 + $0x190] sm:$0xff]  ;;  %v7495_v34 = vld [vmem:[%s13010_s1 + $0x198] sm:$0xff] }
  0x2b   :  { %8957 = vmatprep.mubr.msk.f32.mxu0 %vm178_vm0, %v10361_v43  ;;  %9582 = vmatpush3.bf16.msra.mxu0 %v9579_v37  ;;  %13073 = vst [vmem:[#allocation12_spill] sm:$0xff] %v10659_v31  ;;  %v7494_v33 = vld [vmem:[%s13010_s1 + $0x190] sm:$0xff]  ;;  %v10681_v35 = vld [vmem:[%s13009_s0 + $0x198] sm:$0xff]  ;;  %v10688_v37 = vld [vmem:[%s13009_s0 + $0x1a0] sm:$0xff] }
  0x2c   :  { %9584 = vmatprep.subr.bf16.mxu0 %v9583_v44  ;;  %9518 = vmatpush3.bf16.msra.mxu1 %v9515_v39  ;;  %13074 = vst [vmem:[#allocation13_spill] sm:$0xff] %v10688_v37  ;;  %v9595_v39 = vpack.c.bf16 %v7495_v34, %v7494_v33  ;;  %v7496_v40 = vld [vmem:[%s13010_s1 + $0x1a0] sm:$0xff]  ;;  %v7497_v41 = vld [vmem:[%s13010_s1 + $0x1a8] sm:$0xff]  ;;  %v10713_v45 = vld [vmem:[%s13009_s0 + $0x1b0] sm:$0xff] }
  0x2d   :  { %8510 = vmatmul.mubr.msk.f32.gmra.mrb[4].mxu1 %vm178_vm0, %v10361_v43  ;;  %9520 = vmatprep.subr.bf16.mxu1 %v9519_v49  ;;  %13076 = vst [vmem:[#allocation15_spill] sm:$0xff] %v10713_v45  ;;  %v9599_v46 = vpack.c.bf16 %v7497_v41, %v7496_v40  ;;  %v7498_v47 = vld [vmem:[%s13010_s1 + $0x1b0] sm:$0xff]  ;;  %v7499_v48 = vld [vmem:[%s13010_s1 + $0x1b8] sm:$0xff]  ;;  %v7628_v54 = vld [vmem:[%s13010_s1 + $0x1c0] sm:$0xff] }
  0x2e   :  { %8958 = vmatmul.mubr.msk.f32.gmra.mrb[4].mxu0 %vm178_vm0, %v10386_v50  ;;  %8512 = vmatprep.mubr.msk.f32.mxu1 %vm178_vm0, %v10386_v50  ;;  %v9603_v53 = vpack.c.bf16 %v7499_v48, %v7498_v47  ;;  %v7629_v55 = vld [vmem:[%s13010_s1 + $0x1c8] sm:$0xff]  ;;  %v10781_v1 = vld [vmem:[%s13009_s0 + $0x1f0] sm:$0xff]  ;;  %v10793_v33 = vld [vmem:[%s13009_s0 + $0x1f8] sm:$0xff] }
  0x2f   :  { %8960 = vmatprep.mubr.msk.f32.mxu0 %vm178_vm0, %v10391_v51  ;;  %9586 = vmatpush3.bf16.msra.mxu0 %v9583_v44  ;;  %v10705_v44 = vld [vmem:[%s13009_s0 + $0x1a8] sm:$0xff]  ;;  %13082 = vst [vmem:[#allocation21_spill] sm:$0xff] %v10781_v1  ;;  %13083 = vst [vmem:[#allocation22_spill] sm:$0xff] %v10793_v33  ;;  %v10800_v34 = vld [vmem:[%s13009_s0 + $0x200] sm:$0xff] }
  0x30   :  { %9588 = vmatprep.subr.bf16.mxu0 %v9587_v52  ;;  %9522 = vmatpush3.bf16.msra.mxu1 %v9519_v49  ;;  %13075 = vst [vmem:[#allocation14_spill] sm:$0xff] %v10705_v44  ;;  %v10730_v49 = vld [vmem:[%s13009_s0 + $0x1b8] sm:$0xff]  ;;  %v10754_v58 = vld [vmem:[%s13009_s0 + $0x1c8] sm:$0xff]  ;;  %13084 = vst [vmem:[#allocation23_spill] sm:$0xff] %v10800_v34 }
  0x31   :  { %8513 = vmatmul.mubr.msk.f32.gmra.mrb[6].mxu1 %vm178_vm0, %v10391_v51  ;;  %9524 = vmatprep.subr.bf16.mxu1 %v9523_v61  ;;  %13077 = vst [vmem:[#allocation16_spill] sm:$0xff] %v10730_v49  ;;  %13079 = vst [vmem:[#allocation18_spill] sm:$0xff] %v10754_v58  ;;  %v10774_v0 = vld [vmem:[%s13009_s0 + $0x1e8] sm:$0xff]  ;;  %v10818_v40 = vld [vmem:[%s13009_s0 + $0x210] sm:$0xff] }
  0x32   :  { %8961 = vmatmul.mubr.msk.f32.gmra.mrb[6].mxu0 %vm178_vm0, %v10413_v56  ;;  %8515 = vmatprep.mubr.msk.f32.mxu1 %vm178_vm0, %v10418_v57  ;;  %13081 = vst [vmem:[#allocation20_spill] sm:$0xff] %v10774_v0  ;;  %v10829_v41 = vld [vmem:[%s13009_s0 + $0x218] sm:$0xff]  ;;  %v10854_v48 = vld [vmem:[%s13009_s0 + $0x240] sm:$0xff]  ;;  %v10901_v19 = vld [vmem:[%s13009_s0 + $0x268] sm:$0xff] }
  0x33   :  { %8963 = vmatprep.mubr.msk.f32.mxu0 %vm178_vm0, %v10426_v59  ;;  %9590 = vmatpush3.bf16.msra.mxu0 %v9587_v52  ;;  %v10737_v52 = vld [vmem:[%s13009_s0 + $0x1c0] sm:$0xff]  ;;  %v10847_v47 = vld [vmem:[%s13009_s0 + $0x238] sm:$0xff]  ;;  %v10916_v7 = vld [vmem:[%s13009_s0 + $0x288] sm:$0xff] }
  0x34   :  { %9592 = vmatprep.subr.bf16.mxu0 %v10428_v60  ;;  %9526 = vmatpush3.bf16.msra.mxu1 %v9523_v61  ;;  %13078 = vst [vmem:[#allocation17_spill] sm:$0xff] %v10737_v52  ;;  %v10763_v61 = vpack.c.bf16 %v7629_v55, %v7628_v54  ;;  %v10872_v54 = vld [vmem:[%s13009_s0 + $0x250] sm:$0xff]  ;;  %v10883_v55 = vld [vmem:[%s13009_s0 + $0x258] sm:$0xff]  ;;  %v10890_v25 = vld [vmem:[%s13009_s0 + $0x260] sm:$0xff] }
  0x35   :  { %8516 = vmatmul.mubr.msk.f32.gmra.mrb[8].mxu1 %vm178_vm0, %v10426_v59  ;;  %9528 = vmatprep.subr.bf16.mxu1 %v10468_v3  ;;  %v6740_v12 = vld [vmem:[%s13009_s0 + $0x280] sm:$0xff]  ;;  %v10977_v56 = vld [vmem:[%s13009_s0 + $0x1d0] sm:$0xff] }
  0x36   :  { %8964 = vmatmul.mubr.msk.f32.gmra.mrb[8].mxu0 %vm178_vm0, %v10441_v62  ;;  %8518 = vmatprep.mubr.msk.f32.mxu1 %vm178_vm0, %v10441_v62  ;;  %13086 = vst [vmem:[#allocation25_spill] sm:$0xff] %v10977_v56 }
  0x37   :  { %8966 = vmatprep.mubr.msk.f32.mxu0 %vm178_vm0, %v10446_v63 }
  0x39   :  { %8519 = vmatmul.mubr.msk.f32.gmra.mrb[10].mxu1 %vm178_vm0, %v10446_v63 }
  0x3a   :  { %8967 = vmatmul.mubr.msk.f32.gmra.mrb[10].mxu0 %vm178_vm0, %v10466_v2  ;;  %8521 = vmatprep.mubr.msk.f32.mxu1 %vm178_vm0, %v10466_v2 }
  0x3b   :  { %8969 = vmatprep.mubr.msk.f32.mxu0 %vm178_vm0, %v10473_v4 }
  0x3d   :  { %8522 = vmatmul.mubr.msk.f32.gmra.mrb[12].mxu1 %vm178_vm0, %v10473_v4 }
  0x3e   :  { %8970 = vmatmul.mubr.msk.f32.gmra.mrb[12].mxu0 %vm178_vm0, %v10487_v5  ;;  %8524 = vmatprep.mubr.msk.f32.mxu1 %vm178_vm0, %v10487_v5 }
  0x3f   :  { %8972 = vmatprep.mubr.msk.f32.mxu0 %vm178_vm0, %v10492_v6 }
  0x41   :  { %8525 = vmatmul.mubr.msk.f32.gmra.mrb[14].mxu1 %vm178_vm0, %v10492_v6 }
  0x42   :  { %8973 = vmatmul.mubr.msk.f32.gmra.mrb[14].mxu0 %vm178_vm0, %v10505_v8  ;;  %8527 = vmatprep.mubr.msk.f32.mxu1 %vm178_vm0, %v10510_v9 }
  0x43   :  { %8975 = vmatprep.mubr.msk.f32.mxu0 %vm178_vm0, %v10515_v10 }
  0x45   :  { %8528 = vmatmul.mubr.msk.f32.gmra.mrb[16].mxu1 %vm178_vm0, %v10515_v10 }
  0x46   :  { %8976 = vmatmul.mubr.msk.f32.gmra.mrb[16].mxu0 %vm178_vm0, %v10528_v11  ;;  %8530 = vmatprep.mubr.msk.f32.mxu1 %vm178_vm0, %v10528_v11 }
  0x47   :  { %8978 = vmatprep.mubr.msk.f32.mxu0 %vm178_vm0, %v10533_v13 }
  0x49   :  { %8531 = vmatmul.mubr.msk.f32.gmra.mrb[18].mxu1 %vm178_vm0, %v10533_v13 }
  0x4a   :  { %8979 = vmatmul.mubr.msk.f32.gmra.mrb[18].mxu0 %vm178_vm0, %v10546_v14  ;;  %8533 = vmatprep.mubr.msk.f32.mxu1 %vm178_vm0, %v10546_v14 }
  0x4b   :  { %8981 = vmatprep.mubr.msk.f32.mxu0 %vm178_vm0, %v10551_v15 }
  0x4d   :  { %8534 = vmatmul.mubr.msk.f32.gmra.mrb[20].mxu1 %vm178_vm0, %v10551_v15 }
  0x4e   :  { %8982 = vmatmul.mubr.msk.f32.gmra.mrb[20].mxu0 %vm178_vm0, %v10564_v16  ;;  %8536 = vmatprep.mubr.msk.f32.mxu1 %vm178_vm0, %v10564_v16 }
  0x4f   :  { %8984 = vmatprep.mubr.msk.f32.mxu0 %vm178_vm0, %v10569_v20 }
  0x51   :  { %8537 = vmatmul.mubr.msk.f32.gmra.mrb[22].mxu1 %vm178_vm0, %v10569_v20 }
  0x52   :  { %8985 = vmatmul.mubr.msk.f32.gmra.mrb[22].mxu0 %vm178_vm0, %v10582_v21  ;;  %8539 = vmatprep.mubr.msk.f32.mxu1 %vm178_vm0, %v10587_v22 }
  0x53   :  { %8987 = vmatprep.mubr.msk.f32.mxu0 %vm178_vm0, %v10592_v23 }
  0x55   :  { %8540 = vmatmul.mubr.msk.f32.gmra.mrb[24].mxu1 %vm178_vm0, %v10592_v23 }
  0x56   :  { %8988 = vmatmul.mubr.msk.f32.gmra.mrb[24].mxu0 %vm178_vm0, %v10605_v24  ;;  %8542 = vmatprep.mubr.msk.f32.mxu1 %vm178_vm0, %v10605_v24 }
  0x57   :  { %8990 = vmatprep.mubr.msk.f32.mxu0 %vm178_vm0, %v10610_v26 }
  0x59   :  { %8543 = vmatmul.mubr.msk.f32.gmra.mrb[26].mxu1 %vm178_vm0, %v10610_v26 }
  0x5a   :  { %8991 = vmatmul.mubr.msk.f32.gmra.mrb[26].mxu0 %vm178_vm0, %v10623_v27  ;;  %8545 = vmatprep.mubr.msk.f32.mxu1 %vm178_vm0, %v10623_v27 }
  0x5b   :  { %8993 = vmatprep.mubr.msk.f32.mxu0 %vm178_vm0, %v10628_v28 }
  0x5d   :  { %8546 = vmatmul.mubr.msk.f32.gmra.mrb[28].mxu1 %vm178_vm0, %v10628_v28 }
  0x5e   :  { %8994 = vmatmul.mubr.msk.f32.gmra.mrb[28].mxu0 %vm178_vm0, %v10641_v29  ;;  %8548 = vmatprep.mubr.msk.f32.mxu1 %vm178_vm0, %v10641_v29 }
  0x5f   :  { %8996 = vmatprep.mubr.msk.f32.mxu0 %vm178_vm0, %v10646_v30 }
  0x61   :  { %8549 = vmatmul.mubr.msk.f32.gmra.mrb[30].mxu1 %vm178_vm0, %v10646_v30 }
  0x62   :  { %8997 = vmatmul.mubr.msk.f32.gmra.mrb[30].mxu0 %vm178_vm0, %v10659_v31  ;;  %8551 = vmatprep.mubr.msk.f32.mxu1 %vm178_vm0, %v10664_v32 }
  0x63   :  { %9063 = vmatprep.mubr.msk.f32.mxu0 %vm178_vm0, %v10426_v59 }
  0x65   :  { %8552 = vmatmul.mubr.msk.f32.gmra.mrb[32].mxu1 %vm178_vm0, %v10681_v35 }
  0x66   :  { %9064 = vmatmul.mubr.msk.f32.vlgmr.msra.gmra.mrb[0].mxu0 %vm178_vm0, %v10441_v62  ;;  %8554 = vmatprep.mubr.msk.f32.mxu1 %vm178_vm0, %v10688_v37 }
  0x67   :  { %9594 = vmatpush3.bf16.msra.mxu0 %v10428_v60  ;;  %9066 = vmatprep.mubr.msk.f32.mxu0 %vm178_vm0, %v10446_v63  ;;  %v10761_v60 = vld [vmem:[%s13009_s0 + $0x1e0] sm:$0xff] }
  0x68   :  { %9596 = vmatprep.subr.bf16.mxu0 %v9595_v39  ;;  %13080 = vst [vmem:[#allocation19_spill] sm:$0xff] %v10761_v60 }
  0x69   :  { %8555 = vmatmul.mubr.msk.f32.gmra.mrb[34].mxu1 %vm178_vm0, %v10705_v44 }
  0x6a   :  { %9067 = vmatmul.mubr.msk.f32.gmra.mrb[2].mxu0 %vm178_vm0, %v10466_v2  ;;  %8557 = vmatprep.mubr.msk.f32.mxu1 %vm178_vm0, %v10713_v45 }
  0x6b   :  { %9069 = vmatprep.mubr.msk.f32.mxu0 %vm178_vm0, %v10473_v4  ;;  %9598 = vmatpush3.bf16.msra.mxu0 %v9595_v39  ;;  %v10811_v39 = vld [vmem:[%s13009_s0 + $0x208] sm:$0xff] }
  0x6c   :  { %9600 = vmatprep.subr.bf16.mxu0 %v9599_v46 }
  0x6d   :  { %8558 = vmatmul.mubr.msk.f32.gmra.mrb[36].mxu1 %vm178_vm0, %v10730_v49 }
  0x6e   :  { %9070 = vmatmul.mubr.msk.f32.gmra.mrb[4].mxu0 %vm178_vm0, %v10487_v5  ;;  %8560 = vmatprep.mubr.msk.f32.mxu1 %vm178_vm0, %v10737_v52 }
  0x6f   :  { %9072 = vmatprep.mubr.msk.f32.mxu0 %vm178_vm0, %v10492_v6  ;;  %9602 = vmatpush3.bf16.msra.mxu0 %v9599_v46  ;;  %v10836_v46 = vld [vmem:[%s13009_s0 + $0x230] sm:$0xff] }
  0x70   :  { %9604 = vmatprep.subr.bf16.mxu0 %v9603_v53  ;;  %13085 = vst [vmem:[#allocation24_spill] sm:$0xff] %v10836_v46 }
  0x71   :  { %8561 = vmatmul.mubr.msk.f32.gmra.mrb[38].mxu1 %vm178_vm0, %v10754_v58 }
  0x72   :  { %9073 = vmatmul.mubr.msk.f32.gmra.mrb[6].mxu0 %vm178_vm0, %v10505_v8  ;;  %8563 = vmatprep.mubr.msk.f32.mxu1 %vm178_vm0, %v10761_v60  ;;  %v10959_v8 = vld [vmem:[%s13009_s0 + $0x2b0] sm:$0xff]  ;;  %v10970_v60 = vld [vmem:[%s13009_s0 + $0x2b8] sm:$0xff] }
  0x73   :  { %9075 = vmatprep.mubr.msk.f32.mxu0 %vm178_vm0, %v10515_v10  ;;  %9606 = vmatpush3.bf16.msra.mxu0 %v9603_v53  ;;  %v10865_v53 = vld [vmem:[%s13009_s0 + $0x248] sm:$0xff] }
  0x74   :  { %9608 = vmatprep.subr.bf16.mxu0 %v10763_v61 }
  0x75   :  { %8564 = vmatmul.mubr.msk.f32.gmra.mrb[40].mxu1 %vm178_vm0, %v10774_v0 }
  0x76   :  { %9076 = vmatmul.mubr.msk.f32.gmra.mrb[8].mxu0 %vm178_vm0, %v10528_v11  ;;  %8566 = vmatprep.mubr.msk.f32.mxu1 %vm178_vm0, %v10781_v1 }
  0x77   :  { %9078 = vmatprep.mubr.msk.f32.mxu0 %vm178_vm0, %v10533_v13 }
  0x79   :  { %8567 = vmatmul.mubr.msk.f32.gmra.mrb[42].mxu1 %vm178_vm0, %v10793_v33 }
  0x7a   :  { %9079 = vmatmul.mubr.msk.f32.gmra.mrb[10].mxu0 %vm178_vm0, %v10546_v14  ;;  %8569 = vmatprep.mubr.msk.f32.mxu1 %vm178_vm0, %v10800_v34 }
  0x7b   :  { %9081 = vmatprep.mubr.msk.f32.mxu0 %vm178_vm0, %v10551_v15 }
  0x7d   :  { %8570 = vmatmul.mubr.msk.f32.gmra.mrb[44].mxu1 %vm178_vm0, %v10811_v39 }
  0x7e   :  { %9082 = vmatmul.mubr.msk.f32.gmra.mrb[12].mxu0 %vm178_vm0, %v10564_v16  ;;  %8572 = vmatprep.mubr.msk.f32.mxu1 %vm178_vm0, %v10818_v40 }
  0x7f   :  { %9084 = vmatprep.mubr.msk.f32.mxu0 %vm178_vm0, %v10569_v20 }
  0x81   :  { %8573 = vmatmul.mubr.msk.f32.gmra.mrb[46].mxu1 %vm178_vm0, %v10829_v41 }
  0x82   :  { %9085 = vmatmul.mubr.msk.f32.gmra.mrb[14].mxu0 %vm178_vm0, %v10582_v21  ;;  %8575 = vmatprep.mubr.msk.f32.mxu1 %vm178_vm0, %v10836_v46  ;;  %v10923_v21 = vld [vmem:[%s13009_s0 + $0x290] sm:$0xff]  ;;  %v10952_v46 = vld [vmem:[%s13009_s0 + $0x2a8] sm:$0xff] }
  0x83   :  { %9087 = vmatprep.mubr.msk.f32.mxu0 %vm178_vm0, %v10592_v23 }
  0x85   :  { %8576 = vmatmul.mubr.msk.f32.gmra.mrb[48].mxu1 %vm178_vm0, %v10847_v47 }
  0x86   :  { %9088 = vmatmul.mubr.msk.f32.gmra.mrb[16].mxu0 %vm178_vm0, %v10605_v24  ;;  %8578 = vmatprep.mubr.msk.f32.mxu1 %vm178_vm0, %v10854_v48 }
  0x87   :  { %9090 = vmatprep.mubr.msk.f32.mxu0 %vm178_vm0, %v10610_v26 }
  0x89   :  { %8579 = vmatmul.mubr.msk.f32.gmra.mrb[50].mxu1 %vm178_vm0, %v10865_v53 }
  0x8a   :  { %9091 = vmatmul.mubr.msk.f32.gmra.mrb[18].mxu0 %vm178_vm0, %v10623_v27  ;;  %8581 = vmatprep.mubr.msk.f32.mxu1 %vm178_vm0, %v10872_v54 }
  0x8b   :  { %9093 = vmatprep.mubr.msk.f32.mxu0 %vm178_vm0, %v10628_v28 }
  0x8d   :  { %8582 = vmatmul.mubr.msk.f32.gmra.mrb[52].mxu1 %vm178_vm0, %v10883_v55 }
  0x8e   :  { %9094 = vmatmul.mubr.msk.f32.gmra.mrb[20].mxu0 %vm178_vm0, %v10641_v29  ;;  %8584 = vmatprep.mubr.msk.f32.mxu1 %vm178_vm0, %v10890_v25 }
  0x8f   :  { %9096 = vmatprep.mubr.msk.f32.mxu0 %vm178_vm0, %v10646_v30 }
  0x91   :  { %8585 = vmatmul.mubr.msk.f32.gmra.mrb[54].mxu1 %vm178_vm0, %v10901_v19 }
  0x92   :  { %9097 = vmatmul.mubr.msk.f32.gmra.mrb[22].mxu0 %vm178_vm0, %v10659_v31  ;;  %8587 = vmatprep.mubr.msk.f32.mxu1 %vm178_vm0, %v6740_v12  ;;  %v10934_v12 = vld [vmem:[%s13009_s0 + $0x298] sm:$0xff]  ;;  %v10941_v31 = vld [vmem:[%s13009_s0 + $0x2a0] sm:$0xff] }
  0x93   :  { %9099 = vmatprep.mubr.msk.f32.mxu0 %vm178_vm0, %v10681_v35 }
  0x95   :  { %8588 = vmatmul.mubr.msk.f32.gmra.mrb[56].mxu1 %vm178_vm0, %v10916_v7 }
  0x96   :  { %9100 = vmatmul.mubr.msk.f32.gmra.mrb[24].mxu0 %vm178_vm0, %v10688_v37  ;;  %8590 = vmatprep.mubr.msk.f32.mxu1 %vm178_vm0, %v10923_v21 }
  0x97   :  { %9102 = vmatprep.mubr.msk.f32.mxu0 %vm178_vm0, %v10705_v44  ;;  %v11001_v44 = vld [vmem:[%s13009_s0 + $0x10] sm:$0xff] }
  0x99   :  { %8591 = vmatmul.mubr.msk.f32.gmra.mrb[58].mxu1 %vm178_vm0, %v10934_v12 }
  0x9a   :  { %9103 = vmatmul.mubr.msk.f32.gmra.mrb[26].mxu0 %vm178_vm0, %v10713_v45  ;;  %8593 = vmatprep.mubr.msk.f32.mxu1 %vm178_vm0, %v10941_v31  ;;  %v33_v45 = vld [vmem:[%s13009_s0 + $0x8] sm:$0xff] }
  0x9b   :  { %9105 = vmatprep.mubr.msk.f32.mxu0 %vm178_vm0, %v10730_v49  ;;  %v6950_v49 = vld [vmem:[%s13010_s1 + $0x90] sm:$0xff] }
  0x9d   :  { %8594 = vmatmul.mubr.msk.f32.gmra.mrb[60].mxu1 %vm178_vm0, %v10952_v46 }
  0x9e   :  { %9106 = vmatmul.mubr.msk.f32.gmra.mrb[28].mxu0 %vm178_vm0, %v10737_v52  ;;  %8596 = vmatprep.mubr.msk.f32.mxu1 %vm178_vm0, %v10959_v8  ;;  %v32_v52 = vld [vmem:[%s13009_s0] sm:$0xff] }
  0x9f   :  { %9108 = vmatprep.mubr.msk.f32.mxu0 %vm178_vm0, %v10754_v58  ;;  %v6951_v58 = vld [vmem:[%s13010_s1 + $0x98] sm:$0xff] }
  0xa0   :  { %v9531_v37 = vpack.c.bf16 %v6951_v58, %v6950_v49  ;;  %v6955_v58 = vld [vmem:[%s13010_s1 + $0xb8] sm:$0xff] }
  0xa1   :  { %8597 = vmatmul.mubr.msk.f32.gmra.mrb[62].mxu1 %vm178_vm0, %v10970_v60 }
  0xa2   :  { %9109 = vmatmul.mubr.msk.f32.gmra.mrb[30].mxu0 %vm178_vm0, %v10977_v56  ;;  %8615 = vmatprep.mubr.msk.f32.mxu1 %vm178_vm0, %v32_v52  ;;  %v6952_v56 = vld [vmem:[%s13010_s1 + $0xa0] sm:$0xff]  ;;  %v6953_v52 = vld [vmem:[%s13010_s1 + $0xa8] sm:$0xff] }
  0xa3   :  { %9111 = vmatprep.mubr.msk.f32.mxu0 %vm178_vm0, %v10774_v0  ;;  %v11016_v0 = vld [vmem:[%s13009_s0 + $0x18] sm:$0xff]  ;;  %v9535_v49 = vpack.c.bf16 %v6953_v52, %v6952_v56  ;;  %v11042_v56 = vld [vmem:[%s13009_s0 + $0x28] sm:$0xff]  ;;  %v11049_v52 = vld [vmem:[%s13009_s0 + $0x30] sm:$0xff] }
  0xa5   :  { %8616 = vmatmul.mubr.msk.f32.vlgmr.msra.gmra.mrb[0].mxu1 %vm178_vm0, %v33_v45  ;;  %v11025_v45 = vld [vmem:[%s13009_s0 + $0x20] sm:$0xff] }
  0xa6   :  { %9112 = vmatmul.mubr.msk.f32.gmra.mrb[32].mxu0 %vm178_vm0, %v10781_v1  ;;  %9530 = vmatpush3.bf16.msra.mxu1 %v10468_v3  ;;  %v6954_v3 = vld [vmem:[%s13010_s1 + $0xb0] sm:$0xff]  ;;  %v7085_v1 = vld [vmem:[%s13010_s1 + $0xc8] sm:$0xff] }
  0xa7   :  { %8618 = vmatprep.mubr.msk.f32.mxu1 %vm178_vm0, %v11001_v44  ;;  %9114 = vmatprep.mubr.msk.f32.mxu0 %vm178_vm0, %v10793_v33  ;;  %v9539_v33 = vpack.c.bf16 %v6955_v58, %v6954_v3  ;;  %v11073_v3 = vld [vmem:[%s13009_s0 + $0x220] sm:$0xff] }
  0xa8   :  { %9532 = vmatprep.subr.bf16.mxu1 %v9531_v37 }
  0xa9   :  { %8619 = vmatmul.mubr.msk.f32.gmra.mrb[2].mxu1 %vm178_vm0, %v11016_v0 }
  0xaa   :  { %9115 = vmatmul.mubr.msk.f32.gmra.mrb[34].mxu0 %vm178_vm0, %v10800_v34  ;;  %8621 = vmatprep.mubr.msk.f32.mxu1 %vm178_vm0, %v11025_v45  ;;  %v7084_v34 = vld [vmem:[%s13010_s1 + $0xc0] sm:$0xff] }
  0xab   :  { %9117 = vmatprep.mubr.msk.f32.mxu0 %vm178_vm0, %v10811_v39  ;;  %9534 = vmatpush3.bf16.msra.mxu1 %v9531_v37  ;;  %v11066_v37 = vld [vmem:[%s13009_s0 + $0x38] sm:$0xff]  ;;  %v11075_v58 = vpack.c.bf16 %v7085_v1, %v7084_v34  ;;  %v7632_v34 = vld [vmem:[%s13010_s1 + $0x1e0] sm:$0xff] }
  0xac   :  { %9536 = vmatprep.subr.bf16.mxu1 %v9535_v49  ;;  %v7631_v1 = vld [vmem:[%s13010_s1 + $0x1d8] sm:$0xff] }
  0xad   :  { %8622 = vmatmul.mubr.msk.f32.gmra.mrb[4].mxu1 %vm178_vm0, %v11042_v56 }
  0xae   :  { %9118 = vmatmul.mubr.msk.f32.gmra.mrb[36].mxu0 %vm178_vm0, %v10818_v40  ;;  %8624 = vmatprep.mubr.msk.f32.mxu1 %vm178_vm0, %v11049_v52 }
  0xaf   :  { %9120 = vmatprep.mubr.msk.f32.mxu0 %vm178_vm0, %v10829_v41  ;;  %9538 = vmatpush3.bf16.msra.mxu1 %v9535_v49  ;;  %v7435_v49 = vld [vmem:[%s13009_s0 + $0x48] sm:$0xff] }
  0xb0   :  { %9540 = vmatprep.subr.bf16.mxu1 %v9539_v33 }
  0xb1   :  { %8625 = vmatmul.mubr.msk.f32.gmra.mrb[6].mxu1 %vm178_vm0, %v11066_v37 }
  0xb2   :  { %9121 = vmatmul.mubr.msk.f32.gmra.mrb[38].mxu0 %vm178_vm0, %v11073_v3  ;;  %8627 = vmatprep.mubr.msk.f32.mxu1 %vm178_vm0, %v10272_v17  ;;  %v11113_v17 = vld [vmem:[%s13009_s0 + $0x270] sm:$0xff] }
  0xb3   :  { %9123 = vmatprep.mubr.msk.f32.mxu0 %vm178_vm0, %v10847_v47  ;;  %9542 = vmatpush3.bf16.msra.mxu1 %v9539_v33 }
  0xb4   :  { %9544 = vmatprep.subr.bf16.mxu1 %v11075_v58 }
  0xb5   :  { %8628 = vmatmul.mubr.msk.f32.gmra.mrb[8].mxu1 %vm178_vm0, %v10277_v18  ;;  %v11153_v18 = vld [vmem:[%s13009_s0 + $0x2d8] sm:$0xff] }
  0xb6   :  { %9124 = vmatmul.mubr.msk.f32.gmra.mrb[40].mxu0 %vm178_vm0, %v10854_v48  ;;  %8630 = vmatprep.mubr.msk.f32.mxu1 %vm178_vm0, %v10332_v36 }
  0xb7   :  { %9126 = vmatprep.mubr.msk.f32.mxu0 %vm178_vm0, %v10865_v53 }
  0xb9   :  { %8631 = vmatmul.mubr.msk.f32.gmra.mrb[10].mxu1 %vm178_vm0, %v10339_v38 }
  0xba   :  { %9127 = vmatmul.mubr.msk.f32.gmra.mrb[42].mxu0 %vm178_vm0, %v10872_v54  ;;  %8633 = vmatprep.mubr.msk.f32.mxu1 %vm178_vm0, %v10354_v42 }
  0xbb   :  { %9129 = vmatprep.mubr.msk.f32.mxu0 %vm178_vm0, %v10883_v55 }
  0xbd   :  { %8634 = vmatmul.mubr.msk.f32.gmra.mrb[12].mxu1 %vm178_vm0, %v10361_v43 }
  0xbe   :  { %9130 = vmatmul.mubr.msk.f32.gmra.mrb[44].mxu0 %vm178_vm0, %v10890_v25  ;;  %8636 = vmatprep.mubr.msk.f32.mxu1 %vm178_vm0, %v10386_v50 }
  0xbf   :  { %9132 = vmatprep.mubr.msk.f32.mxu0 %vm178_vm0, %v10901_v19 }
  0xc1   :  { %8637 = vmatmul.mubr.msk.f32.gmra.mrb[14].mxu1 %vm178_vm0, %v10391_v51 }
  0xc2   :  { %9133 = vmatmul.mubr.msk.f32.gmra.mrb[46].mxu0 %vm178_vm0, %v11113_v17  ;;  %8639 = vmatprep.mubr.msk.f32.mxu1 %vm178_vm0, %v10418_v57  ;;  %v11165_v57 = vld [vmem:[%s13009_s0 + $0x2e0] sm:$0xff] }
  0xc3   :  { %9135 = vmatprep.mubr.msk.f32.mxu0 %vm178_vm0, %v10916_v7  ;;  %v7347_v7 = vld [vmem:[%s13009_s0 + $0x2c0] sm:$0xff] }
  0xc5   :  { %8640 = vmatmul.mubr.msk.f32.gmra.mrb[16].mxu1 %vm178_vm0, %v10426_v59  ;;  %v11170_v59 = vld [vmem:[%s13009_s0 + $0x2e8] sm:$0xff] }
  0xc6   :  { %9136 = vmatmul.mubr.msk.f32.gmra.mrb[48].mxu0 %vm178_vm0, %v10923_v21  ;;  %8642 = vmatprep.mubr.msk.f32.mxu1 %vm178_vm0, %v10441_v62  ;;  %v11206_v21 = vld [vmem:[%s13009_s0 + $0x308] sm:$0xff] }
  0xc7   :  { %9138 = vmatprep.mubr.msk.f32.mxu0 %vm178_vm0, %v10934_v12  ;;  %v7764_v12 = vld [vmem:[%s13010_s1 + $0x200] sm:$0xff] }
  0xc9   :  { %8643 = vmatmul.mubr.msk.f32.gmra.mrb[18].mxu1 %vm178_vm0, %v10446_v63 }
  0xca   :  { %9139 = vmatmul.mubr.msk.f32.gmra.mrb[50].mxu0 %vm178_vm0, %v10941_v31  ;;  %8645 = vmatprep.mubr.msk.f32.mxu1 %vm178_vm0, %v10466_v2  ;;  %v7355_v31 = vld [vmem:[%s13009_s0 + $0x310] sm:$0xff] }
  0xcb   :  { %9141 = vmatprep.mubr.msk.f32.mxu0 %vm178_vm0, %v10952_v46  ;;  %v7633_v46 = vld [vmem:[%s13010_s1 + $0x1e8] sm:$0xff] }
  0xcd   :  { %8646 = vmatmul.mubr.msk.f32.gmra.mrb[20].mxu1 %vm178_vm0, %v10473_v4 }
  0xce   :  { %9142 = vmatmul.mubr.msk.f32.gmra.mrb[52].mxu0 %vm178_vm0, %v10959_v8  ;;  %8648 = vmatprep.mubr.msk.f32.mxu1 %vm178_vm0, %v10487_v5  ;;  %v11183_v8 = vld [vmem:[%s13009_s0 + $0x2f0] sm:$0xff] }
  0xcf   :  { %9144 = vmatprep.mubr.msk.f32.mxu0 %vm178_vm0, %v10970_v60  ;;  %v7630_v60 = vld [vmem:[%s13010_s1 + $0x1d0] sm:$0xff] }
  0xd0   :  { %v9611_v33 = vpack.c.bf16 %v7631_v1, %v7630_v60  ;;  %v13098_v60 = vld [vmem:[#allocation23_spill] sm:$0xff]  ;;  %v11445_v1 = vld [vmem:[%s13009_s0 + $0xc0] sm:$0xff] }
  0xd1   :  { %8649 = vmatmul.mubr.msk.f32.gmra.mrb[22].mxu1 %vm178_vm0, %v10492_v6 }
  0xd2   :  { %9145 = vmatmul.mubr.msk.f32.gmra.mrb[54].mxu0 %vm178_vm0, %v7347_v7  ;;  %8651 = vmatprep.mubr.msk.f32.mxu1 %vm178_vm0, %v10510_v9  ;;  %v11188_v9 = vld [vmem:[%s13009_s0 + $0x2f8] sm:$0xff]  ;;  %v13096_v7 = vld [vmem:[#allocation21_spill] sm:$0xff] }
  0xd3   :  { %9147 = vmatprep.mubr.msk.f32.mxu0 %vm178_vm0, %v11153_v18 }
  0xd5   :  { %8652 = vmatmul.mubr.msk.f32.gmra.mrb[24].mxu1 %vm178_vm0, %v10515_v10  ;;  %v11201_v10 = vld [vmem:[%s13009_s0 + $0x300] sm:$0xff] }
  0xd6   :  { %9148 = vmatmul.mubr.msk.f32.gmra.mrb[56].mxu0 %vm178_vm0, %v11165_v57  ;;  %8654 = vmatprep.mubr.msk.f32.mxu1 %vm178_vm0, %v10528_v11 }
  0xd7   :  { %9150 = vmatprep.mubr.msk.f32.mxu0 %vm178_vm0, %v11170_v59 }
  0xd9   :  { %8655 = vmatmul.mubr.msk.f32.gmra.mrb[26].mxu1 %vm178_vm0, %v10533_v13 }
  0xda   :  { %9151 = vmatmul.mubr.msk.f32.gmra.mrb[58].mxu0 %vm178_vm0, %v11183_v8  ;;  %8657 = vmatprep.mubr.msk.f32.mxu1 %vm178_vm0, %v10546_v14 }
  0xdb   :  { %9153 = vmatprep.mubr.msk.f32.mxu0 %vm178_vm0, %v11188_v9 }
  0xdd   :  { %8658 = vmatmul.mubr.msk.f32.gmra.mrb[28].mxu1 %vm178_vm0, %v10551_v15 }
  0xde   :  { %9154 = vmatmul.mubr.msk.f32.gmra.mrb[60].mxu0 %vm178_vm0, %v11201_v10  ;;  %8660 = vmatprep.mubr.msk.f32.mxu1 %vm178_vm0, %v10564_v16 }
  0xdf   :  { %9156 = vmatprep.mubr.msk.f32.mxu0 %vm178_vm0, %v11206_v21 }
  0xe1   :  { %8661 = vmatmul.mubr.msk.f32.gmra.mrb[30].mxu1 %vm178_vm0, %v10569_v20 }
  0xe2   :  { %9157 = vmatmul.mubr.msk.f32.gmra.mrb[62].mxu0 %vm178_vm0, %v7355_v31  ;;  %8663 = vmatprep.mubr.msk.f32.mxu1 %vm178_vm0, %v10587_v22  ;;  %v9615_v22 = vpack.c.bf16 %v7633_v46, %v7632_v34  ;;  %v13097_v31 = vld [vmem:[#allocation22_spill] sm:$0xff] }
  0xe3   :  { %9175 = vmatprep.mubr.msk.f32.mxu0 %vm178_vm0, %v11001_v44  ;;  %v7635_v44 = vld [vmem:[%s13010_s1 + $0x1f8] sm:$0xff]  ;;  %v11469_v34 = vld [vmem:[%s13009_s0 + $0xd0] sm:$0xff] }
  0xe5   :  { %8664 = vmatmul.mubr.msk.f32.gmra.mrb[32].mxu1 %vm178_vm0, %v10592_v23  ;;  %v7634_v23 = vld [vmem:[%s13010_s1 + $0x1f0] sm:$0xff] }
  0xe6   :  { %9176 = vmatmul.mubr.msk.f32.vlgmr.msra.gmra.mrb[0].mxu0 %vm178_vm0, %v11016_v0  ;;  %8666 = vmatprep.mubr.msk.f32.mxu1 %vm178_vm0, %v10605_v24  ;;  %v9619_v0 = vpack.c.bf16 %v7635_v44, %v7634_v23  ;;  %v11500_v23 = vld [vmem:[%s13009_s0 + $0xf8] sm:$0xff]  ;;  %v11507_v44 = vld [vmem:[%s13009_s0 + $0x100] sm:$0xff] }
  0xe7   :  { %9610 = vmatpush3.bf16.msra.mxu0 %v10763_v61  ;;  %9178 = vmatprep.mubr.msk.f32.mxu0 %vm178_vm0, %v11025_v45  ;;  %v11264_v61 = vld [vmem:[%s13009_s0 + $0x40] sm:$0xff]  ;;  %v7765_v45 = vld [vmem:[%s13010_s1 + $0x208] sm:$0xff] }
  0xe8   :  { %9612 = vmatprep.subr.bf16.mxu0 %v9611_v33 }
  0xe9   :  { %8667 = vmatmul.mubr.msk.f32.gmra.mrb[34].mxu1 %vm178_vm0, %v10610_v26 }
  0xea   :  { %9179 = vmatmul.mubr.msk.f32.gmra.mrb[2].mxu0 %vm178_vm0, %v11042_v56  ;;  %8669 = vmatprep.mubr.msk.f32.mxu1 %vm178_vm0, %v10623_v27  ;;  %v11283_v56 = vpack.c.bf16 %v7765_v45, %v7764_v12  ;;  %v11519_v12 = vld [vmem:[%s13009_s0 + $0x108] sm:$0xff]  ;;  %v11526_v45 = vld [vmem:[%s13009_s0 + $0x110] sm:$0xff] }
  0xeb   :  { %9181 = vmatprep.mubr.msk.f32.mxu0 %vm178_vm0, %v11049_v52  ;;  %9614 = vmatpush3.bf16.msra.mxu0 %v9611_v33  ;;  %v13087_v52 = vld [vmem:[#allocation13_spill] sm:$0xff]  ;;  %v7091_v33 = vld [vmem:[%s13010_s1 + $0xf8] sm:$0xff] }
  0xec   :  { %9616 = vmatprep.subr.bf16.mxu0 %v9615_v22 }
  0xed   :  { %8670 = vmatmul.mubr.msk.f32.gmra.mrb[36].mxu1 %vm178_vm0, %v10628_v28 }
  0xee   :  { %9182 = vmatmul.mubr.msk.f32.gmra.mrb[4].mxu0 %vm178_vm0, %v11066_v37  ;;  %8672 = vmatprep.mubr.msk.f32.mxu1 %vm178_vm0, %v10641_v29  ;;  %v13088_v37 = vld [vmem:[#allocation14_spill] sm:$0xff] }
  0xef   :  { %9184 = vmatprep.mubr.msk.f32.mxu0 %vm178_vm0, %v11264_v61  ;;  %9618 = vmatpush3.bf16.msra.mxu0 %v9615_v22  ;;  %v11487_v22 = vld [vmem:[%s13009_s0 + $0x188] sm:$0xff]  ;;  %13105 = vst [vmem:[#allocation14_spill] sm:$0xff] %v11526_v45 }
  0xf0   :  { %9620 = vmatprep.subr.bf16.mxu0 %v9619_v0 }
  0xf1   :  { %8673 = vmatmul.mubr.msk.f32.gmra.mrb[38].mxu1 %vm178_vm0, %v10646_v30 }
  0xf2   :  { %9185 = vmatmul.mubr.msk.f32.gmra.mrb[6].mxu0 %vm178_vm0, %v7435_v49  ;;  %8675 = vmatprep.mubr.msk.f32.mxu1 %vm178_vm0, %v10664_v32  ;;  %v13090_v32 = vld [vmem:[#allocation16_spill] sm:$0xff] }
  0xf3   :  { %9187 = vmatprep.mubr.msk.f32.mxu0 %vm178_vm0, %v10332_v36  ;;  %9622 = vmatpush3.bf16.msra.mxu0 %v9619_v0  ;;  %v13089_v36 = vld [vmem:[#allocation15_spill] sm:$0xff]  ;;  %v13104_v0 = vld [vmem:[#allocation5_spill] sm:$0xff] }
  0xf4   :  { %9624 = vmatprep.subr.bf16.mxu0 %v11283_v56  ;;  %v11537_v49 = vld [vmem:[%s13009_s0 + $0x118] sm:$0xff] }
  0xf5   :  { %8676 = vmatmul.mubr.msk.f32.gmra.mrb[40].mxu1 %vm178_vm0, %v10681_v35  ;;  %v13093_v35 = vld [vmem:[#allocation18_spill] sm:$0xff]  ;;  %13106 = vst [vmem:[#allocation15_spill] sm:$0xff] %v11537_v49 }
  0xf6   :  { %9188 = vmatmul.mubr.msk.f32.gmra.mrb[8].mxu0 %vm178_vm0, %v10339_v38  ;;  %8678 = vmatprep.mubr.msk.f32.mxu1 %vm178_vm0, %v13087_v52  ;;  %v13091_v38 = vld [vmem:[#allocation17_spill] sm:$0xff] }
  0xf7   :  { %9190 = vmatprep.mubr.msk.f32.mxu0 %vm178_vm0, %v10354_v42  ;;  %v13092_v42 = vld [vmem:[#allocation9_spill] sm:$0xff] }
  0xf9   :  { %8679 = vmatmul.mubr.msk.f32.gmra.mrb[42].mxu1 %vm178_vm0, %v13088_v37 }
  0xfa   :  { %9191 = vmatmul.mubr.msk.f32.gmra.mrb[10].mxu0 %vm178_vm0, %v10361_v43  ;;  %8681 = vmatprep.mubr.msk.f32.mxu1 %vm178_vm0, %v13089_v36  ;;  %v11320_v43 = vld [vmem:[%s13009_s0 + $0x98] sm:$0xff] }
  0xfb   :  { %9193 = vmatprep.mubr.msk.f32.mxu0 %vm178_vm0, %v10386_v50  ;;  %v13094_v50 = vld [vmem:[#allocation19_spill] sm:$0xff] }
  0xfd   :  { %8682 = vmatmul.mubr.msk.f32.gmra.mrb[44].mxu1 %vm178_vm0, %v13090_v32 }
  0xfe   :  { %9194 = vmatmul.mubr.msk.f32.gmra.mrb[12].mxu0 %vm178_vm0, %v10391_v51  ;;  %8684 = vmatprep.mubr.msk.f32.mxu1 %vm178_vm0, %v13091_v38  ;;  %v13095_v51 = vld [vmem:[#allocation20_spill] sm:$0xff] }
  0xff   :  { %9196 = vmatprep.mubr.msk.f32.mxu0 %vm178_vm0, %v13092_v42  ;;  %v11575_v42 = vld [vmem:[%s13009_s0 + $0x148] sm:$0xff] }
 0x100   :  { %13109 = vst [vmem:[#allocation17_spill] sm:$0xff] %v11575_v42 }
 0x101   :  { %8685 = vmatmul.mubr.msk.f32.gmra.mrb[46].mxu1 %vm178_vm0, %v13093_v35 }
 0x102   :  { %9197 = vmatmul.mubr.msk.f32.gmra.mrb[14].mxu0 %vm178_vm0, %v11320_v43  ;;  %8687 = vmatprep.mubr.msk.f32.mxu1 %vm178_vm0, %v13094_v50  ;;  %v11593_v50 = vld [vmem:[%s13009_s0 + $0x158] sm:$0xff] }
 0x103   :  { %9199 = vmatprep.mubr.msk.f32.mxu0 %vm178_vm0, %v10441_v62  ;;  %v13099_v62 = vld [vmem:[#allocation10_spill] sm:$0xff] }
 0x105   :  { %8688 = vmatmul.mubr.msk.f32.gmra.mrb[48].mxu1 %vm178_vm0, %v13095_v51  ;;  %v11600_v51 = vld [vmem:[%s13009_s0 + $0x160] sm:$0xff] }
 0x106   :  { %9200 = vmatmul.mubr.msk.f32.gmra.mrb[16].mxu0 %vm178_vm0, %v10446_v63  ;;  %8690 = vmatprep.mubr.msk.f32.mxu1 %vm178_vm0, %v13096_v7  ;;  %v11357_v63 = vld [vmem:[%s13009_s0 + $0xe8] sm:$0xff] }
 0x107   :  { %9202 = vmatprep.mubr.msk.f32.mxu0 %vm178_vm0, %v10466_v2  ;;  %13100 = vst [vmem:[#allocation13_spill] sm:$0xff] %v11357_v63  ;;  %v13101_v2 = vld [vmem:[#allocation24_spill] sm:$0xff] }
 0x109   :  { %8691 = vmatmul.mubr.msk.f32.gmra.mrb[50].mxu1 %vm178_vm0, %v13097_v31 }
 0x10a   :  { %9203 = vmatmul.mubr.msk.f32.gmra.mrb[18].mxu0 %vm178_vm0, %v10473_v4  ;;  %8693 = vmatprep.mubr.msk.f32.mxu1 %vm178_vm0, %v13098_v60  ;;  %v13102_v4 = vld [vmem:[#allocation11_spill] sm:$0xff] }
 0x10b   :  { %9205 = vmatprep.mubr.msk.f32.mxu0 %vm178_vm0, %v10487_v5  ;;  %v11394_v5 = vld [vmem:[%s13009_s0 + $0x138] sm:$0xff] }
 0x10d   :  { %8694 = vmatmul.mubr.msk.f32.gmra.mrb[52].mxu1 %vm178_vm0, %v10811_v39 }
 0x10e   :  { %9206 = vmatmul.mubr.msk.f32.gmra.mrb[20].mxu0 %vm178_vm0, %v10492_v6  ;;  %8696 = vmatprep.mubr.msk.f32.mxu1 %vm178_vm0, %v10818_v40  ;;  %v6884_v6 = vld [vmem:[%s13009_s0 + $0xa0] sm:$0xff] }
 0x10f   :  { %9208 = vmatprep.mubr.msk.f32.mxu0 %vm178_vm0, %v13099_v62  ;;  %v11667_v62 = vld [vmem:[%s13009_s0 + $0x1a8] sm:$0xff] }
 0x111   :  { %8697 = vmatmul.mubr.msk.f32.gmra.mrb[54].mxu1 %vm178_vm0, %v10829_v41 }
 0x112   :  { %9209 = vmatmul.mubr.msk.f32.gmra.mrb[22].mxu0 %vm178_vm0, %v11357_v63  ;;  %8699 = vmatprep.mubr.msk.f32.mxu1 %vm178_vm0, %v13101_v2  ;;  %v11718_v2 = vld [vmem:[%s13009_s0 + $0x60] sm:$0xff] }
 0x113   :  { %9211 = vmatprep.mubr.msk.f32.mxu0 %vm178_vm0, %v10528_v11  ;;  %v7086_v11 = vld [vmem:[%s13010_s1 + $0xd0] sm:$0xff] }
 0x115   :  { %8700 = vmatmul.mubr.msk.f32.gmra.mrb[56].mxu1 %vm178_vm0, %v10847_v47  ;;  %v7089_v47 = vld [vmem:[%s13010_s1 + $0xe8] sm:$0xff] }
 0x116   :  { %9212 = vmatmul.mubr.msk.f32.gmra.mrb[24].mxu0 %vm178_vm0, %v10533_v13  ;;  %8702 = vmatprep.mubr.msk.f32.mxu1 %vm178_vm0, %v10854_v48  ;;  %v7087_v13 = vld [vmem:[%s13010_s1 + $0xd8] sm:$0xff] }
 0x117   :  { %9214 = vmatprep.mubr.msk.f32.mxu0 %vm178_vm0, %v10546_v14  ;;  %v11413_v14 = vld [vmem:[%s13009_s0 + $0xa8] sm:$0xff] }
 0x119   :  { %8703 = vmatmul.mubr.msk.f32.gmra.mrb[58].mxu1 %vm178_vm0, %v10865_v53 }
 0x11a   :  { %9215 = vmatmul.mubr.msk.f32.gmra.mrb[26].mxu0 %vm178_vm0, %v10551_v15  ;;  %8705 = vmatprep.mubr.msk.f32.mxu1 %vm178_vm0, %v10872_v54  ;;  %v11420_v15 = vld [vmem:[%s13009_s0 + $0xb0] sm:$0xff] }
 0x11b   :  { %9217 = vmatprep.mubr.msk.f32.mxu0 %vm178_vm0, %v10564_v16  ;;  %v9547_v16 = vpack.c.bf16 %v7087_v13, %v7086_v11  ;;  %v11741_v11 = vld [vmem:[%s13009_s0 + $0x68] sm:$0xff]  ;;  %v11746_v13 = vld [vmem:[%s13009_s0 + $0x1f0] sm:$0xff] }
 0x11d   :  { %8706 = vmatmul.mubr.msk.f32.gmra.mrb[60].mxu1 %vm178_vm0, %v10883_v55 }
 0x11e   :  { %9218 = vmatmul.mubr.msk.f32.gmra.mrb[28].mxu0 %vm178_vm0, %v10569_v20  ;;  %8708 = vmatprep.mubr.msk.f32.mxu1 %vm178_vm0, %v10890_v25  ;;  %v7088_v20 = vld [vmem:[%s13010_s1 + $0xe0] sm:$0xff] }
 0x11f   :  { %9220 = vmatprep.mubr.msk.f32.mxu0 %vm178_vm0, %v13102_v4  ;;  %v7767_v4 = vld [vmem:[%s13010_s1 + $0x218] sm:$0xff] }
 0x121   :  { %8709 = vmatmul.mubr.msk.f32.gmra.mrb[62].mxu1 %vm178_vm0, %v10901_v19 }
 0x122   :  { %9221 = vmatmul.mubr.msk.f32.gmra.mrb[30].mxu0 %vm178_vm0, %v11394_v5  ;;  %8727 = vmatprep.mubr.msk.f32.mxu1 %vm178_vm0, %v6884_v6  ;;  %v11734_v6 = vld [vmem:[%s13009_s0 + $0x1e8] sm:$0xff] }
 0x123   :  { %9223 = vmatprep.mubr.msk.f32.mxu0 %vm178_vm0, %v10605_v24  ;;  %v11436_v24 = vld [vmem:[%s13009_s0 + $0xb8] sm:$0xff]  ;;  %13111 = vst [vmem:[#allocation18_spill] sm:$0xff] %v11734_v6 }
 0x125   :  { %8728 = vmatmul.mubr.msk.f32.vlgmr.msra.gmra.mrb[0].mxu1 %vm178_vm0, %v11413_v14 }
 0x126   :  { %9224 = vmatmul.mubr.msk.f32.gmra.mrb[32].mxu0 %vm178_vm0, %v10610_v26  ;;  %9546 = vmatpush3.bf16.msra.mxu1 %v11075_v58  ;;  %v9551_v26 = vpack.c.bf16 %v7089_v47, %v7088_v20  ;;  %v7090_v58 = vld [vmem:[%s13010_s1 + $0xf0] sm:$0xff]  ;;  %v7768_v47 = vld [vmem:[%s13010_s1 + $0x220] sm:$0xff] }
 0x127   :  { %8730 = vmatprep.mubr.msk.f32.mxu1 %vm178_vm0, %v11420_v15  ;;  %9226 = vmatprep.mubr.msk.f32.mxu0 %vm178_vm0, %v10623_v27  ;;  %v11462_v27 = vld [vmem:[%s13009_s0 + $0xc8] sm:$0xff]  ;;  %v9555_v46 = vpack.c.bf16 %v7091_v33, %v7090_v58  ;;  %v11768_v58 = vld [vmem:[%s13009_s0 + $0x1f8] sm:$0xff] }
 0x128   :  { %9548 = vmatprep.subr.bf16.mxu1 %v9547_v16  ;;  %v11776_v33 = vld [vmem:[%s13009_s0 + $0x78] sm:$0xff] }
 0x129   :  { %8731 = vmatmul.mubr.msk.f32.gmra.mrb[2].mxu1 %vm178_vm0, %v11436_v24 }
 0x12a   :  { %9227 = vmatmul.mubr.msk.f32.gmra.mrb[34].mxu0 %vm178_vm0, %v10628_v28  ;;  %8733 = vmatprep.mubr.msk.f32.mxu1 %vm178_vm0, %v11445_v1  ;;  %v11480_v28 = vld [vmem:[%s13009_s0 + $0xd8] sm:$0xff] }
 0x12b   :  { %9229 = vmatprep.mubr.msk.f32.mxu0 %vm178_vm0, %v10641_v29  ;;  %9550 = vmatpush3.bf16.msra.mxu1 %v9547_v16  ;;  %v13103_v29 = vld [vmem:[#allocation12_spill] sm:$0xff]  ;;  %v11751_v16 = vld [vmem:[%s13009_s0 + $0x70] sm:$0xff] }
 0x12c   :  { %9552 = vmatprep.subr.bf16.mxu1 %v9551_v26 }
 0x12d   :  { %8734 = vmatmul.mubr.msk.f32.gmra.mrb[4].mxu1 %vm178_vm0, %v11462_v27 }
 0x12e   :  { %9230 = vmatmul.mubr.msk.f32.gmra.mrb[36].mxu0 %vm178_vm0, %v10646_v30  ;;  %8736 = vmatprep.mubr.msk.f32.mxu1 %vm178_vm0, %v11469_v34  ;;  %v6892_v30 = vld [vmem:[%s13009_s0 + $0xf0] sm:$0xff] }
 0x12f   :  { %9232 = vmatprep.mubr.msk.f32.mxu0 %vm178_vm0, %v13103_v29  ;;  %9554 = vmatpush3.bf16.msra.mxu1 %v9551_v26  ;;  %v7769_v26 = vld [vmem:[%s13010_s1 + $0x228] sm:$0xff]  ;;  %v11786_v29 = vld [vmem:[%s13009_s0 + $0x80] sm:$0xff] }
 0x130   :  { %9556 = vmatprep.subr.bf16.mxu1 %v9555_v46 }
 0x131   :  { %8737 = vmatmul.mubr.msk.f32.gmra.mrb[6].mxu1 %vm178_vm0, %v11480_v28 }
 0x132   :  { %9233 = vmatmul.mubr.msk.f32.gmra.mrb[38].mxu0 %vm178_vm0, %v11487_v22  ;;  %8739 = vmatprep.mubr.msk.f32.mxu1 %vm178_vm0, %v6892_v30  ;;  %v7770_v30 = vld [vmem:[%s13010_s1 + $0x230] sm:$0xff] }
 0x133   :  { %9235 = vmatprep.mubr.msk.f32.mxu0 %vm178_vm0, %v13087_v52  ;;  %9558 = vmatpush3.bf16.msra.mxu1 %v9555_v46  ;;  %v11544_v52 = vld [vmem:[%s13009_s0 + $0x120] sm:$0xff] }
 0x134   :  { %9639 = vmatprep.subr.bf16.mxu1 %v13104_v0  ;;  %13107 = vst [vmem:[#allocation16_spill] sm:$0xff] %v11544_v52  ;;  %v11781_v46 = vld [vmem:[%s13009_s0 + $0x200] sm:$0xff] }
 0x135   :  { %8740 = vmatmul.mubr.msk.f32.gmra.mrb[8].mxu1 %vm178_vm0, %v11500_v23 }
 0x136   :  { %9236 = vmatmul.mubr.msk.f32.gmra.mrb[40].mxu0 %vm178_vm0, %v13088_v37  ;;  %8742 = vmatprep.mubr.msk.f32.mxu1 %vm178_vm0, %v11507_v44  ;;  %v11555_v37 = vld [vmem:[%s13009_s0 + $0x128] sm:$0xff] }
 0x137   :  { %9238 = vmatprep.mubr.msk.f32.mxu0 %vm178_vm0, %v13089_v36  ;;  %v13108_v36 = vld [vmem:[#allocation25_spill] sm:$0xff] }
 0x139   :  { %8743 = vmatmul.mubr.msk.f32.gmra.mrb[10].mxu1 %vm178_vm0, %v11519_v12 }
 0x13a   :  { %9239 = vmatmul.mubr.msk.f32.gmra.mrb[42].mxu0 %vm178_vm0, %v13090_v32  ;;  %8745 = vmatprep.mubr.msk.f32.mxu1 %vm178_vm0, %v11526_v45  ;;  %v11562_v32 = vld [vmem:[%s13009_s0 + $0x1d8] sm:$0xff] }
 0x13b   :  { %9241 = vmatprep.mubr.msk.f32.mxu0 %vm178_vm0, %v13091_v38  ;;  %v6900_v38 = vld [vmem:[%s13009_s0 + $0x140] sm:$0xff] }
 0x13d   :  { %8746 = vmatmul.mubr.msk.f32.gmra.mrb[12].mxu1 %vm178_vm0, %v11537_v49 }
 0x13e   :  { %9242 = vmatmul.mubr.msk.f32.gmra.mrb[44].mxu0 %vm178_vm0, %v13093_v35  ;;  %8748 = vmatprep.mubr.msk.f32.mxu1 %vm178_vm0, %v11544_v52  ;;  %v11582_v35 = vld [vmem:[%s13009_s0 + $0x150] sm:$0xff] }
 0x13f   :  { %9244 = vmatprep.mubr.msk.f32.mxu0 %vm178_vm0, %v13108_v36  ;;  %v7771_v36 = vld [vmem:[%s13010_s1 + $0x238] sm:$0xff] }
 0x141   :  { %8749 = vmatmul.mubr.msk.f32.gmra.mrb[14].mxu1 %vm178_vm0, %v11555_v37 }
 0x142   :  { %9245 = vmatmul.mubr.msk.f32.gmra.mrb[46].mxu0 %vm178_vm0, %v11562_v32  ;;  %8751 = vmatprep.mubr.msk.f32.mxu1 %vm178_vm0, %v6900_v38  ;;  %v11803_v38 = vld [vmem:[%s13009_s0 + $0x208] sm:$0xff] }
 0x143   :  { %9247 = vmatprep.mubr.msk.f32.mxu0 %vm178_vm0, %v13096_v7  ;;  %v11611_v7 = vld [vmem:[%s13009_s0 + $0x168] sm:$0xff] }
 0x145   :  { %8752 = vmatmul.mubr.msk.f32.gmra.mrb[16].mxu1 %vm178_vm0, %v11575_v42  ;;  %v11927_v42 = vld [vmem:[%s13009_s0 + $0x290] sm:$0xff] }
 0x146   :  { %9248 = vmatmul.mubr.msk.f32.gmra.mrb[48].mxu0 %vm178_vm0, %v13097_v31  ;;  %8754 = vmatprep.mubr.msk.f32.mxu1 %vm178_vm0, %v11582_v35  ;;  %v11618_v31 = vld [vmem:[%s13009_s0 + $0x170] sm:$0xff] }
 0x147   :  { %9250 = vmatprep.mubr.msk.f32.mxu0 %vm178_vm0, %v13098_v60  ;;  %v11656_v60 = vld [vmem:[%s13009_s0 + $0x1a0] sm:$0xff] }
 0x149   :  { %8755 = vmatmul.mubr.msk.f32.gmra.mrb[18].mxu1 %vm178_vm0, %v11593_v50 }
 0x14a   :  { %9251 = vmatmul.mubr.msk.f32.gmra.mrb[50].mxu0 %vm178_vm0, %v10811_v39  ;;  %8757 = vmatprep.mubr.msk.f32.mxu1 %vm178_vm0, %v11600_v51  ;;  %v11629_v39 = vld [vmem:[%s13009_s0 + $0x178] sm:$0xff] }
 0x14b   :  { %9253 = vmatprep.mubr.msk.f32.mxu0 %vm178_vm0, %v10818_v40  ;;  %v11636_v40 = vld [vmem:[%s13009_s0 + $0x228] sm:$0xff] }
 0x14d   :  { %8758 = vmatmul.mubr.msk.f32.gmra.mrb[20].mxu1 %vm178_vm0, %v11611_v7 }
 0x14e   :  { %9254 = vmatmul.mubr.msk.f32.gmra.mrb[52].mxu0 %vm178_vm0, %v10829_v41  ;;  %8760 = vmatprep.mubr.msk.f32.mxu1 %vm178_vm0, %v11618_v31  ;;  %v6908_v41 = vld [vmem:[%s13009_s0 + $0x190] sm:$0xff] }
 0x14f   :  { %9256 = vmatprep.mubr.msk.f32.mxu0 %vm178_vm0, %v11073_v3  ;;  %v11649_v3 = vld [vmem:[%s13009_s0 + $0x198] sm:$0xff] }
 0x150   :  { %13110 = vst [vmem:[#allocation9_spill] sm:$0xff] %v11649_v3 }
 0x151   :  { %8761 = vmatmul.mubr.msk.f32.gmra.mrb[22].mxu1 %vm178_vm0, %v11629_v39 }
 0x152   :  { %9257 = vmatmul.mubr.msk.f32.gmra.mrb[54].mxu0 %vm178_vm0, %v11636_v40  ;;  %8763 = vmatprep.mubr.msk.f32.mxu1 %vm178_vm0, %v6908_v41  ;;  %v11810_v41 = vld [vmem:[%s13009_s0 + $0x88] sm:$0xff] }
 0x153   :  { %9259 = vmatprep.mubr.msk.f32.mxu0 %vm178_vm0, %v10854_v48  ;;  %v11674_v48 = vld [vmem:[%s13009_s0 + $0x1b0] sm:$0xff] }
 0x155   :  { %8764 = vmatmul.mubr.msk.f32.gmra.mrb[24].mxu1 %vm178_vm0, %v11649_v3  ;;  %v11920_v3 = vld [vmem:[%s13009_s0 + $0x288] sm:$0xff] }
 0x156   :  { %9260 = vmatmul.mubr.msk.f32.gmra.mrb[56].mxu0 %vm178_vm0, %v10865_v53  ;;  %8766 = vmatprep.mubr.msk.f32.mxu1 %vm178_vm0, %v11656_v60  ;;  %v11685_v53 = vld [vmem:[%s13009_s0 + $0x1b8] sm:$0xff]  ;;  %13113 = vst [vmem:[#allocation20_spill] sm:$0xff] %v11920_v3 }
 0x157   :  { %9262 = vmatprep.mubr.msk.f32.mxu0 %vm178_vm0, %v10872_v54  ;;  %v11692_v54 = vld [vmem:[%s13009_s0 + $0x1c0] sm:$0xff] }
 0x159   :  { %8767 = vmatmul.mubr.msk.f32.gmra.mrb[26].mxu1 %vm178_vm0, %v11667_v62 }
 0x15a   :  { %9263 = vmatmul.mubr.msk.f32.gmra.mrb[58].mxu0 %vm178_vm0, %v10883_v55  ;;  %8769 = vmatprep.mubr.msk.f32.mxu1 %vm178_vm0, %v11674_v48  ;;  %v11703_v55 = vld [vmem:[%s13009_s0 + $0x1c8] sm:$0xff] }
 0x15b   :  { %9265 = vmatprep.mubr.msk.f32.mxu0 %vm178_vm0, %v10890_v25  ;;  %v11710_v25 = vld [vmem:[%s13009_s0 + $0x278] sm:$0xff] }
 0x15d   :  { %8770 = vmatmul.mubr.msk.f32.gmra.mrb[28].mxu1 %vm178_vm0, %v11685_v53 }
 0x15e   :  { %9266 = vmatmul.mubr.msk.f32.gmra.mrb[60].mxu0 %vm178_vm0, %v10901_v19  ;;  %8772 = vmatprep.mubr.msk.f32.mxu1 %vm178_vm0, %v11692_v54  ;;  %v6916_v19 = vld [vmem:[%s13009_s0 + $0x1e0] sm:$0xff] }
 0x15f   :  { %9268 = vmatprep.mubr.msk.f32.mxu0 %vm178_vm0, %v11113_v17  ;;  %v7766_v17 = vld [vmem:[%s13010_s1 + $0x210] sm:$0xff] }
 0x160   :  { %v9627_v20 = vpack.c.bf16 %v7767_v4, %v7766_v17  ;;  %v11820_v17 = vld [vmem:[%s13009_s0 + $0x90] sm:$0xff]  ;;  %v9635_v4 = vpack.c.bf16 %v7771_v36, %v7770_v30  ;;  %v11882_v36 = vld [vmem:[%s13009_s0 + $0x258] sm:$0xff] }
 0x161   :  { %8773 = vmatmul.mubr.msk.f32.gmra.mrb[30].mxu1 %vm178_vm0, %v11703_v55  ;;  %v11871_v30 = vld [vmem:[%s13009_s0 + $0x250] sm:$0xff] }
 0x162   :  { %9269 = vmatmul.mubr.msk.f32.gmra.mrb[62].mxu0 %vm178_vm0, %v11710_v25  ;;  %8775 = vmatprep.mubr.msk.f32.mxu1 %vm178_vm0, %v6916_v19  ;;  %v11815_v19 = vld [vmem:[%s13009_s0 + $0x210] sm:$0xff] }
 0x163   :  { %9287 = vmatprep.mubr.msk.f32.mxu0 %vm178_vm0, %v11718_v2 }
 0x165   :  { %8776 = vmatmul.mubr.msk.f32.gmra.mrb[32].mxu1 %vm178_vm0, %v11734_v6  ;;  %v6932_v6 = vld [vmem:[%s13009_s0 + $0x280] sm:$0xff] }
 0x166   :  { %9288 = vmatmul.mubr.msk.f32.vlgmr.msra.gmra.mrb[0].mxu0 %vm178_vm0, %v11741_v11  ;;  %8778 = vmatprep.mubr.msk.f32.mxu1 %vm178_vm0, %v11746_v13 }
 0x167   :  { %9626 = vmatpush3.bf16.msra.mxu0 %v11283_v56  ;;  %9290 = vmatprep.mubr.msk.f32.mxu0 %vm178_vm0, %v11751_v16  ;;  %v9631_v56 = vpack.c.bf16 %v7769_v26, %v7768_v47  ;;  %v6924_v47 = vld [vmem:[%s13009_s0 + $0x230] sm:$0xff]  ;;  %v11846_v26 = vld [vmem:[%s13009_s0 + $0x238] sm:$0xff] }
 0x168   :  { %9628 = vmatprep.subr.bf16.mxu0 %v9627_v20  ;;  %13112 = vst [vmem:[#allocation19_spill] sm:$0xff] %v11846_v26 }
 0x169   :  { %8779 = vmatmul.mubr.msk.f32.gmra.mrb[34].mxu1 %vm178_vm0, %v11768_v58 }
 0x16a   :  { %9291 = vmatmul.mubr.msk.f32.gmra.mrb[2].mxu0 %vm178_vm0, %v11776_v33  ;;  %8781 = vmatprep.mubr.msk.f32.mxu1 %vm178_vm0, %v11781_v46 }
 0x16b   :  { %9293 = vmatprep.mubr.msk.f32.mxu0 %vm178_vm0, %v11786_v29  ;;  %9630 = vmatpush3.bf16.msra.mxu0 %v9627_v20  ;;  %v11831_v20 = vld [vmem:[%s13009_s0 + $0x218] sm:$0xff] }
 0x16c   :  { %9632 = vmatprep.subr.bf16.mxu0 %v9631_v56 }
 0x16d   :  { %8782 = vmatmul.mubr.msk.f32.gmra.mrb[36].mxu1 %vm178_vm0, %v11803_v38 }
 0x16e   :  { %9294 = vmatmul.mubr.msk.f32.gmra.mrb[4].mxu0 %vm178_vm0, %v11810_v41  ;;  %8784 = vmatprep.mubr.msk.f32.mxu1 %vm178_vm0, %v11815_v19 }
 0x16f   :  { %9296 = vmatprep.mubr.msk.f32.mxu0 %vm178_vm0, %v11820_v17  ;;  %9634 = vmatpush3.bf16.msra.mxu0 %v9631_v56  ;;  %v11853_v56 = vld [vmem:[%s13009_s0 + $0x240] sm:$0xff] }
 0x170   :  { %9636 = vmatprep.subr.bf16.mxu0 %v9635_v4 }
 0x171   :  { %8785 = vmatmul.mubr.msk.f32.gmra.mrb[38].mxu1 %vm178_vm0, %v11831_v20 }
 0x172   :  { %9297 = vmatmul.mubr.msk.f32.gmra.mrb[6].mxu0 %vm178_vm0, %v11320_v43  ;;  %8787 = vmatprep.mubr.msk.f32.mxu1 %vm178_vm0, %v6924_v47  ;;  %v11864_v43 = vld [vmem:[%s13009_s0 + $0x248] sm:$0xff]  ;;  %v11894_v47 = vld [vmem:[%s13009_s0 + $0xe0] sm:$0xff] }
 0x173   :  { %9299 = vmatprep.mubr.msk.f32.mxu0 %vm178_vm0, %v11420_v15  ;;  %9638 = vmatpush3.bf16.msra.mxu0 %v9635_v4  ;;  %v11889_v4 = vld [vmem:[%s13009_s0 + $0x260] sm:$0xff] }
 0x175   :  { %8788 = vmatmul.mubr.msk.f32.gmra.mrb[40].mxu1 %vm178_vm0, %v11846_v26  ;;  %v11905_v26 = vld [vmem:[%s13009_s0 + $0x268] sm:$0xff] }
 0x176   :  { %9300 = vmatmul.mubr.msk.f32.gmra.mrb[8].mxu0 %vm178_vm0, %v11436_v24  ;;  %8790 = vmatprep.mubr.msk.f32.mxu1 %vm178_vm0, %v11853_v56 }
 0x177   :  { %9302 = vmatprep.mubr.msk.f32.mxu0 %vm178_vm0, %v11445_v1 }
 0x179   :  { %8791 = vmatmul.mubr.msk.f32.gmra.mrb[42].mxu1 %vm178_vm0, %v11864_v43 }
 0x17a   :  { %9303 = vmatmul.mubr.msk.f32.gmra.mrb[10].mxu0 %vm178_vm0, %v11462_v27  ;;  %8793 = vmatprep.mubr.msk.f32.mxu1 %vm178_vm0, %v11871_v30 }
 0x17b   :  { %9305 = vmatprep.mubr.msk.f32.mxu0 %vm178_vm0, %v11469_v34 }
 0x17d   :  { %8794 = vmatmul.mubr.msk.f32.gmra.mrb[44].mxu1 %vm178_vm0, %v11882_v36 }
 0x17e   :  { %9306 = vmatmul.mubr.msk.f32.gmra.mrb[12].mxu0 %vm178_vm0, %v11480_v28  ;;  %8796 = vmatprep.mubr.msk.f32.mxu1 %vm178_vm0, %v11889_v4 }
 0x17f   :  { %9308 = vmatprep.mubr.msk.f32.mxu0 %vm178_vm0, %v11894_v47 }
 0x181   :  { %8797 = vmatmul.mubr.msk.f32.gmra.mrb[46].mxu1 %vm178_vm0, %v11905_v26 }
 0x182   :  { %9309 = vmatmul.mubr.msk.f32.gmra.mrb[14].mxu0 %vm178_vm0, %v11357_v63  ;;  %8799 = vmatprep.mubr.msk.f32.mxu1 %vm178_vm0, %v6932_v6  ;;  %v11938_v6 = vld [vmem:[%s13009_s0 + $0x298] sm:$0xff]  ;;  %v11945_v63 = vld [vmem:[%s13009_s0 + $0x2a0] sm:$0xff] }
 0x183   :  { %9311 = vmatprep.mubr.msk.f32.mxu0 %vm178_vm0, %v11507_v44  ;;  %13114 = vst [vmem:[#allocation21_spill] sm:$0xff] %v11945_v63 }
 0x185   :  { %8800 = vmatmul.mubr.msk.f32.gmra.mrb[48].mxu1 %vm178_vm0, %v11920_v3  ;;  %v11956_v3 = vld [vmem:[%s13009_s0 + $0x2a8] sm:$0xff] }
 0x186   :  { %9312 = vmatmul.mubr.msk.f32.gmra.mrb[16].mxu0 %vm178_vm0, %v11519_v12  ;;  %8802 = vmatprep.mubr.msk.f32.mxu1 %vm178_vm0, %v11927_v42 }
 0x187   :  { %9314 = vmatprep.mubr.msk.f32.mxu0 %vm178_vm0, %v11526_v45  ;;  %v11963_v45 = vld [vmem:[%s13009_s0 + $0x2b0] sm:$0xff] }
 0x189   :  { %8803 = vmatmul.mubr.msk.f32.gmra.mrb[50].mxu1 %vm178_vm0, %v11938_v6 }
 0x18a   :  { %9315 = vmatmul.mubr.msk.f32.gmra.mrb[18].mxu0 %vm178_vm0, %v11537_v49  ;;  %8805 = vmatprep.mubr.msk.f32.mxu1 %vm178_vm0, %v11945_v63  ;;  %v11968_v49 = vld [vmem:[%s13009_s0 + $0x130] sm:$0xff] }
 0x18b   :  { %9317 = vmatprep.mubr.msk.f32.mxu0 %vm178_vm0, %v11544_v52  ;;  %v11979_v52 = vld [vmem:[%s13009_s0 + $0x2b8] sm:$0xff]  ;;  %v6940_v63 = vld [vmem:[%s13009_s0 + $0x2d0] sm:$0xff] }
 0x18d   :  { %8806 = vmatmul.mubr.msk.f32.gmra.mrb[52].mxu1 %vm178_vm0, %v11956_v3 }
 0x18e   :  { %9318 = vmatmul.mubr.msk.f32.gmra.mrb[20].mxu0 %vm178_vm0, %v11555_v37  ;;  %8808 = vmatprep.mubr.msk.f32.mxu1 %vm178_vm0, %v11963_v45 }
 0x18f   :  { %9320 = vmatprep.mubr.msk.f32.mxu0 %vm178_vm0, %v11968_v49 }
 0x191   :  { %8809 = vmatmul.mubr.msk.f32.gmra.mrb[54].mxu1 %vm178_vm0, %v11979_v52 }
 0x192   :  { %9321 = vmatmul.mubr.msk.f32.gmra.mrb[22].mxu0 %vm178_vm0, %v11394_v5  ;;  %8811 = vmatprep.mubr.msk.f32.mxu1 %vm178_vm0, %v6940_v63  ;;  %v7025_v63 = vld [vmem:[%s13009_s0 + $0x30] sm:$0xff] }
 0x193   :  { %9323 = vmatprep.mubr.msk.f32.mxu0 %vm178_vm0, %v11582_v35 }
 0x195   :  { %8812 = vmatmul.mubr.msk.f32.gmra.mrb[56].mxu1 %vm178_vm0, %v11153_v18  ;;  %v12012_v18 = vld [vmem:[%s13009_s0 + $0x180] sm:$0xff] }
 0x196   :  { %9324 = vmatmul.mubr.msk.f32.gmra.mrb[24].mxu0 %vm178_vm0, %v11593_v50  ;;  %8814 = vmatprep.mubr.msk.f32.mxu1 %vm178_vm0, %v11165_v57  ;;  %v7020_v57 = vld [vmem:[%s13009_s0 + $0x8] sm:$0xff] }
 0x197   :  { %9326 = vmatprep.mubr.msk.f32.mxu0 %vm178_vm0, %v11600_v51 }
 0x199   :  { %8815 = vmatmul.mubr.msk.f32.gmra.mrb[58].mxu1 %vm178_vm0, %v11170_v59  ;;  %v7021_v59 = vld [vmem:[%s13009_s0 + $0x10] sm:$0xff] }
 0x19a   :  { %9327 = vmatmul.mubr.msk.f32.gmra.mrb[26].mxu0 %vm178_vm0, %v11611_v7  ;;  %8817 = vmatprep.mubr.msk.f32.mxu1 %vm178_vm0, %v11183_v8  ;;  %v7022_v8 = vld [vmem:[%s13009_s0 + $0x18] sm:$0xff] }
 0x19b   :  { %9329 = vmatprep.mubr.msk.f32.mxu0 %vm178_vm0, %v11618_v31 }
 0x19d   :  { %8818 = vmatmul.mubr.msk.f32.gmra.mrb[60].mxu1 %vm178_vm0, %v11188_v9  ;;  %v7023_v9 = vld [vmem:[%s13009_s0 + $0x20] sm:$0xff] }
 0x19e   :  { %9330 = vmatmul.mubr.msk.f32.gmra.mrb[28].mxu0 %vm178_vm0, %v11629_v39  ;;  %8820 = vmatprep.mubr.msk.f32.mxu1 %vm178_vm0, %v11201_v10  ;;  %v7024_v10 = vld [vmem:[%s13009_s0 + $0x28] sm:$0xff] }
 0x19f   :  { %9332 = vmatprep.mubr.msk.f32.mxu0 %vm178_vm0, %v12012_v18 }
 0x1a1   :  { %8821 = vmatmul.mubr.msk.f32.gmra.mrb[62].mxu1 %vm178_vm0, %v11206_v21  ;;  %v13115_v21 = vld [vmem:[#allocation6_spill] sm:$0xff] }
 0x1a2   :  { %9333 = vmatmul.mubr.msk.f32.gmra.mrb[30].mxu0 %vm178_vm0, %v11487_v22  ;;  %8839 = vmatprep.mubr.msk.f32.mxu1 %vm178_vm0, %v7020_v57  ;;  %v12068_v57 = vld [vmem:[%s13009_s0 + $0x1d0] sm:$0xff] }
 0x1a3   :  { %9335 = vmatprep.mubr.msk.f32.mxu0 %vm178_vm0, %v11656_v60 }
 0x1a5   :  { %8840 = vmatmul.mubr.msk.f32.vlgmr.msra.gmra.mrb[0].mxu1 %vm178_vm0, %v7021_v59  ;;  %v13116_v59 = vld [vmem:[#allocation7_spill] sm:$0xff] }
 0x1a6   :  { %9336 = vmatmul.mubr.msk.f32.gmra.mrb[32].mxu0 %vm178_vm0, %v11667_v62  ;;  %9643 = vmatpush3.bf16.msra.mxu1 %v13104_v0  ;;  %v7026_v0 = vld [vmem:[%s13009_s0 + $0x38] sm:$0xff] }
 0x1a7   :  { %8842 = vmatprep.mubr.msk.f32.mxu1 %vm178_vm0, %v7022_v8  ;;  %9338 = vmatprep.mubr.msk.f32.mxu0 %vm178_vm0, %v11674_v48  ;;  %v7028_v8 = vld [vmem:[%s13009_s0 + $0x58] sm:$0xff] }
 0x1a8   :  { %9640 = vmatprep.subr.bf16.mxu1 %v13115_v21 }
 0x1a9   :  { %8843 = vmatmul.mubr.msk.f32.gmra.mrb[2].mxu1 %vm178_vm0, %v7023_v9  ;;  %v13117_v9 = vld [vmem:[#allocation8_spill] sm:$0xff] }
 0x1aa   :  { %9339 = vmatmul.mubr.msk.f32.gmra.mrb[34].mxu0 %vm178_vm0, %v11685_v53  ;;  %8845 = vmatprep.mubr.msk.f32.mxu1 %vm178_vm0, %v7024_v10 }
 0x1ab   :  { %9341 = vmatprep.mubr.msk.f32.mxu0 %vm178_vm0, %v11692_v54  ;;  %9644 = vmatpush3.bf16.msra.mxu1 %v13115_v21 }
 0x1ac   :  { %9641 = vmatprep.subr.bf16.mxu1 %v13116_v59 }
 0x1ad   :  { %8846 = vmatmul.mubr.msk.f32.gmra.mrb[4].mxu1 %vm178_vm0, %v7025_v63 }
 0x1ae   :  { %9342 = vmatmul.mubr.msk.f32.gmra.mrb[36].mxu0 %vm178_vm0, %v11703_v55  ;;  %8848 = vmatprep.mubr.msk.f32.mxu1 %vm178_vm0, %v7026_v0 }
 0x1af   :  { %9344 = vmatprep.mubr.msk.f32.mxu0 %vm178_vm0, %v12068_v57  ;;  %9645 = vmatpush3.bf16.msra.mxu1 %v13116_v59 }
 0x1b0   :  { %9642 = vmatprep.subr.bf16.mxu1 %v13117_v9 }
 0x1b1   :  { %8849 = vmatmul.mubr.msk.f32.gmra.mrb[6].mxu1 %vm178_vm0, %v11264_v61  ;;  %v12109_v61 = vld [vmem:[%s13009_s0 + $0x220] sm:$0xff] }
 0x1b2   :  { %9345 = vmatmul.mubr.msk.f32.gmra.mrb[38].mxu0 %vm178_vm0, %v11562_v32  ;;  %8851 = vmatprep.mubr.msk.f32.mxu1 %vm178_vm0, %v7028_v8 }
 0x1b3   :  { %9347 = vmatprep.mubr.msk.f32.mxu0 %vm178_vm0, %v11746_v13  ;;  %9646 = vmatpush3.bf16.msra.mxu1 %v13117_v9 }
 0x1b5   :  { %8852 = vmatmul.mubr.msk.f32.gmra.mrb[8].mxu1 %vm178_vm0, %v11718_v2  ;;  %v13118_v2 = vld [vmem:[#allocation21_spill] sm:$0xff] }
 0x1b6   :  { %9348 = vmatmul.mubr.msk.f32.gmra.mrb[40].mxu0 %vm178_vm0, %v11768_v58  ;;  %8854 = vmatprep.mubr.msk.f32.mxu1 %vm178_vm0, %v11741_v11  ;;  %v13119_v11 = vld [vmem:[#allocation14_spill] sm:$0xff] }
 0x1b7   :  { %9350 = vmatprep.mubr.msk.f32.mxu0 %vm178_vm0, %v11781_v46 }
 0x1b9   :  { %8855 = vmatmul.mubr.msk.f32.gmra.mrb[10].mxu1 %vm178_vm0, %v11751_v16  ;;  %v12183_v16 = vld [vmem:[%s13009_s0 + $0x2c0] sm:$0xff] }
 0x1ba   :  { %9351 = vmatmul.mubr.msk.f32.gmra.mrb[42].mxu0 %vm178_vm0, %v11803_v38  ;;  %8857 = vmatprep.mubr.msk.f32.mxu1 %vm178_vm0, %v11776_v33  ;;  %v13121_v33 = vld [vmem:[#allocation16_spill] sm:$0xff] }
 0x1bb   :  { %9353 = vmatprep.mubr.msk.f32.mxu0 %vm178_vm0, %v11815_v19 }
 0x1bd   :  { %8858 = vmatmul.mubr.msk.f32.gmra.mrb[12].mxu1 %vm178_vm0, %v11786_v29  ;;  %v12196_v29 = vld [vmem:[%s13009_s0 + $0x2c8] sm:$0xff] }
 0x1be   :  { %9354 = vmatmul.mubr.msk.f32.gmra.mrb[44].mxu0 %vm178_vm0, %v11831_v20  ;;  %8860 = vmatprep.mubr.msk.f32.mxu1 %vm178_vm0, %v11810_v41  ;;  %v13122_v41 = vld [vmem:[#allocation17_spill] sm:$0xff] }
 0x1bf   :  { %9356 = vmatprep.mubr.msk.f32.mxu0 %vm178_vm0, %v12109_v61 }
 0x1c1   :  { %8861 = vmatmul.mubr.msk.f32.gmra.mrb[14].mxu1 %vm178_vm0, %v11820_v17 }
 0x1c2   :  { %9357 = vmatmul.mubr.msk.f32.gmra.mrb[46].mxu0 %vm178_vm0, %v11636_v40  ;;  %8863 = vmatprep.mubr.msk.f32.mxu1 %vm178_vm0, %v11413_v14  ;;  %v12146_v14 = vld [vmem:[%s13009_s0 + $0x270] sm:$0xff] }
 0x1c3   :  { %9359 = vmatprep.mubr.msk.f32.mxu0 %vm178_vm0, %v11853_v56 }
 0x1c5   :  { %8864 = vmatmul.mubr.msk.f32.gmra.mrb[16].mxu1 %vm178_vm0, %v11420_v15 }
 0x1c6   :  { %9360 = vmatmul.mubr.msk.f32.gmra.mrb[48].mxu0 %vm178_vm0, %v11864_v43  ;;  %8866 = vmatprep.mubr.msk.f32.mxu1 %vm178_vm0, %v11436_v24 }
 0x1c7   :  { %9362 = vmatprep.mubr.msk.f32.mxu0 %vm178_vm0, %v11871_v30 }
 0x1c9   :  { %8867 = vmatmul.mubr.msk.f32.gmra.mrb[18].mxu1 %vm178_vm0, %v11445_v1 }
 0x1ca   :  { %9363 = vmatmul.mubr.msk.f32.gmra.mrb[50].mxu0 %vm178_vm0, %v11882_v36  ;;  %8869 = vmatprep.mubr.msk.f32.mxu1 %vm178_vm0, %v11462_v27 }
 0x1cb   :  { %9365 = vmatprep.mubr.msk.f32.mxu0 %vm178_vm0, %v11889_v4 }
 0x1cd   :  { %8870 = vmatmul.mubr.msk.f32.gmra.mrb[20].mxu1 %vm178_vm0, %v11469_v34 }
 0x1ce   :  { %9366 = vmatmul.mubr.msk.f32.gmra.mrb[52].mxu0 %vm178_vm0, %v11905_v26  ;;  %8872 = vmatprep.mubr.msk.f32.mxu1 %vm178_vm0, %v11480_v28 }
 0x1cf   :  { %9368 = vmatprep.mubr.msk.f32.mxu0 %vm178_vm0, %v12146_v14 }
 0x1d1   :  { %8873 = vmatmul.mubr.msk.f32.gmra.mrb[22].mxu1 %vm178_vm0, %v11894_v47 }
 0x1d2   :  { %9369 = vmatmul.mubr.msk.f32.gmra.mrb[54].mxu0 %vm178_vm0, %v11710_v25  ;;  %8875 = vmatprep.mubr.msk.f32.mxu1 %vm178_vm0, %v11500_v23  ;;  %v13120_v23 = vld [vmem:[#allocation15_spill] sm:$0xff] }
 0x1d3   :  { %9371 = vmatprep.mubr.msk.f32.mxu0 %vm178_vm0, %v11927_v42 }
 0x1d5   :  { %8876 = vmatmul.mubr.msk.f32.gmra.mrb[24].mxu1 %vm178_vm0, %v11507_v44 }
 0x1d6   :  { %9372 = vmatmul.mubr.msk.f32.gmra.mrb[56].mxu0 %vm178_vm0, %v11938_v6  ;;  %8878 = vmatprep.mubr.msk.f32.mxu1 %vm178_vm0, %v11519_v12 }
 0x1d7   :  { %9374 = vmatprep.mubr.msk.f32.mxu0 %vm178_vm0, %v13118_v2 }
 0x1d9   :  { %8879 = vmatmul.mubr.msk.f32.gmra.mrb[26].mxu1 %vm178_vm0, %v13119_v11 }
 0x1da   :  { %9375 = vmatmul.mubr.msk.f32.gmra.mrb[58].mxu0 %vm178_vm0, %v11956_v3  ;;  %8881 = vmatprep.mubr.msk.f32.mxu1 %vm178_vm0, %v13120_v23 }
 0x1db   :  { %9377 = vmatprep.mubr.msk.f32.mxu0 %vm178_vm0, %v11963_v45 }
 0x1dd   :  { %8882 = vmatmul.mubr.msk.f32.gmra.mrb[28].mxu1 %vm178_vm0, %v13121_v33 }
 0x1de   :  { %9378 = vmatmul.mubr.msk.f32.gmra.mrb[60].mxu0 %vm178_vm0, %v11979_v52  ;;  %8884 = vmatprep.mubr.msk.f32.mxu1 %vm178_vm0, %v11555_v37 }
 0x1df   :  { %9380 = vmatprep.mubr.msk.f32.mxu0 %vm178_vm0, %v12183_v16 }
 0x1e1   :  { %8885 = vmatmul.mubr.msk.f32.gmra.mrb[30].mxu1 %vm178_vm0, %v11968_v49 }
 0x1e2   :  { %9381 = vmatmul.mubr.msk.f32.gmra.mrb[62].mxu0 %vm178_vm0, %v12196_v29  ;;  %8887 = vmatprep.mubr.msk.f32.mxu1 %vm178_vm0, %v13122_v41 }
 0x1e3   :  { %9399 = vmatprep.mubr.msk.f32.mxu0 %vm178_vm0, %v11420_v15  ;;  %v13123_v15 = vld [vmem:[#allocation13_spill] sm:$0xff] }
 0x1e5   :  { %8888 = vmatmul.mubr.msk.f32.gmra.mrb[32].mxu1 %vm178_vm0, %v11582_v35 }
 0x1e6   :  { %9400 = vmatmul.mubr.msk.f32.vlgmr.msra.gmra.mrb[0].mxu0 %vm178_vm0, %v11436_v24  ;;  %8890 = vmatprep.mubr.msk.f32.mxu1 %vm178_vm0, %v11593_v50  ;;  %v13124_v24 = vld [vmem:[#allocation9_spill] sm:$0xff] }
 0x1e7   :  { %9402 = vmatprep.mubr.msk.f32.mxu0 %vm178_vm0, %v11445_v1  ;;  %v13125_v1 = vld [vmem:[#allocation18_spill] sm:$0xff] }
 0x1e9   :  { %8891 = vmatmul.mubr.msk.f32.gmra.mrb[34].mxu1 %vm178_vm0, %v11600_v51 }
 0x1ea   :  { %9403 = vmatmul.mubr.msk.f32.gmra.mrb[2].mxu0 %vm178_vm0, %v11462_v27  ;;  %8893 = vmatprep.mubr.msk.f32.mxu1 %vm178_vm0, %v11611_v7  ;;  %v7756_v27 = vld [vmem:[%s13009_s0 + $0x2e0] sm:$0xff] }
 0x1eb   :  { %9405 = vmatprep.mubr.msk.f32.mxu0 %vm178_vm0, %v11469_v34  ;;  %v13127_v34 = vld [vmem:[#allocation20_spill] sm:$0xff] }
 0x1ed   :  { %8894 = vmatmul.mubr.msk.f32.gmra.mrb[36].mxu1 %vm178_vm0, %v11618_v31 }
 0x1ee   :  { %9406 = vmatmul.mubr.msk.f32.gmra.mrb[4].mxu0 %vm178_vm0, %v11480_v28  ;;  %8896 = vmatprep.mubr.msk.f32.mxu1 %vm178_vm0, %v11629_v39  ;;  %v7757_v28 = vld [vmem:[%s13009_s0 + $0x2e8] sm:$0xff] }
 0x1ef   :  { %9408 = vmatprep.mubr.msk.f32.mxu0 %vm178_vm0, %v11894_v47 }
 0x1f1   :  { %8897 = vmatmul.mubr.msk.f32.gmra.mrb[38].mxu1 %vm178_vm0, %v12012_v18 }
 0x1f2   :  { %9409 = vmatmul.mubr.msk.f32.gmra.mrb[6].mxu0 %vm178_vm0, %v13123_v15  ;;  %8899 = vmatprep.mubr.msk.f32.mxu1 %vm178_vm0, %v13124_v24 }
 0x1f3   :  { %9411 = vmatprep.mubr.msk.f32.mxu0 %vm178_vm0, %v11507_v44  ;;  %v7759_v44 = vld [vmem:[%s13009_s0 + $0x2f8] sm:$0xff] }
 0x1f5   :  { %8900 = vmatmul.mubr.msk.f32.gmra.mrb[40].mxu1 %vm178_vm0, %v11656_v60 }
 0x1f6   :  { %9412 = vmatmul.mubr.msk.f32.gmra.mrb[8].mxu0 %vm178_vm0, %v11519_v12  ;;  %8902 = vmatprep.mubr.msk.f32.mxu1 %vm178_vm0, %v11667_v62  ;;  %v7760_v12 = vld [vmem:[%s13009_s0 + $0x300] sm:$0xff] }
 0x1f7   :  { %9414 = vmatprep.mubr.msk.f32.mxu0 %vm178_vm0, %v13119_v11 }
 0x1f9   :  { %8903 = vmatmul.mubr.msk.f32.gmra.mrb[42].mxu1 %vm178_vm0, %v11674_v48 }
 0x1fa   :  { %9415 = vmatmul.mubr.msk.f32.gmra.mrb[10].mxu0 %vm178_vm0, %v13120_v23  ;;  %8905 = vmatprep.mubr.msk.f32.mxu1 %vm178_vm0, %v11685_v53 }
 0x1fb   :  { %9417 = vmatprep.mubr.msk.f32.mxu0 %vm178_vm0, %v13121_v33 }
 0x1fd   :  { %8906 = vmatmul.mubr.msk.f32.gmra.mrb[44].mxu1 %vm178_vm0, %v11692_v54 }
 0x1fe   :  { %9418 = vmatmul.mubr.msk.f32.gmra.mrb[12].mxu0 %vm178_vm0, %v11555_v37  ;;  %8908 = vmatprep.mubr.msk.f32.mxu1 %vm178_vm0, %v11703_v55  ;;  %v7762_v37 = vld [vmem:[%s13009_s0 + $0x310] sm:$0xff] }
 0x1ff   :  { %9420 = vmatprep.mubr.msk.f32.mxu0 %vm178_vm0, %v11968_v49  ;;  %v7761_v49 = vld [vmem:[%s13009_s0 + $0x308] sm:$0xff] }
 0x201   :  { %8909 = vmatmul.mubr.msk.f32.gmra.mrb[46].mxu1 %vm178_vm0, %v12068_v57 }
 0x202   :  { %9421 = vmatmul.mubr.msk.f32.gmra.mrb[14].mxu0 %vm178_vm0, %v11394_v5  ;;  %8911 = vmatprep.mubr.msk.f32.mxu1 %vm178_vm0, %v13125_v1  ;;  %v13126_v5 = vld [vmem:[#allocation19_spill] sm:$0xff] }
 0x203   :  { %9423 = vmatprep.mubr.msk.f32.mxu0 %vm178_vm0, %v11582_v35 }
 0x205   :  { %8912 = vmatmul.mubr.msk.f32.gmra.mrb[48].mxu1 %vm178_vm0, %v11746_v13 }
 0x206   :  { %9424 = vmatmul.mubr.msk.f32.gmra.mrb[16].mxu0 %vm178_vm0, %v11593_v50  ;;  %8914 = vmatprep.mubr.msk.f32.mxu1 %vm178_vm0, %v11768_v58 }
 0x207   :  { %9426 = vmatprep.mubr.msk.f32.mxu0 %vm178_vm0, %v11600_v51 }
 0x209   :  { %8915 = vmatmul.mubr.msk.f32.gmra.mrb[50].mxu1 %vm178_vm0, %v11781_v46 }
 0x20a   :  { %9427 = vmatmul.mubr.msk.f32.gmra.mrb[18].mxu0 %vm178_vm0, %v11611_v7  ;;  %8917 = vmatprep.mubr.msk.f32.mxu1 %vm178_vm0, %v11803_v38 }
 0x20b   :  { %9429 = vmatprep.mubr.msk.f32.mxu0 %vm178_vm0, %v11618_v31 }
 0x20d   :  { %8918 = vmatmul.mubr.msk.f32.gmra.mrb[52].mxu1 %vm178_vm0, %v11815_v19 }
 0x20e   :  { %9430 = vmatmul.mubr.msk.f32.gmra.mrb[20].mxu0 %vm178_vm0, %v11629_v39  ;;  %8920 = vmatprep.mubr.msk.f32.mxu1 %vm178_vm0, %v11831_v20 }
 0x20f   :  { %9432 = vmatprep.mubr.msk.f32.mxu0 %vm178_vm0, %v12012_v18  ;;  %v12524_v18 = vld [vmem:[#allocation2] ss:$0 sm:$0xff] }
 0x211   :  { %8921 = vmatmul.mubr.msk.f32.gmra.mrb[54].mxu1 %vm178_vm0, %v12109_v61 }
 0x212   :  { %9433 = vmatmul.mubr.msk.f32.gmra.mrb[22].mxu0 %vm178_vm0, %v11487_v22  ;;  %8923 = vmatprep.mubr.msk.f32.mxu1 %vm178_vm0, %v13126_v5  ;;  %v7758_v22 = vld [vmem:[%s13009_s0 + $0x2f0] sm:$0xff] }
 0x213   :  { %9435 = vmatprep.mubr.msk.f32.mxu0 %vm178_vm0, %v11656_v60 }
 0x215   :  { %8924 = vmatmul.mubr.msk.f32.gmra.mrb[56].mxu1 %vm178_vm0, %v11853_v56 }
 0x216   :  { %9436 = vmatmul.mubr.msk.f32.gmra.mrb[24].mxu0 %vm178_vm0, %v11667_v62  ;;  %8926 = vmatprep.mubr.msk.f32.mxu1 %vm178_vm0, %v11864_v43 }
 0x217   :  { %9438 = vmatprep.mubr.msk.f32.mxu0 %vm178_vm0, %v11674_v48 }
 0x219   :  { %8927 = vmatmul.mubr.msk.f32.gmra.mrb[58].mxu1 %vm178_vm0, %v11871_v30 }
 0x21a   :  { %9439 = vmatmul.mubr.msk.f32.gmra.mrb[26].mxu0 %vm178_vm0, %v11685_v53  ;;  %8929 = vmatprep.mubr.msk.f32.mxu1 %vm178_vm0, %v11882_v36 }
 0x21b   :  { %9441 = vmatprep.mubr.msk.f32.mxu0 %vm178_vm0, %v11692_v54 }
 0x21d   :  { %8930 = vmatmul.mubr.msk.f32.gmra.mrb[60].mxu1 %vm178_vm0, %v11889_v4 }
 0x21e   :  { %9442 = vmatmul.mubr.msk.f32.gmra.mrb[28].mxu0 %vm178_vm0, %v11703_v55  ;;  %8932 = vmatprep.mubr.msk.f32.mxu1 %vm178_vm0, %v11905_v26 }
 0x21f   :  { %9444 = vmatprep.mubr.msk.f32.mxu0 %vm178_vm0, %v12068_v57 }
 0x221   :  { %8933 = vmatmul.mubr.msk.f32.gmra.mrb[62].mxu1 %vm178_vm0, %v12146_v14 }
 0x222   :  { %9445 = vmatmul.mubr.msk.f32.gmra.mrb[30].mxu0 %vm178_vm0, %v11562_v32  ;;  %8999 = vmatprep.mubr.msk.f32.mxu1 %vm178_vm0, %v13124_v24  ;;  %v7763_v32 = vld [vmem:[%s13009_s0 + $0x318] sm:$0xff] }
 0x223   :  { %9447 = vmatprep.mubr.msk.f32.mxu0 %vm178_vm0, %v11746_v13 }
 0x225   :  { %9000 = vmatmul.mubr.msk.f32.vlgmr.msra.gmra.mrb[32].mxu1 %vm178_vm0, %v11656_v60 }
 0x226   :  { %9448 = vmatmul.mubr.msk.f32.gmra.mrb[32].mxu0 %vm178_vm0, %v11768_v58  ;;  %9002 = vmatprep.mubr.msk.f32.mxu1 %vm178_vm0, %v11667_v62 }
 0x227   :  { %9450 = vmatprep.mubr.msk.f32.mxu0 %vm178_vm0, %v11781_v46 }
 0x229   :  { %9003 = vmatmul.mubr.msk.f32.gmra.mrb[34].mxu1 %vm178_vm0, %v11674_v48 }
 0x22a   :  { %9451 = vmatmul.mubr.msk.f32.gmra.mrb[34].mxu0 %vm178_vm0, %v11803_v38  ;;  %9005 = vmatprep.mubr.msk.f32.mxu1 %vm178_vm0, %v11685_v53 }
 0x22b   :  { %9453 = vmatprep.mubr.msk.f32.mxu0 %vm178_vm0, %v11815_v19 }
 0x22d   :  { %9006 = vmatmul.mubr.msk.f32.gmra.mrb[36].mxu1 %vm178_vm0, %v11692_v54 }
 0x22e   :  { %9454 = vmatmul.mubr.msk.f32.gmra.mrb[36].mxu0 %vm178_vm0, %v11831_v20  ;;  %9008 = vmatprep.mubr.msk.f32.mxu1 %vm178_vm0, %v11703_v55 }
 0x22f   :  { %9456 = vmatprep.mubr.msk.f32.mxu0 %vm178_vm0, %v12109_v61 }
 0x231   :  { %9009 = vmatmul.mubr.msk.f32.gmra.mrb[38].mxu1 %vm178_vm0, %v12068_v57  ;;  %v12530_v57 = vld [vmem:[%s13012_s3] ss:$0 sm:$0xff] }
 0x232   :  { %9457 = vmatmul.mubr.msk.f32.gmra.mrb[38].mxu0 %vm178_vm0, %v11636_v40  ;;  %9011 = vmatprep.mubr.msk.f32.mxu1 %vm178_vm0, %v13125_v1 }
 0x233   :  { %9459 = vmatprep.mubr.msk.f32.mxu0 %vm178_vm0, %v11853_v56 }
 0x235   :  { %9012 = vmatmul.mubr.msk.f32.gmra.mrb[40].mxu1 %vm178_vm0, %v11746_v13 }
 0x236   :  { %9460 = vmatmul.mubr.msk.f32.gmra.mrb[40].mxu0 %vm178_vm0, %v11864_v43  ;;  %9014 = vmatprep.mubr.msk.f32.mxu1 %vm178_vm0, %v11768_v58 }
 0x237   :  { %9462 = vmatprep.mubr.msk.f32.mxu0 %vm178_vm0, %v11871_v30 }
 0x239   :  { %9015 = vmatmul.mubr.msk.f32.gmra.mrb[42].mxu1 %vm178_vm0, %v11781_v46 }
 0x23a   :  { %9463 = vmatmul.mubr.msk.f32.gmra.mrb[42].mxu0 %vm178_vm0, %v11882_v36  ;;  %9017 = vmatprep.mubr.msk.f32.mxu1 %vm178_vm0, %v11803_v38 }
 0x23b   :  { %9465 = vmatprep.mubr.msk.f32.mxu0 %vm178_vm0, %v11889_v4 }
 0x23d   :  { %9018 = vmatmul.mubr.msk.f32.gmra.mrb[44].mxu1 %vm178_vm0, %v11815_v19 }
 0x23e   :  { %9466 = vmatmul.mubr.msk.f32.gmra.mrb[44].mxu0 %vm178_vm0, %v11905_v26  ;;  %9020 = vmatprep.mubr.msk.f32.mxu1 %vm178_vm0, %v11831_v20 }
 0x23f   :  { %9468 = vmatprep.mubr.msk.f32.mxu0 %vm178_vm0, %v12146_v14 }
 0x241   :  { %9021 = vmatmul.mubr.msk.f32.gmra.mrb[46].mxu1 %vm178_vm0, %v12109_v61 }
 0x242   :  { %9469 = vmatmul.mubr.msk.f32.gmra.mrb[46].mxu0 %vm178_vm0, %v11710_v25  ;;  %9023 = vmatprep.mubr.msk.f32.mxu1 %vm178_vm0, %v13126_v5 }
 0x243   :  { %9471 = vmatprep.mubr.msk.f32.mxu0 %vm178_vm0, %v11927_v42 }
 0x245   :  { %9024 = vmatmul.mubr.msk.f32.gmra.mrb[48].mxu1 %vm178_vm0, %v11853_v56 }
 0x246   :  { %9472 = vmatmul.mubr.msk.f32.gmra.mrb[48].mxu0 %vm178_vm0, %v11938_v6  ;;  %9026 = vmatprep.mubr.msk.f32.mxu1 %vm178_vm0, %v11864_v43 }
 0x247   :  { %9474 = vmatprep.mubr.msk.f32.mxu0 %vm178_vm0, %v13118_v2 }
 0x249   :  { %9027 = vmatmul.mubr.msk.f32.gmra.mrb[50].mxu1 %vm178_vm0, %v11871_v30 }
 0x24a   :  { %9475 = vmatmul.mubr.msk.f32.gmra.mrb[50].mxu0 %vm178_vm0, %v11956_v3  ;;  %9029 = vmatprep.mubr.msk.f32.mxu1 %vm178_vm0, %v11882_v36 }
 0x24b   :  { %9477 = vmatprep.mubr.msk.f32.mxu0 %vm178_vm0, %v11963_v45 }
 0x24d   :  { %9030 = vmatmul.mubr.msk.f32.gmra.mrb[52].mxu1 %vm178_vm0, %v11889_v4 }
 0x24e   :  { %9478 = vmatmul.mubr.msk.f32.gmra.mrb[52].mxu0 %vm178_vm0, %v11979_v52  ;;  %9032 = vmatprep.mubr.msk.f32.mxu1 %vm178_vm0, %v11905_v26 }
 0x24f   :  { %9480 = vmatprep.mubr.msk.f32.mxu0 %vm178_vm0, %v12183_v16 }
 0x251   :  { %9033 = vmatmul.mubr.msk.f32.gmra.mrb[54].mxu1 %vm178_vm0, %v12146_v14 }
 0x252   :  { %9481 = vmatmul.mubr.msk.f32.gmra.mrb[54].mxu0 %vm178_vm0, %v12196_v29  ;;  %9035 = vmatprep.mubr.msk.f32.mxu1 %vm178_vm0, %v13127_v34 }
 0x253   :  { %9483 = vmatprep.mubr.msk.f32.mxu0 %vm178_vm0, %v7756_v27 }
 0x255   :  { %9036 = vmatmul.mubr.msk.f32.gmra.mrb[56].mxu1 %vm178_vm0, %v11927_v42 }
 0x256   :  { %9484 = vmatmul.mubr.msk.f32.gmra.mrb[56].mxu0 %vm178_vm0, %v7757_v28  ;;  %9038 = vmatprep.mubr.msk.f32.mxu1 %vm178_vm0, %v11938_v6 }
 0x257   :  { %9486 = vmatprep.mubr.msk.f32.mxu0 %vm178_vm0, %v7758_v22 }
 0x259   :  { %9039 = vmatmul.mubr.msk.f32.gmra.mrb[58].mxu1 %vm178_vm0, %v13118_v2  ;;  %v12536_v2 = vld [vmem:[%s13013_s4] ss:$0 sm:$0xff] }
 0x25a   :  { %9487 = vmatmul.mubr.msk.f32.gmra.mrb[58].mxu0 %vm178_vm0, %v7759_v44  ;;  %9041 = vmatprep.mubr.msk.f32.mxu1 %vm178_vm0, %v11956_v3 }
 0x25b   :  { %9489 = vmatprep.mubr.msk.f32.mxu0 %vm178_vm0, %v7760_v12 }
 0x25d   :  { %9042 = vmatmul.mubr.msk.f32.gmra.mrb[60].mxu1 %vm178_vm0, %v11963_v45 }
 0x25e   :  { %9490 = vmatmul.mubr.msk.f32.gmra.mrb[60].mxu0 %vm178_vm0, %v7761_v49  ;;  %9044 = vmatprep.mubr.msk.f32.mxu1 %vm178_vm0, %v11979_v52 }
 0x25f   :  { %9492 = vmatprep.mubr.msk.f32.mxu0 %vm178_vm0, %v7762_v37 }
 0x261   :  { %9045 = vmatmul.mubr.msk.f32.gmra.mrb[62].mxu1 %vm178_vm0, %v12183_v16 }
 0x262   :  { %9493 = vmatmul.mubr.msk.f32.gmra.mrb[62].mxu0 %vm178_vm0, %v7763_v32 }
 0x278   :  { %v8841_v42 = vpop.f32.mrb[0].mxu1 }
 0x279   :  { %v2380_v35 = vpop.f32.mrb[1].mxu1 }
 0x27c   :  { %v8844_v50 = vpop.f32.mrb[2].mxu1 }
 0x27d   :  { %v2390_v45 = vpop.f32.mrb[3].mxu1 }
 0x280   :  { %v8847_v51 = vpop.f32.mrb[4].mxu1 }
 0x281   :  { %v2400_v7 = vpop.f32.mrb[5].mxu1 }
 0x284   :  { %v8850_v31 = vpop.f32.mrb[6].mxu1 }
 0x285   :  { %v12474_v39 = vpop.f32.mrb[7].mxu1 }
 0x288   :  { %v12476_v52 = vpop.f32.mrb[8].mxu1 }
 0x289   :  { %v12478_v40 = vpop.f32.mrb[9].mxu1 }
 0x28c   :  { %v12480_v3 = vpop.f32.mrb[10].mxu1 }
 0x28d   :  { %v12482_v60 = vpop.f32.mrb[11].mxu1 }
 0x290   :  { %v12484_v62 = vpop.f32.mrb[12].mxu1 }
 0x291   :  { %v12486_v48 = vpop.f32.mrb[13].mxu1 }
 0x294   :  { %v12488_v53 = vpop.f32.mrb[14].mxu1 }
 0x295   :  { %v12490_v54 = vpop.f32.mrb[15].mxu1 }
 0x298   :  { %v12492_v55 = vpop.f32.mrb[16].mxu1 }
 0x299   :  { %v12494_v25 = vpop.f32.mrb[17].mxu1 }
 0x29c   :  { %v12496_v13 = vpop.f32.mrb[18].mxu1 }
 0x29d   :  { %v12498_v58 = vpop.f32.mrb[19].mxu1 }
 0x2a0   :  { %v12500_v46 = vpop.f32.mrb[20].mxu1 }
 0x2a1   :  { %v12502_v38 = vpop.f32.mrb[21].mxu1 }
 0x2a4   :  { %v12504_v19 = vpop.f32.mrb[22].mxu1 }
 0x2a5   :  { %v12506_v17 = vpop.f32.mrb[23].mxu1 }
 0x2a8   :  { %v12508_v20 = vpop.f32.mrb[24].mxu1 }
 0x2a9   :  { %v12510_v26 = vpop.f32.mrb[25].mxu1 }
 0x2ac   :  { %v12512_v56 = vpop.f32.mrb[26].mxu1 }
 0x2ad   :  { %v12514_v43 = vpop.f32.mrb[27].mxu1 }
 0x2b0   :  { %v12516_v30 = vpop.f32.mrb[28].mxu1 }
 0x2b1   :  { %v12518_v36 = vpop.f32.mrb[29].mxu1 }
 0x2b4   :  { %v12520_v4 = vpop.f32.mrb[30].mxu1 }
 0x2b5   :  { %v12522_v47 = vpop.f32.mrb[31].mxu1 }
 0x2b9   :  { %v9401_v6 = vpop.f32.mrb[0].mxu0 }
 0x2ba   :  { %v9647_v10 = vadd.f32 %v9401_v6, %v8841_v42  ;;  %v5955_v21 = vpop.f32.mrb[1].mxu0 }
 0x2bb   :  { %v9648_v63 = vadd.f32 %v5955_v21, %v2380_v35 }
 0x2bc   :  { %v6346_v0 = vadd.f32 %v9647_v10, %v12524_v18 }
 0x2bd   :  { %v6345_v59 = vadd.f32 %v9648_v63, %v12524_v18  ;;  %v9404_v8 = vpop.f32.mrb[2].mxu0 }
 0x2be   :  { %v6410_v9 = vmax.f32 %v6346_v0, 0.0  ;;  %v9649_v61 = vadd.f32 %v9404_v8, %v8844_v50  ;;  %v5965_v14 = vpop.f32.mrb[3].mxu0 }
 0x2bf   :  { %v6409_v11 = vmax.f32 %v6345_v59, 0.0  ;;  %v9650_v23 = vadd.f32 %v5965_v14, %v2390_v45 }
 0x2c0   :  { %v6481_v16 = vmul.f32 %v12530_v57, %v6410_v9  ;;  %v6348_v33 = vadd.f32 %v9649_v61, %v12524_v18 }
 0x2c1   :  { %v6480_v29 = vmul.f32 %v12530_v57, %v6409_v11  ;;  %v6347_v41 = vadd.f32 %v9650_v23, %v12524_v18  ;;  %v9407_v15 = vpop.f32.mrb[4].mxu0 }
 0x2c2   :  { %v6552_v24 = vadd.f32 %v12536_v2, %v6481_v16  ;;  %v6412_v1 = vmax.f32 %v6348_v33, 0.0  ;;  %v9651_v5 = vadd.f32 %v9407_v15, %v8847_v51  ;;  %v5975_v27 = vpop.f32.mrb[5].mxu0 }
 0x2c3   :  { %v6551_v34 = vadd.f32 %v12536_v2, %v6480_v29  ;;  %v6411_v28 = vmax.f32 %v6347_v41, 0.0  ;;  %v9652_v22 = vadd.f32 %v5975_v27, %v2400_v7 }
 0x2c4   :  { %6616 = vst.msk [vmem:[%s13014_s5 + $0x8] sm:$0xff] %vm178_vm0, %v6552_v24  ;;  %v6483_v44 = vmul.f32 %v12530_v57, %v6412_v1  ;;  %v6350_v12 = vadd.f32 %v9651_v5, %v12524_v18 }
 0x2c5   :  { %6615 = vst.msk [vmem:[%s13014_s5] sm:$0xff] %vm178_vm0, %v6551_v34  ;;  %v6482_v49 = vmul.f32 %v12530_v57, %v6411_v28  ;;  %v6349_v37 = vadd.f32 %v9652_v22, %v12524_v18  ;;  %v9410_v32 = vpop.f32.mrb[6].mxu0 }
 0x2c6   :  { %v6554_v42 = vadd.f32 %v12536_v2, %v6483_v44  ;;  %v6414_v35 = vmax.f32 %v6350_v12, 0.0  ;;  %v9653_v50 = vadd.f32 %v9410_v32, %v8850_v31  ;;  %v5985_v45 = vpop.f32.mrb[7].mxu0 }
 0x2c7   :  { %v6553_v51 = vadd.f32 %v12536_v2, %v6482_v49  ;;  %v6413_v7 = vmax.f32 %v6349_v37, 0.0  ;;  %v9654_v6 = vadd.f32 %v5985_v45, %v12474_v39 }
 0x2c8   :  { %6618 = vst.msk [vmem:[%s13014_s5 + $0x18] sm:$0xff] %vm178_vm0, %v6554_v42  ;;  %v6485_v10 = vmul.f32 %v12530_v57, %v6414_v35  ;;  %v6352_v21 = vadd.f32 %v9653_v50, %v12524_v18 }
 0x2c9   :  { %6617 = vst.msk [vmem:[%s13014_s5 + $0x10] sm:$0xff] %vm178_vm0, %v6553_v51  ;;  %v6484_v31 = vmul.f32 %v12530_v57, %v6413_v7  ;;  %v6351_v63 = vadd.f32 %v9654_v6, %v12524_v18  ;;  %v9413_v0 = vpop.f32.mrb[8].mxu0 }
 0x2ca   :  { %v6556_v39 = vadd.f32 %v12536_v2, %v6485_v10  ;;  %v6416_v59 = vmax.f32 %v6352_v21, 0.0  ;;  %v9655_v8 = vadd.f32 %v9413_v0, %v12476_v52  ;;  %v5995_v9 = vpop.f32.mrb[9].mxu0 }
 0x2cb   :  { %v6555_v61 = vadd.f32 %v12536_v2, %v6484_v31  ;;  %v6415_v14 = vmax.f32 %v6351_v63, 0.0  ;;  %v9656_v11 = vadd.f32 %v5995_v9, %v12478_v40 }
 0x2cc   :  { %6620 = vst.msk [vmem:[%s13014_s5 + $0x28] sm:$0xff] %vm178_vm0, %v6556_v39  ;;  %v6487_v23 = vmul.f32 %v12530_v57, %v6416_v59  ;;  %v6354_v16 = vadd.f32 %v9655_v8, %v12524_v18 }
 0x2cd   :  { %6619 = vst.msk [vmem:[%s13014_s5 + $0x20] sm:$0xff] %vm178_vm0, %v6555_v61  ;;  %v6486_v52 = vmul.f32 %v12530_v57, %v6415_v14  ;;  %v6353_v33 = vadd.f32 %v9656_v11, %v12524_v18  ;;  %v9416_v29 = vpop.f32.mrb[10].mxu0 }
 0x2ce   :  { %v6558_v40 = vadd.f32 %v12536_v2, %v6487_v23  ;;  %v6418_v41 = vmax.f32 %v6354_v16, 0.0  ;;  %v9657_v15 = vadd.f32 %v9416_v29, %v12480_v3  ;;  %v6005_v24 = vpop.f32.mrb[11].mxu0 }
 0x2cf   :  { %v6557_v1 = vadd.f32 %v12536_v2, %v6486_v52  ;;  %v6417_v5 = vmax.f32 %v6353_v33, 0.0  ;;  %v9658_v27 = vadd.f32 %v6005_v24, %v12482_v60 }
 0x2d0   :  { %6622 = vst.msk [vmem:[%s13014_s5 + $0x38] sm:$0xff] %vm178_vm0, %v6558_v40  ;;  %v6489_v34 = vmul.f32 %v12530_v57, %v6418_v41  ;;  %v6356_v28 = vadd.f32 %v9657_v15, %v12524_v18 }
 0x2d1   :  { %6621 = vst.msk [vmem:[%s13014_s5 + $0x30] sm:$0xff] %vm178_vm0, %v6557_v1  ;;  %v6488_v3 = vmul.f32 %v12530_v57, %v6417_v5  ;;  %v6355_v22 = vadd.f32 %v9658_v27, %v12524_v18  ;;  %v9419_v44 = vpop.f32.mrb[12].mxu0 }
 0x2d2   :  { %v6560_v60 = vadd.f32 %v12536_v2, %v6489_v34  ;;  %v6420_v12 = vmax.f32 %v6356_v28, 0.0  ;;  %v9659_v49 = vadd.f32 %v9419_v44, %v12484_v62  ;;  %v6015_v37 = vpop.f32.mrb[13].mxu0 }
 0x2d3   :  { %v6559_v32 = vadd.f32 %v12536_v2, %v6488_v3  ;;  %v6419_v42 = vmax.f32 %v6355_v22, 0.0  ;;  %v9660_v35 = vadd.f32 %v6015_v37, %v12486_v48 }
 0x2d4   :  { %6624 = vst.msk [vmem:[%s13014_s5 + $0x48] sm:$0xff] %vm178_vm0, %v6560_v60  ;;  %v6491_v50 = vmul.f32 %v12530_v57, %v6420_v12  ;;  %v6358_v45 = vadd.f32 %v9659_v49, %v12524_v18 }
 0x2d5   :  { %6623 = vst.msk [vmem:[%s13014_s5 + $0x40] sm:$0xff] %vm178_vm0, %v6559_v32  ;;  %v6490_v62 = vmul.f32 %v12530_v57, %v6419_v42  ;;  %v6357_v51 = vadd.f32 %v9660_v35, %v12524_v18  ;;  %v9422_v7 = vpop.f32.mrb[14].mxu0 }
 0x2d6   :  { %v6562_v48 = vadd.f32 %v12536_v2, %v6491_v50  ;;  %v6422_v6 = vmax.f32 %v6358_v45, 0.0  ;;  %v9661_v10 = vadd.f32 %v9422_v7, %v12488_v53  ;;  %v6025_v21 = vpop.f32.mrb[15].mxu0 }
 0x2d7   :  { %v6561_v31 = vadd.f32 %v12536_v2, %v6490_v62  ;;  %v6421_v63 = vmax.f32 %v6357_v51, 0.0  ;;  %v9662_v0 = vadd.f32 %v6025_v21, %v12490_v54 }
 0x2d8   :  { %6626 = vst.msk [vmem:[%s13014_s5 + $0x58] sm:$0xff] %vm178_vm0, %v6562_v48  ;;  %v6493_v39 = vmul.f32 %v12530_v57, %v6422_v6  ;;  %v6360_v59 = vadd.f32 %v9661_v10, %v12524_v18 }
 0x2d9   :  { %6625 = vst.msk [vmem:[%s13014_s5 + $0x50] sm:$0xff] %vm178_vm0, %v6561_v31  ;;  %v6492_v53 = vmul.f32 %v12530_v57, %v6421_v63  ;;  %v6359_v8 = vadd.f32 %v9662_v0, %v12524_v18  ;;  %v9425_v9 = vpop.f32.mrb[16].mxu0 }
 0x2da   :  { %v6564_v54 = vadd.f32 %v12536_v2, %v6493_v39  ;;  %v6424_v61 = vmax.f32 %v6360_v59, 0.0  ;;  %v9663_v14 = vadd.f32 %v9425_v9, %v12492_v55  ;;  %v6035_v11 = vpop.f32.mrb[17].mxu0 }
 0x2db   :  { %v6563_v23 = vadd.f32 %v12536_v2, %v6492_v53  ;;  %v6423_v16 = vmax.f32 %v6359_v8, 0.0  ;;  %v9664_v52 = vadd.f32 %v6035_v11, %v12494_v25 }
 0x2dc   :  { %6628 = vst.msk [vmem:[%s13014_s5 + $0x68] sm:$0xff] %vm178_vm0, %v6564_v54  ;;  %v6495_v33 = vmul.f32 %v12530_v57, %v6424_v61  ;;  %v6362_v29 = vadd.f32 %v9663_v14, %v12524_v18 }
 0x2dd   :  { %6627 = vst.msk [vmem:[%s13014_s5 + $0x60] sm:$0xff] %vm178_vm0, %v6563_v23  ;;  %v6494_v55 = vmul.f32 %v12530_v57, %v6423_v16  ;;  %v6361_v40 = vadd.f32 %v9664_v52, %v12524_v18  ;;  %v9428_v41 = vpop.f32.mrb[18].mxu0 }
 0x2de   :  { %v6566_v25 = vadd.f32 %v12536_v2, %v6495_v33  ;;  %v6426_v15 = vmax.f32 %v6362_v29, 0.0  ;;  %v9665_v24 = vadd.f32 %v9428_v41, %v12496_v13  ;;  %v6045_v1 = vpop.f32.mrb[19].mxu0 }
 0x2df   :  { %v6565_v5 = vadd.f32 %v12536_v2, %v6494_v55  ;;  %v6425_v27 = vmax.f32 %v6361_v40, 0.0  ;;  %v9666_v34 = vadd.f32 %v6045_v1, %v12498_v58 }
 0x2e0   :  { %6630 = vst.msk [vmem:[%s13014_s5 + $0x78] sm:$0xff] %vm178_vm0, %v6566_v25  ;;  %v6497_v28 = vmul.f32 %v12530_v57, %v6426_v15  ;;  %v6364_v3 = vadd.f32 %v9665_v24, %v12524_v18 }
 0x2e1   :  { %6629 = vst.msk [vmem:[%s13014_s5 + $0x70] sm:$0xff] %vm178_vm0, %v6565_v5  ;;  %v6496_v13 = vmul.f32 %v12530_v57, %v6425_v27  ;;  %v6363_v22 = vadd.f32 %v9666_v34, %v12524_v18  ;;  %v9431_v44 = vpop.f32.mrb[20].mxu0 }
 0x2e2   :  { %v6568_v58 = vadd.f32 %v12536_v2, %v6497_v28  ;;  %v6428_v60 = vmax.f32 %v6364_v3, 0.0  ;;  %v9667_v12 = vadd.f32 %v9431_v44, %v12500_v46  ;;  %v6055_v49 = vpop.f32.mrb[21].mxu0 }
 0x2e3   :  { %v6567_v37 = vadd.f32 %v12536_v2, %v6496_v13  ;;  %v6427_v32 = vmax.f32 %v6363_v22, 0.0  ;;  %v9668_v42 = vadd.f32 %v6055_v49, %v12502_v38 }
 0x2e4   :  { %6632 = vst.msk [vmem:[%s13014_s5 + $0x88] sm:$0xff] %vm178_vm0, %v6568_v58  ;;  %v6499_v35 = vmul.f32 %v12530_v57, %v6428_v60  ;;  %v6366_v50 = vadd.f32 %v9667_v12, %v12524_v18 }
 0x2e5   :  { %6631 = vst.msk [vmem:[%s13014_s5 + $0x80] sm:$0xff] %vm178_vm0, %v6567_v37  ;;  %v6498_v46 = vmul.f32 %v12530_v57, %v6427_v32  ;;  %v6365_v45 = vadd.f32 %v9668_v42, %v12524_v18  ;;  %v9434_v62 = vpop.f32.mrb[22].mxu0 }
 0x2e6   :  { %v6570_v38 = vadd.f32 %v12536_v2, %v6499_v35  ;;  %v6430_v51 = vmax.f32 %v6366_v50, 0.0  ;;  %v9669_v7 = vadd.f32 %v9434_v62, %v12504_v19  ;;  %v6065_v48 = vpop.f32.mrb[23].mxu0 }
 0x2e7   :  { %v6569_v6 = vadd.f32 %v12536_v2, %v6498_v46  ;;  %v6429_v10 = vmax.f32 %v6365_v45, 0.0  ;;  %v9670_v21 = vadd.f32 %v6065_v48, %v12506_v17 }
 0x2e8   :  { %6634 = vst.msk [vmem:[%s13014_s5 + $0x98] sm:$0xff] %vm178_vm0, %v6570_v38  ;;  %v6501_v31 = vmul.f32 %v12530_v57, %v6430_v51  ;;  %v6368_v63 = vadd.f32 %v9669_v7, %v12524_v18 }
 0x2e9   :  { %6633 = vst.msk [vmem:[%s13014_s5 + $0x90] sm:$0xff] %vm178_vm0, %v6569_v6  ;;  %v6500_v19 = vmul.f32 %v12530_v57, %v6429_v10  ;;  %v6367_v0 = vadd.f32 %v9670_v21, %v12524_v18  ;;  %v9437_v39 = vpop.f32.mrb[24].mxu0 }
 0x2ea   :  { %v6572_v17 = vadd.f32 %v12536_v2, %v6501_v31  ;;  %v6432_v59 = vmax.f32 %v6368_v63, 0.0  ;;  %v9671_v53 = vadd.f32 %v9437_v39, %v12508_v20  ;;  %v6075_v8 = vpop.f32.mrb[25].mxu0 }
 0x2eb   :  { %v6571_v9 = vadd.f32 %v12536_v2, %v6500_v19  ;;  %v6431_v54 = vmax.f32 %v6367_v0, 0.0  ;;  %v9672_v61 = vadd.f32 %v6075_v8, %v12510_v26 }
 0x2ec   :  { %6636 = vst.msk [vmem:[%s13014_s5 + $0xa8] sm:$0xff] %vm178_vm0, %v6572_v17  ;;  %v6503_v14 = vmul.f32 %v12530_v57, %v6432_v59  ;;  %v6370_v11 = vadd.f32 %v9671_v53, %v12524_v18 }
 0x2ed   :  { %6635 = vst.msk [vmem:[%s13014_s5 + $0xa0] sm:$0xff] %vm178_vm0, %v6571_v9  ;;  %v6502_v20 = vmul.f32 %v12530_v57, %v6431_v54  ;;  %v6369_v23 = vadd.f32 %v9672_v61, %v12524_v18  ;;  %v9440_v16 = vpop.f32.mrb[26].mxu0 }
 0x2ee   :  { %v6574_v26 = vadd.f32 %v12536_v2, %v6503_v14  ;;  %v6434_v52 = vmax.f32 %v6370_v11, 0.0  ;;  %v9673_v33 = vadd.f32 %v9440_v16, %v12512_v56  ;;  %v6085_v29 = vpop.f32.mrb[27].mxu0 }
 0x2ef   :  { %v6573_v55 = vadd.f32 %v12536_v2, %v6502_v20  ;;  %v6433_v40 = vmax.f32 %v6369_v23, 0.0  ;;  %v9674_v41 = vadd.f32 %v6085_v29, %v12514_v43 }
 0x2f0   :  { %6638 = vst.msk [vmem:[%s13014_s5 + $0xb8] sm:$0xff] %vm178_vm0, %v6574_v26  ;;  %v6505_v25 = vmul.f32 %v12530_v57, %v6434_v52  ;;  %v6372_v15 = vadd.f32 %v9673_v33, %v12524_v18 }
 0x2f1   :  { %6637 = vst.msk [vmem:[%s13014_s5 + $0xb0] sm:$0xff] %vm178_vm0, %v6573_v55  ;;  %v6504_v56 = vmul.f32 %v12530_v57, %v6433_v40  ;;  %v6371_v24 = vadd.f32 %v9674_v41, %v12524_v18  ;;  %v9443_v1 = vpop.f32.mrb[28].mxu0 }
 0x2f2   :  { %v6576_v43 = vadd.f32 %v12536_v2, %v6505_v25  ;;  %v6436_v5 = vmax.f32 %v6372_v15, 0.0  ;;  %v9675_v27 = vadd.f32 %v9443_v1, %v12516_v30  ;;  %v6095_v34 = vpop.f32.mrb[29].mxu0 }
 0x2f3   :  { %v6575_v28 = vadd.f32 %v12536_v2, %v6504_v56  ;;  %v6435_v3 = vmax.f32 %v6371_v24, 0.0  ;;  %v9676_v13 = vadd.f32 %v6095_v34, %v12518_v36 }
 0x2f4   :  { %6640 = vst.msk [vmem:[%s13014_s5 + $0xc8] sm:$0xff] %vm178_vm0, %v6576_v43  ;;  %v6507_v22 = vmul.f32 %v12530_v57, %v6436_v5  ;;  %v6374_v44 = vadd.f32 %v9675_v27, %v12524_v18 }
 0x2f5   :  { %6639 = vst.msk [vmem:[%s13014_s5 + $0xc0] sm:$0xff] %vm178_vm0, %v6575_v28  ;;  %v6506_v30 = vmul.f32 %v12530_v57, %v6435_v3  ;;  %v6373_v58 = vadd.f32 %v9676_v13, %v12524_v18  ;;  %v9446_v60 = vpop.f32.mrb[30].mxu0 }
 0x2f6   :  { %v6578_v36 = vadd.f32 %v12536_v2, %v6507_v22  ;;  %v6438_v12 = vmax.f32 %v6374_v44, 0.0  ;;  %v9677_v49 = vadd.f32 %v9446_v60, %v12520_v4  ;;  %v6105_v37 = vpop.f32.mrb[31].mxu0 }
 0x2f7   :  { %v6577_v32 = vadd.f32 %v12536_v2, %v6506_v30  ;;  %v6437_v42 = vmax.f32 %v6373_v58, 0.0  ;;  %v9678_v35 = vadd.f32 %v6105_v37, %v12522_v47 }
 0x2f8   :  { %6642 = vst.msk [vmem:[%s13014_s5 + $0xd8] sm:$0xff] %vm178_vm0, %v6578_v36  ;;  %v6509_v50 = vmul.f32 %v12530_v57, %v6438_v12  ;;  %v6376_v46 = vadd.f32 %v9677_v49, %v12524_v18  ;;  %v9001_v45 = vpop.f32.mrb[32].mxu1 }
 0x2f9   :  { %6641 = vst.msk [vmem:[%s13014_s5 + $0xd0] sm:$0xff] %vm178_vm0, %v6577_v32  ;;  %v6508_v4 = vmul.f32 %v12530_v57, %v6437_v42  ;;  %v6375_v62 = vadd.f32 %v9678_v35, %v12524_v18  ;;  %v9449_v47 = vpop.f32.mrb[32].mxu0  ;;  %v3255_v38 = vpop.f32.mrb[33].mxu1 }
 0x2fa   :  { %v6580_v51 = vadd.f32 %v12536_v2, %v6509_v50  ;;  %v6440_v7 = vmax.f32 %v6376_v46, 0.0  ;;  %v9679_v48 = vadd.f32 %v9449_v47, %v9001_v45  ;;  %v6115_v6 = vpop.f32.mrb[33].mxu0 }
 0x2fb   :  { %v6579_v10 = vadd.f32 %v12536_v2, %v6508_v4  ;;  %v6439_v21 = vmax.f32 %v6375_v62, 0.0  ;;  %v9680_v31 = vadd.f32 %v6115_v6, %v3255_v38 }
 0x2fc   :  { %6644 = vst.msk [vmem:[%s13014_s5 + $0xe8] sm:$0xff] %vm178_vm0, %v6580_v51  ;;  %v6511_v63 = vmul.f32 %v12530_v57, %v6440_v7  ;;  %v6378_v19 = vadd.f32 %v9679_v48, %v12524_v18  ;;  %v9004_v0 = vpop.f32.mrb[34].mxu1 }
 0x2fd   :  { %6643 = vst.msk [vmem:[%s13014_s5 + $0xe0] sm:$0xff] %vm178_vm0, %v6579_v10  ;;  %v6510_v39 = vmul.f32 %v12530_v57, %v6439_v21  ;;  %v6377_v17 = vadd.f32 %v9680_v31, %v12524_v18  ;;  %v9452_v59 = vpop.f32.mrb[34].mxu0  ;;  %v3265_v53 = vpop.f32.mrb[35].mxu1 }
 0x2fe   :  { %v6582_v8 = vadd.f32 %v12536_v2, %v6511_v63  ;;  %v6442_v9 = vmax.f32 %v6378_v19, 0.0  ;;  %v9681_v54 = vadd.f32 %v9452_v59, %v9004_v0  ;;  %v6125_v61 = vpop.f32.mrb[35].mxu0 }
 0x2ff   :  { %v6581_v14 = vadd.f32 %v12536_v2, %v6510_v39  ;;  %v6441_v11 = vmax.f32 %v6377_v17, 0.0  ;;  %v9682_v20 = vadd.f32 %v6125_v61, %v3265_v53 }
 0x300   :  { %6646 = vst.msk [vmem:[%s13014_s5 + $0xf8] sm:$0xff] %vm178_vm0, %v6582_v8  ;;  %v6513_v23 = vmul.f32 %v12530_v57, %v6442_v9  ;;  %v6380_v16 = vadd.f32 %v9681_v54, %v12524_v18  ;;  %v9007_v26 = vpop.f32.mrb[36].mxu1 }
 0x301   :  { %6645 = vst.msk [vmem:[%s13014_s5 + $0xf0] sm:$0xff] %vm178_vm0, %v6581_v14  ;;  %v6512_v52 = vmul.f32 %v12530_v57, %v6441_v11  ;;  %v6379_v33 = vadd.f32 %v9682_v20, %v12524_v18  ;;  %v9455_v29 = vpop.f32.mrb[36].mxu0  ;;  %v3275_v55 = vpop.f32.mrb[37].mxu1 }
 0x302   :  { %v6584_v40 = vadd.f32 %v12536_v2, %v6513_v23  ;;  %v6444_v41 = vmax.f32 %v6380_v16, 0.0  ;;  %v9683_v25 = vadd.f32 %v9455_v29, %v9007_v26  ;;  %v6135_v15 = vpop.f32.mrb[37].mxu0 }
 0x303   :  { %v6583_v56 = vadd.f32 %v12536_v2, %v6512_v52  ;;  %v6443_v24 = vmax.f32 %v6379_v33, 0.0  ;;  %v9684_v1 = vadd.f32 %v6135_v15, %v3275_v55 }
 0x304   :  { %6648 = vst.msk [vmem:[%s13014_s5 + $0x108] sm:$0xff] %vm178_vm0, %v6584_v40  ;;  %v6515_v43 = vmul.f32 %v12530_v57, %v6444_v41  ;;  %v6382_v5 = vadd.f32 %v9683_v25, %v12524_v18  ;;  %v9010_v27 = vpop.f32.mrb[38].mxu1 }
 0x305   :  { %6647 = vst.msk [vmem:[%s13014_s5 + $0x100] sm:$0xff] %vm178_vm0, %v6583_v56  ;;  %v6514_v34 = vmul.f32 %v12530_v57, %v6443_v24  ;;  %v6381_v28 = vadd.f32 %v9684_v1, %v12524_v18  ;;  %v9458_v3 = vpop.f32.mrb[38].mxu0  ;;  %v3285_v13 = vpop.f32.mrb[39].mxu1 }
 0x306   :  { %v6586_v22 = vadd.f32 %v12536_v2, %v6515_v43  ;;  %v6446_v44 = vmax.f32 %v6382_v5, 0.0  ;;  %v9685_v30 = vadd.f32 %v9458_v3, %v9010_v27  ;;  %v6145_v58 = vpop.f32.mrb[39].mxu0 }
 0x307   :  { %v6585_v60 = vadd.f32 %v12536_v2, %v6514_v34  ;;  %v6445_v36 = vmax.f32 %v6381_v28, 0.0  ;;  %v9686_v12 = vadd.f32 %v6145_v58, %v3285_v13 }
 0x308   :  { %6650 = vst.msk [vmem:[%s13014_s5 + $0x118] sm:$0xff] %vm178_vm0, %v6586_v22  ;;  %v6517_v49 = vmul.f32 %v12530_v57, %v6446_v44  ;;  %v6384_v37 = vadd.f32 %v9685_v30, %v12524_v18  ;;  %v9013_v32 = vpop.f32.mrb[40].mxu1 }
 0x309   :  { %6649 = vst.msk [vmem:[%s13014_s5 + $0x110] sm:$0xff] %vm178_vm0, %v6585_v60  ;;  %v6516_v42 = vmul.f32 %v12530_v57, %v6445_v36  ;;  %v6383_v35 = vadd.f32 %v9686_v12, %v12524_v18  ;;  %v9461_v50 = vpop.f32.mrb[40].mxu0  ;;  %v3295_v46 = vpop.f32.mrb[41].mxu1 }
 0x30a   :  { %v6588_v45 = vadd.f32 %v12536_v2, %v6517_v49  ;;  %v6448_v4 = vmax.f32 %v6384_v37, 0.0  ;;  %v9687_v62 = vadd.f32 %v9461_v50, %v9013_v32  ;;  %v6155_v47 = vpop.f32.mrb[41].mxu0 }
 0x30b   :  { %v6587_v38 = vadd.f32 %v12536_v2, %v6516_v42  ;;  %v6447_v51 = vmax.f32 %v6383_v35, 0.0  ;;  %v9688_v7 = vadd.f32 %v6155_v47, %v3295_v46 }
 0x30c   :  { %6652 = vst.msk [vmem:[%s13014_s5 + $0x128] sm:$0xff] %vm178_vm0, %v6588_v45  ;;  %v6519_v48 = vmul.f32 %v12530_v57, %v6448_v4  ;;  %v6386_v6 = vadd.f32 %v9687_v62, %v12524_v18  ;;  %v9016_v10 = vpop.f32.mrb[42].mxu1 }
 0x30d   :  { %6651 = vst.msk [vmem:[%s13014_s5 + $0x120] sm:$0xff] %vm178_vm0, %v6587_v38  ;;  %v6518_v21 = vmul.f32 %v12530_v57, %v6447_v51  ;;  %v6385_v31 = vadd.f32 %v9688_v7, %v12524_v18  ;;  %v9464_v63 = vpop.f32.mrb[42].mxu0  ;;  %v3305_v19 = vpop.f32.mrb[43].mxu1 }
 0x30e   :  { %v6590_v0 = vadd.f32 %v12536_v2, %v6519_v48  ;;  %v6450_v39 = vmax.f32 %v6386_v6, 0.0  ;;  %v9689_v17 = vadd.f32 %v9464_v63, %v9016_v10  ;;  %v6165_v59 = vpop.f32.mrb[43].mxu0 }
 0x30f   :  { %v6589_v53 = vadd.f32 %v12536_v2, %v6518_v21  ;;  %v6449_v8 = vmax.f32 %v6385_v31, 0.0  ;;  %v9690_v9 = vadd.f32 %v6165_v59, %v3305_v19 }
 0x310   :  { %6654 = vst.msk [vmem:[%s13014_s5 + $0x138] sm:$0xff] %vm178_vm0, %v6590_v0  ;;  %v6521_v54 = vmul.f32 %v12530_v57, %v6450_v39  ;;  %v6388_v61 = vadd.f32 %v9689_v17, %v12524_v18  ;;  %v9019_v14 = vpop.f32.mrb[44].mxu1 }
 0x311   :  { %6653 = vst.msk [vmem:[%s13014_s5 + $0x130] sm:$0xff] %vm178_vm0, %v6589_v53  ;;  %v6520_v11 = vmul.f32 %v12530_v57, %v6449_v8  ;;  %v6387_v20 = vadd.f32 %v9690_v9, %v12524_v18  ;;  %v9467_v23 = vpop.f32.mrb[44].mxu0  ;;  %v3315_v16 = vpop.f32.mrb[45].mxu1 }
 0x312   :  { %v6592_v26 = vadd.f32 %v12536_v2, %v6521_v54  ;;  %v6452_v52 = vmax.f32 %v6388_v61, 0.0  ;;  %v9691_v33 = vadd.f32 %v9467_v23, %v9019_v14  ;;  %v6175_v29 = vpop.f32.mrb[45].mxu0 }
 0x313   :  { %v6591_v55 = vadd.f32 %v12536_v2, %v6520_v11  ;;  %v6451_v40 = vmax.f32 %v6387_v20, 0.0  ;;  %v9692_v41 = vadd.f32 %v6175_v29, %v3315_v16 }
 0x314   :  { %6656 = vst.msk [vmem:[%s13014_s5 + $0x148] sm:$0xff] %vm178_vm0, %v6592_v26  ;;  %v6523_v25 = vmul.f32 %v12530_v57, %v6452_v52  ;;  %v6390_v15 = vadd.f32 %v9691_v33, %v12524_v18  ;;  %v9022_v56 = vpop.f32.mrb[46].mxu1 }
 0x315   :  { %6655 = vst.msk [vmem:[%s13014_s5 + $0x140] sm:$0xff] %vm178_vm0, %v6591_v55  ;;  %v6522_v24 = vmul.f32 %v12530_v57, %v6451_v40  ;;  %v6389_v1 = vadd.f32 %v9692_v41, %v12524_v18  ;;  %v9470_v43 = vpop.f32.mrb[46].mxu0  ;;  %v3325_v5 = vpop.f32.mrb[47].mxu1 }
 0x316   :  { %v6594_v27 = vadd.f32 %v12536_v2, %v6523_v25  ;;  %v6454_v34 = vmax.f32 %v6390_v15, 0.0  ;;  %v9693_v28 = vadd.f32 %v9470_v43, %v9022_v56  ;;  %v6185_v3 = vpop.f32.mrb[47].mxu0 }
 0x317   :  { %v6593_v13 = vadd.f32 %v12536_v2, %v6522_v24  ;;  %v6453_v22 = vmax.f32 %v6389_v1, 0.0  ;;  %v9694_v44 = vadd.f32 %v6185_v3, %v3325_v5 }
 0x318   :  { %6658 = vst.msk [vmem:[%s13014_s5 + $0x158] sm:$0xff] %vm178_vm0, %v6594_v27  ;;  %v6525_v30 = vmul.f32 %v12530_v57, %v6454_v34  ;;  %v6392_v58 = vadd.f32 %v9693_v28, %v12524_v18  ;;  %v9025_v60 = vpop.f32.mrb[48].mxu1 }
 0x319   :  { %6657 = vst.msk [vmem:[%s13014_s5 + $0x150] sm:$0xff] %vm178_vm0, %v6593_v13  ;;  %v6524_v36 = vmul.f32 %v12530_v57, %v6453_v22  ;;  %v6391_v12 = vadd.f32 %v9694_v44, %v12524_v18  ;;  %v9473_v49 = vpop.f32.mrb[48].mxu0  ;;  %v3335_v37 = vpop.f32.mrb[49].mxu1 }
 0x31a   :  { %v6596_v32 = vadd.f32 %v12536_v2, %v6525_v30  ;;  %v6456_v42 = vmax.f32 %v6392_v58, 0.0  ;;  %v9695_v35 = vadd.f32 %v9473_v49, %v9025_v60  ;;  %v6195_v50 = vpop.f32.mrb[49].mxu0 }
 0x31b   :  { %v6595_v46 = vadd.f32 %v12536_v2, %v6524_v36  ;;  %v6455_v45 = vmax.f32 %v6391_v12, 0.0  ;;  %v9696_v4 = vadd.f32 %v6195_v50, %v3335_v37 }
 0x31c   :  { %6660 = vst.msk [vmem:[%s13014_s5 + $0x168] sm:$0xff] %vm178_vm0, %v6596_v32  ;;  %v6527_v62 = vmul.f32 %v12530_v57, %v6456_v42  ;;  %v6394_v47 = vadd.f32 %v9695_v35, %v12524_v18  ;;  %v9028_v38 = vpop.f32.mrb[50].mxu1 }
 0x31d   :  { %6659 = vst.msk [vmem:[%s13014_s5 + $0x160] sm:$0xff] %vm178_vm0, %v6595_v46  ;;  %v6526_v51 = vmul.f32 %v12530_v57, %v6455_v45  ;;  %v6393_v7 = vadd.f32 %v9696_v4, %v12524_v18  ;;  %v9476_v48 = vpop.f32.mrb[50].mxu0  ;;  %v3345_v6 = vpop.f32.mrb[51].mxu1 }
 0x31e   :  { %v6598_v10 = vadd.f32 %v12536_v2, %v6527_v62  ;;  %v6458_v21 = vmax.f32 %v6394_v47, 0.0  ;;  %v9697_v31 = vadd.f32 %v9476_v48, %v9028_v38  ;;  %v6205_v63 = vpop.f32.mrb[51].mxu0 }
 0x31f   :  { %v6597_v19 = vadd.f32 %v12536_v2, %v6526_v51  ;;  %v6457_v0 = vmax.f32 %v6393_v7, 0.0  ;;  %v9698_v39 = vadd.f32 %v6205_v63, %v3345_v6 }
 0x320   :  { %6662 = vst.msk [vmem:[%s13014_s5 + $0x178] sm:$0xff] %vm178_vm0, %v6598_v10  ;;  %v6529_v17 = vmul.f32 %v12530_v57, %v6458_v21  ;;  %v6396_v59 = vadd.f32 %v9697_v31, %v12524_v18  ;;  %v9031_v53 = vpop.f32.mrb[52].mxu1 }
 0x321   :  { %6661 = vst.msk [vmem:[%s13014_s5 + $0x170] sm:$0xff] %vm178_vm0, %v6597_v19  ;;  %v6528_v8 = vmul.f32 %v12530_v57, %v6457_v0  ;;  %v6395_v9 = vadd.f32 %v9698_v39, %v12524_v18  ;;  %v9479_v54 = vpop.f32.mrb[52].mxu0  ;;  %v3355_v61 = vpop.f32.mrb[53].mxu1 }
 0x322   :  { %v6600_v14 = vadd.f32 %v12536_v2, %v6529_v17  ;;  %v6460_v11 = vmax.f32 %v6396_v59, 0.0  ;;  %v9699_v20 = vadd.f32 %v9479_v54, %v9031_v53  ;;  %v6215_v23 = vpop.f32.mrb[53].mxu0 }
 0x323   :  { %v6599_v16 = vadd.f32 %v12536_v2, %v6528_v8  ;;  %v6459_v26 = vmax.f32 %v6395_v9, 0.0  ;;  %v9700_v52 = vadd.f32 %v6215_v23, %v3355_v61 }
 0x324   :  { %6664 = vst.msk [vmem:[%s13014_s5 + $0x188] sm:$0xff] %vm178_vm0, %v6600_v14  ;;  %v6531_v33 = vmul.f32 %v12530_v57, %v6460_v11  ;;  %v6398_v29 = vadd.f32 %v9699_v20, %v12524_v18  ;;  %v9034_v55 = vpop.f32.mrb[54].mxu1 }
 0x325   :  { %6663 = vst.msk [vmem:[%s13014_s5 + $0x180] sm:$0xff] %vm178_vm0, %v6599_v16  ;;  %v6530_v40 = vmul.f32 %v12530_v57, %v6459_v26  ;;  %v6397_v41 = vadd.f32 %v9700_v52, %v12524_v18  ;;  %v9482_v25 = vpop.f32.mrb[54].mxu0  ;;  %v3365_v15 = vpop.f32.mrb[55].mxu1 }
 0x326   :  { %v6602_v56 = vadd.f32 %v12536_v2, %v6531_v33  ;;  %v6462_v24 = vmax.f32 %v6398_v29, 0.0  ;;  %v9701_v1 = vadd.f32 %v9482_v25, %v9034_v55  ;;  %v6225_v43 = vpop.f32.mrb[55].mxu0 }
 0x327   :  { %v6601_v5 = vadd.f32 %v12536_v2, %v6530_v40  ;;  %v6461_v27 = vmax.f32 %v6397_v41, 0.0  ;;  %v9702_v34 = vadd.f32 %v6225_v43, %v3365_v15 }
 0x328   :  { %6666 = vst.msk [vmem:[%s13014_s5 + $0x198] sm:$0xff] %vm178_vm0, %v6602_v56  ;;  %v6533_v28 = vmul.f32 %v12530_v57, %v6462_v24  ;;  %v6400_v3 = vadd.f32 %v9701_v1, %v12524_v18  ;;  %v9037_v13 = vpop.f32.mrb[56].mxu1 }
 0x329   :  { %6665 = vst.msk [vmem:[%s13014_s5 + $0x190] sm:$0xff] %vm178_vm0, %v6601_v5  ;;  %v6532_v22 = vmul.f32 %v12530_v57, %v6461_v27  ;;  %v6399_v44 = vadd.f32 %v9702_v34, %v12524_v18  ;;  %v9485_v30 = vpop.f32.mrb[56].mxu0  ;;  %v3375_v58 = vpop.f32.mrb[57].mxu1 }
 0x32a   :  { %v6604_v60 = vadd.f32 %v12536_v2, %v6533_v28  ;;  %v6464_v36 = vmax.f32 %v6400_v3, 0.0  ;;  %v9703_v12 = vadd.f32 %v9485_v30, %v9037_v13  ;;  %v6235_v49 = vpop.f32.mrb[57].mxu0 }
 0x32b   :  { %v6603_v37 = vadd.f32 %v12536_v2, %v6532_v22  ;;  %v6463_v32 = vmax.f32 %v6399_v44, 0.0  ;;  %v9704_v42 = vadd.f32 %v6235_v49, %v3375_v58 }
 0x32c   :  { %6668 = vst.msk [vmem:[%s13014_s5 + $0x1a8] sm:$0xff] %vm178_vm0, %v6604_v60  ;;  %v6535_v35 = vmul.f32 %v12530_v57, %v6464_v36  ;;  %v6402_v50 = vadd.f32 %v9703_v12, %v12524_v18  ;;  %v9040_v46 = vpop.f32.mrb[58].mxu1 }
 0x32d   :  { %6667 = vst.msk [vmem:[%s13014_s5 + $0x1a0] sm:$0xff] %vm178_vm0, %v6603_v37  ;;  %v6534_v45 = vmul.f32 %v12530_v57, %v6463_v32  ;;  %v6401_v4 = vadd.f32 %v9704_v42, %v12524_v18  ;;  %v9488_v62 = vpop.f32.mrb[58].mxu0  ;;  %v3385_v47 = vpop.f32.mrb[59].mxu1 }
 0x32e   :  { %v6606_v38 = vadd.f32 %v12536_v2, %v6535_v35  ;;  %v6466_v51 = vmax.f32 %v6402_v50, 0.0  ;;  %v9705_v7 = vadd.f32 %v9488_v62, %v9040_v46  ;;  %v6245_v48 = vpop.f32.mrb[59].mxu0 }
 0x32f   :  { %v6605_v6 = vadd.f32 %v12536_v2, %v6534_v45  ;;  %v6465_v10 = vmax.f32 %v6401_v4, 0.0  ;;  %v9706_v21 = vadd.f32 %v6245_v48, %v3385_v47 }
 0x330   :  { %6670 = vst.msk [vmem:[%s13014_s5 + $0x1b8] sm:$0xff] %vm178_vm0, %v6606_v38  ;;  %v6537_v31 = vmul.f32 %v12530_v57, %v6466_v51  ;;  %v6404_v63 = vadd.f32 %v9705_v7, %v12524_v18  ;;  %v9043_v19 = vpop.f32.mrb[60].mxu1 }
 0x331   :  { %6669 = vst.msk [vmem:[%s13014_s5 + $0x1b0] sm:$0xff] %vm178_vm0, %v6605_v6  ;;  %v6536_v0 = vmul.f32 %v12530_v57, %v6465_v10  ;;  %v6403_v39 = vadd.f32 %v9706_v21, %v12524_v18  ;;  %v9491_v17 = vpop.f32.mrb[60].mxu0  ;;  %v3395_v59 = vpop.f32.mrb[61].mxu1 }
 0x332   :  { %v6608_v53 = vadd.f32 %v12536_v2, %v6537_v31  ;;  %v6468_v8 = vmax.f32 %v6404_v63, 0.0  ;;  %v9707_v9 = vadd.f32 %v9491_v17, %v9043_v19  ;;  %v6255_v54 = vpop.f32.mrb[61].mxu0 }
 0x333   :  { %v6607_v61 = vadd.f32 %v12536_v2, %v6536_v0  ;;  %v6467_v14 = vmax.f32 %v6403_v39, 0.0  ;;  %v9708_v11 = vadd.f32 %v6255_v54, %v3395_v59 }
 0x334   :  { %6672 = vst.msk [vmem:[%s13014_s5 + $0x1c8] sm:$0xff] %vm178_vm0, %v6608_v53  ;;  %v6539_v20 = vmul.f32 %v12530_v57, %v6468_v8  ;;  %v6406_v23 = vadd.f32 %v9707_v9, %v12524_v18  ;;  %v9046_v16 = vpop.f32.mrb[62].mxu1 }
 0x335   :  { %6671 = vst.msk [vmem:[%s13014_s5 + $0x1c0] sm:$0xff] %vm178_vm0, %v6607_v61  ;;  %v6538_v26 = vmul.f32 %v12530_v57, %v6467_v14  ;;  %v6405_v52 = vadd.f32 %v9708_v11, %v12524_v18  ;;  %v9494_v33 = vpop.f32.mrb[62].mxu0  ;;  %v3405_v29 = vpop.f32.mrb[63].mxu1 }
 0x336   :  { %v6610_v55 = vadd.f32 %v12536_v2, %v6539_v20  ;;  %v6470_v40 = vmax.f32 %v6406_v23, 0.0  ;;  %v9709_v41 = vadd.f32 %v9494_v33, %v9046_v16  ;;  %v6265_v25 = vpop.f32.mrb[63].mxu0 }
 0x337   :  { %v6609_v15 = vadd.f32 %v12536_v2, %v6538_v26  ;;  %v6469_v56 = vmax.f32 %v6405_v52, 0.0  ;;  %v9710_v24 = vadd.f32 %v6265_v25, %v3405_v29 }
 0x338   :  { %6674 = vst.msk [vmem:[%s13014_s5 + $0x1d8] sm:$0xff] %vm178_vm0, %v6610_v55  ;;  %v6541_v1 = vmul.f32 %v12530_v57, %v6470_v40  ;;  %v6408_v43 = vadd.f32 %v9709_v41, %v12524_v18 }
 0x339   :  { %6673 = vst.msk [vmem:[%s13014_s5 + $0x1d0] sm:$0xff] %vm178_vm0, %v6609_v15  ;;  %v6540_v5 = vmul.f32 %v12530_v57, %v6469_v56  ;;  %v6407_v27 = vadd.f32 %v9710_v24, %v12524_v18 }
 0x33a   :  { %v6612_v34 = vadd.f32 %v12536_v2, %v6541_v1  ;;  %v6472_v28 = vmax.f32 %v6408_v43, 0.0 }
 0x33b   :  { %v6611_v3 = vadd.f32 %v12536_v2, %v6540_v5  ;;  %v6471_v13 = vmax.f32 %v6407_v27, 0.0 }
 0x33c   :  { %6676 = vst.msk [vmem:[%s13014_s5 + $0x1e8] sm:$0xff] %vm178_vm0, %v6612_v34  ;;  %v6543_v22 = vmul.f32 %v12530_v57, %v6472_v28 }
 0x33d   :  { %6675 = vst.msk [vmem:[%s13014_s5 + $0x1e0] sm:$0xff] %vm178_vm0, %v6611_v3  ;;  %v6542_v18 = vmul.f32 %v12530_v57, %v6471_v13 }
 0x33e   :  { %v6614_v44 = vadd.f32 %v12536_v2, %v6543_v22 }
 0x33f   :  { %v6613_v30 = vadd.f32 %v12536_v2, %v6542_v18 }
 0x340   :  { %6678 = vst.msk [vmem:[%s13014_s5 + $0x1f8] sm:$0xff] %vm178_vm0, %v6614_v44 }
 0x341   :  { %6677 = vst.msk [vmem:[%s13014_s5 + $0x1f0] sm:$0xff] %vm178_vm0, %v6613_v30 }
 0x342   :  { %6683 = vsyncpa [#allocation3], 1 }

// kernel: siamese_forward.8
= control target key start
LH: loop header
LB: loop body
LE: loop exit
PB: predicated region body
PF: predicated region fallthrough
CT: control target
= control target key end

     0   :  { %10 = vsyncpa [#allocation3], 0  ;;  %s10185_s18 = smov [#allocation2]   ;;  %s13013_s0 = inlined_call_operand.vmem [shape: f32[10,10,8,64], index: 0, kind: input, shape index: {}]   ;;  %s13014_s1 = inlined_call_operand.vmem [shape: f32[9,64,32], index: 1, kind: input, shape index: {}]   ;;  %s13015_s2 = inlined_call_operand.hbm [shape: f32[1,32], index: 2, kind: input, shape index: {}]   ;;  %s13016_s3 = inlined_call_operand.vmem [shape: f32[1,32], index: 3, kind: input, shape index: {}]   ;;  %s13017_s4 = inlined_call_operand.vmem [shape: f32[1,32], index: 4, kind: input, shape index: {}]   ;;  %s13018_s5 = inlined_call_operand.vmem [shape: f32[8,8,8,32], index: 5, kind: output, shape index: {}]  }
   0x1   :  { %s21_s19 = sshll.u32 %s10185_s18, 4  ;;  %s10161_s22 = scalar_lea.hbm %s13015_s2, 16  ;;  %s22_s19 = int_to_ptr.vmem [resolvable:$true] %s21_s19 }
   0x2   :  { %p10162_p0 = scmp.ne.s32.totalorder %s13015_s2, %s10161_s22  ;;  %p10165_p1 = scmp.lt.u32.totalorder %s10161_s22, %s13015_s2 }
   0x4   :  { %p10167_p2 = pnand %p10165_p1, %p10162_p0 }
   0x6   :  { %10170 = shalt.err (!%p10167_p2)
}
   0x7   :  { %s10171_s27 = scalar_lea.vmem %s22_s19, 16  ;;  %s10175_s28 = scalar_lea.vmem %s22_s19, 32 }
   0x8   :  { %p10172_p3 = scmp.ne.s32.totalorder %s22_s19, %s10171_s27  ;;  %p10176_p4 = scmp.lt.s32.totalorder %s22_s19, %s22_s19 }
   0x9   :  { %p10177_p5 = scmp.lt.s32.totalorder %s10175_s28, %s10171_s27 }
   0xb   :  { %p10178_p6 = por %p10177_p5, %p10176_p4 }
   0xd   :  { %p10179_p7 = pnand %p10178_p6, %p10172_p3 }
   0xf   :  { %10182 = shalt.err (!%p10179_p7)
}
  0x10   :  { %24 = dma.hbm_to_vmem [thread:$0]  %s13015_s2, 16, %s22_s19, [#allocation3]  }
  0x11   :  { %10183 = dma.done.wait [#allocation3], 16  }
  0x12   :  { %10184 = vsyncadd [#allocation3], 4294967280  ;;  %v6749_v0 = vld [vmem:[%s13014_s1 + $0x40] sm:$0xff]  ;;  %v6750_v1 = vld [vmem:[%s13014_s1 + $0x48] sm:$0xff]  ;;  %vm178_vm0 = vcmask 523264   ;;  %vm6615_vm1 = vcmask 261120  }
  0x13   :  { %v7221_v2 = vld [vmem:[%s13014_s1 + $0x100] sm:$0xff]  ;;  %v9496_v3 = vpack.c.bf16 %v6750_v1, %v6749_v0  ;;  %v7222_v4 = vld [vmem:[%s13014_s1 + $0x108] sm:$0xff]  ;;  %v6751_v5 = vld [vmem:[%s13014_s1 + $0x50] sm:$0xff] }
  0x14   :  { %v6752_v6 = vld [vmem:[%s13014_s1 + $0x58] sm:$0xff]  ;;  %v10246_v7 = vpack.c.bf16 %v7222_v4, %v7221_v2  ;;  %v7223_v9 = vld [vmem:[%s13014_s1 + $0x110] sm:$0xff]  ;;  %v6753_v11 = vld [vmem:[%s13014_s1 + $0x60] sm:$0xff] }
  0x15   :  { %v9500_v8 = vpack.c.bf16 %v6752_v6, %v6751_v5  ;;  %v7224_v10 = vld [vmem:[%s13014_s1 + $0x118] sm:$0xff]  ;;  %9497 = vmatprep.subr.bf16.mxu1 %v9496_v3  ;;  %v6754_v13 = vld [vmem:[%s13014_s1 + $0x68] sm:$0xff]  ;;  %v7225_v14 = vld [vmem:[%s13014_s1 + $0x120] sm:$0xff] }
  0x16   :  { %13070 = vst [vmem:[#allocation5_spill] sm:$0xff] %v10246_v7  ;;  %v10257_v12 = vpack.c.bf16 %v7224_v10, %v7223_v9  ;;  %v7226_v15 = vld [vmem:[%s13014_s1 + $0x128] sm:$0xff]  ;;  %9561 = vmatprep.subr.bf16.mxu0 %v10246_v7  ;;  %9499 = vmatpush3.bf16.msra.mxu1 %v9496_v3  ;;  %v9504_v16 = vpack.c.bf16 %v6754_v13, %v6753_v11  ;;  %v10273_v17 = vld [vmem:[%s13013_s0 + $0x50] sm:$0xff]  ;;  %v10278_v18 = vld [vmem:[%s13013_s0 + $0x58] sm:$0xff] }
  0x17   :  { %9563 = vmatpush3.bf16.msra.mxu0 %v10246_v7  ;;  %9501 = vmatprep.subr.bf16.mxu1 %v9500_v8  ;;  %v10281_v19 = vpack.c.bf16 %v7226_v15, %v7225_v14  ;;  %v6755_v20 = vld [vmem:[%s13014_s1 + $0x70] sm:$0xff]  ;;  %v6756_v21 = vld [vmem:[%s13014_s1 + $0x78] sm:$0xff]  ;;  %v96_v26 = vld [vmem:[%s13014_s1] sm:$0xff] }
  0x18   :  { %13071 = vst [vmem:[#allocation6_spill] sm:$0xff] %v10257_v12  ;;  %9565 = vmatprep.subr.bf16.mxu0 %v10257_v12  ;;  %8504 = vmatprep.mubr.msk.f32.mxu1 %vm178_vm0, %v10273_v17  ;;  %v7227_v22 = vld [vmem:[%s13014_s1 + $0x130] sm:$0xff]  ;;  %v7228_v23 = vld [vmem:[%s13014_s1 + $0x138] sm:$0xff]  ;;  %v9508_v24 = vpack.c.bf16 %v6756_v21, %v6755_v20  ;;  %v97_v27 = vld [vmem:[%s13014_s1 + $0x8] sm:$0xff] }
  0x19   :  { %13072 = vst [vmem:[#allocation7_spill] sm:$0xff] %v10281_v19  ;;  %8952 = vmatprep.mubr.msk.f32.mxu0 %vm178_vm0, %v10278_v18  ;;  %v10301_v25 = vpack.c.bf16 %v7228_v23, %v7227_v22  ;;  %v7357_v28 = vld [vmem:[%s13014_s1 + $0x140] sm:$0xff]  ;;  %v7358_v29 = vld [vmem:[%s13014_s1 + $0x148] sm:$0xff]  ;;  %v9512_v30 = vpack.c.bf16 %v97_v27, %v96_v26  ;;  %v7359_v32 = vld [vmem:[%s13014_s1 + $0x150] sm:$0xff] }
  0x1a   :  { %9503 = vmatpush3.bf16.msra.mxu1 %v9500_v8  ;;  %v9576_v31 = vpack.c.bf16 %v7358_v29, %v7357_v28  ;;  %v7360_v33 = vld [vmem:[%s13014_s1 + $0x158] sm:$0xff]  ;;  %v98_v34 = vld [vmem:[%s13014_s1 + $0x10] sm:$0xff]  ;;  %v10333_v36 = vld [vmem:[%s13013_s0 + $0x60] sm:$0xff] }
  0x1b   :  { %9567 = vmatpush3.bf16.msra.mxu0 %v10257_v12  ;;  %9505 = vmatprep.subr.bf16.mxu1 %v9504_v16  ;;  %13073 = vst [vmem:[#allocation8_spill] sm:$0xff] %v10301_v25  ;;  %v99_v35 = vld [vmem:[%s13014_s1 + $0x18] sm:$0xff]  ;;  %v9580_v37 = vpack.c.bf16 %v7360_v33, %v7359_v32  ;;  %v10340_v38 = vld [vmem:[%s13013_s0 + $0x68] sm:$0xff]  ;;  %v7361_v40 = vld [vmem:[%s13014_s1 + $0x160] sm:$0xff] }
  0x1c   :  { %9569 = vmatprep.subr.bf16.mxu0 %v10281_v19  ;;  %v9516_v39 = vpack.c.bf16 %v99_v35, %v98_v34  ;;  %v7362_v41 = vld [vmem:[%s13014_s1 + $0x168] sm:$0xff]  ;;  %v10355_v42 = vld [vmem:[%s13013_s0 + $0x70] sm:$0xff]  ;;  %v10362_v43 = vld [vmem:[%s13013_s0 + $0x78] sm:$0xff] }
  0x1d   :  { %v9584_v44 = vpack.c.bf16 %v7362_v41, %v7361_v40  ;;  %v100_v45 = vld [vmem:[%s13014_s1 + $0x20] sm:$0xff]  ;;  %v101_v46 = vld [vmem:[%s13014_s1 + $0x28] sm:$0xff]  ;;  %v7363_v47 = vld [vmem:[%s13014_s1 + $0x170] sm:$0xff] }
  0x1e   :  { %9507 = vmatpush3.bf16.msra.mxu1 %v9504_v16  ;;  %v7364_v48 = vld [vmem:[%s13014_s1 + $0x178] sm:$0xff]  ;;  %v9520_v49 = vpack.c.bf16 %v101_v46, %v100_v45  ;;  %v10387_v50 = vld [vmem:[%s13013_s0 + $0x80] sm:$0xff]  ;;  %v10392_v51 = vld [vmem:[%s13013_s0 + $0x88] sm:$0xff] }
  0x1f   :  { %9571 = vmatpush3.bf16.msra.mxu0 %v10281_v19  ;;  %9509 = vmatprep.subr.bf16.mxu1 %v9508_v24  ;;  %v9588_v52 = vpack.c.bf16 %v7364_v48, %v7363_v47  ;;  %v7493_v53 = vld [vmem:[%s13014_s1 + $0x180] sm:$0xff]  ;;  %v7494_v54 = vld [vmem:[%s13014_s1 + $0x188] sm:$0xff]  ;;  %v102_v55 = vld [vmem:[%s13014_s1 + $0x30] sm:$0xff] }
  0x20   :  { %9573 = vmatprep.subr.bf16.mxu0 %v10301_v25  ;;  %v10414_v56 = vld [vmem:[%s13013_s0 + $0x90] sm:$0xff]  ;;  %v10419_v57 = vld [vmem:[%s13013_s0 + $0xa0] sm:$0xff]  ;;  %v103_v58 = vld [vmem:[%s13014_s1 + $0x38] sm:$0xff]  ;;  %v10429_v60 = vpack.c.bf16 %v7494_v54, %v7493_v53 }
  0x21   :  { %13074 = vst [vmem:[#allocation9_spill] sm:$0xff] %v10414_v56  ;;  %v10427_v59 = vld [vmem:[%s13013_s0 + $0xa8] sm:$0xff]  ;;  %v9524_v61 = vpack.c.bf16 %v103_v58, %v102_v55  ;;  %v10442_v62 = vld [vmem:[%s13013_s0 + $0xb0] sm:$0xff]  ;;  %v10447_v63 = vld [vmem:[%s13013_s0 + $0xb8] sm:$0xff] }
  0x22   :  { %9511 = vmatpush3.bf16.msra.mxu1 %v9508_v24  ;;  %v6949_v0 = vld [vmem:[%s13014_s1 + $0x80] sm:$0xff]  ;;  %v6950_v1 = vld [vmem:[%s13014_s1 + $0x88] sm:$0xff]  ;;  %v10488_v5 = vld [vmem:[%s13013_s0 + $0xd0] sm:$0xff] }
  0x23   :  { %9575 = vmatpush3.bf16.msra.mxu0 %v10301_v25  ;;  %9513 = vmatprep.subr.bf16.mxu1 %v9512_v30  ;;  %v10467_v2 = vld [vmem:[%s13013_s0 + $0xc0] sm:$0xff]  ;;  %v10469_v3 = vpack.c.bf16 %v6950_v1, %v6949_v0  ;;  %v10474_v4 = vld [vmem:[%s13013_s0 + $0xc8] sm:$0xff]  ;;  %v10493_v6 = vld [vmem:[%s13013_s0 + $0xd8] sm:$0xff] }
  0x24   :  { %9577 = vmatprep.subr.bf16.mxu0 %v9576_v31  ;;  %v10506_v8 = vld [vmem:[%s13013_s0 + $0xe0] sm:$0xff]  ;;  %v10511_v9 = vld [vmem:[%s13013_s0 + $0xf0] sm:$0xff]  ;;  %v10516_v10 = vld [vmem:[%s13013_s0 + $0xf8] sm:$0xff] }
  0x25   :  { %8505 = vmatmul.mubr.msk.f32.vlgmr.msra.gmra.mrb[0].mxu1 %vm178_vm0, %v10278_v18  ;;  %13075 = vst [vmem:[#allocation10_spill] sm:$0xff] %v10506_v8  ;;  %v10529_v11 = vld [vmem:[%s13013_s0 + $0x100] sm:$0xff]  ;;  %v10534_v13 = vld [vmem:[%s13013_s0 + $0x108] sm:$0xff]  ;;  %v10547_v14 = vld [vmem:[%s13013_s0 + $0x110] sm:$0xff] }
  0x26   :  { %8953 = vmatmul.mubr.msk.f32.vlgmr.msra.gmra.mrb[0].mxu0 %vm178_vm0, %v10333_v36  ;;  %9515 = vmatpush3.bf16.msra.mxu1 %v9512_v30  ;;  %v10552_v15 = vld [vmem:[%s13013_s0 + $0x118] sm:$0xff]  ;;  %v10565_v16 = vld [vmem:[%s13013_s0 + $0x120] sm:$0xff]  ;;  %v10570_v20 = vld [vmem:[%s13013_s0 + $0x128] sm:$0xff] }
  0x27   :  { %9579 = vmatpush3.bf16.msra.mxu0 %v9576_v31  ;;  %8507 = vmatprep.mubr.msk.f32.mxu1 %vm178_vm0, %v10333_v36  ;;  %v10583_v21 = vld [vmem:[%s13013_s0 + $0x130] sm:$0xff]  ;;  %v10588_v22 = vld [vmem:[%s13013_s0 + $0x140] sm:$0xff]  ;;  %v10593_v23 = vld [vmem:[%s13013_s0 + $0x148] sm:$0xff] }
  0x28   :  { %8955 = vmatprep.mubr.msk.f32.mxu0 %vm178_vm0, %v10340_v38  ;;  %9581 = vmatprep.subr.bf16.mxu0 %v9580_v37  ;;  %13076 = vst [vmem:[#allocation11_spill] sm:$0xff] %v10583_v21  ;;  %v10606_v24 = vld [vmem:[%s13013_s0 + $0x150] sm:$0xff]  ;;  %v10611_v26 = vld [vmem:[%s13013_s0 + $0x158] sm:$0xff]  ;;  %v10624_v27 = vld [vmem:[%s13013_s0 + $0x160] sm:$0xff] }
  0x29   :  { %8508 = vmatmul.mubr.msk.f32.gmra.mrb[2].mxu1 %vm178_vm0, %v10340_v38  ;;  %9517 = vmatprep.subr.bf16.mxu1 %v9516_v39  ;;  %v10629_v28 = vld [vmem:[%s13013_s0 + $0x168] sm:$0xff]  ;;  %v10642_v29 = vld [vmem:[%s13013_s0 + $0x170] sm:$0xff]  ;;  %v10647_v30 = vld [vmem:[%s13013_s0 + $0x178] sm:$0xff] }
  0x2a   :  { %8956 = vmatmul.mubr.msk.f32.gmra.mrb[2].mxu0 %vm178_vm0, %v10355_v42  ;;  %8510 = vmatprep.mubr.msk.f32.mxu1 %vm178_vm0, %v10355_v42  ;;  %v10660_v31 = vld [vmem:[%s13013_s0 + $0x180] sm:$0xff]  ;;  %v10665_v32 = vld [vmem:[%s13013_s0 + $0x190] sm:$0xff]  ;;  %v7496_v34 = vld [vmem:[%s13014_s1 + $0x198] sm:$0xff] }
  0x2b   :  { %8958 = vmatprep.mubr.msk.f32.mxu0 %vm178_vm0, %v10362_v43  ;;  %9583 = vmatpush3.bf16.msra.mxu0 %v9580_v37  ;;  %13077 = vst [vmem:[#allocation12_spill] sm:$0xff] %v10660_v31  ;;  %v7495_v33 = vld [vmem:[%s13014_s1 + $0x190] sm:$0xff]  ;;  %v10682_v35 = vld [vmem:[%s13013_s0 + $0x198] sm:$0xff]  ;;  %v10689_v37 = vld [vmem:[%s13013_s0 + $0x1a0] sm:$0xff] }
  0x2c   :  { %9585 = vmatprep.subr.bf16.mxu0 %v9584_v44  ;;  %9519 = vmatpush3.bf16.msra.mxu1 %v9516_v39  ;;  %13078 = vst [vmem:[#allocation13_spill] sm:$0xff] %v10689_v37  ;;  %v9596_v39 = vpack.c.bf16 %v7496_v34, %v7495_v33  ;;  %v7497_v40 = vld [vmem:[%s13014_s1 + $0x1a0] sm:$0xff]  ;;  %v7498_v41 = vld [vmem:[%s13014_s1 + $0x1a8] sm:$0xff]  ;;  %v10714_v45 = vld [vmem:[%s13013_s0 + $0x1b0] sm:$0xff] }
  0x2d   :  { %8511 = vmatmul.mubr.msk.f32.gmra.mrb[4].mxu1 %vm178_vm0, %v10362_v43  ;;  %9521 = vmatprep.subr.bf16.mxu1 %v9520_v49  ;;  %13080 = vst [vmem:[#allocation15_spill] sm:$0xff] %v10714_v45  ;;  %v9600_v46 = vpack.c.bf16 %v7498_v41, %v7497_v40  ;;  %v7499_v47 = vld [vmem:[%s13014_s1 + $0x1b0] sm:$0xff]  ;;  %v7500_v48 = vld [vmem:[%s13014_s1 + $0x1b8] sm:$0xff]  ;;  %v7629_v54 = vld [vmem:[%s13014_s1 + $0x1c0] sm:$0xff] }
  0x2e   :  { %8959 = vmatmul.mubr.msk.f32.gmra.mrb[4].mxu0 %vm178_vm0, %v10387_v50  ;;  %8513 = vmatprep.mubr.msk.f32.mxu1 %vm178_vm0, %v10387_v50  ;;  %v9604_v53 = vpack.c.bf16 %v7500_v48, %v7499_v47  ;;  %v7630_v55 = vld [vmem:[%s13014_s1 + $0x1c8] sm:$0xff]  ;;  %v10782_v1 = vld [vmem:[%s13013_s0 + $0x1f0] sm:$0xff]  ;;  %v10794_v33 = vld [vmem:[%s13013_s0 + $0x1f8] sm:$0xff] }
  0x2f   :  { %8961 = vmatprep.mubr.msk.f32.mxu0 %vm178_vm0, %v10392_v51  ;;  %9587 = vmatpush3.bf16.msra.mxu0 %v9584_v44  ;;  %v10706_v44 = vld [vmem:[%s13013_s0 + $0x1a8] sm:$0xff]  ;;  %13086 = vst [vmem:[#allocation21_spill] sm:$0xff] %v10782_v1  ;;  %13087 = vst [vmem:[#allocation22_spill] sm:$0xff] %v10794_v33  ;;  %v10801_v34 = vld [vmem:[%s13013_s0 + $0x200] sm:$0xff] }
  0x30   :  { %9589 = vmatprep.subr.bf16.mxu0 %v9588_v52  ;;  %9523 = vmatpush3.bf16.msra.mxu1 %v9520_v49  ;;  %13079 = vst [vmem:[#allocation14_spill] sm:$0xff] %v10706_v44  ;;  %v10731_v49 = vld [vmem:[%s13013_s0 + $0x1b8] sm:$0xff]  ;;  %v10755_v58 = vld [vmem:[%s13013_s0 + $0x1c8] sm:$0xff]  ;;  %13088 = vst [vmem:[#allocation23_spill] sm:$0xff] %v10801_v34 }
  0x31   :  { %8514 = vmatmul.mubr.msk.f32.gmra.mrb[6].mxu1 %vm178_vm0, %v10392_v51  ;;  %9525 = vmatprep.subr.bf16.mxu1 %v9524_v61  ;;  %13081 = vst [vmem:[#allocation16_spill] sm:$0xff] %v10731_v49  ;;  %13083 = vst [vmem:[#allocation18_spill] sm:$0xff] %v10755_v58  ;;  %v10775_v0 = vld [vmem:[%s13013_s0 + $0x1e8] sm:$0xff]  ;;  %v10819_v40 = vld [vmem:[%s13013_s0 + $0x210] sm:$0xff] }
  0x32   :  { %8962 = vmatmul.mubr.msk.f32.gmra.mrb[6].mxu0 %vm178_vm0, %v10414_v56  ;;  %8516 = vmatprep.mubr.msk.f32.mxu1 %vm178_vm0, %v10419_v57  ;;  %13085 = vst [vmem:[#allocation20_spill] sm:$0xff] %v10775_v0  ;;  %v10830_v41 = vld [vmem:[%s13013_s0 + $0x218] sm:$0xff]  ;;  %v10855_v48 = vld [vmem:[%s13013_s0 + $0x240] sm:$0xff]  ;;  %v10902_v19 = vld [vmem:[%s13013_s0 + $0x268] sm:$0xff] }
  0x33   :  { %8964 = vmatprep.mubr.msk.f32.mxu0 %vm178_vm0, %v10427_v59  ;;  %9591 = vmatpush3.bf16.msra.mxu0 %v9588_v52  ;;  %v10738_v52 = vld [vmem:[%s13013_s0 + $0x1c0] sm:$0xff]  ;;  %v10848_v47 = vld [vmem:[%s13013_s0 + $0x238] sm:$0xff]  ;;  %v10917_v7 = vld [vmem:[%s13013_s0 + $0x288] sm:$0xff] }
  0x34   :  { %9593 = vmatprep.subr.bf16.mxu0 %v10429_v60  ;;  %9527 = vmatpush3.bf16.msra.mxu1 %v9524_v61  ;;  %13082 = vst [vmem:[#allocation17_spill] sm:$0xff] %v10738_v52  ;;  %v10764_v61 = vpack.c.bf16 %v7630_v55, %v7629_v54  ;;  %v10873_v54 = vld [vmem:[%s13013_s0 + $0x250] sm:$0xff]  ;;  %v10884_v55 = vld [vmem:[%s13013_s0 + $0x258] sm:$0xff]  ;;  %v10891_v25 = vld [vmem:[%s13013_s0 + $0x260] sm:$0xff] }
  0x35   :  { %8517 = vmatmul.mubr.msk.f32.gmra.mrb[8].mxu1 %vm178_vm0, %v10427_v59  ;;  %9529 = vmatprep.subr.bf16.mxu1 %v10469_v3  ;;  %v6741_v12 = vld [vmem:[%s13013_s0 + $0x280] sm:$0xff]  ;;  %v10978_v56 = vld [vmem:[%s13013_s0 + $0x1d0] sm:$0xff] }
  0x36   :  { %8965 = vmatmul.mubr.msk.f32.gmra.mrb[8].mxu0 %vm178_vm0, %v10442_v62  ;;  %8519 = vmatprep.mubr.msk.f32.mxu1 %vm178_vm0, %v10442_v62  ;;  %13090 = vst [vmem:[#allocation25_spill] sm:$0xff] %v10978_v56 }
  0x37   :  { %8967 = vmatprep.mubr.msk.f32.mxu0 %vm178_vm0, %v10447_v63 }
  0x39   :  { %8520 = vmatmul.mubr.msk.f32.gmra.mrb[10].mxu1 %vm178_vm0, %v10447_v63 }
  0x3a   :  { %8968 = vmatmul.mubr.msk.f32.gmra.mrb[10].mxu0 %vm178_vm0, %v10467_v2  ;;  %8522 = vmatprep.mubr.msk.f32.mxu1 %vm178_vm0, %v10467_v2 }
  0x3b   :  { %8970 = vmatprep.mubr.msk.f32.mxu0 %vm178_vm0, %v10474_v4 }
  0x3d   :  { %8523 = vmatmul.mubr.msk.f32.gmra.mrb[12].mxu1 %vm178_vm0, %v10474_v4 }
  0x3e   :  { %8971 = vmatmul.mubr.msk.f32.gmra.mrb[12].mxu0 %vm178_vm0, %v10488_v5  ;;  %8525 = vmatprep.mubr.msk.f32.mxu1 %vm178_vm0, %v10488_v5 }
  0x3f   :  { %8973 = vmatprep.mubr.msk.f32.mxu0 %vm178_vm0, %v10493_v6 }
  0x41   :  { %8526 = vmatmul.mubr.msk.f32.gmra.mrb[14].mxu1 %vm178_vm0, %v10493_v6 }
  0x42   :  { %8974 = vmatmul.mubr.msk.f32.gmra.mrb[14].mxu0 %vm178_vm0, %v10506_v8  ;;  %8528 = vmatprep.mubr.msk.f32.mxu1 %vm178_vm0, %v10511_v9 }
  0x43   :  { %8976 = vmatprep.mubr.msk.f32.mxu0 %vm178_vm0, %v10516_v10 }
  0x45   :  { %8529 = vmatmul.mubr.msk.f32.gmra.mrb[16].mxu1 %vm178_vm0, %v10516_v10 }
  0x46   :  { %8977 = vmatmul.mubr.msk.f32.gmra.mrb[16].mxu0 %vm178_vm0, %v10529_v11  ;;  %8531 = vmatprep.mubr.msk.f32.mxu1 %vm178_vm0, %v10529_v11 }
  0x47   :  { %8979 = vmatprep.mubr.msk.f32.mxu0 %vm178_vm0, %v10534_v13 }
  0x49   :  { %8532 = vmatmul.mubr.msk.f32.gmra.mrb[18].mxu1 %vm178_vm0, %v10534_v13 }
  0x4a   :  { %8980 = vmatmul.mubr.msk.f32.gmra.mrb[18].mxu0 %vm178_vm0, %v10547_v14  ;;  %8534 = vmatprep.mubr.msk.f32.mxu1 %vm178_vm0, %v10547_v14 }
  0x4b   :  { %8982 = vmatprep.mubr.msk.f32.mxu0 %vm178_vm0, %v10552_v15 }
  0x4d   :  { %8535 = vmatmul.mubr.msk.f32.gmra.mrb[20].mxu1 %vm178_vm0, %v10552_v15 }
  0x4e   :  { %8983 = vmatmul.mubr.msk.f32.gmra.mrb[20].mxu0 %vm178_vm0, %v10565_v16  ;;  %8537 = vmatprep.mubr.msk.f32.mxu1 %vm178_vm0, %v10565_v16 }
  0x4f   :  { %8985 = vmatprep.mubr.msk.f32.mxu0 %vm178_vm0, %v10570_v20 }
  0x51   :  { %8538 = vmatmul.mubr.msk.f32.gmra.mrb[22].mxu1 %vm178_vm0, %v10570_v20 }
  0x52   :  { %8986 = vmatmul.mubr.msk.f32.gmra.mrb[22].mxu0 %vm178_vm0, %v10583_v21  ;;  %8540 = vmatprep.mubr.msk.f32.mxu1 %vm178_vm0, %v10588_v22 }
  0x53   :  { %8988 = vmatprep.mubr.msk.f32.mxu0 %vm178_vm0, %v10593_v23 }
  0x55   :  { %8541 = vmatmul.mubr.msk.f32.gmra.mrb[24].mxu1 %vm178_vm0, %v10593_v23 }
  0x56   :  { %8989 = vmatmul.mubr.msk.f32.gmra.mrb[24].mxu0 %vm178_vm0, %v10606_v24  ;;  %8543 = vmatprep.mubr.msk.f32.mxu1 %vm178_vm0, %v10606_v24 }
  0x57   :  { %8991 = vmatprep.mubr.msk.f32.mxu0 %vm178_vm0, %v10611_v26 }
  0x59   :  { %8544 = vmatmul.mubr.msk.f32.gmra.mrb[26].mxu1 %vm178_vm0, %v10611_v26 }
  0x5a   :  { %8992 = vmatmul.mubr.msk.f32.gmra.mrb[26].mxu0 %vm178_vm0, %v10624_v27  ;;  %8546 = vmatprep.mubr.msk.f32.mxu1 %vm178_vm0, %v10624_v27 }
  0x5b   :  { %8994 = vmatprep.mubr.msk.f32.mxu0 %vm178_vm0, %v10629_v28 }
  0x5d   :  { %8547 = vmatmul.mubr.msk.f32.gmra.mrb[28].mxu1 %vm178_vm0, %v10629_v28 }
  0x5e   :  { %8995 = vmatmul.mubr.msk.f32.gmra.mrb[28].mxu0 %vm178_vm0, %v10642_v29  ;;  %8549 = vmatprep.mubr.msk.f32.mxu1 %vm178_vm0, %v10642_v29 }
  0x5f   :  { %8997 = vmatprep.mubr.msk.f32.mxu0 %vm178_vm0, %v10647_v30 }
  0x61   :  { %8550 = vmatmul.mubr.msk.f32.gmra.mrb[30].mxu1 %vm178_vm0, %v10647_v30 }
  0x62   :  { %8998 = vmatmul.mubr.msk.f32.gmra.mrb[30].mxu0 %vm178_vm0, %v10660_v31  ;;  %8552 = vmatprep.mubr.msk.f32.mxu1 %vm178_vm0, %v10665_v32 }
  0x63   :  { %9064 = vmatprep.mubr.msk.f32.mxu0 %vm178_vm0, %v10427_v59 }
  0x65   :  { %8553 = vmatmul.mubr.msk.f32.gmra.mrb[32].mxu1 %vm178_vm0, %v10682_v35 }
  0x66   :  { %9065 = vmatmul.mubr.msk.f32.vlgmr.msra.gmra.mrb[0].mxu0 %vm178_vm0, %v10442_v62  ;;  %8555 = vmatprep.mubr.msk.f32.mxu1 %vm178_vm0, %v10689_v37 }
  0x67   :  { %9595 = vmatpush3.bf16.msra.mxu0 %v10429_v60  ;;  %9067 = vmatprep.mubr.msk.f32.mxu0 %vm178_vm0, %v10447_v63  ;;  %v10762_v60 = vld [vmem:[%s13013_s0 + $0x1e0] sm:$0xff] }
  0x68   :  { %9597 = vmatprep.subr.bf16.mxu0 %v9596_v39  ;;  %13084 = vst [vmem:[#allocation19_spill] sm:$0xff] %v10762_v60 }
  0x69   :  { %8556 = vmatmul.mubr.msk.f32.gmra.mrb[34].mxu1 %vm178_vm0, %v10706_v44 }
  0x6a   :  { %9068 = vmatmul.mubr.msk.f32.gmra.mrb[2].mxu0 %vm178_vm0, %v10467_v2  ;;  %8558 = vmatprep.mubr.msk.f32.mxu1 %vm178_vm0, %v10714_v45 }
  0x6b   :  { %9070 = vmatprep.mubr.msk.f32.mxu0 %vm178_vm0, %v10474_v4  ;;  %9599 = vmatpush3.bf16.msra.mxu0 %v9596_v39  ;;  %v10812_v39 = vld [vmem:[%s13013_s0 + $0x208] sm:$0xff] }
  0x6c   :  { %9601 = vmatprep.subr.bf16.mxu0 %v9600_v46 }
  0x6d   :  { %8559 = vmatmul.mubr.msk.f32.gmra.mrb[36].mxu1 %vm178_vm0, %v10731_v49 }
  0x6e   :  { %9071 = vmatmul.mubr.msk.f32.gmra.mrb[4].mxu0 %vm178_vm0, %v10488_v5  ;;  %8561 = vmatprep.mubr.msk.f32.mxu1 %vm178_vm0, %v10738_v52 }
  0x6f   :  { %9073 = vmatprep.mubr.msk.f32.mxu0 %vm178_vm0, %v10493_v6  ;;  %9603 = vmatpush3.bf16.msra.mxu0 %v9600_v46  ;;  %v10837_v46 = vld [vmem:[%s13013_s0 + $0x230] sm:$0xff] }
  0x70   :  { %9605 = vmatprep.subr.bf16.mxu0 %v9604_v53  ;;  %13089 = vst [vmem:[#allocation24_spill] sm:$0xff] %v10837_v46 }
  0x71   :  { %8562 = vmatmul.mubr.msk.f32.gmra.mrb[38].mxu1 %vm178_vm0, %v10755_v58 }
  0x72   :  { %9074 = vmatmul.mubr.msk.f32.gmra.mrb[6].mxu0 %vm178_vm0, %v10506_v8  ;;  %8564 = vmatprep.mubr.msk.f32.mxu1 %vm178_vm0, %v10762_v60  ;;  %v10960_v8 = vld [vmem:[%s13013_s0 + $0x2b0] sm:$0xff]  ;;  %v10971_v60 = vld [vmem:[%s13013_s0 + $0x2b8] sm:$0xff] }
  0x73   :  { %9076 = vmatprep.mubr.msk.f32.mxu0 %vm178_vm0, %v10516_v10  ;;  %9607 = vmatpush3.bf16.msra.mxu0 %v9604_v53  ;;  %v10866_v53 = vld [vmem:[%s13013_s0 + $0x248] sm:$0xff] }
  0x74   :  { %9609 = vmatprep.subr.bf16.mxu0 %v10764_v61 }
  0x75   :  { %8565 = vmatmul.mubr.msk.f32.gmra.mrb[40].mxu1 %vm178_vm0, %v10775_v0 }
  0x76   :  { %9077 = vmatmul.mubr.msk.f32.gmra.mrb[8].mxu0 %vm178_vm0, %v10529_v11  ;;  %8567 = vmatprep.mubr.msk.f32.mxu1 %vm178_vm0, %v10782_v1 }
  0x77   :  { %9079 = vmatprep.mubr.msk.f32.mxu0 %vm178_vm0, %v10534_v13 }
  0x79   :  { %8568 = vmatmul.mubr.msk.f32.gmra.mrb[42].mxu1 %vm178_vm0, %v10794_v33 }
  0x7a   :  { %9080 = vmatmul.mubr.msk.f32.gmra.mrb[10].mxu0 %vm178_vm0, %v10547_v14  ;;  %8570 = vmatprep.mubr.msk.f32.mxu1 %vm178_vm0, %v10801_v34 }
  0x7b   :  { %9082 = vmatprep.mubr.msk.f32.mxu0 %vm178_vm0, %v10552_v15 }
  0x7d   :  { %8571 = vmatmul.mubr.msk.f32.gmra.mrb[44].mxu1 %vm178_vm0, %v10812_v39 }
  0x7e   :  { %9083 = vmatmul.mubr.msk.f32.gmra.mrb[12].mxu0 %vm178_vm0, %v10565_v16  ;;  %8573 = vmatprep.mubr.msk.f32.mxu1 %vm178_vm0, %v10819_v40 }
  0x7f   :  { %9085 = vmatprep.mubr.msk.f32.mxu0 %vm178_vm0, %v10570_v20 }
  0x81   :  { %8574 = vmatmul.mubr.msk.f32.gmra.mrb[46].mxu1 %vm178_vm0, %v10830_v41 }
  0x82   :  { %9086 = vmatmul.mubr.msk.f32.gmra.mrb[14].mxu0 %vm178_vm0, %v10583_v21  ;;  %8576 = vmatprep.mubr.msk.f32.mxu1 %vm178_vm0, %v10837_v46  ;;  %v10924_v21 = vld [vmem:[%s13013_s0 + $0x290] sm:$0xff]  ;;  %v10953_v46 = vld [vmem:[%s13013_s0 + $0x2a8] sm:$0xff] }
  0x83   :  { %9088 = vmatprep.mubr.msk.f32.mxu0 %vm178_vm0, %v10593_v23 }
  0x85   :  { %8577 = vmatmul.mubr.msk.f32.gmra.mrb[48].mxu1 %vm178_vm0, %v10848_v47 }
  0x86   :  { %9089 = vmatmul.mubr.msk.f32.gmra.mrb[16].mxu0 %vm178_vm0, %v10606_v24  ;;  %8579 = vmatprep.mubr.msk.f32.mxu1 %vm178_vm0, %v10855_v48 }
  0x87   :  { %9091 = vmatprep.mubr.msk.f32.mxu0 %vm178_vm0, %v10611_v26 }
  0x89   :  { %8580 = vmatmul.mubr.msk.f32.gmra.mrb[50].mxu1 %vm178_vm0, %v10866_v53 }
  0x8a   :  { %9092 = vmatmul.mubr.msk.f32.gmra.mrb[18].mxu0 %vm178_vm0, %v10624_v27  ;;  %8582 = vmatprep.mubr.msk.f32.mxu1 %vm178_vm0, %v10873_v54 }
  0x8b   :  { %9094 = vmatprep.mubr.msk.f32.mxu0 %vm178_vm0, %v10629_v28 }
  0x8d   :  { %8583 = vmatmul.mubr.msk.f32.gmra.mrb[52].mxu1 %vm178_vm0, %v10884_v55 }
  0x8e   :  { %9095 = vmatmul.mubr.msk.f32.gmra.mrb[20].mxu0 %vm178_vm0, %v10642_v29  ;;  %8585 = vmatprep.mubr.msk.f32.mxu1 %vm178_vm0, %v10891_v25 }
  0x8f   :  { %9097 = vmatprep.mubr.msk.f32.mxu0 %vm178_vm0, %v10647_v30 }
  0x91   :  { %8586 = vmatmul.mubr.msk.f32.gmra.mrb[54].mxu1 %vm178_vm0, %v10902_v19 }
  0x92   :  { %9098 = vmatmul.mubr.msk.f32.gmra.mrb[22].mxu0 %vm178_vm0, %v10660_v31  ;;  %8588 = vmatprep.mubr.msk.f32.mxu1 %vm178_vm0, %v6741_v12  ;;  %v10935_v12 = vld [vmem:[%s13013_s0 + $0x298] sm:$0xff]  ;;  %v10942_v31 = vld [vmem:[%s13013_s0 + $0x2a0] sm:$0xff] }
  0x93   :  { %9100 = vmatprep.mubr.msk.f32.mxu0 %vm178_vm0, %v10682_v35 }
  0x95   :  { %8589 = vmatmul.mubr.msk.f32.gmra.mrb[56].mxu1 %vm178_vm0, %v10917_v7 }
  0x96   :  { %9101 = vmatmul.mubr.msk.f32.gmra.mrb[24].mxu0 %vm178_vm0, %v10689_v37  ;;  %8591 = vmatprep.mubr.msk.f32.mxu1 %vm178_vm0, %v10924_v21 }
  0x97   :  { %9103 = vmatprep.mubr.msk.f32.mxu0 %vm178_vm0, %v10706_v44  ;;  %v11002_v44 = vld [vmem:[%s13013_s0 + $0x10] sm:$0xff] }
  0x99   :  { %8592 = vmatmul.mubr.msk.f32.gmra.mrb[58].mxu1 %vm178_vm0, %v10935_v12 }
  0x9a   :  { %9104 = vmatmul.mubr.msk.f32.gmra.mrb[26].mxu0 %vm178_vm0, %v10714_v45  ;;  %8594 = vmatprep.mubr.msk.f32.mxu1 %vm178_vm0, %v10942_v31  ;;  %v33_v45 = vld [vmem:[%s13013_s0 + $0x8] sm:$0xff] }
  0x9b   :  { %9106 = vmatprep.mubr.msk.f32.mxu0 %vm178_vm0, %v10731_v49  ;;  %v6951_v49 = vld [vmem:[%s13014_s1 + $0x90] sm:$0xff] }
  0x9d   :  { %8595 = vmatmul.mubr.msk.f32.gmra.mrb[60].mxu1 %vm178_vm0, %v10953_v46 }
  0x9e   :  { %9107 = vmatmul.mubr.msk.f32.gmra.mrb[28].mxu0 %vm178_vm0, %v10738_v52  ;;  %8597 = vmatprep.mubr.msk.f32.mxu1 %vm178_vm0, %v10960_v8  ;;  %v32_v52 = vld [vmem:[%s13013_s0] sm:$0xff] }
  0x9f   :  { %9109 = vmatprep.mubr.msk.f32.mxu0 %vm178_vm0, %v10755_v58  ;;  %v6952_v58 = vld [vmem:[%s13014_s1 + $0x98] sm:$0xff] }
  0xa0   :  { %v9532_v37 = vpack.c.bf16 %v6952_v58, %v6951_v49  ;;  %v6956_v58 = vld [vmem:[%s13014_s1 + $0xb8] sm:$0xff] }
  0xa1   :  { %8598 = vmatmul.mubr.msk.f32.gmra.mrb[62].mxu1 %vm178_vm0, %v10971_v60 }
  0xa2   :  { %9110 = vmatmul.mubr.msk.f32.gmra.mrb[30].mxu0 %vm178_vm0, %v10978_v56  ;;  %8616 = vmatprep.mubr.msk.f32.mxu1 %vm178_vm0, %v32_v52  ;;  %v6953_v56 = vld [vmem:[%s13014_s1 + $0xa0] sm:$0xff]  ;;  %v6954_v52 = vld [vmem:[%s13014_s1 + $0xa8] sm:$0xff] }
  0xa3   :  { %9112 = vmatprep.mubr.msk.f32.mxu0 %vm178_vm0, %v10775_v0  ;;  %v11017_v0 = vld [vmem:[%s13013_s0 + $0x18] sm:$0xff]  ;;  %v9536_v49 = vpack.c.bf16 %v6954_v52, %v6953_v56  ;;  %v11043_v56 = vld [vmem:[%s13013_s0 + $0x28] sm:$0xff]  ;;  %v11050_v52 = vld [vmem:[%s13013_s0 + $0x30] sm:$0xff] }
  0xa5   :  { %8617 = vmatmul.mubr.msk.f32.vlgmr.msra.gmra.mrb[0].mxu1 %vm178_vm0, %v33_v45  ;;  %v11026_v45 = vld [vmem:[%s13013_s0 + $0x20] sm:$0xff] }
  0xa6   :  { %9113 = vmatmul.mubr.msk.f32.gmra.mrb[32].mxu0 %vm178_vm0, %v10782_v1  ;;  %9531 = vmatpush3.bf16.msra.mxu1 %v10469_v3  ;;  %v6955_v3 = vld [vmem:[%s13014_s1 + $0xb0] sm:$0xff]  ;;  %v7086_v1 = vld [vmem:[%s13014_s1 + $0xc8] sm:$0xff] }
  0xa7   :  { %8619 = vmatprep.mubr.msk.f32.mxu1 %vm178_vm0, %v11002_v44  ;;  %9115 = vmatprep.mubr.msk.f32.mxu0 %vm178_vm0, %v10794_v33  ;;  %v9540_v33 = vpack.c.bf16 %v6956_v58, %v6955_v3  ;;  %v11074_v3 = vld [vmem:[%s13013_s0 + $0x220] sm:$0xff] }
  0xa8   :  { %9533 = vmatprep.subr.bf16.mxu1 %v9532_v37 }
  0xa9   :  { %8620 = vmatmul.mubr.msk.f32.gmra.mrb[2].mxu1 %vm178_vm0, %v11017_v0 }
  0xaa   :  { %9116 = vmatmul.mubr.msk.f32.gmra.mrb[34].mxu0 %vm178_vm0, %v10801_v34  ;;  %8622 = vmatprep.mubr.msk.f32.mxu1 %vm178_vm0, %v11026_v45  ;;  %v7085_v34 = vld [vmem:[%s13014_s1 + $0xc0] sm:$0xff] }
  0xab   :  { %9118 = vmatprep.mubr.msk.f32.mxu0 %vm178_vm0, %v10812_v39  ;;  %9535 = vmatpush3.bf16.msra.mxu1 %v9532_v37  ;;  %v11067_v37 = vld [vmem:[%s13013_s0 + $0x38] sm:$0xff]  ;;  %v11076_v58 = vpack.c.bf16 %v7086_v1, %v7085_v34  ;;  %v7633_v34 = vld [vmem:[%s13014_s1 + $0x1e0] sm:$0xff] }
  0xac   :  { %9537 = vmatprep.subr.bf16.mxu1 %v9536_v49  ;;  %v7632_v1 = vld [vmem:[%s13014_s1 + $0x1d8] sm:$0xff] }
  0xad   :  { %8623 = vmatmul.mubr.msk.f32.gmra.mrb[4].mxu1 %vm178_vm0, %v11043_v56 }
  0xae   :  { %9119 = vmatmul.mubr.msk.f32.gmra.mrb[36].mxu0 %vm178_vm0, %v10819_v40  ;;  %8625 = vmatprep.mubr.msk.f32.mxu1 %vm178_vm0, %v11050_v52 }
  0xaf   :  { %9121 = vmatprep.mubr.msk.f32.mxu0 %vm178_vm0, %v10830_v41  ;;  %9539 = vmatpush3.bf16.msra.mxu1 %v9536_v49  ;;  %v7436_v49 = vld [vmem:[%s13013_s0 + $0x48] sm:$0xff] }
  0xb0   :  { %9541 = vmatprep.subr.bf16.mxu1 %v9540_v33 }
  0xb1   :  { %8626 = vmatmul.mubr.msk.f32.gmra.mrb[6].mxu1 %vm178_vm0, %v11067_v37 }
  0xb2   :  { %9122 = vmatmul.mubr.msk.f32.gmra.mrb[38].mxu0 %vm178_vm0, %v11074_v3  ;;  %8628 = vmatprep.mubr.msk.f32.mxu1 %vm178_vm0, %v10273_v17  ;;  %v11114_v17 = vld [vmem:[%s13013_s0 + $0x270] sm:$0xff] }
  0xb3   :  { %9124 = vmatprep.mubr.msk.f32.mxu0 %vm178_vm0, %v10848_v47  ;;  %9543 = vmatpush3.bf16.msra.mxu1 %v9540_v33 }
  0xb4   :  { %9545 = vmatprep.subr.bf16.mxu1 %v11076_v58 }
  0xb5   :  { %8629 = vmatmul.mubr.msk.f32.gmra.mrb[8].mxu1 %vm178_vm0, %v10278_v18  ;;  %v11154_v18 = vld [vmem:[%s13013_s0 + $0x2d8] sm:$0xff] }
  0xb6   :  { %9125 = vmatmul.mubr.msk.f32.gmra.mrb[40].mxu0 %vm178_vm0, %v10855_v48  ;;  %8631 = vmatprep.mubr.msk.f32.mxu1 %vm178_vm0, %v10333_v36 }
  0xb7   :  { %9127 = vmatprep.mubr.msk.f32.mxu0 %vm178_vm0, %v10866_v53 }
  0xb9   :  { %8632 = vmatmul.mubr.msk.f32.gmra.mrb[10].mxu1 %vm178_vm0, %v10340_v38 }
  0xba   :  { %9128 = vmatmul.mubr.msk.f32.gmra.mrb[42].mxu0 %vm178_vm0, %v10873_v54  ;;  %8634 = vmatprep.mubr.msk.f32.mxu1 %vm178_vm0, %v10355_v42 }
  0xbb   :  { %9130 = vmatprep.mubr.msk.f32.mxu0 %vm178_vm0, %v10884_v55 }
  0xbd   :  { %8635 = vmatmul.mubr.msk.f32.gmra.mrb[12].mxu1 %vm178_vm0, %v10362_v43 }
  0xbe   :  { %9131 = vmatmul.mubr.msk.f32.gmra.mrb[44].mxu0 %vm178_vm0, %v10891_v25  ;;  %8637 = vmatprep.mubr.msk.f32.mxu1 %vm178_vm0, %v10387_v50 }
  0xbf   :  { %9133 = vmatprep.mubr.msk.f32.mxu0 %vm178_vm0, %v10902_v19 }
  0xc1   :  { %8638 = vmatmul.mubr.msk.f32.gmra.mrb[14].mxu1 %vm178_vm0, %v10392_v51 }
  0xc2   :  { %9134 = vmatmul.mubr.msk.f32.gmra.mrb[46].mxu0 %vm178_vm0, %v11114_v17  ;;  %8640 = vmatprep.mubr.msk.f32.mxu1 %vm178_vm0, %v10419_v57  ;;  %v11166_v57 = vld [vmem:[%s13013_s0 + $0x2e0] sm:$0xff] }
  0xc3   :  { %9136 = vmatprep.mubr.msk.f32.mxu0 %vm178_vm0, %v10917_v7  ;;  %v7348_v7 = vld [vmem:[%s13013_s0 + $0x2c0] sm:$0xff] }
  0xc5   :  { %8641 = vmatmul.mubr.msk.f32.gmra.mrb[16].mxu1 %vm178_vm0, %v10427_v59  ;;  %v11171_v59 = vld [vmem:[%s13013_s0 + $0x2e8] sm:$0xff] }
  0xc6   :  { %9137 = vmatmul.mubr.msk.f32.gmra.mrb[48].mxu0 %vm178_vm0, %v10924_v21  ;;  %8643 = vmatprep.mubr.msk.f32.mxu1 %vm178_vm0, %v10442_v62  ;;  %v11207_v21 = vld [vmem:[%s13013_s0 + $0x308] sm:$0xff] }
  0xc7   :  { %9139 = vmatprep.mubr.msk.f32.mxu0 %vm178_vm0, %v10935_v12  ;;  %v7765_v12 = vld [vmem:[%s13014_s1 + $0x200] sm:$0xff] }
  0xc9   :  { %8644 = vmatmul.mubr.msk.f32.gmra.mrb[18].mxu1 %vm178_vm0, %v10447_v63 }
  0xca   :  { %9140 = vmatmul.mubr.msk.f32.gmra.mrb[50].mxu0 %vm178_vm0, %v10942_v31  ;;  %8646 = vmatprep.mubr.msk.f32.mxu1 %vm178_vm0, %v10467_v2  ;;  %v7356_v31 = vld [vmem:[%s13013_s0 + $0x310] sm:$0xff] }
  0xcb   :  { %9142 = vmatprep.mubr.msk.f32.mxu0 %vm178_vm0, %v10953_v46  ;;  %v7634_v46 = vld [vmem:[%s13014_s1 + $0x1e8] sm:$0xff] }
  0xcd   :  { %8647 = vmatmul.mubr.msk.f32.gmra.mrb[20].mxu1 %vm178_vm0, %v10474_v4 }
  0xce   :  { %9143 = vmatmul.mubr.msk.f32.gmra.mrb[52].mxu0 %vm178_vm0, %v10960_v8  ;;  %8649 = vmatprep.mubr.msk.f32.mxu1 %vm178_vm0, %v10488_v5  ;;  %v11184_v8 = vld [vmem:[%s13013_s0 + $0x2f0] sm:$0xff] }
  0xcf   :  { %9145 = vmatprep.mubr.msk.f32.mxu0 %vm178_vm0, %v10971_v60  ;;  %v7631_v60 = vld [vmem:[%s13014_s1 + $0x1d0] sm:$0xff] }
  0xd0   :  { %v9612_v33 = vpack.c.bf16 %v7632_v1, %v7631_v60  ;;  %v13102_v60 = vld [vmem:[#allocation23_spill] sm:$0xff]  ;;  %v11446_v1 = vld [vmem:[%s13013_s0 + $0xc0] sm:$0xff] }
  0xd1   :  { %8650 = vmatmul.mubr.msk.f32.gmra.mrb[22].mxu1 %vm178_vm0, %v10493_v6 }
  0xd2   :  { %9146 = vmatmul.mubr.msk.f32.gmra.mrb[54].mxu0 %vm178_vm0, %v7348_v7  ;;  %8652 = vmatprep.mubr.msk.f32.mxu1 %vm178_vm0, %v10511_v9  ;;  %v11189_v9 = vld [vmem:[%s13013_s0 + $0x2f8] sm:$0xff]  ;;  %v13100_v7 = vld [vmem:[#allocation21_spill] sm:$0xff] }
  0xd3   :  { %9148 = vmatprep.mubr.msk.f32.mxu0 %vm178_vm0, %v11154_v18 }
  0xd5   :  { %8653 = vmatmul.mubr.msk.f32.gmra.mrb[24].mxu1 %vm178_vm0, %v10516_v10  ;;  %v11202_v10 = vld [vmem:[%s13013_s0 + $0x300] sm:$0xff] }
  0xd6   :  { %9149 = vmatmul.mubr.msk.f32.gmra.mrb[56].mxu0 %vm178_vm0, %v11166_v57  ;;  %8655 = vmatprep.mubr.msk.f32.mxu1 %vm178_vm0, %v10529_v11 }
  0xd7   :  { %9151 = vmatprep.mubr.msk.f32.mxu0 %vm178_vm0, %v11171_v59 }
  0xd9   :  { %8656 = vmatmul.mubr.msk.f32.gmra.mrb[26].mxu1 %vm178_vm0, %v10534_v13 }
  0xda   :  { %9152 = vmatmul.mubr.msk.f32.gmra.mrb[58].mxu0 %vm178_vm0, %v11184_v8  ;;  %8658 = vmatprep.mubr.msk.f32.mxu1 %vm178_vm0, %v10547_v14 }
  0xdb   :  { %9154 = vmatprep.mubr.msk.f32.mxu0 %vm178_vm0, %v11189_v9 }
  0xdd   :  { %8659 = vmatmul.mubr.msk.f32.gmra.mrb[28].mxu1 %vm178_vm0, %v10552_v15 }
  0xde   :  { %9155 = vmatmul.mubr.msk.f32.gmra.mrb[60].mxu0 %vm178_vm0, %v11202_v10  ;;  %8661 = vmatprep.mubr.msk.f32.mxu1 %vm178_vm0, %v10565_v16 }
  0xdf   :  { %9157 = vmatprep.mubr.msk.f32.mxu0 %vm178_vm0, %v11207_v21 }
  0xe1   :  { %8662 = vmatmul.mubr.msk.f32.gmra.mrb[30].mxu1 %vm178_vm0, %v10570_v20 }
  0xe2   :  { %9158 = vmatmul.mubr.msk.f32.gmra.mrb[62].mxu0 %vm178_vm0, %v7356_v31  ;;  %8664 = vmatprep.mubr.msk.f32.mxu1 %vm178_vm0, %v10588_v22  ;;  %v9616_v22 = vpack.c.bf16 %v7634_v46, %v7633_v34  ;;  %v13101_v31 = vld [vmem:[#allocation22_spill] sm:$0xff] }
  0xe3   :  { %9176 = vmatprep.mubr.msk.f32.mxu0 %vm178_vm0, %v11002_v44  ;;  %v7636_v44 = vld [vmem:[%s13014_s1 + $0x1f8] sm:$0xff]  ;;  %v11470_v34 = vld [vmem:[%s13013_s0 + $0xd0] sm:$0xff] }
  0xe5   :  { %8665 = vmatmul.mubr.msk.f32.gmra.mrb[32].mxu1 %vm178_vm0, %v10593_v23  ;;  %v7635_v23 = vld [vmem:[%s13014_s1 + $0x1f0] sm:$0xff] }
  0xe6   :  { %9177 = vmatmul.mubr.msk.f32.vlgmr.msra.gmra.mrb[0].mxu0 %vm178_vm0, %v11017_v0  ;;  %8667 = vmatprep.mubr.msk.f32.mxu1 %vm178_vm0, %v10606_v24  ;;  %v9620_v0 = vpack.c.bf16 %v7636_v44, %v7635_v23  ;;  %v11501_v23 = vld [vmem:[%s13013_s0 + $0xf8] sm:$0xff]  ;;  %v11508_v44 = vld [vmem:[%s13013_s0 + $0x100] sm:$0xff] }
  0xe7   :  { %9611 = vmatpush3.bf16.msra.mxu0 %v10764_v61  ;;  %9179 = vmatprep.mubr.msk.f32.mxu0 %vm178_vm0, %v11026_v45  ;;  %v11265_v61 = vld [vmem:[%s13013_s0 + $0x40] sm:$0xff]  ;;  %v7766_v45 = vld [vmem:[%s13014_s1 + $0x208] sm:$0xff] }
  0xe8   :  { %9613 = vmatprep.subr.bf16.mxu0 %v9612_v33 }
  0xe9   :  { %8668 = vmatmul.mubr.msk.f32.gmra.mrb[34].mxu1 %vm178_vm0, %v10611_v26 }
  0xea   :  { %9180 = vmatmul.mubr.msk.f32.gmra.mrb[2].mxu0 %vm178_vm0, %v11043_v56  ;;  %8670 = vmatprep.mubr.msk.f32.mxu1 %vm178_vm0, %v10624_v27  ;;  %v11284_v56 = vpack.c.bf16 %v7766_v45, %v7765_v12  ;;  %v11520_v12 = vld [vmem:[%s13013_s0 + $0x108] sm:$0xff]  ;;  %v11527_v45 = vld [vmem:[%s13013_s0 + $0x110] sm:$0xff] }
  0xeb   :  { %9182 = vmatprep.mubr.msk.f32.mxu0 %vm178_vm0, %v11050_v52  ;;  %9615 = vmatpush3.bf16.msra.mxu0 %v9612_v33  ;;  %v13091_v52 = vld [vmem:[#allocation13_spill] sm:$0xff]  ;;  %v7092_v33 = vld [vmem:[%s13014_s1 + $0xf8] sm:$0xff] }
  0xec   :  { %9617 = vmatprep.subr.bf16.mxu0 %v9616_v22 }
  0xed   :  { %8671 = vmatmul.mubr.msk.f32.gmra.mrb[36].mxu1 %vm178_vm0, %v10629_v28 }
  0xee   :  { %9183 = vmatmul.mubr.msk.f32.gmra.mrb[4].mxu0 %vm178_vm0, %v11067_v37  ;;  %8673 = vmatprep.mubr.msk.f32.mxu1 %vm178_vm0, %v10642_v29  ;;  %v13092_v37 = vld [vmem:[#allocation14_spill] sm:$0xff] }
  0xef   :  { %9185 = vmatprep.mubr.msk.f32.mxu0 %vm178_vm0, %v11265_v61  ;;  %9619 = vmatpush3.bf16.msra.mxu0 %v9616_v22  ;;  %v11488_v22 = vld [vmem:[%s13013_s0 + $0x188] sm:$0xff]  ;;  %13109 = vst [vmem:[#allocation14_spill] sm:$0xff] %v11527_v45 }
  0xf0   :  { %9621 = vmatprep.subr.bf16.mxu0 %v9620_v0 }
  0xf1   :  { %8674 = vmatmul.mubr.msk.f32.gmra.mrb[38].mxu1 %vm178_vm0, %v10647_v30 }
  0xf2   :  { %9186 = vmatmul.mubr.msk.f32.gmra.mrb[6].mxu0 %vm178_vm0, %v7436_v49  ;;  %8676 = vmatprep.mubr.msk.f32.mxu1 %vm178_vm0, %v10665_v32  ;;  %v13094_v32 = vld [vmem:[#allocation16_spill] sm:$0xff] }
  0xf3   :  { %9188 = vmatprep.mubr.msk.f32.mxu0 %vm178_vm0, %v10333_v36  ;;  %9623 = vmatpush3.bf16.msra.mxu0 %v9620_v0  ;;  %v13093_v36 = vld [vmem:[#allocation15_spill] sm:$0xff]  ;;  %v13108_v0 = vld [vmem:[#allocation5_spill] sm:$0xff] }
  0xf4   :  { %9625 = vmatprep.subr.bf16.mxu0 %v11284_v56  ;;  %v11538_v49 = vld [vmem:[%s13013_s0 + $0x118] sm:$0xff] }
  0xf5   :  { %8677 = vmatmul.mubr.msk.f32.gmra.mrb[40].mxu1 %vm178_vm0, %v10682_v35  ;;  %v13097_v35 = vld [vmem:[#allocation18_spill] sm:$0xff]  ;;  %13110 = vst [vmem:[#allocation15_spill] sm:$0xff] %v11538_v49 }
  0xf6   :  { %9189 = vmatmul.mubr.msk.f32.gmra.mrb[8].mxu0 %vm178_vm0, %v10340_v38  ;;  %8679 = vmatprep.mubr.msk.f32.mxu1 %vm178_vm0, %v13091_v52  ;;  %v13095_v38 = vld [vmem:[#allocation17_spill] sm:$0xff] }
  0xf7   :  { %9191 = vmatprep.mubr.msk.f32.mxu0 %vm178_vm0, %v10355_v42  ;;  %v13096_v42 = vld [vmem:[#allocation9_spill] sm:$0xff] }
  0xf9   :  { %8680 = vmatmul.mubr.msk.f32.gmra.mrb[42].mxu1 %vm178_vm0, %v13092_v37 }
  0xfa   :  { %9192 = vmatmul.mubr.msk.f32.gmra.mrb[10].mxu0 %vm178_vm0, %v10362_v43  ;;  %8682 = vmatprep.mubr.msk.f32.mxu1 %vm178_vm0, %v13093_v36  ;;  %v11321_v43 = vld [vmem:[%s13013_s0 + $0x98] sm:$0xff] }
  0xfb   :  { %9194 = vmatprep.mubr.msk.f32.mxu0 %vm178_vm0, %v10387_v50  ;;  %v13098_v50 = vld [vmem:[#allocation19_spill] sm:$0xff] }
  0xfd   :  { %8683 = vmatmul.mubr.msk.f32.gmra.mrb[44].mxu1 %vm178_vm0, %v13094_v32 }
  0xfe   :  { %9195 = vmatmul.mubr.msk.f32.gmra.mrb[12].mxu0 %vm178_vm0, %v10392_v51  ;;  %8685 = vmatprep.mubr.msk.f32.mxu1 %vm178_vm0, %v13095_v38  ;;  %v13099_v51 = vld [vmem:[#allocation20_spill] sm:$0xff] }
  0xff   :  { %9197 = vmatprep.mubr.msk.f32.mxu0 %vm178_vm0, %v13096_v42  ;;  %v11576_v42 = vld [vmem:[%s13013_s0 + $0x148] sm:$0xff] }
 0x100   :  { %13113 = vst [vmem:[#allocation17_spill] sm:$0xff] %v11576_v42 }
 0x101   :  { %8686 = vmatmul.mubr.msk.f32.gmra.mrb[46].mxu1 %vm178_vm0, %v13097_v35 }
 0x102   :  { %9198 = vmatmul.mubr.msk.f32.gmra.mrb[14].mxu0 %vm178_vm0, %v11321_v43  ;;  %8688 = vmatprep.mubr.msk.f32.mxu1 %vm178_vm0, %v13098_v50  ;;  %v11594_v50 = vld [vmem:[%s13013_s0 + $0x158] sm:$0xff] }
 0x103   :  { %9200 = vmatprep.mubr.msk.f32.mxu0 %vm178_vm0, %v10442_v62  ;;  %v13103_v62 = vld [vmem:[#allocation10_spill] sm:$0xff] }
 0x105   :  { %8689 = vmatmul.mubr.msk.f32.gmra.mrb[48].mxu1 %vm178_vm0, %v13099_v51  ;;  %v11601_v51 = vld [vmem:[%s13013_s0 + $0x160] sm:$0xff] }
 0x106   :  { %9201 = vmatmul.mubr.msk.f32.gmra.mrb[16].mxu0 %vm178_vm0, %v10447_v63  ;;  %8691 = vmatprep.mubr.msk.f32.mxu1 %vm178_vm0, %v13100_v7  ;;  %v11358_v63 = vld [vmem:[%s13013_s0 + $0xe8] sm:$0xff] }
 0x107   :  { %9203 = vmatprep.mubr.msk.f32.mxu0 %vm178_vm0, %v10467_v2  ;;  %13104 = vst [vmem:[#allocation13_spill] sm:$0xff] %v11358_v63  ;;  %v13105_v2 = vld [vmem:[#allocation24_spill] sm:$0xff] }
 0x109   :  { %8692 = vmatmul.mubr.msk.f32.gmra.mrb[50].mxu1 %vm178_vm0, %v13101_v31 }
 0x10a   :  { %9204 = vmatmul.mubr.msk.f32.gmra.mrb[18].mxu0 %vm178_vm0, %v10474_v4  ;;  %8694 = vmatprep.mubr.msk.f32.mxu1 %vm178_vm0, %v13102_v60  ;;  %v13106_v4 = vld [vmem:[#allocation11_spill] sm:$0xff] }
 0x10b   :  { %9206 = vmatprep.mubr.msk.f32.mxu0 %vm178_vm0, %v10488_v5  ;;  %v11395_v5 = vld [vmem:[%s13013_s0 + $0x138] sm:$0xff] }
 0x10d   :  { %8695 = vmatmul.mubr.msk.f32.gmra.mrb[52].mxu1 %vm178_vm0, %v10812_v39 }
 0x10e   :  { %9207 = vmatmul.mubr.msk.f32.gmra.mrb[20].mxu0 %vm178_vm0, %v10493_v6  ;;  %8697 = vmatprep.mubr.msk.f32.mxu1 %vm178_vm0, %v10819_v40  ;;  %v6885_v6 = vld [vmem:[%s13013_s0 + $0xa0] sm:$0xff] }
 0x10f   :  { %9209 = vmatprep.mubr.msk.f32.mxu0 %vm178_vm0, %v13103_v62  ;;  %v11668_v62 = vld [vmem:[%s13013_s0 + $0x1a8] sm:$0xff] }
 0x111   :  { %8698 = vmatmul.mubr.msk.f32.gmra.mrb[54].mxu1 %vm178_vm0, %v10830_v41 }
 0x112   :  { %9210 = vmatmul.mubr.msk.f32.gmra.mrb[22].mxu0 %vm178_vm0, %v11358_v63  ;;  %8700 = vmatprep.mubr.msk.f32.mxu1 %vm178_vm0, %v13105_v2  ;;  %v11719_v2 = vld [vmem:[%s13013_s0 + $0x60] sm:$0xff] }
 0x113   :  { %9212 = vmatprep.mubr.msk.f32.mxu0 %vm178_vm0, %v10529_v11  ;;  %v7087_v11 = vld [vmem:[%s13014_s1 + $0xd0] sm:$0xff] }
 0x115   :  { %8701 = vmatmul.mubr.msk.f32.gmra.mrb[56].mxu1 %vm178_vm0, %v10848_v47  ;;  %v7090_v47 = vld [vmem:[%s13014_s1 + $0xe8] sm:$0xff] }
 0x116   :  { %9213 = vmatmul.mubr.msk.f32.gmra.mrb[24].mxu0 %vm178_vm0, %v10534_v13  ;;  %8703 = vmatprep.mubr.msk.f32.mxu1 %vm178_vm0, %v10855_v48  ;;  %v7088_v13 = vld [vmem:[%s13014_s1 + $0xd8] sm:$0xff] }
 0x117   :  { %9215 = vmatprep.mubr.msk.f32.mxu0 %vm178_vm0, %v10547_v14  ;;  %v11414_v14 = vld [vmem:[%s13013_s0 + $0xa8] sm:$0xff] }
 0x119   :  { %8704 = vmatmul.mubr.msk.f32.gmra.mrb[58].mxu1 %vm178_vm0, %v10866_v53 }
 0x11a   :  { %9216 = vmatmul.mubr.msk.f32.gmra.mrb[26].mxu0 %vm178_vm0, %v10552_v15  ;;  %8706 = vmatprep.mubr.msk.f32.mxu1 %vm178_vm0, %v10873_v54  ;;  %v11421_v15 = vld [vmem:[%s13013_s0 + $0xb0] sm:$0xff] }
 0x11b   :  { %9218 = vmatprep.mubr.msk.f32.mxu0 %vm178_vm0, %v10565_v16  ;;  %v9548_v16 = vpack.c.bf16 %v7088_v13, %v7087_v11  ;;  %v11742_v11 = vld [vmem:[%s13013_s0 + $0x68] sm:$0xff]  ;;  %v11747_v13 = vld [vmem:[%s13013_s0 + $0x1f0] sm:$0xff] }
 0x11d   :  { %8707 = vmatmul.mubr.msk.f32.gmra.mrb[60].mxu1 %vm178_vm0, %v10884_v55 }
 0x11e   :  { %9219 = vmatmul.mubr.msk.f32.gmra.mrb[28].mxu0 %vm178_vm0, %v10570_v20  ;;  %8709 = vmatprep.mubr.msk.f32.mxu1 %vm178_vm0, %v10891_v25  ;;  %v7089_v20 = vld [vmem:[%s13014_s1 + $0xe0] sm:$0xff] }
 0x11f   :  { %9221 = vmatprep.mubr.msk.f32.mxu0 %vm178_vm0, %v13106_v4  ;;  %v7768_v4 = vld [vmem:[%s13014_s1 + $0x218] sm:$0xff] }
 0x121   :  { %8710 = vmatmul.mubr.msk.f32.gmra.mrb[62].mxu1 %vm178_vm0, %v10902_v19 }
 0x122   :  { %9222 = vmatmul.mubr.msk.f32.gmra.mrb[30].mxu0 %vm178_vm0, %v11395_v5  ;;  %8728 = vmatprep.mubr.msk.f32.mxu1 %vm178_vm0, %v6885_v6  ;;  %v11735_v6 = vld [vmem:[%s13013_s0 + $0x1e8] sm:$0xff] }
 0x123   :  { %9224 = vmatprep.mubr.msk.f32.mxu0 %vm178_vm0, %v10606_v24  ;;  %v11437_v24 = vld [vmem:[%s13013_s0 + $0xb8] sm:$0xff]  ;;  %13115 = vst [vmem:[#allocation18_spill] sm:$0xff] %v11735_v6 }
 0x125   :  { %8729 = vmatmul.mubr.msk.f32.vlgmr.msra.gmra.mrb[0].mxu1 %vm178_vm0, %v11414_v14 }
 0x126   :  { %9225 = vmatmul.mubr.msk.f32.gmra.mrb[32].mxu0 %vm178_vm0, %v10611_v26  ;;  %9547 = vmatpush3.bf16.msra.mxu1 %v11076_v58  ;;  %v9552_v26 = vpack.c.bf16 %v7090_v47, %v7089_v20  ;;  %v7091_v58 = vld [vmem:[%s13014_s1 + $0xf0] sm:$0xff]  ;;  %v7769_v47 = vld [vmem:[%s13014_s1 + $0x220] sm:$0xff] }
 0x127   :  { %8731 = vmatprep.mubr.msk.f32.mxu1 %vm178_vm0, %v11421_v15  ;;  %9227 = vmatprep.mubr.msk.f32.mxu0 %vm178_vm0, %v10624_v27  ;;  %v11463_v27 = vld [vmem:[%s13013_s0 + $0xc8] sm:$0xff]  ;;  %v9556_v46 = vpack.c.bf16 %v7092_v33, %v7091_v58  ;;  %v11769_v58 = vld [vmem:[%s13013_s0 + $0x1f8] sm:$0xff] }
 0x128   :  { %9549 = vmatprep.subr.bf16.mxu1 %v9548_v16  ;;  %v11777_v33 = vld [vmem:[%s13013_s0 + $0x78] sm:$0xff] }
 0x129   :  { %8732 = vmatmul.mubr.msk.f32.gmra.mrb[2].mxu1 %vm178_vm0, %v11437_v24 }
 0x12a   :  { %9228 = vmatmul.mubr.msk.f32.gmra.mrb[34].mxu0 %vm178_vm0, %v10629_v28  ;;  %8734 = vmatprep.mubr.msk.f32.mxu1 %vm178_vm0, %v11446_v1  ;;  %v11481_v28 = vld [vmem:[%s13013_s0 + $0xd8] sm:$0xff] }
 0x12b   :  { %9230 = vmatprep.mubr.msk.f32.mxu0 %vm178_vm0, %v10642_v29  ;;  %9551 = vmatpush3.bf16.msra.mxu1 %v9548_v16  ;;  %v13107_v29 = vld [vmem:[#allocation12_spill] sm:$0xff]  ;;  %v11752_v16 = vld [vmem:[%s13013_s0 + $0x70] sm:$0xff] }
 0x12c   :  { %9553 = vmatprep.subr.bf16.mxu1 %v9552_v26 }
 0x12d   :  { %8735 = vmatmul.mubr.msk.f32.gmra.mrb[4].mxu1 %vm178_vm0, %v11463_v27 }
 0x12e   :  { %9231 = vmatmul.mubr.msk.f32.gmra.mrb[36].mxu0 %vm178_vm0, %v10647_v30  ;;  %8737 = vmatprep.mubr.msk.f32.mxu1 %vm178_vm0, %v11470_v34  ;;  %v6893_v30 = vld [vmem:[%s13013_s0 + $0xf0] sm:$0xff] }
 0x12f   :  { %9233 = vmatprep.mubr.msk.f32.mxu0 %vm178_vm0, %v13107_v29  ;;  %9555 = vmatpush3.bf16.msra.mxu1 %v9552_v26  ;;  %v7770_v26 = vld [vmem:[%s13014_s1 + $0x228] sm:$0xff]  ;;  %v11787_v29 = vld [vmem:[%s13013_s0 + $0x80] sm:$0xff] }
 0x130   :  { %9557 = vmatprep.subr.bf16.mxu1 %v9556_v46 }
 0x131   :  { %8738 = vmatmul.mubr.msk.f32.gmra.mrb[6].mxu1 %vm178_vm0, %v11481_v28 }
 0x132   :  { %9234 = vmatmul.mubr.msk.f32.gmra.mrb[38].mxu0 %vm178_vm0, %v11488_v22  ;;  %8740 = vmatprep.mubr.msk.f32.mxu1 %vm178_vm0, %v6893_v30  ;;  %v7771_v30 = vld [vmem:[%s13014_s1 + $0x230] sm:$0xff] }
 0x133   :  { %9236 = vmatprep.mubr.msk.f32.mxu0 %vm178_vm0, %v13091_v52  ;;  %9559 = vmatpush3.bf16.msra.mxu1 %v9556_v46  ;;  %v11545_v52 = vld [vmem:[%s13013_s0 + $0x120] sm:$0xff] }
 0x134   :  { %9640 = vmatprep.subr.bf16.mxu1 %v13108_v0  ;;  %13111 = vst [vmem:[#allocation16_spill] sm:$0xff] %v11545_v52  ;;  %v11782_v46 = vld [vmem:[%s13013_s0 + $0x200] sm:$0xff] }
 0x135   :  { %8741 = vmatmul.mubr.msk.f32.gmra.mrb[8].mxu1 %vm178_vm0, %v11501_v23 }
 0x136   :  { %9237 = vmatmul.mubr.msk.f32.gmra.mrb[40].mxu0 %vm178_vm0, %v13092_v37  ;;  %8743 = vmatprep.mubr.msk.f32.mxu1 %vm178_vm0, %v11508_v44  ;;  %v11556_v37 = vld [vmem:[%s13013_s0 + $0x128] sm:$0xff] }
 0x137   :  { %9239 = vmatprep.mubr.msk.f32.mxu0 %vm178_vm0, %v13093_v36  ;;  %v13112_v36 = vld [vmem:[#allocation25_spill] sm:$0xff] }
 0x139   :  { %8744 = vmatmul.mubr.msk.f32.gmra.mrb[10].mxu1 %vm178_vm0, %v11520_v12 }
 0x13a   :  { %9240 = vmatmul.mubr.msk.f32.gmra.mrb[42].mxu0 %vm178_vm0, %v13094_v32  ;;  %8746 = vmatprep.mubr.msk.f32.mxu1 %vm178_vm0, %v11527_v45  ;;  %v11563_v32 = vld [vmem:[%s13013_s0 + $0x1d8] sm:$0xff] }
 0x13b   :  { %9242 = vmatprep.mubr.msk.f32.mxu0 %vm178_vm0, %v13095_v38  ;;  %v6901_v38 = vld [vmem:[%s13013_s0 + $0x140] sm:$0xff] }
 0x13d   :  { %8747 = vmatmul.mubr.msk.f32.gmra.mrb[12].mxu1 %vm178_vm0, %v11538_v49 }
 0x13e   :  { %9243 = vmatmul.mubr.msk.f32.gmra.mrb[44].mxu0 %vm178_vm0, %v13097_v35  ;;  %8749 = vmatprep.mubr.msk.f32.mxu1 %vm178_vm0, %v11545_v52  ;;  %v11583_v35 = vld [vmem:[%s13013_s0 + $0x150] sm:$0xff] }
 0x13f   :  { %9245 = vmatprep.mubr.msk.f32.mxu0 %vm178_vm0, %v13112_v36  ;;  %v7772_v36 = vld [vmem:[%s13014_s1 + $0x238] sm:$0xff] }
 0x141   :  { %8750 = vmatmul.mubr.msk.f32.gmra.mrb[14].mxu1 %vm178_vm0, %v11556_v37 }
 0x142   :  { %9246 = vmatmul.mubr.msk.f32.gmra.mrb[46].mxu0 %vm178_vm0, %v11563_v32  ;;  %8752 = vmatprep.mubr.msk.f32.mxu1 %vm178_vm0, %v6901_v38  ;;  %v11804_v38 = vld [vmem:[%s13013_s0 + $0x208] sm:$0xff] }
 0x143   :  { %9248 = vmatprep.mubr.msk.f32.mxu0 %vm178_vm0, %v13100_v7  ;;  %v11612_v7 = vld [vmem:[%s13013_s0 + $0x168] sm:$0xff] }
 0x145   :  { %8753 = vmatmul.mubr.msk.f32.gmra.mrb[16].mxu1 %vm178_vm0, %v11576_v42  ;;  %v11928_v42 = vld [vmem:[%s13013_s0 + $0x290] sm:$0xff] }
 0x146   :  { %9249 = vmatmul.mubr.msk.f32.gmra.mrb[48].mxu0 %vm178_vm0, %v13101_v31  ;;  %8755 = vmatprep.mubr.msk.f32.mxu1 %vm178_vm0, %v11583_v35  ;;  %v11619_v31 = vld [vmem:[%s13013_s0 + $0x170] sm:$0xff] }
 0x147   :  { %9251 = vmatprep.mubr.msk.f32.mxu0 %vm178_vm0, %v13102_v60  ;;  %v11657_v60 = vld [vmem:[%s13013_s0 + $0x1a0] sm:$0xff] }
 0x149   :  { %8756 = vmatmul.mubr.msk.f32.gmra.mrb[18].mxu1 %vm178_vm0, %v11594_v50 }
 0x14a   :  { %9252 = vmatmul.mubr.msk.f32.gmra.mrb[50].mxu0 %vm178_vm0, %v10812_v39  ;;  %8758 = vmatprep.mubr.msk.f32.mxu1 %vm178_vm0, %v11601_v51  ;;  %v11630_v39 = vld [vmem:[%s13013_s0 + $0x178] sm:$0xff] }
 0x14b   :  { %9254 = vmatprep.mubr.msk.f32.mxu0 %vm178_vm0, %v10819_v40  ;;  %v11637_v40 = vld [vmem:[%s13013_s0 + $0x228] sm:$0xff] }
 0x14d   :  { %8759 = vmatmul.mubr.msk.f32.gmra.mrb[20].mxu1 %vm178_vm0, %v11612_v7 }
 0x14e   :  { %9255 = vmatmul.mubr.msk.f32.gmra.mrb[52].mxu0 %vm178_vm0, %v10830_v41  ;;  %8761 = vmatprep.mubr.msk.f32.mxu1 %vm178_vm0, %v11619_v31  ;;  %v6909_v41 = vld [vmem:[%s13013_s0 + $0x190] sm:$0xff] }
 0x14f   :  { %9257 = vmatprep.mubr.msk.f32.mxu0 %vm178_vm0, %v11074_v3  ;;  %v11650_v3 = vld [vmem:[%s13013_s0 + $0x198] sm:$0xff] }
 0x150   :  { %13114 = vst [vmem:[#allocation9_spill] sm:$0xff] %v11650_v3 }
 0x151   :  { %8762 = vmatmul.mubr.msk.f32.gmra.mrb[22].mxu1 %vm178_vm0, %v11630_v39 }
 0x152   :  { %9258 = vmatmul.mubr.msk.f32.gmra.mrb[54].mxu0 %vm178_vm0, %v11637_v40  ;;  %8764 = vmatprep.mubr.msk.f32.mxu1 %vm178_vm0, %v6909_v41  ;;  %v11811_v41 = vld [vmem:[%s13013_s0 + $0x88] sm:$0xff] }
 0x153   :  { %9260 = vmatprep.mubr.msk.f32.mxu0 %vm178_vm0, %v10855_v48  ;;  %v11675_v48 = vld [vmem:[%s13013_s0 + $0x1b0] sm:$0xff] }
 0x155   :  { %8765 = vmatmul.mubr.msk.f32.gmra.mrb[24].mxu1 %vm178_vm0, %v11650_v3  ;;  %v11921_v3 = vld [vmem:[%s13013_s0 + $0x288] sm:$0xff] }
 0x156   :  { %9261 = vmatmul.mubr.msk.f32.gmra.mrb[56].mxu0 %vm178_vm0, %v10866_v53  ;;  %8767 = vmatprep.mubr.msk.f32.mxu1 %vm178_vm0, %v11657_v60  ;;  %v11686_v53 = vld [vmem:[%s13013_s0 + $0x1b8] sm:$0xff]  ;;  %13117 = vst [vmem:[#allocation20_spill] sm:$0xff] %v11921_v3 }
 0x157   :  { %9263 = vmatprep.mubr.msk.f32.mxu0 %vm178_vm0, %v10873_v54  ;;  %v11693_v54 = vld [vmem:[%s13013_s0 + $0x1c0] sm:$0xff] }
 0x159   :  { %8768 = vmatmul.mubr.msk.f32.gmra.mrb[26].mxu1 %vm178_vm0, %v11668_v62 }
 0x15a   :  { %9264 = vmatmul.mubr.msk.f32.gmra.mrb[58].mxu0 %vm178_vm0, %v10884_v55  ;;  %8770 = vmatprep.mubr.msk.f32.mxu1 %vm178_vm0, %v11675_v48  ;;  %v11704_v55 = vld [vmem:[%s13013_s0 + $0x1c8] sm:$0xff] }
 0x15b   :  { %9266 = vmatprep.mubr.msk.f32.mxu0 %vm178_vm0, %v10891_v25  ;;  %v11711_v25 = vld [vmem:[%s13013_s0 + $0x278] sm:$0xff] }
 0x15d   :  { %8771 = vmatmul.mubr.msk.f32.gmra.mrb[28].mxu1 %vm178_vm0, %v11686_v53 }
 0x15e   :  { %9267 = vmatmul.mubr.msk.f32.gmra.mrb[60].mxu0 %vm178_vm0, %v10902_v19  ;;  %8773 = vmatprep.mubr.msk.f32.mxu1 %vm178_vm0, %v11693_v54  ;;  %v6917_v19 = vld [vmem:[%s13013_s0 + $0x1e0] sm:$0xff] }
 0x15f   :  { %9269 = vmatprep.mubr.msk.f32.mxu0 %vm178_vm0, %v11114_v17  ;;  %v7767_v17 = vld [vmem:[%s13014_s1 + $0x210] sm:$0xff] }
 0x160   :  { %v9628_v20 = vpack.c.bf16 %v7768_v4, %v7767_v17  ;;  %v11821_v17 = vld [vmem:[%s13013_s0 + $0x90] sm:$0xff]  ;;  %v9636_v4 = vpack.c.bf16 %v7772_v36, %v7771_v30  ;;  %v11883_v36 = vld [vmem:[%s13013_s0 + $0x258] sm:$0xff] }
 0x161   :  { %8774 = vmatmul.mubr.msk.f32.gmra.mrb[30].mxu1 %vm178_vm0, %v11704_v55  ;;  %v11872_v30 = vld [vmem:[%s13013_s0 + $0x250] sm:$0xff] }
 0x162   :  { %9270 = vmatmul.mubr.msk.f32.gmra.mrb[62].mxu0 %vm178_vm0, %v11711_v25  ;;  %8776 = vmatprep.mubr.msk.f32.mxu1 %vm178_vm0, %v6917_v19  ;;  %v11816_v19 = vld [vmem:[%s13013_s0 + $0x210] sm:$0xff] }
 0x163   :  { %9288 = vmatprep.mubr.msk.f32.mxu0 %vm178_vm0, %v11719_v2 }
 0x165   :  { %8777 = vmatmul.mubr.msk.f32.gmra.mrb[32].mxu1 %vm178_vm0, %v11735_v6  ;;  %v6933_v6 = vld [vmem:[%s13013_s0 + $0x280] sm:$0xff] }
 0x166   :  { %9289 = vmatmul.mubr.msk.f32.vlgmr.msra.gmra.mrb[0].mxu0 %vm178_vm0, %v11742_v11  ;;  %8779 = vmatprep.mubr.msk.f32.mxu1 %vm178_vm0, %v11747_v13 }
 0x167   :  { %9627 = vmatpush3.bf16.msra.mxu0 %v11284_v56  ;;  %9291 = vmatprep.mubr.msk.f32.mxu0 %vm178_vm0, %v11752_v16  ;;  %v9632_v56 = vpack.c.bf16 %v7770_v26, %v7769_v47  ;;  %v6925_v47 = vld [vmem:[%s13013_s0 + $0x230] sm:$0xff]  ;;  %v11847_v26 = vld [vmem:[%s13013_s0 + $0x238] sm:$0xff] }
 0x168   :  { %9629 = vmatprep.subr.bf16.mxu0 %v9628_v20  ;;  %13116 = vst [vmem:[#allocation19_spill] sm:$0xff] %v11847_v26 }
 0x169   :  { %8780 = vmatmul.mubr.msk.f32.gmra.mrb[34].mxu1 %vm178_vm0, %v11769_v58 }
 0x16a   :  { %9292 = vmatmul.mubr.msk.f32.gmra.mrb[2].mxu0 %vm178_vm0, %v11777_v33  ;;  %8782 = vmatprep.mubr.msk.f32.mxu1 %vm178_vm0, %v11782_v46 }
 0x16b   :  { %9294 = vmatprep.mubr.msk.f32.mxu0 %vm178_vm0, %v11787_v29  ;;  %9631 = vmatpush3.bf16.msra.mxu0 %v9628_v20  ;;  %v11832_v20 = vld [vmem:[%s13013_s0 + $0x218] sm:$0xff] }
 0x16c   :  { %9633 = vmatprep.subr.bf16.mxu0 %v9632_v56 }
 0x16d   :  { %8783 = vmatmul.mubr.msk.f32.gmra.mrb[36].mxu1 %vm178_vm0, %v11804_v38 }
 0x16e   :  { %9295 = vmatmul.mubr.msk.f32.gmra.mrb[4].mxu0 %vm178_vm0, %v11811_v41  ;;  %8785 = vmatprep.mubr.msk.f32.mxu1 %vm178_vm0, %v11816_v19 }
 0x16f   :  { %9297 = vmatprep.mubr.msk.f32.mxu0 %vm178_vm0, %v11821_v17  ;;  %9635 = vmatpush3.bf16.msra.mxu0 %v9632_v56  ;;  %v11854_v56 = vld [vmem:[%s13013_s0 + $0x240] sm:$0xff] }
 0x170   :  { %9637 = vmatprep.subr.bf16.mxu0 %v9636_v4 }
 0x171   :  { %8786 = vmatmul.mubr.msk.f32.gmra.mrb[38].mxu1 %vm178_vm0, %v11832_v20 }
 0x172   :  { %9298 = vmatmul.mubr.msk.f32.gmra.mrb[6].mxu0 %vm178_vm0, %v11321_v43  ;;  %8788 = vmatprep.mubr.msk.f32.mxu1 %vm178_vm0, %v6925_v47  ;;  %v11865_v43 = vld [vmem:[%s13013_s0 + $0x248] sm:$0xff]  ;;  %v11895_v47 = vld [vmem:[%s13013_s0 + $0xe0] sm:$0xff] }
 0x173   :  { %9300 = vmatprep.mubr.msk.f32.mxu0 %vm178_vm0, %v11421_v15  ;;  %9639 = vmatpush3.bf16.msra.mxu0 %v9636_v4  ;;  %v11890_v4 = vld [vmem:[%s13013_s0 + $0x260] sm:$0xff] }
 0x175   :  { %8789 = vmatmul.mubr.msk.f32.gmra.mrb[40].mxu1 %vm178_vm0, %v11847_v26  ;;  %v11906_v26 = vld [vmem:[%s13013_s0 + $0x268] sm:$0xff] }
 0x176   :  { %9301 = vmatmul.mubr.msk.f32.gmra.mrb[8].mxu0 %vm178_vm0, %v11437_v24  ;;  %8791 = vmatprep.mubr.msk.f32.mxu1 %vm178_vm0, %v11854_v56 }
 0x177   :  { %9303 = vmatprep.mubr.msk.f32.mxu0 %vm178_vm0, %v11446_v1 }
 0x179   :  { %8792 = vmatmul.mubr.msk.f32.gmra.mrb[42].mxu1 %vm178_vm0, %v11865_v43 }
 0x17a   :  { %9304 = vmatmul.mubr.msk.f32.gmra.mrb[10].mxu0 %vm178_vm0, %v11463_v27  ;;  %8794 = vmatprep.mubr.msk.f32.mxu1 %vm178_vm0, %v11872_v30 }
 0x17b   :  { %9306 = vmatprep.mubr.msk.f32.mxu0 %vm178_vm0, %v11470_v34 }
 0x17d   :  { %8795 = vmatmul.mubr.msk.f32.gmra.mrb[44].mxu1 %vm178_vm0, %v11883_v36 }
 0x17e   :  { %9307 = vmatmul.mubr.msk.f32.gmra.mrb[12].mxu0 %vm178_vm0, %v11481_v28  ;;  %8797 = vmatprep.mubr.msk.f32.mxu1 %vm178_vm0, %v11890_v4 }
 0x17f   :  { %9309 = vmatprep.mubr.msk.f32.mxu0 %vm178_vm0, %v11895_v47 }
 0x181   :  { %8798 = vmatmul.mubr.msk.f32.gmra.mrb[46].mxu1 %vm178_vm0, %v11906_v26 }
 0x182   :  { %9310 = vmatmul.mubr.msk.f32.gmra.mrb[14].mxu0 %vm178_vm0, %v11358_v63  ;;  %8800 = vmatprep.mubr.msk.f32.mxu1 %vm178_vm0, %v6933_v6  ;;  %v11939_v6 = vld [vmem:[%s13013_s0 + $0x298] sm:$0xff]  ;;  %v11946_v63 = vld [vmem:[%s13013_s0 + $0x2a0] sm:$0xff] }
 0x183   :  { %9312 = vmatprep.mubr.msk.f32.mxu0 %vm178_vm0, %v11508_v44  ;;  %13118 = vst [vmem:[#allocation21_spill] sm:$0xff] %v11946_v63 }
 0x185   :  { %8801 = vmatmul.mubr.msk.f32.gmra.mrb[48].mxu1 %vm178_vm0, %v11921_v3  ;;  %v11957_v3 = vld [vmem:[%s13013_s0 + $0x2a8] sm:$0xff] }
 0x186   :  { %9313 = vmatmul.mubr.msk.f32.gmra.mrb[16].mxu0 %vm178_vm0, %v11520_v12  ;;  %8803 = vmatprep.mubr.msk.f32.mxu1 %vm178_vm0, %v11928_v42 }
 0x187   :  { %9315 = vmatprep.mubr.msk.f32.mxu0 %vm178_vm0, %v11527_v45  ;;  %v11964_v45 = vld [vmem:[%s13013_s0 + $0x2b0] sm:$0xff] }
 0x189   :  { %8804 = vmatmul.mubr.msk.f32.gmra.mrb[50].mxu1 %vm178_vm0, %v11939_v6 }
 0x18a   :  { %9316 = vmatmul.mubr.msk.f32.gmra.mrb[18].mxu0 %vm178_vm0, %v11538_v49  ;;  %8806 = vmatprep.mubr.msk.f32.mxu1 %vm178_vm0, %v11946_v63  ;;  %v11969_v49 = vld [vmem:[%s13013_s0 + $0x130] sm:$0xff] }
 0x18b   :  { %9318 = vmatprep.mubr.msk.f32.mxu0 %vm178_vm0, %v11545_v52  ;;  %v11980_v52 = vld [vmem:[%s13013_s0 + $0x2b8] sm:$0xff]  ;;  %v6941_v63 = vld [vmem:[%s13013_s0 + $0x2d0] sm:$0xff] }
 0x18d   :  { %8807 = vmatmul.mubr.msk.f32.gmra.mrb[52].mxu1 %vm178_vm0, %v11957_v3 }
 0x18e   :  { %9319 = vmatmul.mubr.msk.f32.gmra.mrb[20].mxu0 %vm178_vm0, %v11556_v37  ;;  %8809 = vmatprep.mubr.msk.f32.mxu1 %vm178_vm0, %v11964_v45 }
 0x18f   :  { %9321 = vmatprep.mubr.msk.f32.mxu0 %vm178_vm0, %v11969_v49 }
 0x191   :  { %8810 = vmatmul.mubr.msk.f32.gmra.mrb[54].mxu1 %vm178_vm0, %v11980_v52 }
 0x192   :  { %9322 = vmatmul.mubr.msk.f32.gmra.mrb[22].mxu0 %vm178_vm0, %v11395_v5  ;;  %8812 = vmatprep.mubr.msk.f32.mxu1 %vm178_vm0, %v6941_v63  ;;  %v7026_v63 = vld [vmem:[%s13013_s0 + $0x30] sm:$0xff] }
 0x193   :  { %9324 = vmatprep.mubr.msk.f32.mxu0 %vm178_vm0, %v11583_v35 }
 0x195   :  { %8813 = vmatmul.mubr.msk.f32.gmra.mrb[56].mxu1 %vm178_vm0, %v11154_v18  ;;  %v12013_v18 = vld [vmem:[%s13013_s0 + $0x180] sm:$0xff] }
 0x196   :  { %9325 = vmatmul.mubr.msk.f32.gmra.mrb[24].mxu0 %vm178_vm0, %v11594_v50  ;;  %8815 = vmatprep.mubr.msk.f32.mxu1 %vm178_vm0, %v11166_v57  ;;  %v7021_v57 = vld [vmem:[%s13013_s0 + $0x8] sm:$0xff] }
 0x197   :  { %9327 = vmatprep.mubr.msk.f32.mxu0 %vm178_vm0, %v11601_v51 }
 0x199   :  { %8816 = vmatmul.mubr.msk.f32.gmra.mrb[58].mxu1 %vm178_vm0, %v11171_v59  ;;  %v7022_v59 = vld [vmem:[%s13013_s0 + $0x10] sm:$0xff] }
 0x19a   :  { %9328 = vmatmul.mubr.msk.f32.gmra.mrb[26].mxu0 %vm178_vm0, %v11612_v7  ;;  %8818 = vmatprep.mubr.msk.f32.mxu1 %vm178_vm0, %v11184_v8  ;;  %v7023_v8 = vld [vmem:[%s13013_s0 + $0x18] sm:$0xff] }
 0x19b   :  { %9330 = vmatprep.mubr.msk.f32.mxu0 %vm178_vm0, %v11619_v31 }
 0x19d   :  { %8819 = vmatmul.mubr.msk.f32.gmra.mrb[60].mxu1 %vm178_vm0, %v11189_v9  ;;  %v7024_v9 = vld [vmem:[%s13013_s0 + $0x20] sm:$0xff] }
 0x19e   :  { %9331 = vmatmul.mubr.msk.f32.gmra.mrb[28].mxu0 %vm178_vm0, %v11630_v39  ;;  %8821 = vmatprep.mubr.msk.f32.mxu1 %vm178_vm0, %v11202_v10  ;;  %v7025_v10 = vld [vmem:[%s13013_s0 + $0x28] sm:$0xff] }
 0x19f   :  { %9333 = vmatprep.mubr.msk.f32.mxu0 %vm178_vm0, %v12013_v18 }
 0x1a1   :  { %8822 = vmatmul.mubr.msk.f32.gmra.mrb[62].mxu1 %vm178_vm0, %v11207_v21  ;;  %v13119_v21 = vld [vmem:[#allocation6_spill] sm:$0xff] }
 0x1a2   :  { %9334 = vmatmul.mubr.msk.f32.gmra.mrb[30].mxu0 %vm178_vm0, %v11488_v22  ;;  %8840 = vmatprep.mubr.msk.f32.mxu1 %vm178_vm0, %v7021_v57  ;;  %v12069_v57 = vld [vmem:[%s13013_s0 + $0x1d0] sm:$0xff] }
 0x1a3   :  { %9336 = vmatprep.mubr.msk.f32.mxu0 %vm178_vm0, %v11657_v60 }
 0x1a5   :  { %8841 = vmatmul.mubr.msk.f32.vlgmr.msra.gmra.mrb[0].mxu1 %vm178_vm0, %v7022_v59  ;;  %v13120_v59 = vld [vmem:[#allocation7_spill] sm:$0xff] }
 0x1a6   :  { %9337 = vmatmul.mubr.msk.f32.gmra.mrb[32].mxu0 %vm178_vm0, %v11668_v62  ;;  %9644 = vmatpush3.bf16.msra.mxu1 %v13108_v0  ;;  %v7027_v0 = vld [vmem:[%s13013_s0 + $0x38] sm:$0xff] }
 0x1a7   :  { %8843 = vmatprep.mubr.msk.f32.mxu1 %vm178_vm0, %v7023_v8  ;;  %9339 = vmatprep.mubr.msk.f32.mxu0 %vm178_vm0, %v11675_v48  ;;  %v7029_v8 = vld [vmem:[%s13013_s0 + $0x58] sm:$0xff] }
 0x1a8   :  { %9641 = vmatprep.subr.bf16.mxu1 %v13119_v21 }
 0x1a9   :  { %8844 = vmatmul.mubr.msk.f32.gmra.mrb[2].mxu1 %vm178_vm0, %v7024_v9  ;;  %v13121_v9 = vld [vmem:[#allocation8_spill] sm:$0xff] }
 0x1aa   :  { %9340 = vmatmul.mubr.msk.f32.gmra.mrb[34].mxu0 %vm178_vm0, %v11686_v53  ;;  %8846 = vmatprep.mubr.msk.f32.mxu1 %vm178_vm0, %v7025_v10 }
 0x1ab   :  { %9342 = vmatprep.mubr.msk.f32.mxu0 %vm178_vm0, %v11693_v54  ;;  %9645 = vmatpush3.bf16.msra.mxu1 %v13119_v21 }
 0x1ac   :  { %9642 = vmatprep.subr.bf16.mxu1 %v13120_v59 }
 0x1ad   :  { %8847 = vmatmul.mubr.msk.f32.gmra.mrb[4].mxu1 %vm178_vm0, %v7026_v63 }
 0x1ae   :  { %9343 = vmatmul.mubr.msk.f32.gmra.mrb[36].mxu0 %vm178_vm0, %v11704_v55  ;;  %8849 = vmatprep.mubr.msk.f32.mxu1 %vm178_vm0, %v7027_v0 }
 0x1af   :  { %9345 = vmatprep.mubr.msk.f32.mxu0 %vm178_vm0, %v12069_v57  ;;  %9646 = vmatpush3.bf16.msra.mxu1 %v13120_v59 }
 0x1b0   :  { %9643 = vmatprep.subr.bf16.mxu1 %v13121_v9 }
 0x1b1   :  { %8850 = vmatmul.mubr.msk.f32.gmra.mrb[6].mxu1 %vm178_vm0, %v11265_v61  ;;  %v12110_v61 = vld [vmem:[%s13013_s0 + $0x220] sm:$0xff] }
 0x1b2   :  { %9346 = vmatmul.mubr.msk.f32.gmra.mrb[38].mxu0 %vm178_vm0, %v11563_v32  ;;  %8852 = vmatprep.mubr.msk.f32.mxu1 %vm178_vm0, %v7029_v8 }
 0x1b3   :  { %9348 = vmatprep.mubr.msk.f32.mxu0 %vm178_vm0, %v11747_v13  ;;  %9647 = vmatpush3.bf16.msra.mxu1 %v13121_v9 }
 0x1b5   :  { %8853 = vmatmul.mubr.msk.f32.gmra.mrb[8].mxu1 %vm178_vm0, %v11719_v2  ;;  %v13122_v2 = vld [vmem:[#allocation21_spill] sm:$0xff] }
 0x1b6   :  { %9349 = vmatmul.mubr.msk.f32.gmra.mrb[40].mxu0 %vm178_vm0, %v11769_v58  ;;  %8855 = vmatprep.mubr.msk.f32.mxu1 %vm178_vm0, %v11742_v11  ;;  %v13123_v11 = vld [vmem:[#allocation14_spill] sm:$0xff] }
 0x1b7   :  { %9351 = vmatprep.mubr.msk.f32.mxu0 %vm178_vm0, %v11782_v46 }
 0x1b9   :  { %8856 = vmatmul.mubr.msk.f32.gmra.mrb[10].mxu1 %vm178_vm0, %v11752_v16  ;;  %v12184_v16 = vld [vmem:[%s13013_s0 + $0x2c0] sm:$0xff] }
 0x1ba   :  { %9352 = vmatmul.mubr.msk.f32.gmra.mrb[42].mxu0 %vm178_vm0, %v11804_v38  ;;  %8858 = vmatprep.mubr.msk.f32.mxu1 %vm178_vm0, %v11777_v33  ;;  %v13125_v33 = vld [vmem:[#allocation16_spill] sm:$0xff] }
 0x1bb   :  { %9354 = vmatprep.mubr.msk.f32.mxu0 %vm178_vm0, %v11816_v19 }
 0x1bd   :  { %8859 = vmatmul.mubr.msk.f32.gmra.mrb[12].mxu1 %vm178_vm0, %v11787_v29  ;;  %v12197_v29 = vld [vmem:[%s13013_s0 + $0x2c8] sm:$0xff] }
 0x1be   :  { %9355 = vmatmul.mubr.msk.f32.gmra.mrb[44].mxu0 %vm178_vm0, %v11832_v20  ;;  %8861 = vmatprep.mubr.msk.f32.mxu1 %vm178_vm0, %v11811_v41  ;;  %v13126_v41 = vld [vmem:[#allocation17_spill] sm:$0xff] }
 0x1bf   :  { %9357 = vmatprep.mubr.msk.f32.mxu0 %vm178_vm0, %v12110_v61 }
 0x1c1   :  { %8862 = vmatmul.mubr.msk.f32.gmra.mrb[14].mxu1 %vm178_vm0, %v11821_v17 }
 0x1c2   :  { %9358 = vmatmul.mubr.msk.f32.gmra.mrb[46].mxu0 %vm178_vm0, %v11637_v40  ;;  %8864 = vmatprep.mubr.msk.f32.mxu1 %vm178_vm0, %v11414_v14  ;;  %v12147_v14 = vld [vmem:[%s13013_s0 + $0x270] sm:$0xff] }
 0x1c3   :  { %9360 = vmatprep.mubr.msk.f32.mxu0 %vm178_vm0, %v11854_v56 }
 0x1c5   :  { %8865 = vmatmul.mubr.msk.f32.gmra.mrb[16].mxu1 %vm178_vm0, %v11421_v15 }
 0x1c6   :  { %9361 = vmatmul.mubr.msk.f32.gmra.mrb[48].mxu0 %vm178_vm0, %v11865_v43  ;;  %8867 = vmatprep.mubr.msk.f32.mxu1 %vm178_vm0, %v11437_v24 }
 0x1c7   :  { %9363 = vmatprep.mubr.msk.f32.mxu0 %vm178_vm0, %v11872_v30 }
 0x1c9   :  { %8868 = vmatmul.mubr.msk.f32.gmra.mrb[18].mxu1 %vm178_vm0, %v11446_v1 }
 0x1ca   :  { %9364 = vmatmul.mubr.msk.f32.gmra.mrb[50].mxu0 %vm178_vm0, %v11883_v36  ;;  %8870 = vmatprep.mubr.msk.f32.mxu1 %vm178_vm0, %v11463_v27 }
 0x1cb   :  { %9366 = vmatprep.mubr.msk.f32.mxu0 %vm178_vm0, %v11890_v4 }
 0x1cd   :  { %8871 = vmatmul.mubr.msk.f32.gmra.mrb[20].mxu1 %vm178_vm0, %v11470_v34 }
 0x1ce   :  { %9367 = vmatmul.mubr.msk.f32.gmra.mrb[52].mxu0 %vm178_vm0, %v11906_v26  ;;  %8873 = vmatprep.mubr.msk.f32.mxu1 %vm178_vm0, %v11481_v28 }
 0x1cf   :  { %9369 = vmatprep.mubr.msk.f32.mxu0 %vm178_vm0, %v12147_v14 }
 0x1d1   :  { %8874 = vmatmul.mubr.msk.f32.gmra.mrb[22].mxu1 %vm178_vm0, %v11895_v47 }
 0x1d2   :  { %9370 = vmatmul.mubr.msk.f32.gmra.mrb[54].mxu0 %vm178_vm0, %v11711_v25  ;;  %8876 = vmatprep.mubr.msk.f32.mxu1 %vm178_vm0, %v11501_v23  ;;  %v13124_v23 = vld [vmem:[#allocation15_spill] sm:$0xff] }
 0x1d3   :  { %9372 = vmatprep.mubr.msk.f32.mxu0 %vm178_vm0, %v11928_v42 }
 0x1d5   :  { %8877 = vmatmul.mubr.msk.f32.gmra.mrb[24].mxu1 %vm178_vm0, %v11508_v44 }
 0x1d6   :  { %9373 = vmatmul.mubr.msk.f32.gmra.mrb[56].mxu0 %vm178_vm0, %v11939_v6  ;;  %8879 = vmatprep.mubr.msk.f32.mxu1 %vm178_vm0, %v11520_v12 }
 0x1d7   :  { %9375 = vmatprep.mubr.msk.f32.mxu0 %vm178_vm0, %v13122_v2 }
 0x1d9   :  { %8880 = vmatmul.mubr.msk.f32.gmra.mrb[26].mxu1 %vm178_vm0, %v13123_v11 }
 0x1da   :  { %9376 = vmatmul.mubr.msk.f32.gmra.mrb[58].mxu0 %vm178_vm0, %v11957_v3  ;;  %8882 = vmatprep.mubr.msk.f32.mxu1 %vm178_vm0, %v13124_v23 }
 0x1db   :  { %9378 = vmatprep.mubr.msk.f32.mxu0 %vm178_vm0, %v11964_v45 }
 0x1dd   :  { %8883 = vmatmul.mubr.msk.f32.gmra.mrb[28].mxu1 %vm178_vm0, %v13125_v33 }
 0x1de   :  { %9379 = vmatmul.mubr.msk.f32.gmra.mrb[60].mxu0 %vm178_vm0, %v11980_v52  ;;  %8885 = vmatprep.mubr.msk.f32.mxu1 %vm178_vm0, %v11556_v37 }
 0x1df   :  { %9381 = vmatprep.mubr.msk.f32.mxu0 %vm178_vm0, %v12184_v16 }
 0x1e1   :  { %8886 = vmatmul.mubr.msk.f32.gmra.mrb[30].mxu1 %vm178_vm0, %v11969_v49 }
 0x1e2   :  { %9382 = vmatmul.mubr.msk.f32.gmra.mrb[62].mxu0 %vm178_vm0, %v12197_v29  ;;  %8888 = vmatprep.mubr.msk.f32.mxu1 %vm178_vm0, %v13126_v41 }
 0x1e3   :  { %9400 = vmatprep.mubr.msk.f32.mxu0 %vm178_vm0, %v11421_v15  ;;  %v13127_v15 = vld [vmem:[#allocation13_spill] sm:$0xff] }
 0x1e5   :  { %8889 = vmatmul.mubr.msk.f32.gmra.mrb[32].mxu1 %vm178_vm0, %v11583_v35 }
 0x1e6   :  { %9401 = vmatmul.mubr.msk.f32.vlgmr.msra.gmra.mrb[0].mxu0 %vm178_vm0, %v11437_v24  ;;  %8891 = vmatprep.mubr.msk.f32.mxu1 %vm178_vm0, %v11594_v50  ;;  %v13128_v24 = vld [vmem:[#allocation9_spill] sm:$0xff] }
 0x1e7   :  { %9403 = vmatprep.mubr.msk.f32.mxu0 %vm178_vm0, %v11446_v1  ;;  %v13129_v1 = vld [vmem:[#allocation18_spill] sm:$0xff] }
 0x1e9   :  { %8892 = vmatmul.mubr.msk.f32.gmra.mrb[34].mxu1 %vm178_vm0, %v11601_v51 }
 0x1ea   :  { %9404 = vmatmul.mubr.msk.f32.gmra.mrb[2].mxu0 %vm178_vm0, %v11463_v27  ;;  %8894 = vmatprep.mubr.msk.f32.mxu1 %vm178_vm0, %v11612_v7  ;;  %v7757_v27 = vld [vmem:[%s13013_s0 + $0x2e0] sm:$0xff] }
 0x1eb   :  { %9406 = vmatprep.mubr.msk.f32.mxu0 %vm178_vm0, %v11470_v34  ;;  %v13131_v34 = vld [vmem:[#allocation20_spill] sm:$0xff] }
 0x1ed   :  { %8895 = vmatmul.mubr.msk.f32.gmra.mrb[36].mxu1 %vm178_vm0, %v11619_v31 }
 0x1ee   :  { %9407 = vmatmul.mubr.msk.f32.gmra.mrb[4].mxu0 %vm178_vm0, %v11481_v28  ;;  %8897 = vmatprep.mubr.msk.f32.mxu1 %vm178_vm0, %v11630_v39  ;;  %v7758_v28 = vld [vmem:[%s13013_s0 + $0x2e8] sm:$0xff] }
 0x1ef   :  { %9409 = vmatprep.mubr.msk.f32.mxu0 %vm178_vm0, %v11895_v47 }
 0x1f1   :  { %8898 = vmatmul.mubr.msk.f32.gmra.mrb[38].mxu1 %vm178_vm0, %v12013_v18 }
 0x1f2   :  { %9410 = vmatmul.mubr.msk.f32.gmra.mrb[6].mxu0 %vm178_vm0, %v13127_v15  ;;  %8900 = vmatprep.mubr.msk.f32.mxu1 %vm178_vm0, %v13128_v24 }
 0x1f3   :  { %9412 = vmatprep.mubr.msk.f32.mxu0 %vm178_vm0, %v11508_v44  ;;  %v7760_v44 = vld [vmem:[%s13013_s0 + $0x2f8] sm:$0xff] }
 0x1f5   :  { %8901 = vmatmul.mubr.msk.f32.gmra.mrb[40].mxu1 %vm178_vm0, %v11657_v60 }
 0x1f6   :  { %9413 = vmatmul.mubr.msk.f32.gmra.mrb[8].mxu0 %vm178_vm0, %v11520_v12  ;;  %8903 = vmatprep.mubr.msk.f32.mxu1 %vm178_vm0, %v11668_v62  ;;  %v7761_v12 = vld [vmem:[%s13013_s0 + $0x300] sm:$0xff] }
 0x1f7   :  { %9415 = vmatprep.mubr.msk.f32.mxu0 %vm178_vm0, %v13123_v11 }
 0x1f9   :  { %8904 = vmatmul.mubr.msk.f32.gmra.mrb[42].mxu1 %vm178_vm0, %v11675_v48 }
 0x1fa   :  { %9416 = vmatmul.mubr.msk.f32.gmra.mrb[10].mxu0 %vm178_vm0, %v13124_v23  ;;  %8906 = vmatprep.mubr.msk.f32.mxu1 %vm178_vm0, %v11686_v53 }
 0x1fb   :  { %9418 = vmatprep.mubr.msk.f32.mxu0 %vm178_vm0, %v13125_v33 }
 0x1fd   :  { %8907 = vmatmul.mubr.msk.f32.gmra.mrb[44].mxu1 %vm178_vm0, %v11693_v54 }
 0x1fe   :  { %9419 = vmatmul.mubr.msk.f32.gmra.mrb[12].mxu0 %vm178_vm0, %v11556_v37  ;;  %8909 = vmatprep.mubr.msk.f32.mxu1 %vm178_vm0, %v11704_v55  ;;  %v7763_v37 = vld [vmem:[%s13013_s0 + $0x310] sm:$0xff] }
 0x1ff   :  { %9421 = vmatprep.mubr.msk.f32.mxu0 %vm178_vm0, %v11969_v49  ;;  %v7762_v49 = vld [vmem:[%s13013_s0 + $0x308] sm:$0xff] }
 0x201   :  { %8910 = vmatmul.mubr.msk.f32.gmra.mrb[46].mxu1 %vm178_vm0, %v12069_v57 }
 0x202   :  { %9422 = vmatmul.mubr.msk.f32.gmra.mrb[14].mxu0 %vm178_vm0, %v11395_v5  ;;  %8912 = vmatprep.mubr.msk.f32.mxu1 %vm178_vm0, %v13129_v1  ;;  %v13130_v5 = vld [vmem:[#allocation19_spill] sm:$0xff] }
 0x203   :  { %9424 = vmatprep.mubr.msk.f32.mxu0 %vm178_vm0, %v11583_v35 }
 0x205   :  { %8913 = vmatmul.mubr.msk.f32.gmra.mrb[48].mxu1 %vm178_vm0, %v11747_v13 }
 0x206   :  { %9425 = vmatmul.mubr.msk.f32.gmra.mrb[16].mxu0 %vm178_vm0, %v11594_v50  ;;  %8915 = vmatprep.mubr.msk.f32.mxu1 %vm178_vm0, %v11769_v58 }
 0x207   :  { %9427 = vmatprep.mubr.msk.f32.mxu0 %vm178_vm0, %v11601_v51 }
 0x209   :  { %8916 = vmatmul.mubr.msk.f32.gmra.mrb[50].mxu1 %vm178_vm0, %v11782_v46 }
 0x20a   :  { %9428 = vmatmul.mubr.msk.f32.gmra.mrb[18].mxu0 %vm178_vm0, %v11612_v7  ;;  %8918 = vmatprep.mubr.msk.f32.mxu1 %vm178_vm0, %v11804_v38 }
 0x20b   :  { %9430 = vmatprep.mubr.msk.f32.mxu0 %vm178_vm0, %v11619_v31 }
 0x20d   :  { %8919 = vmatmul.mubr.msk.f32.gmra.mrb[52].mxu1 %vm178_vm0, %v11816_v19 }
 0x20e   :  { %9431 = vmatmul.mubr.msk.f32.gmra.mrb[20].mxu0 %vm178_vm0, %v11630_v39  ;;  %8921 = vmatprep.mubr.msk.f32.mxu1 %vm178_vm0, %v11832_v20 }
 0x20f   :  { %9433 = vmatprep.mubr.msk.f32.mxu0 %vm178_vm0, %v12013_v18  ;;  %v12527_v18 = vld [vmem:[#allocation2] ss:$0 sm:$0xff] }
 0x211   :  { %8922 = vmatmul.mubr.msk.f32.gmra.mrb[54].mxu1 %vm178_vm0, %v12110_v61 }
 0x212   :  { %9434 = vmatmul.mubr.msk.f32.gmra.mrb[22].mxu0 %vm178_vm0, %v11488_v22  ;;  %8924 = vmatprep.mubr.msk.f32.mxu1 %vm178_vm0, %v13130_v5  ;;  %v7759_v22 = vld [vmem:[%s13013_s0 + $0x2f0] sm:$0xff] }
 0x213   :  { %9436 = vmatprep.mubr.msk.f32.mxu0 %vm178_vm0, %v11657_v60 }
 0x215   :  { %8925 = vmatmul.mubr.msk.f32.gmra.mrb[56].mxu1 %vm178_vm0, %v11854_v56 }
 0x216   :  { %9437 = vmatmul.mubr.msk.f32.gmra.mrb[24].mxu0 %vm178_vm0, %v11668_v62  ;;  %8927 = vmatprep.mubr.msk.f32.mxu1 %vm178_vm0, %v11865_v43 }
 0x217   :  { %9439 = vmatprep.mubr.msk.f32.mxu0 %vm178_vm0, %v11675_v48 }
 0x219   :  { %8928 = vmatmul.mubr.msk.f32.gmra.mrb[58].mxu1 %vm178_vm0, %v11872_v30 }
 0x21a   :  { %9440 = vmatmul.mubr.msk.f32.gmra.mrb[26].mxu0 %vm178_vm0, %v11686_v53  ;;  %8930 = vmatprep.mubr.msk.f32.mxu1 %vm178_vm0, %v11883_v36 }
 0x21b   :  { %9442 = vmatprep.mubr.msk.f32.mxu0 %vm178_vm0, %v11693_v54 }
 0x21d   :  { %8931 = vmatmul.mubr.msk.f32.gmra.mrb[60].mxu1 %vm178_vm0, %v11890_v4 }
 0x21e   :  { %9443 = vmatmul.mubr.msk.f32.gmra.mrb[28].mxu0 %vm178_vm0, %v11704_v55  ;;  %8933 = vmatprep.mubr.msk.f32.mxu1 %vm178_vm0, %v11906_v26 }
 0x21f   :  { %9445 = vmatprep.mubr.msk.f32.mxu0 %vm178_vm0, %v12069_v57 }
 0x221   :  { %8934 = vmatmul.mubr.msk.f32.gmra.mrb[62].mxu1 %vm178_vm0, %v12147_v14 }
 0x222   :  { %9446 = vmatmul.mubr.msk.f32.gmra.mrb[30].mxu0 %vm178_vm0, %v11563_v32  ;;  %9000 = vmatprep.mubr.msk.f32.mxu1 %vm178_vm0, %v13128_v24  ;;  %v7764_v32 = vld [vmem:[%s13013_s0 + $0x318] sm:$0xff] }
 0x223   :  { %9448 = vmatprep.mubr.msk.f32.mxu0 %vm178_vm0, %v11747_v13 }
 0x225   :  { %9001 = vmatmul.mubr.msk.f32.vlgmr.msra.gmra.mrb[32].mxu1 %vm178_vm0, %v11657_v60 }
 0x226   :  { %9449 = vmatmul.mubr.msk.f32.gmra.mrb[32].mxu0 %vm178_vm0, %v11769_v58  ;;  %9003 = vmatprep.mubr.msk.f32.mxu1 %vm178_vm0, %v11668_v62 }
 0x227   :  { %9451 = vmatprep.mubr.msk.f32.mxu0 %vm178_vm0, %v11782_v46 }
 0x229   :  { %9004 = vmatmul.mubr.msk.f32.gmra.mrb[34].mxu1 %vm178_vm0, %v11675_v48 }
 0x22a   :  { %9452 = vmatmul.mubr.msk.f32.gmra.mrb[34].mxu0 %vm178_vm0, %v11804_v38  ;;  %9006 = vmatprep.mubr.msk.f32.mxu1 %vm178_vm0, %v11686_v53 }
 0x22b   :  { %9454 = vmatprep.mubr.msk.f32.mxu0 %vm178_vm0, %v11816_v19 }
 0x22d   :  { %9007 = vmatmul.mubr.msk.f32.gmra.mrb[36].mxu1 %vm178_vm0, %v11693_v54 }
 0x22e   :  { %9455 = vmatmul.mubr.msk.f32.gmra.mrb[36].mxu0 %vm178_vm0, %v11832_v20  ;;  %9009 = vmatprep.mubr.msk.f32.mxu1 %vm178_vm0, %v11704_v55 }
 0x22f   :  { %9457 = vmatprep.mubr.msk.f32.mxu0 %vm178_vm0, %v12110_v61 }
 0x231   :  { %9010 = vmatmul.mubr.msk.f32.gmra.mrb[38].mxu1 %vm178_vm0, %v12069_v57  ;;  %v12533_v57 = vld [vmem:[%s13016_s3] ss:$0 sm:$0xff] }
 0x232   :  { %9458 = vmatmul.mubr.msk.f32.gmra.mrb[38].mxu0 %vm178_vm0, %v11637_v40  ;;  %9012 = vmatprep.mubr.msk.f32.mxu1 %vm178_vm0, %v13129_v1 }
 0x233   :  { %9460 = vmatprep.mubr.msk.f32.mxu0 %vm178_vm0, %v11854_v56 }
 0x235   :  { %9013 = vmatmul.mubr.msk.f32.gmra.mrb[40].mxu1 %vm178_vm0, %v11747_v13 }
 0x236   :  { %9461 = vmatmul.mubr.msk.f32.gmra.mrb[40].mxu0 %vm178_vm0, %v11865_v43  ;;  %9015 = vmatprep.mubr.msk.f32.mxu1 %vm178_vm0, %v11769_v58 }
 0x237   :  { %9463 = vmatprep.mubr.msk.f32.mxu0 %vm178_vm0, %v11872_v30 }
 0x239   :  { %9016 = vmatmul.mubr.msk.f32.gmra.mrb[42].mxu1 %vm178_vm0, %v11782_v46 }
 0x23a   :  { %9464 = vmatmul.mubr.msk.f32.gmra.mrb[42].mxu0 %vm178_vm0, %v11883_v36  ;;  %9018 = vmatprep.mubr.msk.f32.mxu1 %vm178_vm0, %v11804_v38 }
 0x23b   :  { %9466 = vmatprep.mubr.msk.f32.mxu0 %vm178_vm0, %v11890_v4 }
 0x23d   :  { %9019 = vmatmul.mubr.msk.f32.gmra.mrb[44].mxu1 %vm178_vm0, %v11816_v19 }
 0x23e   :  { %9467 = vmatmul.mubr.msk.f32.gmra.mrb[44].mxu0 %vm178_vm0, %v11906_v26  ;;  %9021 = vmatprep.mubr.msk.f32.mxu1 %vm178_vm0, %v11832_v20 }
 0x23f   :  { %9469 = vmatprep.mubr.msk.f32.mxu0 %vm178_vm0, %v12147_v14 }
 0x241   :  { %9022 = vmatmul.mubr.msk.f32.gmra.mrb[46].mxu1 %vm178_vm0, %v12110_v61 }
 0x242   :  { %9470 = vmatmul.mubr.msk.f32.gmra.mrb[46].mxu0 %vm178_vm0, %v11711_v25  ;;  %9024 = vmatprep.mubr.msk.f32.mxu1 %vm178_vm0, %v13130_v5 }
 0x243   :  { %9472 = vmatprep.mubr.msk.f32.mxu0 %vm178_vm0, %v11928_v42 }
 0x245   :  { %9025 = vmatmul.mubr.msk.f32.gmra.mrb[48].mxu1 %vm178_vm0, %v11854_v56 }
 0x246   :  { %9473 = vmatmul.mubr.msk.f32.gmra.mrb[48].mxu0 %vm178_vm0, %v11939_v6  ;;  %9027 = vmatprep.mubr.msk.f32.mxu1 %vm178_vm0, %v11865_v43 }
 0x247   :  { %9475 = vmatprep.mubr.msk.f32.mxu0 %vm178_vm0, %v13122_v2 }
 0x249   :  { %9028 = vmatmul.mubr.msk.f32.gmra.mrb[50].mxu1 %vm178_vm0, %v11872_v30 }
 0x24a   :  { %9476 = vmatmul.mubr.msk.f32.gmra.mrb[50].mxu0 %vm178_vm0, %v11957_v3  ;;  %9030 = vmatprep.mubr.msk.f32.mxu1 %vm178_vm0, %v11883_v36 }
 0x24b   :  { %9478 = vmatprep.mubr.msk.f32.mxu0 %vm178_vm0, %v11964_v45 }
 0x24d   :  { %9031 = vmatmul.mubr.msk.f32.gmra.mrb[52].mxu1 %vm178_vm0, %v11890_v4 }
 0x24e   :  { %9479 = vmatmul.mubr.msk.f32.gmra.mrb[52].mxu0 %vm178_vm0, %v11980_v52  ;;  %9033 = vmatprep.mubr.msk.f32.mxu1 %vm178_vm0, %v11906_v26 }
 0x24f   :  { %9481 = vmatprep.mubr.msk.f32.mxu0 %vm178_vm0, %v12184_v16 }
 0x251   :  { %9034 = vmatmul.mubr.msk.f32.gmra.mrb[54].mxu1 %vm178_vm0, %v12147_v14 }
 0x252   :  { %9482 = vmatmul.mubr.msk.f32.gmra.mrb[54].mxu0 %vm178_vm0, %v12197_v29  ;;  %9036 = vmatprep.mubr.msk.f32.mxu1 %vm178_vm0, %v13131_v34 }
 0x253   :  { %9484 = vmatprep.mubr.msk.f32.mxu0 %vm178_vm0, %v7757_v27 }
 0x255   :  { %9037 = vmatmul.mubr.msk.f32.gmra.mrb[56].mxu1 %vm178_vm0, %v11928_v42 }
 0x256   :  { %9485 = vmatmul.mubr.msk.f32.gmra.mrb[56].mxu0 %vm178_vm0, %v7758_v28  ;;  %9039 = vmatprep.mubr.msk.f32.mxu1 %vm178_vm0, %v11939_v6 }
 0x257   :  { %9487 = vmatprep.mubr.msk.f32.mxu0 %vm178_vm0, %v7759_v22 }
 0x259   :  { %9040 = vmatmul.mubr.msk.f32.gmra.mrb[58].mxu1 %vm178_vm0, %v13122_v2  ;;  %v12539_v2 = vld [vmem:[%s13017_s4] ss:$0 sm:$0xff] }
 0x25a   :  { %9488 = vmatmul.mubr.msk.f32.gmra.mrb[58].mxu0 %vm178_vm0, %v7760_v44  ;;  %9042 = vmatprep.mubr.msk.f32.mxu1 %vm178_vm0, %v11957_v3 }
 0x25b   :  { %9490 = vmatprep.mubr.msk.f32.mxu0 %vm178_vm0, %v7761_v12 }
 0x25d   :  { %9043 = vmatmul.mubr.msk.f32.gmra.mrb[60].mxu1 %vm178_vm0, %v11964_v45 }
 0x25e   :  { %9491 = vmatmul.mubr.msk.f32.gmra.mrb[60].mxu0 %vm178_vm0, %v7762_v49  ;;  %9045 = vmatprep.mubr.msk.f32.mxu1 %vm178_vm0, %v11980_v52 }
 0x25f   :  { %9493 = vmatprep.mubr.msk.f32.mxu0 %vm178_vm0, %v7763_v37 }
 0x261   :  { %9046 = vmatmul.mubr.msk.f32.gmra.mrb[62].mxu1 %vm178_vm0, %v12184_v16 }
 0x262   :  { %9494 = vmatmul.mubr.msk.f32.gmra.mrb[62].mxu0 %vm178_vm0, %v7764_v32 }
 0x278   :  { %v8842_v42 = vpop.f32.mrb[0].mxu1 }
 0x279   :  { %v2380_v35 = vpop.f32.mrb[1].mxu1 }
 0x27c   :  { %v8845_v50 = vpop.f32.mrb[2].mxu1 }
 0x27d   :  { %v2390_v45 = vpop.f32.mrb[3].mxu1 }
 0x280   :  { %v8848_v51 = vpop.f32.mrb[4].mxu1 }
 0x281   :  { %v2400_v7 = vpop.f32.mrb[5].mxu1 }
 0x284   :  { %v12475_v31 = vpop.f32.mrb[6].mxu1 }
 0x285   :  { %v12477_v52 = vpop.f32.mrb[7].mxu1 }
 0x288   :  { %v12479_v39 = vpop.f32.mrb[8].mxu1 }
 0x289   :  { %v12481_v40 = vpop.f32.mrb[9].mxu1 }
 0x28c   :  { %v12483_v3 = vpop.f32.mrb[10].mxu1 }
 0x28d   :  { %v12485_v60 = vpop.f32.mrb[11].mxu1 }
 0x290   :  { %v12487_v62 = vpop.f32.mrb[12].mxu1 }
 0x291   :  { %v12489_v48 = vpop.f32.mrb[13].mxu1 }
 0x294   :  { %v12491_v53 = vpop.f32.mrb[14].mxu1 }
 0x295   :  { %v12493_v54 = vpop.f32.mrb[15].mxu1 }
 0x298   :  { %v12495_v55 = vpop.f32.mrb[16].mxu1 }
 0x299   :  { %v12497_v25 = vpop.f32.mrb[17].mxu1 }
 0x29c   :  { %v12499_v13 = vpop.f32.mrb[18].mxu1 }
 0x29d   :  { %v12501_v58 = vpop.f32.mrb[19].mxu1 }
 0x2a0   :  { %v12503_v46 = vpop.f32.mrb[20].mxu1 }
 0x2a1   :  { %v12505_v38 = vpop.f32.mrb[21].mxu1 }
 0x2a4   :  { %v12507_v19 = vpop.f32.mrb[22].mxu1 }
 0x2a5   :  { %v12509_v17 = vpop.f32.mrb[23].mxu1 }
 0x2a8   :  { %v12511_v20 = vpop.f32.mrb[24].mxu1 }
 0x2a9   :  { %v12513_v26 = vpop.f32.mrb[25].mxu1 }
 0x2ac   :  { %v12515_v56 = vpop.f32.mrb[26].mxu1 }
 0x2ad   :  { %v12517_v43 = vpop.f32.mrb[27].mxu1 }
 0x2b0   :  { %v12519_v30 = vpop.f32.mrb[28].mxu1 }
 0x2b1   :  { %v12521_v36 = vpop.f32.mrb[29].mxu1 }
 0x2b4   :  { %v12523_v4 = vpop.f32.mrb[30].mxu1 }
 0x2b5   :  { %v12525_v47 = vpop.f32.mrb[31].mxu1 }
 0x2b9   :  { %v9402_v6 = vpop.f32.mrb[0].mxu0 }
 0x2ba   :  { %v9648_v10 = vadd.f32 %v9402_v6, %v8842_v42  ;;  %v5955_v21 = vpop.f32.mrb[1].mxu0 }
 0x2bb   :  { %v9649_v63 = vadd.f32 %v5955_v21, %v2380_v35 }
 0x2bc   :  { %v6346_v0 = vadd.f32 %v9648_v10, %v12527_v18 }
 0x2bd   :  { %v6345_v59 = vadd.f32 %v9649_v63, %v12527_v18  ;;  %v9405_v8 = vpop.f32.mrb[2].mxu0 }
 0x2be   :  { %v6410_v9 = vmax.f32 %v6346_v0, 0.0  ;;  %v9650_v61 = vadd.f32 %v9405_v8, %v8845_v50  ;;  %v5965_v14 = vpop.f32.mrb[3].mxu0 }
 0x2bf   :  { %v6409_v11 = vmax.f32 %v6345_v59, 0.0  ;;  %v9651_v23 = vadd.f32 %v5965_v14, %v2390_v45 }
 0x2c0   :  { %v6481_v16 = vmul.f32 %v12533_v57, %v6410_v9  ;;  %v6348_v33 = vadd.f32 %v9650_v61, %v12527_v18 }
 0x2c1   :  { %v6480_v29 = vmul.f32 %v12533_v57, %v6409_v11  ;;  %v6347_v41 = vadd.f32 %v9651_v23, %v12527_v18  ;;  %v9408_v15 = vpop.f32.mrb[4].mxu0 }
 0x2c2   :  { %v6552_v24 = vadd.f32 %v12539_v2, %v6481_v16  ;;  %v6412_v1 = vmax.f32 %v6348_v33, 0.0  ;;  %v9652_v5 = vadd.f32 %v9408_v15, %v8848_v51  ;;  %v5975_v27 = vpop.f32.mrb[5].mxu0 }
 0x2c3   :  { %v6551_v34 = vadd.f32 %v12539_v2, %v6480_v29  ;;  %v6411_v28 = vmax.f32 %v6347_v41, 0.0  ;;  %v9653_v22 = vadd.f32 %v5975_v27, %v2400_v7 }
 0x2c4   :  { %6617 = vst.msk [vmem:[%s13018_s5 + $0x8] sm:$0xff] %vm6615_vm1, %v6552_v24  ;;  %v6483_v44 = vmul.f32 %v12533_v57, %v6412_v1  ;;  %v6350_v12 = vadd.f32 %v9652_v5, %v12527_v18 }
 0x2c5   :  { %6616 = vst.msk [vmem:[%s13018_s5] sm:$0xff] %vm6615_vm1, %v6551_v34  ;;  %v6482_v49 = vmul.f32 %v12533_v57, %v6411_v28  ;;  %v6349_v37 = vadd.f32 %v9653_v22, %v12527_v18  ;;  %v9411_v32 = vpop.f32.mrb[6].mxu0 }
 0x2c6   :  { %v6554_v42 = vadd.f32 %v12539_v2, %v6483_v44  ;;  %v6414_v35 = vmax.f32 %v6350_v12, 0.0  ;;  %v9654_v50 = vadd.f32 %v9411_v32, %v12475_v31  ;;  %v5985_v45 = vpop.f32.mrb[7].mxu0 }
 0x2c7   :  { %v6553_v51 = vadd.f32 %v12539_v2, %v6482_v49  ;;  %v6413_v7 = vmax.f32 %v6349_v37, 0.0  ;;  %v9655_v6 = vadd.f32 %v5985_v45, %v12477_v52 }
 0x2c8   :  { %6619 = vst.msk [vmem:[%s13018_s5 + $0x18] sm:$0xff] %vm6615_vm1, %v6554_v42  ;;  %v6485_v10 = vmul.f32 %v12533_v57, %v6414_v35  ;;  %v6352_v21 = vadd.f32 %v9654_v50, %v12527_v18 }
 0x2c9   :  { %6618 = vst.msk [vmem:[%s13018_s5 + $0x10] sm:$0xff] %vm6615_vm1, %v6553_v51  ;;  %v6484_v31 = vmul.f32 %v12533_v57, %v6413_v7  ;;  %v6351_v63 = vadd.f32 %v9655_v6, %v12527_v18  ;;  %v9414_v0 = vpop.f32.mrb[8].mxu0 }
 0x2ca   :  { %v6556_v52 = vadd.f32 %v12539_v2, %v6485_v10  ;;  %v6416_v59 = vmax.f32 %v6352_v21, 0.0  ;;  %v9656_v8 = vadd.f32 %v9414_v0, %v12479_v39  ;;  %v5995_v9 = vpop.f32.mrb[9].mxu0 }
 0x2cb   :  { %v6555_v61 = vadd.f32 %v12539_v2, %v6484_v31  ;;  %v6415_v14 = vmax.f32 %v6351_v63, 0.0  ;;  %v9657_v11 = vadd.f32 %v5995_v9, %v12481_v40 }
 0x2cc   :  { %6621 = vst.msk [vmem:[%s13018_s5 + $0x28] sm:$0xff] %vm6615_vm1, %v6556_v52  ;;  %v6487_v23 = vmul.f32 %v12533_v57, %v6416_v59  ;;  %v6354_v16 = vadd.f32 %v9656_v8, %v12527_v18 }
 0x2cd   :  { %6620 = vst.msk [vmem:[%s13018_s5 + $0x20] sm:$0xff] %vm6615_vm1, %v6555_v61  ;;  %v6486_v39 = vmul.f32 %v12533_v57, %v6415_v14  ;;  %v6353_v33 = vadd.f32 %v9657_v11, %v12527_v18  ;;  %v9417_v29 = vpop.f32.mrb[10].mxu0 }
 0x2ce   :  { %v6558_v40 = vadd.f32 %v12539_v2, %v6487_v23  ;;  %v6418_v41 = vmax.f32 %v6354_v16, 0.0  ;;  %v9658_v15 = vadd.f32 %v9417_v29, %v12483_v3  ;;  %v6005_v24 = vpop.f32.mrb[11].mxu0 }
 0x2cf   :  { %v6557_v1 = vadd.f32 %v12539_v2, %v6486_v39  ;;  %v6417_v5 = vmax.f32 %v6353_v33, 0.0  ;;  %v9659_v27 = vadd.f32 %v6005_v24, %v12485_v60 }
 0x2d0   :  { %6623 = vst.msk [vmem:[%s13018_s5 + $0x38] sm:$0xff] %vm6615_vm1, %v6558_v40  ;;  %v6489_v34 = vmul.f32 %v12533_v57, %v6418_v41  ;;  %v6356_v28 = vadd.f32 %v9658_v15, %v12527_v18 }
 0x2d1   :  { %6622 = vst.msk [vmem:[%s13018_s5 + $0x30] sm:$0xff] %vm6615_vm1, %v6557_v1  ;;  %v6488_v3 = vmul.f32 %v12533_v57, %v6417_v5  ;;  %v6355_v22 = vadd.f32 %v9659_v27, %v12527_v18  ;;  %v9420_v44 = vpop.f32.mrb[12].mxu0 }
 0x2d2   :  { %v6560_v60 = vadd.f32 %v12539_v2, %v6489_v34  ;;  %v6420_v12 = vmax.f32 %v6356_v28, 0.0  ;;  %v9660_v49 = vadd.f32 %v9420_v44, %v12487_v62  ;;  %v6015_v37 = vpop.f32.mrb[13].mxu0 }
 0x2d3   :  { %v6559_v32 = vadd.f32 %v12539_v2, %v6488_v3  ;;  %v6419_v42 = vmax.f32 %v6355_v22, 0.0  ;;  %v9661_v35 = vadd.f32 %v6015_v37, %v12489_v48 }
 0x2d4   :  { %6625 = vst.msk [vmem:[%s13018_s5 + $0x48] sm:$0xff] %vm6615_vm1, %v6560_v60  ;;  %v6491_v50 = vmul.f32 %v12533_v57, %v6420_v12  ;;  %v6358_v45 = vadd.f32 %v9660_v49, %v12527_v18 }
 0x2d5   :  { %6624 = vst.msk [vmem:[%s13018_s5 + $0x40] sm:$0xff] %vm6615_vm1, %v6559_v32  ;;  %v6490_v62 = vmul.f32 %v12533_v57, %v6419_v42  ;;  %v6357_v51 = vadd.f32 %v9661_v35, %v12527_v18  ;;  %v9423_v7 = vpop.f32.mrb[14].mxu0 }
 0x2d6   :  { %v6562_v48 = vadd.f32 %v12539_v2, %v6491_v50  ;;  %v6422_v6 = vmax.f32 %v6358_v45, 0.0  ;;  %v9662_v10 = vadd.f32 %v9423_v7, %v12491_v53  ;;  %v6025_v21 = vpop.f32.mrb[15].mxu0 }
 0x2d7   :  { %v6561_v31 = vadd.f32 %v12539_v2, %v6490_v62  ;;  %v6421_v63 = vmax.f32 %v6357_v51, 0.0  ;;  %v9663_v0 = vadd.f32 %v6025_v21, %v12493_v54 }
 0x2d8   :  { %6627 = vst.msk [vmem:[%s13018_s5 + $0x58] sm:$0xff] %vm6615_vm1, %v6562_v48  ;;  %v6493_v52 = vmul.f32 %v12533_v57, %v6422_v6  ;;  %v6360_v59 = vadd.f32 %v9662_v10, %v12527_v18 }
 0x2d9   :  { %6626 = vst.msk [vmem:[%s13018_s5 + $0x50] sm:$0xff] %vm6615_vm1, %v6561_v31  ;;  %v6492_v53 = vmul.f32 %v12533_v57, %v6421_v63  ;;  %v6359_v8 = vadd.f32 %v9663_v0, %v12527_v18  ;;  %v9426_v9 = vpop.f32.mrb[16].mxu0 }
 0x2da   :  { %v6564_v54 = vadd.f32 %v12539_v2, %v6493_v52  ;;  %v6424_v61 = vmax.f32 %v6360_v59, 0.0  ;;  %v9664_v14 = vadd.f32 %v9426_v9, %v12495_v55  ;;  %v6035_v11 = vpop.f32.mrb[17].mxu0 }
 0x2db   :  { %v6563_v23 = vadd.f32 %v12539_v2, %v6492_v53  ;;  %v6423_v16 = vmax.f32 %v6359_v8, 0.0  ;;  %v9665_v39 = vadd.f32 %v6035_v11, %v12497_v25 }
 0x2dc   :  { %6629 = vst.msk [vmem:[%s13018_s5 + $0x68] sm:$0xff] %vm6615_vm1, %v6564_v54  ;;  %v6495_v33 = vmul.f32 %v12533_v57, %v6424_v61  ;;  %v6362_v29 = vadd.f32 %v9664_v14, %v12527_v18 }
 0x2dd   :  { %6628 = vst.msk [vmem:[%s13018_s5 + $0x60] sm:$0xff] %vm6615_vm1, %v6563_v23  ;;  %v6494_v55 = vmul.f32 %v12533_v57, %v6423_v16  ;;  %v6361_v40 = vadd.f32 %v9665_v39, %v12527_v18  ;;  %v9429_v41 = vpop.f32.mrb[18].mxu0 }
 0x2de   :  { %v6566_v25 = vadd.f32 %v12539_v2, %v6495_v33  ;;  %v6426_v15 = vmax.f32 %v6362_v29, 0.0  ;;  %v9666_v24 = vadd.f32 %v9429_v41, %v12499_v13  ;;  %v6045_v1 = vpop.f32.mrb[19].mxu0 }
 0x2df   :  { %v6565_v5 = vadd.f32 %v12539_v2, %v6494_v55  ;;  %v6425_v27 = vmax.f32 %v6361_v40, 0.0  ;;  %v9667_v34 = vadd.f32 %v6045_v1, %v12501_v58 }
 0x2e0   :  { %6631 = vst.msk [vmem:[%s13018_s5 + $0x78] sm:$0xff] %vm6615_vm1, %v6566_v25  ;;  %v6497_v28 = vmul.f32 %v12533_v57, %v6426_v15  ;;  %v6364_v3 = vadd.f32 %v9666_v24, %v12527_v18 }
 0x2e1   :  { %6630 = vst.msk [vmem:[%s13018_s5 + $0x70] sm:$0xff] %vm6615_vm1, %v6565_v5  ;;  %v6496_v13 = vmul.f32 %v12533_v57, %v6425_v27  ;;  %v6363_v22 = vadd.f32 %v9667_v34, %v12527_v18  ;;  %v9432_v44 = vpop.f32.mrb[20].mxu0 }
 0x2e2   :  { %v6568_v58 = vadd.f32 %v12539_v2, %v6497_v28  ;;  %v6428_v60 = vmax.f32 %v6364_v3, 0.0  ;;  %v9668_v12 = vadd.f32 %v9432_v44, %v12503_v46  ;;  %v6055_v49 = vpop.f32.mrb[21].mxu0 }
 0x2e3   :  { %v6567_v37 = vadd.f32 %v12539_v2, %v6496_v13  ;;  %v6427_v32 = vmax.f32 %v6363_v22, 0.0  ;;  %v9669_v42 = vadd.f32 %v6055_v49, %v12505_v38 }
 0x2e4   :  { %6633 = vst.msk [vmem:[%s13018_s5 + $0x88] sm:$0xff] %vm6615_vm1, %v6568_v58  ;;  %v6499_v35 = vmul.f32 %v12533_v57, %v6428_v60  ;;  %v6366_v50 = vadd.f32 %v9668_v12, %v12527_v18 }
 0x2e5   :  { %6632 = vst.msk [vmem:[%s13018_s5 + $0x80] sm:$0xff] %vm6615_vm1, %v6567_v37  ;;  %v6498_v46 = vmul.f32 %v12533_v57, %v6427_v32  ;;  %v6365_v45 = vadd.f32 %v9669_v42, %v12527_v18  ;;  %v9435_v62 = vpop.f32.mrb[22].mxu0 }
 0x2e6   :  { %v6570_v38 = vadd.f32 %v12539_v2, %v6499_v35  ;;  %v6430_v51 = vmax.f32 %v6366_v50, 0.0  ;;  %v9670_v7 = vadd.f32 %v9435_v62, %v12507_v19  ;;  %v6065_v48 = vpop.f32.mrb[23].mxu0 }
 0x2e7   :  { %v6569_v6 = vadd.f32 %v12539_v2, %v6498_v46  ;;  %v6429_v10 = vmax.f32 %v6365_v45, 0.0  ;;  %v9671_v21 = vadd.f32 %v6065_v48, %v12509_v17 }
 0x2e8   :  { %6635 = vst.msk [vmem:[%s13018_s5 + $0x98] sm:$0xff] %vm6615_vm1, %v6570_v38  ;;  %v6501_v31 = vmul.f32 %v12533_v57, %v6430_v51  ;;  %v6368_v63 = vadd.f32 %v9670_v7, %v12527_v18 }
 0x2e9   :  { %6634 = vst.msk [vmem:[%s13018_s5 + $0x90] sm:$0xff] %vm6615_vm1, %v6569_v6  ;;  %v6500_v19 = vmul.f32 %v12533_v57, %v6429_v10  ;;  %v6367_v0 = vadd.f32 %v9671_v21, %v12527_v18  ;;  %v9438_v52 = vpop.f32.mrb[24].mxu0 }
 0x2ea   :  { %v6572_v17 = vadd.f32 %v12539_v2, %v6501_v31  ;;  %v6432_v59 = vmax.f32 %v6368_v63, 0.0  ;;  %v9672_v53 = vadd.f32 %v9438_v52, %v12511_v20  ;;  %v6075_v8 = vpop.f32.mrb[25].mxu0 }
 0x2eb   :  { %v6571_v9 = vadd.f32 %v12539_v2, %v6500_v19  ;;  %v6431_v54 = vmax.f32 %v6367_v0, 0.0  ;;  %v9673_v61 = vadd.f32 %v6075_v8, %v12513_v26 }
 0x2ec   :  { %6637 = vst.msk [vmem:[%s13018_s5 + $0xa8] sm:$0xff] %vm6615_vm1, %v6572_v17  ;;  %v6503_v14 = vmul.f32 %v12533_v57, %v6432_v59  ;;  %v6370_v11 = vadd.f32 %v9672_v53, %v12527_v18 }
 0x2ed   :  { %6636 = vst.msk [vmem:[%s13018_s5 + $0xa0] sm:$0xff] %vm6615_vm1, %v6571_v9  ;;  %v6502_v20 = vmul.f32 %v12533_v57, %v6431_v54  ;;  %v6369_v23 = vadd.f32 %v9673_v61, %v12527_v18  ;;  %v9441_v16 = vpop.f32.mrb[26].mxu0 }
 0x2ee   :  { %v6574_v26 = vadd.f32 %v12539_v2, %v6503_v14  ;;  %v6434_v39 = vmax.f32 %v6370_v11, 0.0  ;;  %v9674_v33 = vadd.f32 %v9441_v16, %v12515_v56  ;;  %v6085_v29 = vpop.f32.mrb[27].mxu0 }
 0x2ef   :  { %v6573_v55 = vadd.f32 %v12539_v2, %v6502_v20  ;;  %v6433_v40 = vmax.f32 %v6369_v23, 0.0  ;;  %v9675_v41 = vadd.f32 %v6085_v29, %v12517_v43 }
 0x2f0   :  { %6639 = vst.msk [vmem:[%s13018_s5 + $0xb8] sm:$0xff] %vm6615_vm1, %v6574_v26  ;;  %v6505_v25 = vmul.f32 %v12533_v57, %v6434_v39  ;;  %v6372_v15 = vadd.f32 %v9674_v33, %v12527_v18 }
 0x2f1   :  { %6638 = vst.msk [vmem:[%s13018_s5 + $0xb0] sm:$0xff] %vm6615_vm1, %v6573_v55  ;;  %v6504_v56 = vmul.f32 %v12533_v57, %v6433_v40  ;;  %v6371_v24 = vadd.f32 %v9675_v41, %v12527_v18  ;;  %v9444_v1 = vpop.f32.mrb[28].mxu0 }
 0x2f2   :  { %v6576_v43 = vadd.f32 %v12539_v2, %v6505_v25  ;;  %v6436_v5 = vmax.f32 %v6372_v15, 0.0  ;;  %v9676_v27 = vadd.f32 %v9444_v1, %v12519_v30  ;;  %v6095_v34 = vpop.f32.mrb[29].mxu0 }
 0x2f3   :  { %v6575_v28 = vadd.f32 %v12539_v2, %v6504_v56  ;;  %v6435_v3 = vmax.f32 %v6371_v24, 0.0  ;;  %v9677_v13 = vadd.f32 %v6095_v34, %v12521_v36 }
 0x2f4   :  { %6641 = vst.msk [vmem:[%s13018_s5 + $0xc8] sm:$0xff] %vm6615_vm1, %v6576_v43  ;;  %v6507_v22 = vmul.f32 %v12533_v57, %v6436_v5  ;;  %v6374_v44 = vadd.f32 %v9676_v27, %v12527_v18 }
 0x2f5   :  { %6640 = vst.msk [vmem:[%s13018_s5 + $0xc0] sm:$0xff] %vm6615_vm1, %v6575_v28  ;;  %v6506_v30 = vmul.f32 %v12533_v57, %v6435_v3  ;;  %v6373_v58 = vadd.f32 %v9677_v13, %v12527_v18  ;;  %v9447_v60 = vpop.f32.mrb[30].mxu0 }
 0x2f6   :  { %v6578_v36 = vadd.f32 %v12539_v2, %v6507_v22  ;;  %v6438_v12 = vmax.f32 %v6374_v44, 0.0  ;;  %v9678_v49 = vadd.f32 %v9447_v60, %v12523_v4  ;;  %v6105_v37 = vpop.f32.mrb[31].mxu0 }
 0x2f7   :  { %v6577_v32 = vadd.f32 %v12539_v2, %v6506_v30  ;;  %v6437_v42 = vmax.f32 %v6373_v58, 0.0  ;;  %v9679_v35 = vadd.f32 %v6105_v37, %v12525_v47 }
 0x2f8   :  { %6643 = vst.msk [vmem:[%s13018_s5 + $0xd8] sm:$0xff] %vm6615_vm1, %v6578_v36  ;;  %v6509_v50 = vmul.f32 %v12533_v57, %v6438_v12  ;;  %v6376_v46 = vadd.f32 %v9678_v49, %v12527_v18  ;;  %v9002_v45 = vpop.f32.mrb[32].mxu1 }
 0x2f9   :  { %6642 = vst.msk [vmem:[%s13018_s5 + $0xd0] sm:$0xff] %vm6615_vm1, %v6577_v32  ;;  %v6508_v4 = vmul.f32 %v12533_v57, %v6437_v42  ;;  %v6375_v62 = vadd.f32 %v9679_v35, %v12527_v18  ;;  %v9450_v47 = vpop.f32.mrb[32].mxu0  ;;  %v3255_v38 = vpop.f32.mrb[33].mxu1 }
 0x2fa   :  { %v6580_v51 = vadd.f32 %v12539_v2, %v6509_v50  ;;  %v6440_v7 = vmax.f32 %v6376_v46, 0.0  ;;  %v9680_v48 = vadd.f32 %v9450_v47, %v9002_v45  ;;  %v6115_v6 = vpop.f32.mrb[33].mxu0 }
 0x2fb   :  { %v6579_v10 = vadd.f32 %v12539_v2, %v6508_v4  ;;  %v6439_v21 = vmax.f32 %v6375_v62, 0.0  ;;  %v9681_v31 = vadd.f32 %v6115_v6, %v3255_v38 }
 0x2fc   :  { %6645 = vst.msk [vmem:[%s13018_s5 + $0xe8] sm:$0xff] %vm6615_vm1, %v6580_v51  ;;  %v6511_v63 = vmul.f32 %v12533_v57, %v6440_v7  ;;  %v6378_v19 = vadd.f32 %v9680_v48, %v12527_v18  ;;  %v9005_v0 = vpop.f32.mrb[34].mxu1 }
 0x2fd   :  { %6644 = vst.msk [vmem:[%s13018_s5 + $0xe0] sm:$0xff] %vm6615_vm1, %v6579_v10  ;;  %v6510_v52 = vmul.f32 %v12533_v57, %v6439_v21  ;;  %v6377_v17 = vadd.f32 %v9681_v31, %v12527_v18  ;;  %v9453_v59 = vpop.f32.mrb[34].mxu0  ;;  %v3265_v53 = vpop.f32.mrb[35].mxu1 }
 0x2fe   :  { %v6582_v8 = vadd.f32 %v12539_v2, %v6511_v63  ;;  %v6442_v9 = vmax.f32 %v6378_v19, 0.0  ;;  %v9682_v54 = vadd.f32 %v9453_v59, %v9005_v0  ;;  %v6125_v61 = vpop.f32.mrb[35].mxu0 }
 0x2ff   :  { %v6581_v14 = vadd.f32 %v12539_v2, %v6510_v52  ;;  %v6441_v11 = vmax.f32 %v6377_v17, 0.0  ;;  %v9683_v20 = vadd.f32 %v6125_v61, %v3265_v53 }
 0x300   :  { %6647 = vst.msk [vmem:[%s13018_s5 + $0xf8] sm:$0xff] %vm6615_vm1, %v6582_v8  ;;  %v6513_v23 = vmul.f32 %v12533_v57, %v6442_v9  ;;  %v6380_v16 = vadd.f32 %v9682_v54, %v12527_v18  ;;  %v9008_v26 = vpop.f32.mrb[36].mxu1 }
 0x301   :  { %6646 = vst.msk [vmem:[%s13018_s5 + $0xf0] sm:$0xff] %vm6615_vm1, %v6581_v14  ;;  %v6512_v39 = vmul.f32 %v12533_v57, %v6441_v11  ;;  %v6379_v33 = vadd.f32 %v9683_v20, %v12527_v18  ;;  %v9456_v29 = vpop.f32.mrb[36].mxu0  ;;  %v3275_v55 = vpop.f32.mrb[37].mxu1 }
 0x302   :  { %v6584_v40 = vadd.f32 %v12539_v2, %v6513_v23  ;;  %v6444_v41 = vmax.f32 %v6380_v16, 0.0  ;;  %v9684_v25 = vadd.f32 %v9456_v29, %v9008_v26  ;;  %v6135_v15 = vpop.f32.mrb[37].mxu0 }
 0x303   :  { %v6583_v56 = vadd.f32 %v12539_v2, %v6512_v39  ;;  %v6443_v24 = vmax.f32 %v6379_v33, 0.0  ;;  %v9685_v1 = vadd.f32 %v6135_v15, %v3275_v55 }
 0x304   :  { %6649 = vst.msk [vmem:[%s13018_s5 + $0x108] sm:$0xff] %vm6615_vm1, %v6584_v40  ;;  %v6515_v43 = vmul.f32 %v12533_v57, %v6444_v41  ;;  %v6382_v5 = vadd.f32 %v9684_v25, %v12527_v18  ;;  %v9011_v27 = vpop.f32.mrb[38].mxu1 }
 0x305   :  { %6648 = vst.msk [vmem:[%s13018_s5 + $0x100] sm:$0xff] %vm6615_vm1, %v6583_v56  ;;  %v6514_v34 = vmul.f32 %v12533_v57, %v6443_v24  ;;  %v6381_v28 = vadd.f32 %v9685_v1, %v12527_v18  ;;  %v9459_v3 = vpop.f32.mrb[38].mxu0  ;;  %v3285_v13 = vpop.f32.mrb[39].mxu1 }
 0x306   :  { %v6586_v22 = vadd.f32 %v12539_v2, %v6515_v43  ;;  %v6446_v44 = vmax.f32 %v6382_v5, 0.0  ;;  %v9686_v30 = vadd.f32 %v9459_v3, %v9011_v27  ;;  %v6145_v58 = vpop.f32.mrb[39].mxu0 }
 0x307   :  { %v6585_v60 = vadd.f32 %v12539_v2, %v6514_v34  ;;  %v6445_v36 = vmax.f32 %v6381_v28, 0.0  ;;  %v9687_v12 = vadd.f32 %v6145_v58, %v3285_v13 }
 0x308   :  { %6651 = vst.msk [vmem:[%s13018_s5 + $0x118] sm:$0xff] %vm6615_vm1, %v6586_v22  ;;  %v6517_v49 = vmul.f32 %v12533_v57, %v6446_v44  ;;  %v6384_v37 = vadd.f32 %v9686_v30, %v12527_v18  ;;  %v9014_v32 = vpop.f32.mrb[40].mxu1 }
 0x309   :  { %6650 = vst.msk [vmem:[%s13018_s5 + $0x110] sm:$0xff] %vm6615_vm1, %v6585_v60  ;;  %v6516_v42 = vmul.f32 %v12533_v57, %v6445_v36  ;;  %v6383_v35 = vadd.f32 %v9687_v12, %v12527_v18  ;;  %v9462_v50 = vpop.f32.mrb[40].mxu0  ;;  %v3295_v46 = vpop.f32.mrb[41].mxu1 }
 0x30a   :  { %v6588_v45 = vadd.f32 %v12539_v2, %v6517_v49  ;;  %v6448_v4 = vmax.f32 %v6384_v37, 0.0  ;;  %v9688_v62 = vadd.f32 %v9462_v50, %v9014_v32  ;;  %v6155_v47 = vpop.f32.mrb[41].mxu0 }
 0x30b   :  { %v6587_v38 = vadd.f32 %v12539_v2, %v6516_v42  ;;  %v6447_v51 = vmax.f32 %v6383_v35, 0.0  ;;  %v9689_v7 = vadd.f32 %v6155_v47, %v3295_v46 }
 0x30c   :  { %6653 = vst.msk [vmem:[%s13018_s5 + $0x128] sm:$0xff] %vm6615_vm1, %v6588_v45  ;;  %v6519_v48 = vmul.f32 %v12533_v57, %v6448_v4  ;;  %v6386_v6 = vadd.f32 %v9688_v62, %v12527_v18  ;;  %v9017_v10 = vpop.f32.mrb[42].mxu1 }
 0x30d   :  { %6652 = vst.msk [vmem:[%s13018_s5 + $0x120] sm:$0xff] %vm6615_vm1, %v6587_v38  ;;  %v6518_v21 = vmul.f32 %v12533_v57, %v6447_v51  ;;  %v6385_v31 = vadd.f32 %v9689_v7, %v12527_v18  ;;  %v9465_v63 = vpop.f32.mrb[42].mxu0  ;;  %v3305_v19 = vpop.f32.mrb[43].mxu1 }
 0x30e   :  { %v6590_v0 = vadd.f32 %v12539_v2, %v6519_v48  ;;  %v6450_v52 = vmax.f32 %v6386_v6, 0.0  ;;  %v9690_v17 = vadd.f32 %v9465_v63, %v9017_v10  ;;  %v6165_v59 = vpop.f32.mrb[43].mxu0 }
 0x30f   :  { %v6589_v53 = vadd.f32 %v12539_v2, %v6518_v21  ;;  %v6449_v8 = vmax.f32 %v6385_v31, 0.0  ;;  %v9691_v9 = vadd.f32 %v6165_v59, %v3305_v19 }
 0x310   :  { %6655 = vst.msk [vmem:[%s13018_s5 + $0x138] sm:$0xff] %vm6615_vm1, %v6590_v0  ;;  %v6521_v54 = vmul.f32 %v12533_v57, %v6450_v52  ;;  %v6388_v61 = vadd.f32 %v9690_v17, %v12527_v18  ;;  %v9020_v14 = vpop.f32.mrb[44].mxu1 }
 0x311   :  { %6654 = vst.msk [vmem:[%s13018_s5 + $0x130] sm:$0xff] %vm6615_vm1, %v6589_v53  ;;  %v6520_v11 = vmul.f32 %v12533_v57, %v6449_v8  ;;  %v6387_v20 = vadd.f32 %v9691_v9, %v12527_v18  ;;  %v9468_v23 = vpop.f32.mrb[44].mxu0  ;;  %v3315_v16 = vpop.f32.mrb[45].mxu1 }
 0x312   :  { %v6592_v26 = vadd.f32 %v12539_v2, %v6521_v54  ;;  %v6452_v39 = vmax.f32 %v6388_v61, 0.0  ;;  %v9692_v33 = vadd.f32 %v9468_v23, %v9020_v14  ;;  %v6175_v29 = vpop.f32.mrb[45].mxu0 }
 0x313   :  { %v6591_v55 = vadd.f32 %v12539_v2, %v6520_v11  ;;  %v6451_v40 = vmax.f32 %v6387_v20, 0.0  ;;  %v9693_v41 = vadd.f32 %v6175_v29, %v3315_v16 }
 0x314   :  { %6657 = vst.msk [vmem:[%s13018_s5 + $0x148] sm:$0xff] %vm6615_vm1, %v6592_v26  ;;  %v6523_v25 = vmul.f32 %v12533_v57, %v6452_v39  ;;  %v6390_v15 = vadd.f32 %v9692_v33, %v12527_v18  ;;  %v9023_v56 = vpop.f32.mrb[46].mxu1 }
 0x315   :  { %6656 = vst.msk [vmem:[%s13018_s5 + $0x140] sm:$0xff] %vm6615_vm1, %v6591_v55  ;;  %v6522_v24 = vmul.f32 %v12533_v57, %v6451_v40  ;;  %v6389_v1 = vadd.f32 %v9693_v41, %v12527_v18  ;;  %v9471_v43 = vpop.f32.mrb[46].mxu0  ;;  %v3325_v5 = vpop.f32.mrb[47].mxu1 }
 0x316   :  { %v6594_v27 = vadd.f32 %v12539_v2, %v6523_v25  ;;  %v6454_v34 = vmax.f32 %v6390_v15, 0.0  ;;  %v9694_v28 = vadd.f32 %v9471_v43, %v9023_v56  ;;  %v6185_v3 = vpop.f32.mrb[47].mxu0 }
 0x317   :  { %v6593_v13 = vadd.f32 %v12539_v2, %v6522_v24  ;;  %v6453_v22 = vmax.f32 %v6389_v1, 0.0  ;;  %v9695_v44 = vadd.f32 %v6185_v3, %v3325_v5 }
 0x318   :  { %6659 = vst.msk [vmem:[%s13018_s5 + $0x158] sm:$0xff] %vm6615_vm1, %v6594_v27  ;;  %v6525_v30 = vmul.f32 %v12533_v57, %v6454_v34  ;;  %v6392_v58 = vadd.f32 %v9694_v28, %v12527_v18  ;;  %v9026_v60 = vpop.f32.mrb[48].mxu1 }
 0x319   :  { %6658 = vst.msk [vmem:[%s13018_s5 + $0x150] sm:$0xff] %vm6615_vm1, %v6593_v13  ;;  %v6524_v36 = vmul.f32 %v12533_v57, %v6453_v22  ;;  %v6391_v12 = vadd.f32 %v9695_v44, %v12527_v18  ;;  %v9474_v49 = vpop.f32.mrb[48].mxu0  ;;  %v3335_v37 = vpop.f32.mrb[49].mxu1 }
 0x31a   :  { %v6596_v32 = vadd.f32 %v12539_v2, %v6525_v30  ;;  %v6456_v42 = vmax.f32 %v6392_v58, 0.0  ;;  %v9696_v35 = vadd.f32 %v9474_v49, %v9026_v60  ;;  %v6195_v50 = vpop.f32.mrb[49].mxu0 }
 0x31b   :  { %v6595_v46 = vadd.f32 %v12539_v2, %v6524_v36  ;;  %v6455_v45 = vmax.f32 %v6391_v12, 0.0  ;;  %v9697_v4 = vadd.f32 %v6195_v50, %v3335_v37 }
 0x31c   :  { %6661 = vst.msk [vmem:[%s13018_s5 + $0x168] sm:$0xff] %vm6615_vm1, %v6596_v32  ;;  %v6527_v62 = vmul.f32 %v12533_v57, %v6456_v42  ;;  %v6394_v47 = vadd.f32 %v9696_v35, %v12527_v18  ;;  %v9029_v38 = vpop.f32.mrb[50].mxu1 }
 0x31d   :  { %6660 = vst.msk [vmem:[%s13018_s5 + $0x160] sm:$0xff] %vm6615_vm1, %v6595_v46  ;;  %v6526_v51 = vmul.f32 %v12533_v57, %v6455_v45  ;;  %v6393_v7 = vadd.f32 %v9697_v4, %v12527_v18  ;;  %v9477_v48 = vpop.f32.mrb[50].mxu0  ;;  %v3345_v6 = vpop.f32.mrb[51].mxu1 }
 0x31e   :  { %v6598_v10 = vadd.f32 %v12539_v2, %v6527_v62  ;;  %v6458_v21 = vmax.f32 %v6394_v47, 0.0  ;;  %v9698_v31 = vadd.f32 %v9477_v48, %v9029_v38  ;;  %v6205_v63 = vpop.f32.mrb[51].mxu0 }
 0x31f   :  { %v6597_v19 = vadd.f32 %v12539_v2, %v6526_v51  ;;  %v6457_v0 = vmax.f32 %v6393_v7, 0.0  ;;  %v9699_v52 = vadd.f32 %v6205_v63, %v3345_v6 }
 0x320   :  { %6663 = vst.msk [vmem:[%s13018_s5 + $0x178] sm:$0xff] %vm6615_vm1, %v6598_v10  ;;  %v6529_v17 = vmul.f32 %v12533_v57, %v6458_v21  ;;  %v6396_v59 = vadd.f32 %v9698_v31, %v12527_v18  ;;  %v9032_v53 = vpop.f32.mrb[52].mxu1 }
 0x321   :  { %6662 = vst.msk [vmem:[%s13018_s5 + $0x170] sm:$0xff] %vm6615_vm1, %v6597_v19  ;;  %v6528_v8 = vmul.f32 %v12533_v57, %v6457_v0  ;;  %v6395_v9 = vadd.f32 %v9699_v52, %v12527_v18  ;;  %v9480_v54 = vpop.f32.mrb[52].mxu0  ;;  %v3355_v61 = vpop.f32.mrb[53].mxu1 }
 0x322   :  { %v6600_v14 = vadd.f32 %v12539_v2, %v6529_v17  ;;  %v6460_v11 = vmax.f32 %v6396_v59, 0.0  ;;  %v9700_v20 = vadd.f32 %v9480_v54, %v9032_v53  ;;  %v6215_v23 = vpop.f32.mrb[53].mxu0 }
 0x323   :  { %v6599_v16 = vadd.f32 %v12539_v2, %v6528_v8  ;;  %v6459_v26 = vmax.f32 %v6395_v9, 0.0  ;;  %v9701_v39 = vadd.f32 %v6215_v23, %v3355_v61 }
 0x324   :  { %6665 = vst.msk [vmem:[%s13018_s5 + $0x188] sm:$0xff] %vm6615_vm1, %v6600_v14  ;;  %v6531_v33 = vmul.f32 %v12533_v57, %v6460_v11  ;;  %v6398_v29 = vadd.f32 %v9700_v20, %v12527_v18  ;;  %v9035_v55 = vpop.f32.mrb[54].mxu1 }
 0x325   :  { %6664 = vst.msk [vmem:[%s13018_s5 + $0x180] sm:$0xff] %vm6615_vm1, %v6599_v16  ;;  %v6530_v40 = vmul.f32 %v12533_v57, %v6459_v26  ;;  %v6397_v41 = vadd.f32 %v9701_v39, %v12527_v18  ;;  %v9483_v25 = vpop.f32.mrb[54].mxu0  ;;  %v3365_v15 = vpop.f32.mrb[55].mxu1 }
 0x326   :  { %v6602_v56 = vadd.f32 %v12539_v2, %v6531_v33  ;;  %v6462_v24 = vmax.f32 %v6398_v29, 0.0  ;;  %v9702_v1 = vadd.f32 %v9483_v25, %v9035_v55  ;;  %v6225_v43 = vpop.f32.mrb[55].mxu0 }
 0x327   :  { %v6601_v5 = vadd.f32 %v12539_v2, %v6530_v40  ;;  %v6461_v27 = vmax.f32 %v6397_v41, 0.0  ;;  %v9703_v34 = vadd.f32 %v6225_v43, %v3365_v15 }
 0x328   :  { %6667 = vst.msk [vmem:[%s13018_s5 + $0x198] sm:$0xff] %vm6615_vm1, %v6602_v56  ;;  %v6533_v28 = vmul.f32 %v12533_v57, %v6462_v24  ;;  %v6400_v3 = vadd.f32 %v9702_v1, %v12527_v18  ;;  %v9038_v13 = vpop.f32.mrb[56].mxu1 }
 0x329   :  { %6666 = vst.msk [vmem:[%s13018_s5 + $0x190] sm:$0xff] %vm6615_vm1, %v6601_v5  ;;  %v6532_v22 = vmul.f32 %v12533_v57, %v6461_v27  ;;  %v6399_v44 = vadd.f32 %v9703_v34, %v12527_v18  ;;  %v9486_v30 = vpop.f32.mrb[56].mxu0  ;;  %v3375_v58 = vpop.f32.mrb[57].mxu1 }
 0x32a   :  { %v6604_v60 = vadd.f32 %v12539_v2, %v6533_v28  ;;  %v6464_v36 = vmax.f32 %v6400_v3, 0.0  ;;  %v9704_v12 = vadd.f32 %v9486_v30, %v9038_v13  ;;  %v6235_v49 = vpop.f32.mrb[57].mxu0 }
 0x32b   :  { %v6603_v37 = vadd.f32 %v12539_v2, %v6532_v22  ;;  %v6463_v32 = vmax.f32 %v6399_v44, 0.0  ;;  %v9705_v42 = vadd.f32 %v6235_v49, %v3375_v58 }
 0x32c   :  { %6669 = vst.msk [vmem:[%s13018_s5 + $0x1a8] sm:$0xff] %vm6615_vm1, %v6604_v60  ;;  %v6535_v35 = vmul.f32 %v12533_v57, %v6464_v36  ;;  %v6402_v50 = vadd.f32 %v9704_v12, %v12527_v18  ;;  %v9041_v46 = vpop.f32.mrb[58].mxu1 }
 0x32d   :  { %6668 = vst.msk [vmem:[%s13018_s5 + $0x1a0] sm:$0xff] %vm6615_vm1, %v6603_v37  ;;  %v6534_v45 = vmul.f32 %v12533_v57, %v6463_v32  ;;  %v6401_v4 = vadd.f32 %v9705_v42, %v12527_v18  ;;  %v9489_v62 = vpop.f32.mrb[58].mxu0  ;;  %v3385_v47 = vpop.f32.mrb[59].mxu1 }
 0x32e   :  { %v6606_v38 = vadd.f32 %v12539_v2, %v6535_v35  ;;  %v6466_v51 = vmax.f32 %v6402_v50, 0.0  ;;  %v9706_v7 = vadd.f32 %v9489_v62, %v9041_v46  ;;  %v6245_v48 = vpop.f32.mrb[59].mxu0 }
 0x32f   :  { %v6605_v6 = vadd.f32 %v12539_v2, %v6534_v45  ;;  %v6465_v10 = vmax.f32 %v6401_v4, 0.0  ;;  %v9707_v21 = vadd.f32 %v6245_v48, %v3385_v47 }
 0x330   :  { %6671 = vst.msk [vmem:[%s13018_s5 + $0x1b8] sm:$0xff] %vm6615_vm1, %v6606_v38  ;;  %v6537_v31 = vmul.f32 %v12533_v57, %v6466_v51  ;;  %v6404_v63 = vadd.f32 %v9706_v7, %v12527_v18  ;;  %v9044_v19 = vpop.f32.mrb[60].mxu1 }
 0x331   :  { %6670 = vst.msk [vmem:[%s13018_s5 + $0x1b0] sm:$0xff] %vm6615_vm1, %v6605_v6  ;;  %v6536_v0 = vmul.f32 %v12533_v57, %v6465_v10  ;;  %v6403_v52 = vadd.f32 %v9707_v21, %v12527_v18  ;;  %v9492_v17 = vpop.f32.mrb[60].mxu0  ;;  %v3395_v59 = vpop.f32.mrb[61].mxu1 }
 0x332   :  { %v6608_v53 = vadd.f32 %v12539_v2, %v6537_v31  ;;  %v6468_v8 = vmax.f32 %v6404_v63, 0.0  ;;  %v9708_v9 = vadd.f32 %v9492_v17, %v9044_v19  ;;  %v6255_v54 = vpop.f32.mrb[61].mxu0 }
 0x333   :  { %v6607_v61 = vadd.f32 %v12539_v2, %v6536_v0  ;;  %v6467_v14 = vmax.f32 %v6403_v52, 0.0  ;;  %v9709_v11 = vadd.f32 %v6255_v54, %v3395_v59 }
 0x334   :  { %6673 = vst.msk [vmem:[%s13018_s5 + $0x1c8] sm:$0xff] %vm6615_vm1, %v6608_v53  ;;  %v6539_v20 = vmul.f32 %v12533_v57, %v6468_v8  ;;  %v6406_v23 = vadd.f32 %v9708_v9, %v12527_v18  ;;  %v9047_v16 = vpop.f32.mrb[62].mxu1 }
 0x335   :  { %6672 = vst.msk [vmem:[%s13018_s5 + $0x1c0] sm:$0xff] %vm6615_vm1, %v6607_v61  ;;  %v6538_v26 = vmul.f32 %v12533_v57, %v6467_v14  ;;  %v6405_v39 = vadd.f32 %v9709_v11, %v12527_v18  ;;  %v9495_v33 = vpop.f32.mrb[62].mxu0  ;;  %v3405_v29 = vpop.f32.mrb[63].mxu1 }
 0x336   :  { %v6610_v55 = vadd.f32 %v12539_v2, %v6539_v20  ;;  %v6470_v40 = vmax.f32 %v6406_v23, 0.0  ;;  %v9710_v41 = vadd.f32 %v9495_v33, %v9047_v16  ;;  %v6265_v25 = vpop.f32.mrb[63].mxu0 }
 0x337   :  { %v6609_v15 = vadd.f32 %v12539_v2, %v6538_v26  ;;  %v6469_v56 = vmax.f32 %v6405_v39, 0.0  ;;  %v9711_v24 = vadd.f32 %v6265_v25, %v3405_v29 }
 0x338   :  { %6675 = vst.msk [vmem:[%s13018_s5 + $0x1d8] sm:$0xff] %vm6615_vm1, %v6610_v55  ;;  %v6541_v1 = vmul.f32 %v12533_v57, %v6470_v40  ;;  %v6408_v43 = vadd.f32 %v9710_v41, %v12527_v18 }
 0x339   :  { %6674 = vst.msk [vmem:[%s13018_s5 + $0x1d0] sm:$0xff] %vm6615_vm1, %v6609_v15  ;;  %v6540_v5 = vmul.f32 %v12533_v57, %v6469_v56  ;;  %v6407_v27 = vadd.f32 %v9711_v24, %v12527_v18 }
 0x33a   :  { %v6612_v34 = vadd.f32 %v12539_v2, %v6541_v1  ;;  %v6472_v28 = vmax.f32 %v6408_v43, 0.0 }
 0x33b   :  { %v6611_v3 = vadd.f32 %v12539_v2, %v6540_v5  ;;  %v6471_v13 = vmax.f32 %v6407_v27, 0.0 }
 0x33c   :  { %6677 = vst.msk [vmem:[%s13018_s5 + $0x1e8] sm:$0xff] %vm6615_vm1, %v6612_v34  ;;  %v6543_v22 = vmul.f32 %v12533_v57, %v6472_v28 }
 0x33d   :  { %6676 = vst.msk [vmem:[%s13018_s5 + $0x1e0] sm:$0xff] %vm6615_vm1, %v6611_v3  ;;  %v6542_v18 = vmul.f32 %v12533_v57, %v6471_v13 }
 0x33e   :  { %v6614_v44 = vadd.f32 %v12539_v2, %v6543_v22 }
 0x33f   :  { %v6613_v30 = vadd.f32 %v12539_v2, %v6542_v18 }
 0x340   :  { %6679 = vst.msk [vmem:[%s13018_s5 + $0x1f8] sm:$0xff] %vm6615_vm1, %v6614_v44 }
 0x341   :  { %6678 = vst.msk [vmem:[%s13018_s5 + $0x1f0] sm:$0xff] %vm6615_vm1, %v6613_v30 }
 0x342   :  { %6684 = vsyncpa [#allocation3], 1 }

// kernel: siamese_forward.11
= control target key start
LH: loop header
LB: loop body
LE: loop exit
PB: predicated region body
PF: predicated region fallthrough
CT: control target
= control target key end

     0   :  { %s612_s1 = inlined_call_operand.vmem [shape: f32[512,128], index: 1, kind: input, shape index: {}]   ;;  %s613_s0 = inlined_call_operand.vmem [shape: f32[8,512], index: 0, kind: input, shape index: {}]   ;;  %s614_s2 = inlined_call_operand.vmem [shape: f32[1,128], index: 2, kind: input, shape index: {}]   ;;  %s615_s3 = inlined_call_operand.vmem [shape: f32[8,128], index: 3, kind: output, shape index: {}]  }
   0x1   :  { %v40_v0 = vld [vmem:[%s612_s1 + $0x80] sm:$0xff]  ;;  %v41_v1 = vld [vmem:[%s612_s1 + $0x88] sm:$0xff]  ;;  %v42_v11 = vld [vmem:[%s612_s1 + $0x90] sm:$0xff] }
   0x2   :  { %v72_v2 = vld [vmem:[%s612_s1 + $0x180] sm:$0xff]  ;;  %v318_v3 = vpack.c.bf16 %v41_v1, %v40_v0  ;;  %v73_v4 = vld [vmem:[%s612_s1 + $0x188] sm:$0xff]  ;;  %v43_v13 = vld [vmem:[%s612_s1 + $0x98] sm:$0xff] }
   0x3   :  { %v24_v5 = vld [vmem:[%s612_s1] sm:$0xff]  ;;  %v25_v6 = vld [vmem:[%s612_s1 + $0x8] sm:$0xff]  ;;  %v350_v7 = vpack.c.bf16 %v73_v4, %v72_v2  ;;  %v74_v14 = vld [vmem:[%s612_s1 + $0x190] sm:$0xff]  ;;  %v322_v16 = vpack.c.bf16 %v43_v13, %v42_v11 }
   0x4   :  { %v320_v8 = vpack.c.bf16 %v25_v6, %v24_v5  ;;  %v56_v9 = vld [vmem:[%s612_s1 + $0x100] sm:$0xff]  ;;  %v57_v10 = vld [vmem:[%s612_s1 + $0x108] sm:$0xff]  ;;  %319 = vmatprep.subr.bf16.mxu0 %v318_v3  ;;  %v75_v15 = vld [vmem:[%s612_s1 + $0x198] sm:$0xff] }
   0x5   :  { %v352_v12 = vpack.c.bf16 %v57_v10, %v56_v9  ;;  %351 = vmatprep.subr.bf16.mxu1 %v350_v7  ;;  %v354_v17 = vpack.c.bf16 %v75_v15, %v74_v14  ;;  %v26_v18 = vld [vmem:[%s612_s1 + $0x10] sm:$0xff]  ;;  %v27_v19 = vld [vmem:[%s612_s1 + $0x18] sm:$0xff]  ;;  %v44_v23 = vld [vmem:[%s612_s1 + $0xa0] sm:$0xff] }
   0x6   :  { %321 = vmatpush3.bf16.msra.mxu0 %v320_v8  ;;  %v58_v20 = vld [vmem:[%s612_s1 + $0x110] sm:$0xff]  ;;  %v324_v21 = vpack.c.bf16 %v27_v19, %v26_v18  ;;  %v59_v22 = vld [vmem:[%s612_s1 + $0x118] sm:$0xff]  ;;  %v45_v24 = vld [vmem:[%s612_s1 + $0xa8] sm:$0xff] }
   0x7   :  { %353 = vmatpush3.bf16.msra.mxu1 %v352_v12  ;;  %323 = vmatprep.subr.bf16.mxu0 %v322_v16  ;;  %v356_v25 = vpack.c.bf16 %v59_v22, %v58_v20  ;;  %v326_v26 = vpack.c.bf16 %v45_v24, %v44_v23  ;;  %v76_v27 = vld [vmem:[%s612_s1 + $0x1a0] sm:$0xff]  ;;  %v77_v28 = vld [vmem:[%s612_s1 + $0x1a8] sm:$0xff]  ;;  %v46_v35 = vld [vmem:[%s612_s1 + $0xb0] sm:$0xff] }
   0x8   :  { %355 = vmatprep.subr.bf16.mxu1 %v354_v17  ;;  %v28_v29 = vld [vmem:[%s612_s1 + $0x20] sm:$0xff]  ;;  %v358_v30 = vpack.c.bf16 %v77_v28, %v76_v27  ;;  %v29_v31 = vld [vmem:[%s612_s1 + $0x28] sm:$0xff]  ;;  %v47_v36 = vld [vmem:[%s612_s1 + $0xb8] sm:$0xff] }
   0x9   :  { %v60_v32 = vld [vmem:[%s612_s1 + $0x120] sm:$0xff]  ;;  %v61_v33 = vld [vmem:[%s612_s1 + $0x128] sm:$0xff]  ;;  %v328_v34 = vpack.c.bf16 %v29_v31, %v28_v29  ;;  %v78_v37 = vld [vmem:[%s612_s1 + $0x1b0] sm:$0xff]  ;;  %v330_v39 = vpack.c.bf16 %v47_v36, %v46_v35 }
   0xa   :  { %325 = vmatpush3.bf16.msra.mxu0 %v324_v21  ;;  %v360_v38 = vpack.c.bf16 %v61_v33, %v60_v32  ;;  %v79_v40 = vld [vmem:[%s612_s1 + $0x1b8] sm:$0xff]  ;;  %v30_v41 = vld [vmem:[%s612_s1 + $0x30] sm:$0xff]  ;;  %v48_v46 = vld [vmem:[%s612_s1 + $0xc0] sm:$0xff] }
   0xb   :  { %357 = vmatpush3.bf16.msra.mxu1 %v356_v25  ;;  %327 = vmatprep.subr.bf16.mxu0 %v326_v26  ;;  %v31_v42 = vld [vmem:[%s612_s1 + $0x38] sm:$0xff]  ;;  %v362_v43 = vpack.c.bf16 %v79_v40, %v78_v37  ;;  %v62_v44 = vld [vmem:[%s612_s1 + $0x130] sm:$0xff]  ;;  %v49_v47 = vld [vmem:[%s612_s1 + $0xc8] sm:$0xff] }
   0xc   :  { %359 = vmatprep.subr.bf16.mxu1 %v358_v30  ;;  %v63_v45 = vld [vmem:[%s612_s1 + $0x138] sm:$0xff]  ;;  %v80_v48 = vld [vmem:[%s612_s1 + $0x1c0] sm:$0xff]  ;;  %v81_v49 = vld [vmem:[%s612_s1 + $0x1c8] sm:$0xff]  ;;  %v332_v50 = vpack.c.bf16 %v31_v42, %v30_v41  ;;  %v334_v52 = vpack.c.bf16 %v49_v47, %v48_v46 }
   0xd   :  { %v364_v51 = vpack.c.bf16 %v63_v45, %v62_v44  ;;  %v32_v53 = vld [vmem:[%s612_s1 + $0x40] sm:$0xff]  ;;  %v33_v54 = vld [vmem:[%s612_s1 + $0x48] sm:$0xff]  ;;  %v366_v56 = vpack.c.bf16 %v81_v49, %v80_v48  ;;  %v50_v58 = vld [vmem:[%s612_s1 + $0xd0] sm:$0xff] }
   0xe   :  { %329 = vmatpush3.bf16.msra.mxu0 %v328_v34  ;;  %v64_v55 = vld [vmem:[%s612_s1 + $0x140] sm:$0xff]  ;;  %v65_v57 = vld [vmem:[%s612_s1 + $0x148] sm:$0xff]  ;;  %v51_v59 = vld [vmem:[%s612_s1 + $0xd8] sm:$0xff]  ;;  %v336_v62 = vpack.c.bf16 %v33_v54, %v32_v53 }
   0xf   :  { %361 = vmatpush3.bf16.msra.mxu1 %v360_v38  ;;  %331 = vmatprep.subr.bf16.mxu0 %v330_v39  ;;  %v82_v60 = vld [vmem:[%s612_s1 + $0x1d0] sm:$0xff]  ;;  %v83_v61 = vld [vmem:[%s612_s1 + $0x1d8] sm:$0xff]  ;;  %v368_v63 = vpack.c.bf16 %v65_v57, %v64_v55  ;;  %v338_v0 = vpack.c.bf16 %v51_v59, %v50_v58  ;;  %v52_v6 = vld [vmem:[%s612_s1 + $0xe0] sm:$0xff] }
  0x10   :  { %363 = vmatprep.subr.bf16.mxu1 %v362_v43  ;;  %v34_v1 = vld [vmem:[%s612_s1 + $0x50] sm:$0xff]  ;;  %v35_v2 = vld [vmem:[%s612_s1 + $0x58] sm:$0xff]  ;;  %v370_v4 = vpack.c.bf16 %v83_v61, %v82_v60  ;;  %v53_v7 = vld [vmem:[%s612_s1 + $0xe8] sm:$0xff] }
  0x11   :  { %v66_v3 = vld [vmem:[%s612_s1 + $0x150] sm:$0xff]  ;;  %v67_v5 = vld [vmem:[%s612_s1 + $0x158] sm:$0xff]  ;;  %v84_v8 = vld [vmem:[%s612_s1 + $0x1e0] sm:$0xff]  ;;  %v340_v10 = vpack.c.bf16 %v35_v2, %v34_v1  ;;  %v342_v14 = vpack.c.bf16 %v53_v7, %v52_v6 }
  0x12   :  { %333 = vmatpush3.bf16.msra.mxu0 %v332_v50  ;;  %v85_v9 = vld [vmem:[%s612_s1 + $0x1e8] sm:$0xff]  ;;  %v36_v11 = vld [vmem:[%s612_s1 + $0x60] sm:$0xff]  ;;  %v372_v13 = vpack.c.bf16 %v67_v5, %v66_v3  ;;  %v23_v17 = vld [vmem:[%s613_s0 + $0x18] sm:$0xff] }
  0x13   :  { %365 = vmatpush3.bf16.msra.mxu1 %v364_v51  ;;  %335 = vmatprep.subr.bf16.mxu0 %v334_v52  ;;  %v37_v12 = vld [vmem:[%s612_s1 + $0x68] sm:$0xff]  ;;  %v68_v15 = vld [vmem:[%s612_s1 + $0x160] sm:$0xff]  ;;  %v374_v18 = vpack.c.bf16 %v85_v9, %v84_v8  ;;  %v54_v20 = vld [vmem:[%s612_s1 + $0xf0] sm:$0xff] }
  0x14   :  { %367 = vmatprep.subr.bf16.mxu1 %v366_v56  ;;  %v21_v16 = vld [vmem:[%s613_s0 + $0x8] sm:$0xff]  ;;  %v55_v21 = vld [vmem:[%s612_s1 + $0xf8] sm:$0xff]  ;;  %v86_v22 = vld [vmem:[%s612_s1 + $0x1f0] sm:$0xff]  ;;  %222 = vmatprep.mubr.f32.mxu1 %v23_v17  ;;  %v344_v24 = vpack.c.bf16 %v37_v12, %v36_v11 }
  0x15   :  { %v69_v19 = vld [vmem:[%s612_s1 + $0x168] sm:$0xff]  ;;  %152 = vmatprep.mubr.f32.mxu0 %v21_v16  ;;  %v87_v23 = vld [vmem:[%s612_s1 + $0x1f8] sm:$0xff]  ;;  %v346_v26 = vpack.c.bf16 %v55_v21, %v54_v20  ;;  %v38_v27 = vld [vmem:[%s612_s1 + $0x70] sm:$0xff] }
  0x16   :  { %337 = vmatpush3.bf16.msra.mxu0 %v336_v62  ;;  %v376_v25 = vpack.c.bf16 %v69_v19, %v68_v15  ;;  %v39_v28 = vld [vmem:[%s612_s1 + $0x78] sm:$0xff]  ;;  %v378_v29 = vpack.c.bf16 %v87_v23, %v86_v22  ;;  %v70_v30 = vld [vmem:[%s612_s1 + $0x170] sm:$0xff]  ;;  %v20_v34 = vld [vmem:[%s613_s0] sm:$0xff] }
  0x17   :  { %369 = vmatpush3.bf16.msra.mxu1 %v368_v63  ;;  %339 = vmatprep.subr.bf16.mxu0 %v338_v0  ;;  %v71_v31 = vld [vmem:[%s612_s1 + $0x178] sm:$0xff]  ;;  %v348_v32 = vpack.c.bf16 %v39_v28, %v38_v27  ;;  %v22_v35 = vld [vmem:[%s613_s0 + $0x10] sm:$0xff]  ;;  %v247_v42 = vld [vmem:[%s614_s2] ss:$0 sm:$0xff] }
  0x18   :  { %371 = vmatprep.subr.bf16.mxu1 %v370_v4  ;;  %v380_v33 = vpack.c.bf16 %v71_v31, %v70_v30 }
  0x1a   :  { %341 = vmatpush3.bf16.msra.mxu0 %v340_v10 }
  0x1b   :  { %373 = vmatpush3.bf16.msra.mxu1 %v372_v13  ;;  %343 = vmatprep.subr.bf16.mxu0 %v342_v14 }
  0x1c   :  { %375 = vmatprep.subr.bf16.mxu1 %v374_v18 }
  0x1e   :  { %345 = vmatpush3.bf16.msra.mxu0 %v344_v24 }
  0x1f   :  { %377 = vmatpush3.bf16.msra.mxu1 %v376_v25  ;;  %347 = vmatprep.subr.bf16.mxu0 %v346_v26 }
  0x20   :  { %379 = vmatprep.subr.bf16.mxu1 %v378_v29 }
  0x22   :  { %349 = vmatpush3.bf16.msra.mxu0 %v348_v32 }
  0x23   :  { %381 = vmatpush3.bf16.msra.mxu1 %v380_v33 }
  0x25   :  { %153 = vmatmul.mubr.f32.vlgmr.msra.gmra.mrb[0].mxu0 %v20_v34 }
  0x26   :  { %223 = vmatmul.mubr.f32.vlgmr.msra.gmra.mrb[0].mxu1 %v22_v35 }
  0xf8   :  { %v280_v36 = vpop.f32.mrb[0].mxu0 }
  0xf9   :  { %v315_v37 = vpop.f32.mrb[0].mxu1  ;;  %v281_v38 = vpop.f32.mrb[1].mxu0 }
  0xfa   :  { %v282_v39 = vadd.f32 %v281_v38, %v280_v36  ;;  %v316_v40 = vpop.f32.mrb[1].mxu1 }
  0xfb   :  { %v317_v41 = vadd.f32 %v316_v40, %v315_v37 }
  0xfd   :  { %v225_v43 = vadd.f32 %v317_v41, %v282_v39 }
  0xff   :  { %v241_v44 = vadd.f32 %v247_v42, %v225_v43 }
 0x101   :  { %242 = vst [vmem:[%s615_s3] sm:$0xff] %v241_v44 }

// kernel: siamese_forward.10
= control target key start
LH: loop header
LB: loop body
LE: loop exit
PB: predicated region body
PF: predicated region fallthrough
CT: control target
= control target key end

     0   :  { %s1698_s1 = inlined_call_operand.vmem [shape: f32[512,512], index: 1, kind: input, shape index: {}]   ;;  %s1699_s0 = inlined_call_operand.vmem [shape: f32[8,512], index: 0, kind: input, shape index: {}]   ;;  %s1700_s2 = inlined_call_operand.vmem [shape: f32[1,512], index: 2, kind: input, shape index: {}]   ;;  %s1701_s3 = inlined_call_operand.vmem [shape: f32[8,512], index: 3, kind: output, shape index: {}]  }
   0x1   :  { %v31_v0 = vld [vmem:[%s1698_s1 + $0x8] sm:$0xff]  ;;  %v33_v2 = vld [vmem:[%s1698_s1 + $0x18] sm:$0xff]  ;;  %v30_v5 = vld [vmem:[%s1698_s1] sm:$0xff] }
   0x2   :  { %v35_v1 = vld [vmem:[%s1698_s1 + $0x28] sm:$0xff]  ;;  %v37_v4 = vld [vmem:[%s1698_s1 + $0x38] sm:$0xff]  ;;  %v34_v6 = vld [vmem:[%s1698_s1 + $0x20] sm:$0xff] }
   0x3   :  { %v623_v3 = vpack.c.bf16 %v35_v1, %v31_v0  ;;  %v751_v7 = vpack.c.bf16 %v37_v4, %v33_v2  ;;  %v625_v8 = vpack.c.bf16 %v34_v6, %v30_v5  ;;  %v32_v9 = vld [vmem:[%s1698_s1 + $0x10] sm:$0xff]  ;;  %v39_v11 = vld [vmem:[%s1698_s1 + $0x48] sm:$0xff]  ;;  %v41_v14 = vld [vmem:[%s1698_s1 + $0x58] sm:$0xff] }
   0x4   :  { %v36_v10 = vld [vmem:[%s1698_s1 + $0x30] sm:$0xff]  ;;  %v43_v13 = vld [vmem:[%s1698_s1 + $0x68] sm:$0xff]  ;;  %v45_v15 = vld [vmem:[%s1698_s1 + $0x78] sm:$0xff] }
   0x5   :  { %624 = vmatprep.subr.bf16.mxu0 %v623_v3  ;;  %v753_v12 = vpack.c.bf16 %v36_v10, %v32_v9  ;;  %752 = vmatprep.subr.bf16.mxu1 %v751_v7  ;;  %v627_v16 = vpack.c.bf16 %v43_v13, %v39_v11  ;;  %v755_v17 = vpack.c.bf16 %v45_v15, %v41_v14  ;;  %v38_v18 = vld [vmem:[%s1698_s1 + $0x40] sm:$0xff]  ;;  %v40_v20 = vld [vmem:[%s1698_s1 + $0x50] sm:$0xff]  ;;  %v47_v23 = vld [vmem:[%s1698_s1 + $0x88] sm:$0xff] }
   0x6   :  { %626 = vmatpush1.bf16.msra.mxu0 %v625_v8  ;;  %v42_v19 = vld [vmem:[%s1698_s1 + $0x60] sm:$0xff]  ;;  %v44_v22 = vld [vmem:[%s1698_s1 + $0x70] sm:$0xff]  ;;  %v51_v24 = vld [vmem:[%s1698_s1 + $0xa8] sm:$0xff] }
   0x7   :  { %754 = vmatpush1.bf16.msra.mxu1 %v753_v12  ;;  %v629_v21 = vpack.c.bf16 %v42_v19, %v38_v18  ;;  %628 = vmatprep.subr.bf16.mxu0 %v627_v16  ;;  %v757_v25 = vpack.c.bf16 %v44_v22, %v40_v20  ;;  %v631_v26 = vpack.c.bf16 %v51_v24, %v47_v23  ;;  %v49_v27 = vld [vmem:[%s1698_s1 + $0x98] sm:$0xff]  ;;  %v46_v29 = vld [vmem:[%s1698_s1 + $0x80] sm:$0xff]  ;;  %v48_v32 = vld [vmem:[%s1698_s1 + $0x90] sm:$0xff] }
   0x8   :  { %756 = vmatprep.subr.bf16.mxu1 %v755_v17  ;;  %v53_v28 = vld [vmem:[%s1698_s1 + $0xb8] sm:$0xff]  ;;  %v50_v31 = vld [vmem:[%s1698_s1 + $0xa0] sm:$0xff]  ;;  %v52_v33 = vld [vmem:[%s1698_s1 + $0xb0] sm:$0xff] }
   0x9   :  { %v759_v30 = vpack.c.bf16 %v53_v28, %v49_v27  ;;  %v633_v34 = vpack.c.bf16 %v50_v31, %v46_v29  ;;  %v55_v35 = vld [vmem:[%s1698_s1 + $0xc8] sm:$0xff]  ;;  %v57_v37 = vld [vmem:[%s1698_s1 + $0xd8] sm:$0xff]  ;;  %v761_v38 = vpack.c.bf16 %v52_v33, %v48_v32  ;;  %v54_v41 = vld [vmem:[%s1698_s1 + $0xc0] sm:$0xff] }
   0xa   :  { %630 = vmatpush1.bf16.msra.mxu0 %v629_v21  ;;  %v59_v36 = vld [vmem:[%s1698_s1 + $0xe8] sm:$0xff]  ;;  %v61_v40 = vld [vmem:[%s1698_s1 + $0xf8] sm:$0xff]  ;;  %v58_v42 = vld [vmem:[%s1698_s1 + $0xe0] sm:$0xff] }
   0xb   :  { %758 = vmatpush1.bf16.msra.mxu1 %v757_v25  ;;  %632 = vmatprep.subr.bf16.mxu0 %v631_v26  ;;  %v635_v39 = vpack.c.bf16 %v59_v36, %v55_v35  ;;  %v763_v43 = vpack.c.bf16 %v61_v40, %v57_v37  ;;  %v56_v44 = vld [vmem:[%s1698_s1 + $0xd0] sm:$0xff]  ;;  %v63_v46 = vld [vmem:[%s1698_s1 + $0x108] sm:$0xff]  ;;  %v65_v48 = vld [vmem:[%s1698_s1 + $0x118] sm:$0xff]  ;;  %v637_v50 = vpack.c.bf16 %v58_v42, %v54_v41 }
   0xc   :  { %760 = vmatprep.subr.bf16.mxu1 %v759_v30  ;;  %v60_v45 = vld [vmem:[%s1698_s1 + $0xf0] sm:$0xff]  ;;  %v67_v47 = vld [vmem:[%s1698_s1 + $0x128] sm:$0xff]  ;;  %v69_v49 = vld [vmem:[%s1698_s1 + $0x138] sm:$0xff] }
   0xd   :  { %v765_v51 = vpack.c.bf16 %v60_v45, %v56_v44  ;;  %v639_v52 = vpack.c.bf16 %v67_v47, %v63_v46  ;;  %v62_v53 = vld [vmem:[%s1698_s1 + $0x100] sm:$0xff]  ;;  %v64_v55 = vld [vmem:[%s1698_s1 + $0x110] sm:$0xff]  ;;  %v767_v56 = vpack.c.bf16 %v69_v49, %v65_v48  ;;  %v71_v58 = vld [vmem:[%s1698_s1 + $0x148] sm:$0xff] }
   0xe   :  { %634 = vmatpush1.bf16.msra.mxu0 %v633_v34  ;;  %v66_v54 = vld [vmem:[%s1698_s1 + $0x120] sm:$0xff]  ;;  %v68_v57 = vld [vmem:[%s1698_s1 + $0x130] sm:$0xff]  ;;  %v75_v59 = vld [vmem:[%s1698_s1 + $0x168] sm:$0xff] }
   0xf   :  { %762 = vmatpush1.bf16.msra.mxu1 %v761_v38  ;;  %636 = vmatprep.subr.bf16.mxu0 %v635_v39  ;;  %v73_v60 = vld [vmem:[%s1698_s1 + $0x158] sm:$0xff]  ;;  %v641_v62 = vpack.c.bf16 %v66_v54, %v62_v53  ;;  %v769_v63 = vpack.c.bf16 %v68_v57, %v64_v55  ;;  %v643_v0 = vpack.c.bf16 %v75_v59, %v71_v58  ;;  %v70_v1 = vld [vmem:[%s1698_s1 + $0x140] sm:$0xff]  ;;  %v72_v3 = vld [vmem:[%s1698_s1 + $0x150] sm:$0xff] }
  0x10   :  { %764 = vmatprep.subr.bf16.mxu1 %v763_v43  ;;  %v77_v61 = vld [vmem:[%s1698_s1 + $0x178] sm:$0xff]  ;;  %v74_v2 = vld [vmem:[%s1698_s1 + $0x160] sm:$0xff]  ;;  %v76_v5 = vld [vmem:[%s1698_s1 + $0x170] sm:$0xff] }
  0x11   :  { %v771_v4 = vpack.c.bf16 %v77_v61, %v73_v60  ;;  %v79_v6 = vld [vmem:[%s1698_s1 + $0x188] sm:$0xff]  ;;  %v81_v8 = vld [vmem:[%s1698_s1 + $0x198] sm:$0xff]  ;;  %v645_v10 = vpack.c.bf16 %v74_v2, %v70_v1  ;;  %v773_v11 = vpack.c.bf16 %v76_v5, %v72_v3  ;;  %v78_v13 = vld [vmem:[%s1698_s1 + $0x180] sm:$0xff] }
  0x12   :  { %638 = vmatpush1.bf16.msra.mxu0 %v637_v50  ;;  %v83_v7 = vld [vmem:[%s1698_s1 + $0x1a8] sm:$0xff]  ;;  %v85_v9 = vld [vmem:[%s1698_s1 + $0x1b8] sm:$0xff]  ;;  %v82_v14 = vld [vmem:[%s1698_s1 + $0x1a0] sm:$0xff] }
  0x13   :  { %766 = vmatpush1.bf16.msra.mxu1 %v765_v51  ;;  %640 = vmatprep.subr.bf16.mxu0 %v639_v52  ;;  %v647_v12 = vpack.c.bf16 %v83_v7, %v79_v6  ;;  %v80_v15 = vld [vmem:[%s1698_s1 + $0x190] sm:$0xff]  ;;  %v775_v16 = vpack.c.bf16 %v85_v9, %v81_v8  ;;  %v87_v18 = vld [vmem:[%s1698_s1 + $0x1c8] sm:$0xff]  ;;  %v89_v20 = vld [vmem:[%s1698_s1 + $0x1d8] sm:$0xff]  ;;  %v649_v22 = vpack.c.bf16 %v82_v14, %v78_v13 }
  0x14   :  { %768 = vmatprep.subr.bf16.mxu1 %v767_v56  ;;  %v84_v17 = vld [vmem:[%s1698_s1 + $0x1b0] sm:$0xff]  ;;  %v91_v19 = vld [vmem:[%s1698_s1 + $0x1e8] sm:$0xff]  ;;  %v93_v21 = vld [vmem:[%s1698_s1 + $0x1f8] sm:$0xff] }
  0x15   :  { %v777_v23 = vpack.c.bf16 %v84_v17, %v80_v15  ;;  %v651_v24 = vpack.c.bf16 %v91_v19, %v87_v18  ;;  %v86_v25 = vld [vmem:[%s1698_s1 + $0x1c0] sm:$0xff]  ;;  %v88_v27 = vld [vmem:[%s1698_s1 + $0x1d0] sm:$0xff]  ;;  %v779_v28 = vpack.c.bf16 %v93_v21, %v89_v20  ;;  %v95_v30 = vld [vmem:[%s1698_s1 + $0x208] sm:$0xff] }
  0x16   :  { %642 = vmatpush1.bf16.msra.mxu0 %v641_v62  ;;  %v90_v26 = vld [vmem:[%s1698_s1 + $0x1e0] sm:$0xff]  ;;  %v92_v29 = vld [vmem:[%s1698_s1 + $0x1f0] sm:$0xff]  ;;  %v99_v31 = vld [vmem:[%s1698_s1 + $0x228] sm:$0xff] }
  0x17   :  { %770 = vmatpush1.bf16.msra.mxu1 %v769_v63  ;;  %644 = vmatprep.subr.bf16.mxu0 %v643_v0  ;;  %v97_v32 = vld [vmem:[%s1698_s1 + $0x218] sm:$0xff]  ;;  %v653_v34 = vpack.c.bf16 %v90_v26, %v86_v25  ;;  %v781_v35 = vpack.c.bf16 %v92_v29, %v88_v27  ;;  %v655_v36 = vpack.c.bf16 %v99_v31, %v95_v30  ;;  %v94_v37 = vld [vmem:[%s1698_s1 + $0x200] sm:$0xff]  ;;  %v96_v39 = vld [vmem:[%s1698_s1 + $0x210] sm:$0xff] }
  0x18   :  { %772 = vmatprep.subr.bf16.mxu1 %v771_v4  ;;  %v101_v33 = vld [vmem:[%s1698_s1 + $0x238] sm:$0xff]  ;;  %v98_v38 = vld [vmem:[%s1698_s1 + $0x220] sm:$0xff]  ;;  %v100_v41 = vld [vmem:[%s1698_s1 + $0x230] sm:$0xff] }
  0x19   :  { %v783_v40 = vpack.c.bf16 %v101_v33, %v97_v32  ;;  %v103_v42 = vld [vmem:[%s1698_s1 + $0x248] sm:$0xff]  ;;  %v105_v44 = vld [vmem:[%s1698_s1 + $0x258] sm:$0xff]  ;;  %v657_v46 = vpack.c.bf16 %v98_v38, %v94_v37  ;;  %v785_v47 = vpack.c.bf16 %v100_v41, %v96_v39  ;;  %v102_v49 = vld [vmem:[%s1698_s1 + $0x240] sm:$0xff] }
  0x1a   :  { %646 = vmatpush1.bf16.msra.mxu0 %v645_v10  ;;  %v107_v43 = vld [vmem:[%s1698_s1 + $0x268] sm:$0xff]  ;;  %v109_v45 = vld [vmem:[%s1698_s1 + $0x278] sm:$0xff]  ;;  %v106_v50 = vld [vmem:[%s1698_s1 + $0x260] sm:$0xff] }
  0x1b   :  { %774 = vmatpush1.bf16.msra.mxu1 %v773_v11  ;;  %648 = vmatprep.subr.bf16.mxu0 %v647_v12  ;;  %v659_v48 = vpack.c.bf16 %v107_v43, %v103_v42  ;;  %v104_v51 = vld [vmem:[%s1698_s1 + $0x250] sm:$0xff]  ;;  %v787_v52 = vpack.c.bf16 %v109_v45, %v105_v44  ;;  %v111_v54 = vld [vmem:[%s1698_s1 + $0x288] sm:$0xff]  ;;  %v113_v56 = vld [vmem:[%s1698_s1 + $0x298] sm:$0xff]  ;;  %v661_v58 = vpack.c.bf16 %v106_v50, %v102_v49 }
  0x1c   :  { %776 = vmatprep.subr.bf16.mxu1 %v775_v16  ;;  %v108_v53 = vld [vmem:[%s1698_s1 + $0x270] sm:$0xff]  ;;  %v115_v55 = vld [vmem:[%s1698_s1 + $0x2a8] sm:$0xff]  ;;  %v117_v57 = vld [vmem:[%s1698_s1 + $0x2b8] sm:$0xff] }
  0x1d   :  { %v789_v59 = vpack.c.bf16 %v108_v53, %v104_v51  ;;  %v663_v60 = vpack.c.bf16 %v115_v55, %v111_v54  ;;  %v110_v61 = vld [vmem:[%s1698_s1 + $0x280] sm:$0xff]  ;;  %v112_v63 = vld [vmem:[%s1698_s1 + $0x290] sm:$0xff]  ;;  %v791_v0 = vpack.c.bf16 %v117_v57, %v113_v56  ;;  %v119_v2 = vld [vmem:[%s1698_s1 + $0x2c8] sm:$0xff] }
  0x1e   :  { %650 = vmatpush1.bf16.msra.mxu0 %v649_v22  ;;  %v114_v62 = vld [vmem:[%s1698_s1 + $0x2a0] sm:$0xff]  ;;  %v116_v1 = vld [vmem:[%s1698_s1 + $0x2b0] sm:$0xff]  ;;  %v123_v3 = vld [vmem:[%s1698_s1 + $0x2e8] sm:$0xff] }
  0x1f   :  { %778 = vmatpush1.bf16.msra.mxu1 %v777_v23  ;;  %652 = vmatprep.subr.bf16.mxu0 %v651_v24  ;;  %v121_v4 = vld [vmem:[%s1698_s1 + $0x2d8] sm:$0xff]  ;;  %v665_v6 = vpack.c.bf16 %v114_v62, %v110_v61  ;;  %v118_v7 = vld [vmem:[%s1698_s1 + $0x2c0] sm:$0xff]  ;;  %v793_v8 = vpack.c.bf16 %v116_v1, %v112_v63  ;;  %v667_v9 = vpack.c.bf16 %v123_v3, %v119_v2  ;;  %v120_v11 = vld [vmem:[%s1698_s1 + $0x2d0] sm:$0xff] }
  0x20   :  { %780 = vmatprep.subr.bf16.mxu1 %v779_v28  ;;  %v125_v5 = vld [vmem:[%s1698_s1 + $0x2f8] sm:$0xff]  ;;  %v122_v10 = vld [vmem:[%s1698_s1 + $0x2e0] sm:$0xff]  ;;  %v124_v12 = vld [vmem:[%s1698_s1 + $0x2f0] sm:$0xff] }
  0x21   :  { %v795_v13 = vpack.c.bf16 %v125_v5, %v121_v4  ;;  %v127_v14 = vld [vmem:[%s1698_s1 + $0x308] sm:$0xff]  ;;  %v129_v17 = vld [vmem:[%s1698_s1 + $0x318] sm:$0xff]  ;;  %v669_v19 = vpack.c.bf16 %v122_v10, %v118_v7  ;;  %v797_v20 = vpack.c.bf16 %v124_v12, %v120_v11  ;;  %v126_v22 = vld [vmem:[%s1698_s1 + $0x300] sm:$0xff] }
  0x22   :  { %654 = vmatpush1.bf16.msra.mxu0 %v653_v34  ;;  %v131_v15 = vld [vmem:[%s1698_s1 + $0x328] sm:$0xff]  ;;  %v133_v18 = vld [vmem:[%s1698_s1 + $0x338] sm:$0xff]  ;;  %v130_v23 = vld [vmem:[%s1698_s1 + $0x320] sm:$0xff] }
  0x23   :  { %782 = vmatpush1.bf16.msra.mxu1 %v781_v35  ;;  %656 = vmatprep.subr.bf16.mxu0 %v655_v36  ;;  %v27_v16 = vld [vmem:[%s1699_s0 + $0x8] sm:$0xff]  ;;  %v671_v21 = vpack.c.bf16 %v131_v15, %v127_v14  ;;  %v128_v24 = vld [vmem:[%s1698_s1 + $0x310] sm:$0xff]  ;;  %v799_v25 = vpack.c.bf16 %v133_v18, %v129_v17  ;;  %v137_v29 = vld [vmem:[%s1698_s1 + $0x358] sm:$0xff]  ;;  %v673_v31 = vpack.c.bf16 %v130_v23, %v126_v22 }
  0x24   :  { %784 = vmatprep.subr.bf16.mxu1 %v783_v40  ;;  %350 = vmatprep.mubr.f32.mxu0 %v27_v16  ;;  %v132_v26 = vld [vmem:[%s1698_s1 + $0x330] sm:$0xff]  ;;  %v135_v27 = vld [vmem:[%s1698_s1 + $0x348] sm:$0xff]  ;;  %v141_v30 = vld [vmem:[%s1698_s1 + $0x378] sm:$0xff] }
  0x25   :  { %492 = vmatprep.mubr.f32.mxu1 %v27_v16  ;;  %v139_v28 = vld [vmem:[%s1698_s1 + $0x368] sm:$0xff]  ;;  %v801_v32 = vpack.c.bf16 %v132_v26, %v128_v24  ;;  %v134_v34 = vld [vmem:[%s1698_s1 + $0x340] sm:$0xff]  ;;  %v136_v36 = vld [vmem:[%s1698_s1 + $0x350] sm:$0xff]  ;;  %v803_v37 = vpack.c.bf16 %v141_v30, %v137_v29 }
  0x26   :  { %658 = vmatpush1.bf16.msra.mxu0 %v657_v46  ;;  %v675_v33 = vpack.c.bf16 %v139_v28, %v135_v27  ;;  %v138_v35 = vld [vmem:[%s1698_s1 + $0x360] sm:$0xff]  ;;  %v140_v38 = vld [vmem:[%s1698_s1 + $0x370] sm:$0xff]  ;;  %v143_v39 = vld [vmem:[%s1698_s1 + $0x388] sm:$0xff] }
  0x27   :  { %786 = vmatpush1.bf16.msra.mxu1 %v785_v47  ;;  %660 = vmatprep.subr.bf16.mxu0 %v659_v48  ;;  %v147_v40 = vld [vmem:[%s1698_s1 + $0x3a8] sm:$0xff]  ;;  %v145_v41 = vld [vmem:[%s1698_s1 + $0x398] sm:$0xff]  ;;  %v677_v43 = vpack.c.bf16 %v138_v35, %v134_v34  ;;  %v805_v44 = vpack.c.bf16 %v140_v38, %v136_v36  ;;  %v142_v46 = vld [vmem:[%s1698_s1 + $0x380] sm:$0xff] }
  0x28   :  { %788 = vmatprep.subr.bf16.mxu1 %v787_v52  ;;  %v149_v42 = vld [vmem:[%s1698_s1 + $0x3b8] sm:$0xff]  ;;  %v679_v45 = vpack.c.bf16 %v147_v40, %v143_v39  ;;  %v146_v47 = vld [vmem:[%s1698_s1 + $0x3a0] sm:$0xff]  ;;  %v144_v48 = vld [vmem:[%s1698_s1 + $0x390] sm:$0xff] }
  0x29   :  { %v807_v49 = vpack.c.bf16 %v149_v42, %v145_v41  ;;  %v148_v50 = vld [vmem:[%s1698_s1 + $0x3b0] sm:$0xff]  ;;  %v151_v51 = vld [vmem:[%s1698_s1 + $0x3c8] sm:$0xff]  ;;  %v153_v53 = vld [vmem:[%s1698_s1 + $0x3d8] sm:$0xff]  ;;  %v681_v55 = vpack.c.bf16 %v146_v47, %v142_v46 }
  0x2a   :  { %662 = vmatpush1.bf16.msra.mxu0 %v661_v58  ;;  %v155_v52 = vld [vmem:[%s1698_s1 + $0x3e8] sm:$0xff]  ;;  %v157_v54 = vld [vmem:[%s1698_s1 + $0x3f8] sm:$0xff]  ;;  %v809_v56 = vpack.c.bf16 %v148_v50, %v144_v48  ;;  %v150_v58 = vld [vmem:[%s1698_s1 + $0x3c0] sm:$0xff] }
  0x2b   :  { %790 = vmatpush1.bf16.msra.mxu1 %v789_v59  ;;  %664 = vmatprep.subr.bf16.mxu0 %v663_v60  ;;  %v683_v57 = vpack.c.bf16 %v155_v52, %v151_v51  ;;  %v154_v59 = vld [vmem:[%s1698_s1 + $0x3e0] sm:$0xff]  ;;  %v152_v60 = vld [vmem:[%s1698_s1 + $0x3d0] sm:$0xff]  ;;  %v811_v61 = vpack.c.bf16 %v157_v54, %v153_v53  ;;  %v159_v63 = vld [vmem:[%s1698_s1 + $0x408] sm:$0xff] }
  0x2c   :  { %792 = vmatprep.subr.bf16.mxu1 %v791_v0  ;;  %v156_v62 = vld [vmem:[%s1698_s1 + $0x3f0] sm:$0xff]  ;;  %v163_v0 = vld [vmem:[%s1698_s1 + $0x428] sm:$0xff]  ;;  %v161_v1 = vld [vmem:[%s1698_s1 + $0x418] sm:$0xff]  ;;  %v685_v3 = vpack.c.bf16 %v154_v59, %v150_v58 }
  0x2d   :  { %v165_v2 = vld [vmem:[%s1698_s1 + $0x438] sm:$0xff]  ;;  %v813_v4 = vpack.c.bf16 %v156_v62, %v152_v60  ;;  %v687_v5 = vpack.c.bf16 %v163_v0, %v159_v63  ;;  %v162_v7 = vld [vmem:[%s1698_s1 + $0x420] sm:$0xff]  ;;  %v164_v10 = vld [vmem:[%s1698_s1 + $0x430] sm:$0xff] }
  0x2e   :  { %666 = vmatpush1.bf16.msra.mxu0 %v665_v6  ;;  %v158_v6 = vld [vmem:[%s1698_s1 + $0x400] sm:$0xff]  ;;  %v167_v11 = vld [vmem:[%s1698_s1 + $0x448] sm:$0xff]  ;;  %v173_v14 = vld [vmem:[%s1698_s1 + $0x478] sm:$0xff] }
  0x2f   :  { %794 = vmatpush1.bf16.msra.mxu1 %v793_v8  ;;  %668 = vmatprep.subr.bf16.mxu0 %v667_v9  ;;  %v160_v8 = vld [vmem:[%s1698_s1 + $0x410] sm:$0xff]  ;;  %v815_v9 = vpack.c.bf16 %v165_v2, %v161_v1  ;;  %v171_v12 = vld [vmem:[%s1698_s1 + $0x468] sm:$0xff]  ;;  %v26_v15 = vld [vmem:[%s1699_s0] sm:$0xff]  ;;  %v689_v16 = vpack.c.bf16 %v162_v7, %v158_v6 }
  0x30   :  { %796 = vmatprep.subr.bf16.mxu1 %v795_v13  ;;  %v169_v13 = vld [vmem:[%s1698_s1 + $0x458] sm:$0xff]  ;;  %v817_v17 = vpack.c.bf16 %v164_v10, %v160_v8  ;;  %v691_v18 = vpack.c.bf16 %v171_v12, %v167_v11  ;;  %v172_v23 = vld [vmem:[%s1698_s1 + $0x470] sm:$0xff]  ;;  %v175_v24 = vld [vmem:[%s1698_s1 + $0x488] sm:$0xff] }
  0x31   :  { %v819_v22 = vpack.c.bf16 %v173_v14, %v169_v13  ;;  %v177_v26 = vld [vmem:[%s1698_s1 + $0x498] sm:$0xff]  ;;  %v180_v35 = vld [vmem:[%s1698_s1 + $0x4b0] sm:$0xff]  ;;  %v183_v36 = vld [vmem:[%s1698_s1 + $0x4c8] sm:$0xff] }
  0x32   :  { %670 = vmatpush1.bf16.msra.mxu0 %v669_v19  ;;  %v166_v19 = vld [vmem:[%s1698_s1 + $0x440] sm:$0xff]  ;;  %v181_v27 = vld [vmem:[%s1698_s1 + $0x4b8] sm:$0xff]  ;;  %v188_v47 = vld [vmem:[%s1698_s1 + $0x4f0] sm:$0xff] }
  0x33   :  { %798 = vmatpush1.bf16.msra.mxu1 %v797_v20  ;;  %672 = vmatprep.subr.bf16.mxu0 %v671_v21  ;;  %v170_v20 = vld [vmem:[%s1698_s1 + $0x460] sm:$0xff]  ;;  %v168_v21 = vld [vmem:[%s1698_s1 + $0x450] sm:$0xff]  ;;  %v823_v34 = vpack.c.bf16 %v181_v27, %v177_v26  ;;  %v185_v38 = vld [vmem:[%s1698_s1 + $0x4d8] sm:$0xff] }
  0x34   :  { %800 = vmatprep.subr.bf16.mxu1 %v799_v25  ;;  %v179_v25 = vld [vmem:[%s1698_s1 + $0x4a8] sm:$0xff]  ;;  %v693_v28 = vpack.c.bf16 %v170_v20, %v166_v19  ;;  %v821_v29 = vpack.c.bf16 %v172_v23, %v168_v21  ;;  %v189_v39 = vld [vmem:[%s1698_s1 + $0x4f8] sm:$0xff]  ;;  %v196_v59 = vld [vmem:[%s1698_s1 + $0x530] sm:$0xff] }
  0x35   :  { %v695_v30 = vpack.c.bf16 %v179_v25, %v175_v24  ;;  %v827_v46 = vpack.c.bf16 %v189_v39, %v185_v38  ;;  %v191_v48 = vld [vmem:[%s1698_s1 + $0x508] sm:$0xff]  ;;  %v193_v50 = vld [vmem:[%s1698_s1 + $0x518] sm:$0xff]  ;;  %v204_v7 = vld [vmem:[%s1698_s1 + $0x570] sm:$0xff] }
  0x36   :  { %674 = vmatpush1.bf16.msra.mxu0 %v673_v31  ;;  %v174_v31 = vld [vmem:[%s1698_s1 + $0x480] sm:$0xff]  ;;  %v197_v51 = vld [vmem:[%s1698_s1 + $0x538] sm:$0xff]  ;;  %v199_v60 = vld [vmem:[%s1698_s1 + $0x548] sm:$0xff] }
  0x37   :  { %802 = vmatpush1.bf16.msra.mxu1 %v801_v32  ;;  %676 = vmatprep.subr.bf16.mxu0 %v675_v33  ;;  %v178_v32 = vld [vmem:[%s1698_s1 + $0x4a0] sm:$0xff]  ;;  %v176_v33 = vld [vmem:[%s1698_s1 + $0x490] sm:$0xff]  ;;  %v831_v58 = vpack.c.bf16 %v197_v51, %v193_v50  ;;  %v201_v62 = vld [vmem:[%s1698_s1 + $0x558] sm:$0xff] }
  0x38   :  { %804 = vmatprep.subr.bf16.mxu1 %v803_v37  ;;  %v187_v37 = vld [vmem:[%s1698_s1 + $0x4e8] sm:$0xff]  ;;  %v697_v40 = vpack.c.bf16 %v178_v32, %v174_v31  ;;  %v825_v41 = vpack.c.bf16 %v180_v35, %v176_v33  ;;  %v205_v63 = vld [vmem:[%s1698_s1 + $0x578] sm:$0xff]  ;;  %v206_v13 = vld [vmem:[%s1698_s1 + $0x580] sm:$0xff] }
  0x39   :  { %v699_v42 = vpack.c.bf16 %v187_v37, %v183_v36  ;;  %v835_v6 = vpack.c.bf16 %v205_v63, %v201_v62  ;;  %v207_v8 = vld [vmem:[%s1698_s1 + $0x588] sm:$0xff]  ;;  %v209_v10 = vld [vmem:[%s1698_s1 + $0x598] sm:$0xff]  ;;  %v220_v32 = vld [vmem:[%s1698_s1 + $0x5f0] sm:$0xff] }
  0x3a   :  { %678 = vmatpush1.bf16.msra.mxu0 %v677_v43  ;;  %v182_v43 = vld [vmem:[%s1698_s1 + $0x4c0] sm:$0xff]  ;;  %v213_v11 = vld [vmem:[%s1698_s1 + $0x5b8] sm:$0xff]  ;;  %v215_v20 = vld [vmem:[%s1698_s1 + $0x5c8] sm:$0xff] }
  0x3b   :  { %806 = vmatpush1.bf16.msra.mxu1 %v805_v44  ;;  %680 = vmatprep.subr.bf16.mxu0 %v679_v45  ;;  %v186_v44 = vld [vmem:[%s1698_s1 + $0x4e0] sm:$0xff]  ;;  %v184_v45 = vld [vmem:[%s1698_s1 + $0x4d0] sm:$0xff]  ;;  %v839_v19 = vpack.c.bf16 %v213_v11, %v209_v10  ;;  %v219_v21 = vld [vmem:[%s1698_s1 + $0x5e8] sm:$0xff] }
  0x3c   :  { %808 = vmatprep.subr.bf16.mxu1 %v807_v49  ;;  %v195_v49 = vld [vmem:[%s1698_s1 + $0x528] sm:$0xff]  ;;  %v701_v52 = vpack.c.bf16 %v186_v44, %v182_v43  ;;  %v829_v53 = vpack.c.bf16 %v188_v47, %v184_v45  ;;  %v217_v23 = vld [vmem:[%s1698_s1 + $0x5d8] sm:$0xff]  ;;  %v715_v27 = vpack.c.bf16 %v219_v21, %v215_v20  ;;  %v228_v44 = vld [vmem:[%s1698_s1 + $0x630] sm:$0xff] }
  0x3d   :  { %v703_v54 = vpack.c.bf16 %v195_v49, %v191_v48  ;;  %v221_v24 = vld [vmem:[%s1698_s1 + $0x5f8] sm:$0xff]  ;;  %v223_v33 = vld [vmem:[%s1698_s1 + $0x608] sm:$0xff] }
  0x3e   :  { %682 = vmatpush1.bf16.msra.mxu0 %v681_v55  ;;  %v190_v55 = vld [vmem:[%s1698_s1 + $0x500] sm:$0xff]  ;;  %v843_v31 = vpack.c.bf16 %v221_v24, %v217_v23  ;;  %v225_v35 = vld [vmem:[%s1698_s1 + $0x618] sm:$0xff]  ;;  %v231_v45 = vld [vmem:[%s1698_s1 + $0x648] sm:$0xff] }
  0x3f   :  { %810 = vmatpush1.bf16.msra.mxu1 %v809_v56  ;;  %684 = vmatprep.subr.bf16.mxu0 %v683_v57  ;;  %v194_v56 = vld [vmem:[%s1698_s1 + $0x520] sm:$0xff]  ;;  %v192_v57 = vld [vmem:[%s1698_s1 + $0x510] sm:$0xff]  ;;  %v229_v36 = vld [vmem:[%s1698_s1 + $0x638] sm:$0xff] }
  0x40   :  { %812 = vmatprep.subr.bf16.mxu1 %v811_v61  ;;  %v203_v61 = vld [vmem:[%s1698_s1 + $0x568] sm:$0xff]  ;;  %v705_v0 = vpack.c.bf16 %v194_v56, %v190_v55  ;;  %v833_v1 = vpack.c.bf16 %v196_v59, %v192_v57  ;;  %v847_v43 = vpack.c.bf16 %v229_v36, %v225_v35  ;;  %v233_v47 = vld [vmem:[%s1698_s1 + $0x658] sm:$0xff]  ;;  %v236_v56 = vld [vmem:[%s1698_s1 + $0x670] sm:$0xff] }
  0x41   :  { %v707_v2 = vpack.c.bf16 %v203_v61, %v199_v60  ;;  %v237_v48 = vld [vmem:[%s1698_s1 + $0x678] sm:$0xff]  ;;  %v239_v57 = vld [vmem:[%s1698_s1 + $0x688] sm:$0xff]  ;;  %v254_v24 = vld [vmem:[%s1698_s1 + $0x700] sm:$0xff] }
  0x42   :  { %686 = vmatpush1.bf16.msra.mxu0 %v685_v3  ;;  %v198_v3 = vld [vmem:[%s1698_s1 + $0x540] sm:$0xff]  ;;  %v851_v55 = vpack.c.bf16 %v237_v48, %v233_v47  ;;  %v241_v59 = vld [vmem:[%s1698_s1 + $0x698] sm:$0xff] }
  0x43   :  { %814 = vmatpush1.bf16.msra.mxu1 %v813_v4  ;;  %688 = vmatprep.subr.bf16.mxu0 %v687_v5  ;;  %v202_v4 = vld [vmem:[%s1698_s1 + $0x560] sm:$0xff]  ;;  %v200_v5 = vld [vmem:[%s1698_s1 + $0x550] sm:$0xff]  ;;  %v245_v60 = vld [vmem:[%s1698_s1 + $0x6b8] sm:$0xff] }
  0x44   :  { %816 = vmatprep.subr.bf16.mxu1 %v815_v9  ;;  %v211_v9 = vld [vmem:[%s1698_s1 + $0x5a8] sm:$0xff]  ;;  %v709_v12 = vpack.c.bf16 %v202_v4, %v198_v3  ;;  %v837_v14 = vpack.c.bf16 %v204_v7, %v200_v5  ;;  %v855_v3 = vpack.c.bf16 %v245_v60, %v241_v59  ;;  %v244_v4 = vld [vmem:[%s1698_s1 + $0x6b0] sm:$0xff]  ;;  %v249_v7 = vld [vmem:[%s1698_s1 + $0x6d8] sm:$0xff] }
  0x45   :  { %351 = vmatmul.mubr.f32.vlgmr.msra.gmra.mrb[0].mxu0 %v26_v15  ;;  %v247_v5 = vld [vmem:[%s1698_s1 + $0x6c8] sm:$0xff]  ;;  %v261_v20 = vld [vmem:[%s1698_s1 + $0x738] sm:$0xff]  ;;  %v262_v36 = vld [vmem:[%s1698_s1 + $0x740] sm:$0xff] }
  0x46   :  { %690 = vmatpush1.bf16.msra.mxu0 %v689_v16  ;;  %493 = vmatmul.mubr.f32.vlgmr.msra.gmra.mrb[0].mxu1 %v26_v15  ;;  %v711_v15 = vpack.c.bf16 %v211_v9, %v207_v8  ;;  %v210_v16 = vld [vmem:[%s1698_s1 + $0x5a0] sm:$0xff]  ;;  %v253_v8 = vld [vmem:[%s1698_s1 + $0x6f8] sm:$0xff] }
  0x47   :  { %818 = vmatpush1.bf16.msra.mxu1 %v817_v17  ;;  %692 = vmatprep.subr.bf16.mxu0 %v691_v18  ;;  %v208_v17 = vld [vmem:[%s1698_s1 + $0x590] sm:$0xff]  ;;  %v713_v25 = vpack.c.bf16 %v210_v16, %v206_v13  ;;  %v250_v13 = vld [vmem:[%s1698_s1 + $0x6e0] sm:$0xff] }
  0x48   :  { %820 = vmatprep.subr.bf16.mxu1 %v819_v22  ;;  %v212_v18 = vld [vmem:[%s1698_s1 + $0x5b0] sm:$0xff]  ;;  %v29_v22 = vld [vmem:[%s1699_s0 + $0x18] sm:$0xff]  ;;  %v270_v48 = vld [vmem:[%s1698_s1 + $0x780] sm:$0xff] }
  0x49   :  { %421 = vmatprep.mubr.f32.mxu0 %v29_v22  ;;  %563 = vmatprep.mubr.f32.mxu1 %v29_v22  ;;  %v841_v26 = vpack.c.bf16 %v212_v18, %v208_v17  ;;  %v252_v16 = vld [vmem:[%s1698_s1 + $0x6f0] sm:$0xff]  ;;  %v255_v17 = vld [vmem:[%s1698_s1 + $0x708] sm:$0xff]  ;;  %v278_v60 = vld [vmem:[%s1698_s1 + $0x7c0] sm:$0xff] }
  0x4a   :  { %694 = vmatpush1.bf16.msra.mxu0 %v693_v28  ;;  %v214_v28 = vld [vmem:[%s1698_s1 + $0x5c0] sm:$0xff]  ;;  %v259_v18 = vld [vmem:[%s1698_s1 + $0x728] sm:$0xff] }
  0x4b   :  { %822 = vmatpush1.bf16.msra.mxu1 %v821_v29  ;;  %696 = vmatprep.subr.bf16.mxu0 %v695_v30  ;;  %v218_v29 = vld [vmem:[%s1698_s1 + $0x5e0] sm:$0xff]  ;;  %v216_v30 = vld [vmem:[%s1698_s1 + $0x5d0] sm:$0xff]  ;;  %v735_v23 = vpack.c.bf16 %v259_v18, %v255_v17 }
  0x4c   :  { %824 = vmatprep.subr.bf16.mxu1 %v823_v34  ;;  %v227_v34 = vld [vmem:[%s1698_s1 + $0x628] sm:$0xff]  ;;  %v717_v37 = vpack.c.bf16 %v218_v29, %v214_v28  ;;  %v845_v38 = vpack.c.bf16 %v220_v32, %v216_v30  ;;  %v260_v28 = vld [vmem:[%s1698_s1 + $0x730] sm:$0xff]  ;;  %v269_v32 = vld [vmem:[%s1698_s1 + $0x778] sm:$0xff] }
  0x4d   :  { %v719_v39 = vpack.c.bf16 %v227_v34, %v223_v33  ;;  %v263_v29 = vld [vmem:[%s1698_s1 + $0x748] sm:$0xff] }
  0x4e   :  { %698 = vmatpush1.bf16.msra.mxu0 %v697_v40  ;;  %v222_v40 = vld [vmem:[%s1698_s1 + $0x600] sm:$0xff]  ;;  %v267_v30 = vld [vmem:[%s1698_s1 + $0x768] sm:$0xff] }
  0x4f   :  { %826 = vmatpush1.bf16.msra.mxu1 %v825_v41  ;;  %700 = vmatprep.subr.bf16.mxu0 %v699_v42  ;;  %v226_v41 = vld [vmem:[%s1698_s1 + $0x620] sm:$0xff]  ;;  %v224_v42 = vld [vmem:[%s1698_s1 + $0x610] sm:$0xff]  ;;  %v739_v35 = vpack.c.bf16 %v267_v30, %v263_v29 }
  0x50   :  { %828 = vmatprep.subr.bf16.mxu1 %v827_v46  ;;  %v235_v46 = vld [vmem:[%s1698_s1 + $0x668] sm:$0xff]  ;;  %v721_v49 = vpack.c.bf16 %v226_v41, %v222_v40  ;;  %v849_v50 = vpack.c.bf16 %v228_v44, %v224_v42  ;;  %v268_v40 = vld [vmem:[%s1698_s1 + $0x770] sm:$0xff]  ;;  %v277_v44 = vld [vmem:[%s1698_s1 + $0x7b8] sm:$0xff] }
  0x51   :  { %v723_v51 = vpack.c.bf16 %v235_v46, %v231_v45  ;;  %v271_v41 = vld [vmem:[%s1698_s1 + $0x788] sm:$0xff] }
  0x52   :  { %702 = vmatpush1.bf16.msra.mxu0 %v701_v52  ;;  %v230_v52 = vld [vmem:[%s1698_s1 + $0x640] sm:$0xff]  ;;  %v275_v42 = vld [vmem:[%s1698_s1 + $0x7a8] sm:$0xff] }
  0x53   :  { %830 = vmatpush1.bf16.msra.mxu1 %v829_v53  ;;  %704 = vmatprep.subr.bf16.mxu0 %v703_v54  ;;  %v234_v53 = vld [vmem:[%s1698_s1 + $0x660] sm:$0xff]  ;;  %v232_v54 = vld [vmem:[%s1698_s1 + $0x650] sm:$0xff]  ;;  %v743_v47 = vpack.c.bf16 %v275_v42, %v271_v41 }
  0x54   :  { %832 = vmatprep.subr.bf16.mxu1 %v831_v58  ;;  %v243_v58 = vld [vmem:[%s1698_s1 + $0x6a8] sm:$0xff]  ;;  %v725_v61 = vpack.c.bf16 %v234_v53, %v230_v52  ;;  %v853_v62 = vpack.c.bf16 %v236_v56, %v232_v54  ;;  %v276_v52 = vld [vmem:[%s1698_s1 + $0x7b0] sm:$0xff]  ;;  %v285_v56 = vld [vmem:[%s1698_s1 + $0x7f8] sm:$0xff] }
  0x55   :  { %v727_v63 = vpack.c.bf16 %v243_v58, %v239_v57  ;;  %v279_v53 = vld [vmem:[%s1698_s1 + $0x7c8] sm:$0xff] }
  0x56   :  { %706 = vmatpush1.bf16.msra.mxu0 %v705_v0  ;;  %v238_v0 = vld [vmem:[%s1698_s1 + $0x680] sm:$0xff]  ;;  %v283_v54 = vld [vmem:[%s1698_s1 + $0x7e8] sm:$0xff] }
  0x57   :  { %834 = vmatpush1.bf16.msra.mxu1 %v833_v1  ;;  %708 = vmatprep.subr.bf16.mxu0 %v707_v2  ;;  %v242_v1 = vld [vmem:[%s1698_s1 + $0x6a0] sm:$0xff]  ;;  %v240_v2 = vld [vmem:[%s1698_s1 + $0x690] sm:$0xff]  ;;  %v747_v59 = vpack.c.bf16 %v283_v54, %v279_v53 }
  0x58   :  { %836 = vmatprep.subr.bf16.mxu1 %v835_v6  ;;  %v251_v6 = vld [vmem:[%s1698_s1 + $0x6e8] sm:$0xff]  ;;  %v729_v9 = vpack.c.bf16 %v242_v1, %v238_v0  ;;  %v857_v10 = vpack.c.bf16 %v244_v4, %v240_v2  ;;  %v284_v0 = vld [vmem:[%s1698_s1 + $0x7f0] sm:$0xff]  ;;  %v587_v4 = vlaneseq }
  0x59   :  { %v731_v11 = vpack.c.bf16 %v251_v6, %v247_v5 }
  0x5a   :  { %710 = vmatpush1.bf16.msra.mxu0 %v709_v12  ;;  %v246_v12 = vld [vmem:[%s1698_s1 + $0x6c0] sm:$0xff]  ;;  %v588_v5 = vshrl.u32 %v587_v4, 7 }
  0x5b   :  { %838 = vmatpush1.bf16.msra.mxu1 %v837_v14  ;;  %712 = vmatprep.subr.bf16.mxu0 %v711_v15  ;;  %v248_v14 = vld [vmem:[%s1698_s1 + $0x6d0] sm:$0xff]  ;;  %v859_v15 = vpack.c.bf16 %v253_v8, %v249_v7  ;;  %v733_v21 = vpack.c.bf16 %v250_v13, %v246_v12  ;;  %v585_v7 = vld [vmem:[%s1700_s2] sm:$0xf] }
  0x5c   :  { %840 = vmatprep.subr.bf16.mxu1 %v839_v19  ;;  %v257_v19 = vld [vmem:[%s1698_s1 + $0x718] sm:$0xff]  ;;  %v861_v22 = vpack.c.bf16 %v252_v16, %v248_v14  ;;  %v589_v6 = vsub.s32 0, %v588_v5  ;;  %v597_v8 = vsub.s32 2, %v588_v5 }
  0x5e   :  { %714 = vmatpush1.bf16.msra.mxu0 %v713_v25  ;;  %v258_v25 = vld [vmem:[%s1698_s1 + $0x720] sm:$0xff]  ;;  %v598_v12 = vrot.slane %v585_v7, %v597_v8 }
  0x5f   :  { %842 = vmatpush1.bf16.msra.mxu1 %v841_v26  ;;  %716 = vmatprep.subr.bf16.mxu0 %v715_v27  ;;  %v256_v26 = vld [vmem:[%s1698_s1 + $0x710] sm:$0xff]  ;;  %v863_v27 = vpack.c.bf16 %v261_v20, %v257_v19  ;;  %v737_v33 = vpack.c.bf16 %v258_v25, %v254_v24 }
  0x60   :  { %844 = vmatprep.subr.bf16.mxu1 %v843_v31  ;;  %v265_v31 = vld [vmem:[%s1698_s1 + $0x758] sm:$0xff]  ;;  %v865_v34 = vpack.c.bf16 %v260_v28, %v256_v26 }
  0x62   :  { %718 = vmatpush1.bf16.msra.mxu0 %v717_v37  ;;  %v266_v37 = vld [vmem:[%s1698_s1 + $0x760] sm:$0xff] }
  0x63   :  { %846 = vmatpush1.bf16.msra.mxu1 %v845_v38  ;;  %720 = vmatprep.subr.bf16.mxu0 %v719_v39  ;;  %v264_v38 = vld [vmem:[%s1698_s1 + $0x750] sm:$0xff]  ;;  %v867_v39 = vpack.c.bf16 %v269_v32, %v265_v31  ;;  %v741_v45 = vpack.c.bf16 %v266_v37, %v262_v36 }
  0x64   :  { %848 = vmatprep.subr.bf16.mxu1 %v847_v43  ;;  %v273_v43 = vld [vmem:[%s1698_s1 + $0x798] sm:$0xff]  ;;  %v869_v46 = vpack.c.bf16 %v268_v40, %v264_v38 }
  0x66   :  { %722 = vmatpush1.bf16.msra.mxu0 %v721_v49  ;;  %v274_v49 = vld [vmem:[%s1698_s1 + $0x7a0] sm:$0xff] }
  0x67   :  { %850 = vmatpush1.bf16.msra.mxu1 %v849_v50  ;;  %724 = vmatprep.subr.bf16.mxu0 %v723_v51  ;;  %v272_v50 = vld [vmem:[%s1698_s1 + $0x790] sm:$0xff]  ;;  %v871_v51 = vpack.c.bf16 %v277_v44, %v273_v43  ;;  %v745_v57 = vpack.c.bf16 %v274_v49, %v270_v48 }
  0x68   :  { %852 = vmatprep.subr.bf16.mxu1 %v851_v55  ;;  %v281_v55 = vld [vmem:[%s1698_s1 + $0x7d8] sm:$0xff]  ;;  %v873_v58 = vpack.c.bf16 %v276_v52, %v272_v50 }
  0x6a   :  { %726 = vmatpush1.bf16.msra.mxu0 %v725_v61  ;;  %v282_v61 = vld [vmem:[%s1698_s1 + $0x7e0] sm:$0xff] }
  0x6b   :  { %854 = vmatpush1.bf16.msra.mxu1 %v853_v62  ;;  %728 = vmatprep.subr.bf16.mxu0 %v727_v63  ;;  %v875_v62 = vpack.c.bf16 %v285_v56, %v281_v55  ;;  %v280_v63 = vld [vmem:[%s1698_s1 + $0x7d0] sm:$0xff]  ;;  %v749_v1 = vpack.c.bf16 %v282_v61, %v278_v60 }
  0x6c   :  { %856 = vmatprep.subr.bf16.mxu1 %v855_v3  ;;  %v877_v2 = vpack.c.bf16 %v284_v0, %v280_v63  ;;  %v28_v3 = vld [vmem:[%s1699_s0 + $0x10] sm:$0xff] }
  0x6e   :  { %730 = vmatpush1.bf16.msra.mxu0 %v729_v9  ;;  %v593_v9 = vsub.s32 1, %v588_v5 }
  0x6f   :  { %858 = vmatpush1.bf16.msra.mxu1 %v857_v10  ;;  %732 = vmatprep.subr.bf16.mxu0 %v731_v11  ;;  %v601_v10 = vsub.s32 3, %v588_v5  ;;  %v590_v11 = vrot.slane %v585_v7, %v589_v6 }
  0x70   :  { %860 = vmatprep.subr.bf16.mxu1 %v859_v15  ;;  %v594_v13 = vrot.slane %v585_v7, %v593_v9 }
  0x71   :  { %v602_v14 = vrot.slane %v585_v7, %v601_v10 }
  0x72   :  { %734 = vmatpush1.bf16.msra.mxu0 %v733_v21 }
  0x73   :  { %862 = vmatpush1.bf16.msra.mxu1 %v861_v22  ;;  %736 = vmatprep.subr.bf16.mxu0 %v735_v23 }
  0x74   :  { %864 = vmatprep.subr.bf16.mxu1 %v863_v27 }
  0x76   :  { %738 = vmatpush1.bf16.msra.mxu0 %v737_v33 }
  0x77   :  { %866 = vmatpush1.bf16.msra.mxu1 %v865_v34  ;;  %740 = vmatprep.subr.bf16.mxu0 %v739_v35 }
  0x78   :  { %868 = vmatprep.subr.bf16.mxu1 %v867_v39 }
  0x7a   :  { %742 = vmatpush1.bf16.msra.mxu0 %v741_v45 }
  0x7b   :  { %870 = vmatpush1.bf16.msra.mxu1 %v869_v46  ;;  %744 = vmatprep.subr.bf16.mxu0 %v743_v47 }
  0x7c   :  { %872 = vmatprep.subr.bf16.mxu1 %v871_v51 }
  0x7e   :  { %746 = vmatpush1.bf16.msra.mxu0 %v745_v57 }
  0x7f   :  { %874 = vmatpush1.bf16.msra.mxu1 %v873_v58  ;;  %748 = vmatprep.subr.bf16.mxu0 %v747_v59 }
  0x80   :  { %876 = vmatprep.subr.bf16.mxu1 %v875_v62 }
  0x82   :  { %750 = vmatpush1.bf16.msra.mxu0 %v749_v1 }
  0x83   :  { %878 = vmatpush1.bf16.msra.mxu1 %v877_v2 }
  0x85   :  { %422 = vmatmul.mubr.f32.vlgmr.msra.gmra.mrb[0].mxu0 %v28_v3 }
  0x86   :  { %564 = vmatmul.mubr.f32.vlgmr.msra.gmra.mrb[0].mxu1 %v28_v3 }
 0x158   :  { %v423_v15 = vpop.f32.mrb[0].mxu0 }
 0x159   :  { %v607_v16 = vadd.f32 %v590_v11, %v423_v15  ;;  %v565_v17 = vpop.f32.mrb[0].mxu1  ;;  %v425_v18 = vpop.f32.mrb[1].mxu0 }
 0x15a   :  { %v609_v19 = vadd.f32 %v598_v12, %v565_v17  ;;  %v608_v20 = vadd.f32 %v594_v13, %v425_v18  ;;  %v567_v21 = vpop.f32.mrb[1].mxu1 }
 0x15b   :  { %v611_v22 = vmax.f32 %v607_v16, 0.0  ;;  %v610_v23 = vadd.f32 %v602_v14, %v567_v21 }
 0x15c   :  { %v613_v24 = vmax.f32 %v609_v19, 0.0  ;;  %v612_v25 = vmax.f32 %v608_v20, 0.0 }
 0x15d   :  { %615 = vst [vmem:[%s1701_s3] sm:$0xff] %v611_v22  ;;  %v614_v26 = vmax.f32 %v610_v23, 0.0 }
 0x15e   :  { %617 = vst [vmem:[%s1701_s3 + $0x10] sm:$0xff] %v613_v24  ;;  %616 = vst [vmem:[%s1701_s3 + $0x8] sm:$0xff] %v612_v25 }
 0x15f   :  { %618 = vst [vmem:[%s1701_s3 + $0x18] sm:$0xff] %v614_v26 }

// kernel: siamese_forward.9
= control target key start
LH: loop header
LB: loop body
LE: loop exit
PB: predicated region body
PF: predicated region fallthrough
CT: control target
= control target key end

     0   :  { %s1254_s12 = smov 0   ;;  %s1256_s13 = smov 0   ;;  %s1572_s0 = inlined_call_operand.vmem [shape: f32[8,4096], index: 0, kind: input, shape index: {}]   ;;  %s1573_s1 = inlined_call_operand.vmem [shape: f32[4096,512], index: 1, kind: input, shape index: {}]   ;;  %s1574_s2 = inlined_call_operand.vmem [shape: f32[1,512], index: 2, kind: input, shape index: {}]   ;;  %s1575_s3 = inlined_call_operand.vmem [shape: f32[8,512], index: 3, kind: output, shape index: {}]  }
   0x1   :  { %s1258_s14 = smov 0  }
   0x2 LB: > { %s22_s15 = sadd.s32 1, %s1227_s13  ;;  %p912_p0 = scmp.ge.s32.totalorder %s1231_s14, 1  ;;  %s1231_s14 = sphi %s1258_s14, %s13_s14   ;;  %s1227_s13 = sphi %s1256_s13, %s1577_s13   ;;  %s1223_s12 = sphi %s1254_s12, %s1576_s12  }
   0x3   : > { %p23_p1 = scmp.ge.s32.totalorder %s22_s15, 8  ;;  %p168_p2 = scmp.lt.s32.totalorder %s1231_s14, 9 }
   0x5   : > { %s1579_s15 = smov (%p23_p1, %s22_s15), 0  ;;  %p169_p3 = pnand %p912_p0, %p168_p2 }
   0x6   : > { %s913_s16 = sshll.u32 (!%p169_p3), %s1223_s12, 2  ;;  %s915_s17 = sshll.u32 (!%p169_p3), %s1223_s12, 6 }
   0x7   : > { %172 = sbr.rel (%p169_p3) target bundleno = 385 (0x181), region = 32  ;;  %p205_p4 = scmp.lt.s32.totalorder (!%p169_p3), %s913_s16, 31 }
   0x8   : > { %p213_p5 = scmp.lt.s32.totalorder (!%p169_p3), %s915_s17, 511  ;;  %p918_p6 = scmp.ne.s32.totalorder (!%p169_p3), %s1223_s12, 0 }
   0xe   : > { %s1581_s16 = smov (!%p205_p4, %s913_s16), 31  ;;  %s1583_s17 = smov (!%p213_p5, %s915_s17), 511 }
   0xf   : > { %s914_s18 = sshll.u32 %s1581_s16, 3  ;;  %s923_s22 = sshll.u32 %s1583_s17, 5  ;;  %v1233_v0 = vmov (!%p918_p6), 0.0  }
  0x10   : > { %s1279_s21 = scalar_lea.vmem %s1572_s0, %s914_s18  ;;  %s1284_s25 = scalar_lea.vmem %s1573_s1, %s923_s22  ;;  %228 = vst [vmem:[#allocation2] sm:$0xff] (!%p918_p6), %v1233_v0  ;;  %229 = vst [vmem:[#allocation2 + $0x8] sm:$0xff] (!%p918_p6), %v1233_v0 }
  0x11   : > { %227 = sbr.rel (%p918_p6) target bundleno = 24 (0x18), region = 36  ;;  %230 = vst [vmem:[#allocation2 + $0x10] sm:$0xff] (!%p918_p6), %v1233_v0  ;;  %231 = vst [vmem:[#allocation2 + $0x18] sm:$0xff] (!%p918_p6), %v1233_v0 }
  0x18 PF: > { %v241_v1 = vld [vmem:[%s1284_s25 + $0x8] sm:$0xff]  ;;  %v243_v3 = vld [vmem:[%s1284_s25 + $0x18] sm:$0xff]  ;;  %v240_v6 = vld [vmem:[%s1284_s25] sm:$0xff]  ;;  %p919_p7 = scmp.ne.s32.totalorder %s1223_s12, 7 }
  0x19   : > { %v245_v2 = vld [vmem:[%s1284_s25 + $0x28] sm:$0xff]  ;;  %v247_v5 = vld [vmem:[%s1284_s25 + $0x38] sm:$0xff]  ;;  %v244_v7 = vld [vmem:[%s1284_s25 + $0x20] sm:$0xff] }
  0x1a   : > { %v924_v4 = vpack.c.bf16 %v245_v2, %v241_v1  ;;  %v1052_v8 = vpack.c.bf16 %v247_v5, %v243_v3  ;;  %v926_v9 = vpack.c.bf16 %v244_v7, %v240_v6  ;;  %v242_v10 = vld [vmem:[%s1284_s25 + $0x10] sm:$0xff]  ;;  %v249_v12 = vld [vmem:[%s1284_s25 + $0x48] sm:$0xff]  ;;  %v251_v15 = vld [vmem:[%s1284_s25 + $0x58] sm:$0xff] }
  0x1b   : > { %v246_v11 = vld [vmem:[%s1284_s25 + $0x30] sm:$0xff]  ;;  %v253_v14 = vld [vmem:[%s1284_s25 + $0x68] sm:$0xff]  ;;  %v255_v16 = vld [vmem:[%s1284_s25 + $0x78] sm:$0xff] }
  0x1c   : > { %925 = vmatprep.subr.bf16.mxu0 %v924_v4  ;;  %v1054_v13 = vpack.c.bf16 %v246_v11, %v242_v10  ;;  %1053 = vmatprep.subr.bf16.mxu1 %v1052_v8  ;;  %v928_v17 = vpack.c.bf16 %v253_v14, %v249_v12  ;;  %v1056_v18 = vpack.c.bf16 %v255_v16, %v251_v15  ;;  %v248_v19 = vld [vmem:[%s1284_s25 + $0x40] sm:$0xff]  ;;  %v250_v21 = vld [vmem:[%s1284_s25 + $0x50] sm:$0xff]  ;;  %v257_v24 = vld [vmem:[%s1284_s25 + $0x88] sm:$0xff] }
  0x1d   : > { %927 = vmatpush1.bf16.msra.mxu0 %v926_v9  ;;  %v252_v20 = vld [vmem:[%s1284_s25 + $0x60] sm:$0xff]  ;;  %v254_v23 = vld [vmem:[%s1284_s25 + $0x70] sm:$0xff]  ;;  %v261_v25 = vld [vmem:[%s1284_s25 + $0xa8] sm:$0xff] }
  0x1e   : > { %1055 = vmatpush1.bf16.msra.mxu1 %v1054_v13  ;;  %v930_v22 = vpack.c.bf16 %v252_v20, %v248_v19  ;;  %929 = vmatprep.subr.bf16.mxu0 %v928_v17  ;;  %v1058_v26 = vpack.c.bf16 %v254_v23, %v250_v21  ;;  %v932_v27 = vpack.c.bf16 %v261_v25, %v257_v24  ;;  %v259_v28 = vld [vmem:[%s1284_s25 + $0x98] sm:$0xff]  ;;  %v256_v30 = vld [vmem:[%s1284_s25 + $0x80] sm:$0xff]  ;;  %v258_v33 = vld [vmem:[%s1284_s25 + $0x90] sm:$0xff] }
  0x1f   : > { %1057 = vmatprep.subr.bf16.mxu1 %v1056_v18  ;;  %v263_v29 = vld [vmem:[%s1284_s25 + $0xb8] sm:$0xff]  ;;  %v260_v32 = vld [vmem:[%s1284_s25 + $0xa0] sm:$0xff]  ;;  %v262_v34 = vld [vmem:[%s1284_s25 + $0xb0] sm:$0xff] }
  0x20   : > { %v1060_v31 = vpack.c.bf16 %v263_v29, %v259_v28  ;;  %v934_v35 = vpack.c.bf16 %v260_v32, %v256_v30  ;;  %v265_v36 = vld [vmem:[%s1284_s25 + $0xc8] sm:$0xff]  ;;  %v267_v38 = vld [vmem:[%s1284_s25 + $0xd8] sm:$0xff]  ;;  %v1062_v39 = vpack.c.bf16 %v262_v34, %v258_v33  ;;  %v264_v42 = vld [vmem:[%s1284_s25 + $0xc0] sm:$0xff] }
  0x21   : > { %931 = vmatpush1.bf16.msra.mxu0 %v930_v22  ;;  %v269_v37 = vld [vmem:[%s1284_s25 + $0xe8] sm:$0xff]  ;;  %v271_v41 = vld [vmem:[%s1284_s25 + $0xf8] sm:$0xff]  ;;  %v268_v43 = vld [vmem:[%s1284_s25 + $0xe0] sm:$0xff] }
  0x22   : > { %1059 = vmatpush1.bf16.msra.mxu1 %v1058_v26  ;;  %933 = vmatprep.subr.bf16.mxu0 %v932_v27  ;;  %v936_v40 = vpack.c.bf16 %v269_v37, %v265_v36  ;;  %v1064_v44 = vpack.c.bf16 %v271_v41, %v267_v38  ;;  %v266_v45 = vld [vmem:[%s1284_s25 + $0xd0] sm:$0xff]  ;;  %v273_v47 = vld [vmem:[%s1284_s25 + $0x108] sm:$0xff]  ;;  %v275_v49 = vld [vmem:[%s1284_s25 + $0x118] sm:$0xff]  ;;  %v938_v51 = vpack.c.bf16 %v268_v43, %v264_v42 }
  0x23   : > { %1061 = vmatprep.subr.bf16.mxu1 %v1060_v31  ;;  %v270_v46 = vld [vmem:[%s1284_s25 + $0xf0] sm:$0xff]  ;;  %v277_v48 = vld [vmem:[%s1284_s25 + $0x128] sm:$0xff]  ;;  %v279_v50 = vld [vmem:[%s1284_s25 + $0x138] sm:$0xff] }
  0x24   : > { %v1066_v52 = vpack.c.bf16 %v270_v46, %v266_v45  ;;  %v940_v53 = vpack.c.bf16 %v277_v48, %v273_v47  ;;  %v272_v54 = vld [vmem:[%s1284_s25 + $0x100] sm:$0xff]  ;;  %v274_v56 = vld [vmem:[%s1284_s25 + $0x110] sm:$0xff]  ;;  %v1068_v57 = vpack.c.bf16 %v279_v50, %v275_v49  ;;  %v281_v59 = vld [vmem:[%s1284_s25 + $0x148] sm:$0xff] }
  0x25   : > { %935 = vmatpush1.bf16.msra.mxu0 %v934_v35  ;;  %v276_v55 = vld [vmem:[%s1284_s25 + $0x120] sm:$0xff]  ;;  %v278_v58 = vld [vmem:[%s1284_s25 + $0x130] sm:$0xff]  ;;  %v285_v60 = vld [vmem:[%s1284_s25 + $0x168] sm:$0xff] }
  0x26   : > { %1063 = vmatpush1.bf16.msra.mxu1 %v1062_v39  ;;  %937 = vmatprep.subr.bf16.mxu0 %v936_v40  ;;  %v283_v61 = vld [vmem:[%s1284_s25 + $0x158] sm:$0xff]  ;;  %v942_v63 = vpack.c.bf16 %v276_v55, %v272_v54  ;;  %v1070_v0 = vpack.c.bf16 %v278_v58, %v274_v56  ;;  %v944_v1 = vpack.c.bf16 %v285_v60, %v281_v59  ;;  %v280_v2 = vld [vmem:[%s1284_s25 + $0x140] sm:$0xff]  ;;  %v282_v4 = vld [vmem:[%s1284_s25 + $0x150] sm:$0xff] }
  0x27   : > { %1065 = vmatprep.subr.bf16.mxu1 %v1064_v44  ;;  %v287_v62 = vld [vmem:[%s1284_s25 + $0x178] sm:$0xff]  ;;  %v284_v3 = vld [vmem:[%s1284_s25 + $0x160] sm:$0xff]  ;;  %v286_v6 = vld [vmem:[%s1284_s25 + $0x170] sm:$0xff] }
  0x28   : > { %v1072_v5 = vpack.c.bf16 %v287_v62, %v283_v61  ;;  %v289_v7 = vld [vmem:[%s1284_s25 + $0x188] sm:$0xff]  ;;  %v291_v9 = vld [vmem:[%s1284_s25 + $0x198] sm:$0xff]  ;;  %v946_v11 = vpack.c.bf16 %v284_v3, %v280_v2  ;;  %v1074_v12 = vpack.c.bf16 %v286_v6, %v282_v4  ;;  %v288_v14 = vld [vmem:[%s1284_s25 + $0x180] sm:$0xff] }
  0x29   : > { %939 = vmatpush1.bf16.msra.mxu0 %v938_v51  ;;  %v293_v8 = vld [vmem:[%s1284_s25 + $0x1a8] sm:$0xff]  ;;  %v295_v10 = vld [vmem:[%s1284_s25 + $0x1b8] sm:$0xff]  ;;  %v292_v15 = vld [vmem:[%s1284_s25 + $0x1a0] sm:$0xff] }
  0x2a   : > { %1067 = vmatpush1.bf16.msra.mxu1 %v1066_v52  ;;  %941 = vmatprep.subr.bf16.mxu0 %v940_v53  ;;  %v948_v13 = vpack.c.bf16 %v293_v8, %v289_v7  ;;  %v290_v16 = vld [vmem:[%s1284_s25 + $0x190] sm:$0xff]  ;;  %v1076_v17 = vpack.c.bf16 %v295_v10, %v291_v9  ;;  %v297_v19 = vld [vmem:[%s1284_s25 + $0x1c8] sm:$0xff]  ;;  %v299_v21 = vld [vmem:[%s1284_s25 + $0x1d8] sm:$0xff]  ;;  %v950_v23 = vpack.c.bf16 %v292_v15, %v288_v14 }
  0x2b   : > { %1069 = vmatprep.subr.bf16.mxu1 %v1068_v57  ;;  %v294_v18 = vld [vmem:[%s1284_s25 + $0x1b0] sm:$0xff]  ;;  %v301_v20 = vld [vmem:[%s1284_s25 + $0x1e8] sm:$0xff]  ;;  %v303_v22 = vld [vmem:[%s1284_s25 + $0x1f8] sm:$0xff] }
  0x2c   : > { %v1078_v24 = vpack.c.bf16 %v294_v18, %v290_v16  ;;  %v952_v25 = vpack.c.bf16 %v301_v20, %v297_v19  ;;  %v296_v26 = vld [vmem:[%s1284_s25 + $0x1c0] sm:$0xff]  ;;  %v298_v28 = vld [vmem:[%s1284_s25 + $0x1d0] sm:$0xff]  ;;  %v1080_v29 = vpack.c.bf16 %v303_v22, %v299_v21  ;;  %v305_v31 = vld [vmem:[%s1284_s25 + $0x208] sm:$0xff] }
  0x2d   : > { %943 = vmatpush1.bf16.msra.mxu0 %v942_v63  ;;  %v300_v27 = vld [vmem:[%s1284_s25 + $0x1e0] sm:$0xff]  ;;  %v302_v30 = vld [vmem:[%s1284_s25 + $0x1f0] sm:$0xff]  ;;  %v309_v32 = vld [vmem:[%s1284_s25 + $0x228] sm:$0xff] }
  0x2e   : > { %1071 = vmatpush1.bf16.msra.mxu1 %v1070_v0  ;;  %945 = vmatprep.subr.bf16.mxu0 %v944_v1  ;;  %v307_v33 = vld [vmem:[%s1284_s25 + $0x218] sm:$0xff]  ;;  %v954_v35 = vpack.c.bf16 %v300_v27, %v296_v26  ;;  %v1082_v36 = vpack.c.bf16 %v302_v30, %v298_v28  ;;  %v956_v37 = vpack.c.bf16 %v309_v32, %v305_v31  ;;  %v304_v38 = vld [vmem:[%s1284_s25 + $0x200] sm:$0xff]  ;;  %v306_v40 = vld [vmem:[%s1284_s25 + $0x210] sm:$0xff] }
  0x2f   : > { %1073 = vmatprep.subr.bf16.mxu1 %v1072_v5  ;;  %v311_v34 = vld [vmem:[%s1284_s25 + $0x238] sm:$0xff]  ;;  %v308_v39 = vld [vmem:[%s1284_s25 + $0x220] sm:$0xff]  ;;  %v310_v42 = vld [vmem:[%s1284_s25 + $0x230] sm:$0xff] }
  0x30   : > { %v1084_v41 = vpack.c.bf16 %v311_v34, %v307_v33  ;;  %v313_v43 = vld [vmem:[%s1284_s25 + $0x248] sm:$0xff]  ;;  %v315_v45 = vld [vmem:[%s1284_s25 + $0x258] sm:$0xff]  ;;  %v958_v47 = vpack.c.bf16 %v308_v39, %v304_v38  ;;  %v1086_v48 = vpack.c.bf16 %v310_v42, %v306_v40  ;;  %v312_v50 = vld [vmem:[%s1284_s25 + $0x240] sm:$0xff] }
  0x31   : > { %947 = vmatpush1.bf16.msra.mxu0 %v946_v11  ;;  %v317_v44 = vld [vmem:[%s1284_s25 + $0x268] sm:$0xff]  ;;  %v319_v46 = vld [vmem:[%s1284_s25 + $0x278] sm:$0xff]  ;;  %v316_v51 = vld [vmem:[%s1284_s25 + $0x260] sm:$0xff] }
  0x32   : > { %1075 = vmatpush1.bf16.msra.mxu1 %v1074_v12  ;;  %949 = vmatprep.subr.bf16.mxu0 %v948_v13  ;;  %v960_v49 = vpack.c.bf16 %v317_v44, %v313_v43  ;;  %v314_v52 = vld [vmem:[%s1284_s25 + $0x250] sm:$0xff]  ;;  %v1088_v53 = vpack.c.bf16 %v319_v46, %v315_v45  ;;  %v321_v55 = vld [vmem:[%s1284_s25 + $0x288] sm:$0xff]  ;;  %v323_v57 = vld [vmem:[%s1284_s25 + $0x298] sm:$0xff]  ;;  %v962_v59 = vpack.c.bf16 %v316_v51, %v312_v50 }
  0x33   : > { %1077 = vmatprep.subr.bf16.mxu1 %v1076_v17  ;;  %v318_v54 = vld [vmem:[%s1284_s25 + $0x270] sm:$0xff]  ;;  %v325_v56 = vld [vmem:[%s1284_s25 + $0x2a8] sm:$0xff]  ;;  %v327_v58 = vld [vmem:[%s1284_s25 + $0x2b8] sm:$0xff] }
  0x34   : > { %v1090_v60 = vpack.c.bf16 %v318_v54, %v314_v52  ;;  %v964_v61 = vpack.c.bf16 %v325_v56, %v321_v55  ;;  %v320_v62 = vld [vmem:[%s1284_s25 + $0x280] sm:$0xff]  ;;  %v322_v0 = vld [vmem:[%s1284_s25 + $0x290] sm:$0xff]  ;;  %v1092_v1 = vpack.c.bf16 %v327_v58, %v323_v57  ;;  %v329_v3 = vld [vmem:[%s1284_s25 + $0x2c8] sm:$0xff] }
  0x35   : > { %951 = vmatpush1.bf16.msra.mxu0 %v950_v23  ;;  %v324_v63 = vld [vmem:[%s1284_s25 + $0x2a0] sm:$0xff]  ;;  %v326_v2 = vld [vmem:[%s1284_s25 + $0x2b0] sm:$0xff]  ;;  %v333_v4 = vld [vmem:[%s1284_s25 + $0x2e8] sm:$0xff] }
  0x36   : > { %1079 = vmatpush1.bf16.msra.mxu1 %v1078_v24  ;;  %953 = vmatprep.subr.bf16.mxu0 %v952_v25  ;;  %v331_v5 = vld [vmem:[%s1284_s25 + $0x2d8] sm:$0xff]  ;;  %v966_v7 = vpack.c.bf16 %v324_v63, %v320_v62  ;;  %v328_v8 = vld [vmem:[%s1284_s25 + $0x2c0] sm:$0xff]  ;;  %v1094_v9 = vpack.c.bf16 %v326_v2, %v322_v0  ;;  %v968_v10 = vpack.c.bf16 %v333_v4, %v329_v3  ;;  %v330_v12 = vld [vmem:[%s1284_s25 + $0x2d0] sm:$0xff] }
  0x37   : > { %1081 = vmatprep.subr.bf16.mxu1 %v1080_v29  ;;  %v335_v6 = vld [vmem:[%s1284_s25 + $0x2f8] sm:$0xff]  ;;  %v332_v11 = vld [vmem:[%s1284_s25 + $0x2e0] sm:$0xff]  ;;  %v334_v13 = vld [vmem:[%s1284_s25 + $0x2f0] sm:$0xff] }
  0x38   : > { %v1096_v14 = vpack.c.bf16 %v335_v6, %v331_v5  ;;  %v337_v15 = vld [vmem:[%s1284_s25 + $0x308] sm:$0xff]  ;;  %v339_v18 = vld [vmem:[%s1284_s25 + $0x318] sm:$0xff]  ;;  %v970_v20 = vpack.c.bf16 %v332_v11, %v328_v8  ;;  %v1098_v21 = vpack.c.bf16 %v334_v13, %v330_v12  ;;  %v336_v23 = vld [vmem:[%s1284_s25 + $0x300] sm:$0xff] }
  0x39   : > { %955 = vmatpush1.bf16.msra.mxu0 %v954_v35  ;;  %v341_v16 = vld [vmem:[%s1284_s25 + $0x328] sm:$0xff]  ;;  %v343_v19 = vld [vmem:[%s1284_s25 + $0x338] sm:$0xff]  ;;  %v340_v24 = vld [vmem:[%s1284_s25 + $0x320] sm:$0xff] }
  0x3a   : > { %1083 = vmatpush1.bf16.msra.mxu1 %v1082_v36  ;;  %957 = vmatprep.subr.bf16.mxu0 %v956_v37  ;;  %v237_v17 = vld [vmem:[%s1279_s21 + $0x8] sm:$0xff]  ;;  %v972_v22 = vpack.c.bf16 %v341_v16, %v337_v15  ;;  %v338_v25 = vld [vmem:[%s1284_s25 + $0x310] sm:$0xff]  ;;  %v1100_v26 = vpack.c.bf16 %v343_v19, %v339_v18  ;;  %v347_v30 = vld [vmem:[%s1284_s25 + $0x358] sm:$0xff]  ;;  %v974_v32 = vpack.c.bf16 %v340_v24, %v336_v23 }
  0x3b   : > { %1085 = vmatprep.subr.bf16.mxu1 %v1084_v41  ;;  %560 = vmatprep.mubr.f32.mxu0 %v237_v17  ;;  %v342_v27 = vld [vmem:[%s1284_s25 + $0x330] sm:$0xff]  ;;  %v345_v28 = vld [vmem:[%s1284_s25 + $0x348] sm:$0xff]  ;;  %v351_v31 = vld [vmem:[%s1284_s25 + $0x378] sm:$0xff] }
  0x3c   : > { %702 = vmatprep.mubr.f32.mxu1 %v237_v17  ;;  %v349_v29 = vld [vmem:[%s1284_s25 + $0x368] sm:$0xff]  ;;  %v1102_v33 = vpack.c.bf16 %v342_v27, %v338_v25  ;;  %v344_v35 = vld [vmem:[%s1284_s25 + $0x340] sm:$0xff]  ;;  %v346_v37 = vld [vmem:[%s1284_s25 + $0x350] sm:$0xff]  ;;  %v1104_v38 = vpack.c.bf16 %v351_v31, %v347_v30 }
  0x3d   : > { %959 = vmatpush1.bf16.msra.mxu0 %v958_v47  ;;  %v976_v34 = vpack.c.bf16 %v349_v29, %v345_v28  ;;  %v348_v36 = vld [vmem:[%s1284_s25 + $0x360] sm:$0xff]  ;;  %v350_v39 = vld [vmem:[%s1284_s25 + $0x370] sm:$0xff]  ;;  %v353_v40 = vld [vmem:[%s1284_s25 + $0x388] sm:$0xff] }
  0x3e   : > { %1087 = vmatpush1.bf16.msra.mxu1 %v1086_v48  ;;  %961 = vmatprep.subr.bf16.mxu0 %v960_v49  ;;  %v357_v41 = vld [vmem:[%s1284_s25 + $0x3a8] sm:$0xff]  ;;  %v355_v42 = vld [vmem:[%s1284_s25 + $0x398] sm:$0xff]  ;;  %v978_v44 = vpack.c.bf16 %v348_v36, %v344_v35  ;;  %v1106_v45 = vpack.c.bf16 %v350_v39, %v346_v37  ;;  %v352_v47 = vld [vmem:[%s1284_s25 + $0x380] sm:$0xff] }
  0x3f   : > { %1089 = vmatprep.subr.bf16.mxu1 %v1088_v53  ;;  %v359_v43 = vld [vmem:[%s1284_s25 + $0x3b8] sm:$0xff]  ;;  %v980_v46 = vpack.c.bf16 %v357_v41, %v353_v40  ;;  %v356_v48 = vld [vmem:[%s1284_s25 + $0x3a0] sm:$0xff]  ;;  %v354_v49 = vld [vmem:[%s1284_s25 + $0x390] sm:$0xff] }
  0x40   : > { %v1108_v50 = vpack.c.bf16 %v359_v43, %v355_v42  ;;  %v358_v51 = vld [vmem:[%s1284_s25 + $0x3b0] sm:$0xff]  ;;  %v361_v52 = vld [vmem:[%s1284_s25 + $0x3c8] sm:$0xff]  ;;  %v363_v54 = vld [vmem:[%s1284_s25 + $0x3d8] sm:$0xff]  ;;  %v982_v56 = vpack.c.bf16 %v356_v48, %v352_v47 }
  0x41   : > { %963 = vmatpush1.bf16.msra.mxu0 %v962_v59  ;;  %v365_v53 = vld [vmem:[%s1284_s25 + $0x3e8] sm:$0xff]  ;;  %v367_v55 = vld [vmem:[%s1284_s25 + $0x3f8] sm:$0xff]  ;;  %v1110_v57 = vpack.c.bf16 %v358_v51, %v354_v49  ;;  %v360_v59 = vld [vmem:[%s1284_s25 + $0x3c0] sm:$0xff] }
  0x42   : > { %1091 = vmatpush1.bf16.msra.mxu1 %v1090_v60  ;;  %965 = vmatprep.subr.bf16.mxu0 %v964_v61  ;;  %v984_v58 = vpack.c.bf16 %v365_v53, %v361_v52  ;;  %v364_v60 = vld [vmem:[%s1284_s25 + $0x3e0] sm:$0xff]  ;;  %v362_v61 = vld [vmem:[%s1284_s25 + $0x3d0] sm:$0xff]  ;;  %v1112_v62 = vpack.c.bf16 %v367_v55, %v363_v54  ;;  %v369_v0 = vld [vmem:[%s1284_s25 + $0x408] sm:$0xff] }
  0x43   : > { %1093 = vmatprep.subr.bf16.mxu1 %v1092_v1  ;;  %v366_v63 = vld [vmem:[%s1284_s25 + $0x3f0] sm:$0xff]  ;;  %v373_v1 = vld [vmem:[%s1284_s25 + $0x428] sm:$0xff]  ;;  %v371_v2 = vld [vmem:[%s1284_s25 + $0x418] sm:$0xff]  ;;  %v986_v4 = vpack.c.bf16 %v364_v60, %v360_v59 }
  0x44   : > { %v375_v3 = vld [vmem:[%s1284_s25 + $0x438] sm:$0xff]  ;;  %v1114_v5 = vpack.c.bf16 %v366_v63, %v362_v61  ;;  %v988_v6 = vpack.c.bf16 %v373_v1, %v369_v0  ;;  %v372_v8 = vld [vmem:[%s1284_s25 + $0x420] sm:$0xff]  ;;  %v374_v11 = vld [vmem:[%s1284_s25 + $0x430] sm:$0xff] }
  0x45   : > { %967 = vmatpush1.bf16.msra.mxu0 %v966_v7  ;;  %v368_v7 = vld [vmem:[%s1284_s25 + $0x400] sm:$0xff]  ;;  %v377_v12 = vld [vmem:[%s1284_s25 + $0x448] sm:$0xff]  ;;  %v383_v15 = vld [vmem:[%s1284_s25 + $0x478] sm:$0xff] }
  0x46   : > { %1095 = vmatpush1.bf16.msra.mxu1 %v1094_v9  ;;  %969 = vmatprep.subr.bf16.mxu0 %v968_v10  ;;  %v370_v9 = vld [vmem:[%s1284_s25 + $0x410] sm:$0xff]  ;;  %v1116_v10 = vpack.c.bf16 %v375_v3, %v371_v2  ;;  %v381_v13 = vld [vmem:[%s1284_s25 + $0x468] sm:$0xff]  ;;  %v236_v16 = vld [vmem:[%s1279_s21] sm:$0xff]  ;;  %v990_v17 = vpack.c.bf16 %v372_v8, %v368_v7 }
  0x47   : > { %1097 = vmatprep.subr.bf16.mxu1 %v1096_v14  ;;  %v379_v14 = vld [vmem:[%s1284_s25 + $0x458] sm:$0xff]  ;;  %v1118_v18 = vpack.c.bf16 %v374_v11, %v370_v9  ;;  %v992_v19 = vpack.c.bf16 %v381_v13, %v377_v12  ;;  %v382_v24 = vld [vmem:[%s1284_s25 + $0x470] sm:$0xff]  ;;  %v385_v25 = vld [vmem:[%s1284_s25 + $0x488] sm:$0xff] }
  0x48   : > { %v1120_v23 = vpack.c.bf16 %v383_v15, %v379_v14  ;;  %v387_v27 = vld [vmem:[%s1284_s25 + $0x498] sm:$0xff]  ;;  %v390_v36 = vld [vmem:[%s1284_s25 + $0x4b0] sm:$0xff]  ;;  %v393_v37 = vld [vmem:[%s1284_s25 + $0x4c8] sm:$0xff] }
  0x49   : > { %971 = vmatpush1.bf16.msra.mxu0 %v970_v20  ;;  %v376_v20 = vld [vmem:[%s1284_s25 + $0x440] sm:$0xff]  ;;  %v391_v28 = vld [vmem:[%s1284_s25 + $0x4b8] sm:$0xff]  ;;  %v398_v48 = vld [vmem:[%s1284_s25 + $0x4f0] sm:$0xff] }
  0x4a   : > { %1099 = vmatpush1.bf16.msra.mxu1 %v1098_v21  ;;  %973 = vmatprep.subr.bf16.mxu0 %v972_v22  ;;  %v380_v21 = vld [vmem:[%s1284_s25 + $0x460] sm:$0xff]  ;;  %v378_v22 = vld [vmem:[%s1284_s25 + $0x450] sm:$0xff]  ;;  %v1124_v35 = vpack.c.bf16 %v391_v28, %v387_v27  ;;  %v395_v39 = vld [vmem:[%s1284_s25 + $0x4d8] sm:$0xff] }
  0x4b   : > { %1101 = vmatprep.subr.bf16.mxu1 %v1100_v26  ;;  %v389_v26 = vld [vmem:[%s1284_s25 + $0x4a8] sm:$0xff]  ;;  %v994_v29 = vpack.c.bf16 %v380_v21, %v376_v20  ;;  %v1122_v30 = vpack.c.bf16 %v382_v24, %v378_v22  ;;  %v399_v40 = vld [vmem:[%s1284_s25 + $0x4f8] sm:$0xff]  ;;  %v406_v60 = vld [vmem:[%s1284_s25 + $0x530] sm:$0xff] }
  0x4c   : > { %v996_v31 = vpack.c.bf16 %v389_v26, %v385_v25  ;;  %v1128_v47 = vpack.c.bf16 %v399_v40, %v395_v39  ;;  %v401_v49 = vld [vmem:[%s1284_s25 + $0x508] sm:$0xff]  ;;  %v403_v51 = vld [vmem:[%s1284_s25 + $0x518] sm:$0xff]  ;;  %v414_v8 = vld [vmem:[%s1284_s25 + $0x570] sm:$0xff] }
  0x4d   : > { %975 = vmatpush1.bf16.msra.mxu0 %v974_v32  ;;  %v384_v32 = vld [vmem:[%s1284_s25 + $0x480] sm:$0xff]  ;;  %v407_v52 = vld [vmem:[%s1284_s25 + $0x538] sm:$0xff]  ;;  %v409_v61 = vld [vmem:[%s1284_s25 + $0x548] sm:$0xff] }
  0x4e   : > { %1103 = vmatpush1.bf16.msra.mxu1 %v1102_v33  ;;  %977 = vmatprep.subr.bf16.mxu0 %v976_v34  ;;  %v388_v33 = vld [vmem:[%s1284_s25 + $0x4a0] sm:$0xff]  ;;  %v386_v34 = vld [vmem:[%s1284_s25 + $0x490] sm:$0xff]  ;;  %v1132_v59 = vpack.c.bf16 %v407_v52, %v403_v51  ;;  %v411_v63 = vld [vmem:[%s1284_s25 + $0x558] sm:$0xff] }
  0x4f   : > { %1105 = vmatprep.subr.bf16.mxu1 %v1104_v38  ;;  %v397_v38 = vld [vmem:[%s1284_s25 + $0x4e8] sm:$0xff]  ;;  %v998_v41 = vpack.c.bf16 %v388_v33, %v384_v32  ;;  %v1126_v42 = vpack.c.bf16 %v390_v36, %v386_v34  ;;  %v415_v0 = vld [vmem:[%s1284_s25 + $0x578] sm:$0xff]  ;;  %v416_v14 = vld [vmem:[%s1284_s25 + $0x580] sm:$0xff] }
  0x50   : > { %v1000_v43 = vpack.c.bf16 %v397_v38, %v393_v37  ;;  %v1136_v7 = vpack.c.bf16 %v415_v0, %v411_v63  ;;  %v417_v9 = vld [vmem:[%s1284_s25 + $0x588] sm:$0xff]  ;;  %v419_v11 = vld [vmem:[%s1284_s25 + $0x598] sm:$0xff]  ;;  %v430_v33 = vld [vmem:[%s1284_s25 + $0x5f0] sm:$0xff] }
  0x51   : > { %979 = vmatpush1.bf16.msra.mxu0 %v978_v44  ;;  %v392_v44 = vld [vmem:[%s1284_s25 + $0x4c0] sm:$0xff]  ;;  %v423_v12 = vld [vmem:[%s1284_s25 + $0x5b8] sm:$0xff]  ;;  %v425_v21 = vld [vmem:[%s1284_s25 + $0x5c8] sm:$0xff] }
  0x52   : > { %1107 = vmatpush1.bf16.msra.mxu1 %v1106_v45  ;;  %981 = vmatprep.subr.bf16.mxu0 %v980_v46  ;;  %v396_v45 = vld [vmem:[%s1284_s25 + $0x4e0] sm:$0xff]  ;;  %v394_v46 = vld [vmem:[%s1284_s25 + $0x4d0] sm:$0xff]  ;;  %v1140_v20 = vpack.c.bf16 %v423_v12, %v419_v11  ;;  %v429_v22 = vld [vmem:[%s1284_s25 + $0x5e8] sm:$0xff] }
  0x53   : > { %1109 = vmatprep.subr.bf16.mxu1 %v1108_v50  ;;  %v405_v50 = vld [vmem:[%s1284_s25 + $0x528] sm:$0xff]  ;;  %v1002_v53 = vpack.c.bf16 %v396_v45, %v392_v44  ;;  %v1130_v54 = vpack.c.bf16 %v398_v48, %v394_v46  ;;  %v427_v24 = vld [vmem:[%s1284_s25 + $0x5d8] sm:$0xff]  ;;  %v1016_v28 = vpack.c.bf16 %v429_v22, %v425_v21  ;;  %v438_v45 = vld [vmem:[%s1284_s25 + $0x630] sm:$0xff] }
  0x54   : > { %v1004_v55 = vpack.c.bf16 %v405_v50, %v401_v49  ;;  %v431_v25 = vld [vmem:[%s1284_s25 + $0x5f8] sm:$0xff]  ;;  %v433_v34 = vld [vmem:[%s1284_s25 + $0x608] sm:$0xff] }
  0x55   : > { %983 = vmatpush1.bf16.msra.mxu0 %v982_v56  ;;  %v400_v56 = vld [vmem:[%s1284_s25 + $0x500] sm:$0xff]  ;;  %v1144_v32 = vpack.c.bf16 %v431_v25, %v427_v24  ;;  %v435_v36 = vld [vmem:[%s1284_s25 + $0x618] sm:$0xff]  ;;  %v441_v46 = vld [vmem:[%s1284_s25 + $0x648] sm:$0xff] }
  0x56   : > { %1111 = vmatpush1.bf16.msra.mxu1 %v1110_v57  ;;  %985 = vmatprep.subr.bf16.mxu0 %v984_v58  ;;  %v404_v57 = vld [vmem:[%s1284_s25 + $0x520] sm:$0xff]  ;;  %v402_v58 = vld [vmem:[%s1284_s25 + $0x510] sm:$0xff]  ;;  %v439_v37 = vld [vmem:[%s1284_s25 + $0x638] sm:$0xff] }
  0x57   : > { %1113 = vmatprep.subr.bf16.mxu1 %v1112_v62  ;;  %v413_v62 = vld [vmem:[%s1284_s25 + $0x568] sm:$0xff]  ;;  %v1006_v1 = vpack.c.bf16 %v404_v57, %v400_v56  ;;  %v1134_v2 = vpack.c.bf16 %v406_v60, %v402_v58  ;;  %v1148_v44 = vpack.c.bf16 %v439_v37, %v435_v36  ;;  %v443_v48 = vld [vmem:[%s1284_s25 + $0x658] sm:$0xff]  ;;  %v446_v57 = vld [vmem:[%s1284_s25 + $0x670] sm:$0xff] }
  0x58   : > { %v1008_v3 = vpack.c.bf16 %v413_v62, %v409_v61  ;;  %v447_v49 = vld [vmem:[%s1284_s25 + $0x678] sm:$0xff]  ;;  %v449_v58 = vld [vmem:[%s1284_s25 + $0x688] sm:$0xff]  ;;  %v464_v25 = vld [vmem:[%s1284_s25 + $0x700] sm:$0xff] }
  0x59   : > { %987 = vmatpush1.bf16.msra.mxu0 %v986_v4  ;;  %v408_v4 = vld [vmem:[%s1284_s25 + $0x540] sm:$0xff]  ;;  %v1152_v56 = vpack.c.bf16 %v447_v49, %v443_v48  ;;  %v451_v60 = vld [vmem:[%s1284_s25 + $0x698] sm:$0xff] }
  0x5a   : > { %1115 = vmatpush1.bf16.msra.mxu1 %v1114_v5  ;;  %989 = vmatprep.subr.bf16.mxu0 %v988_v6  ;;  %v412_v5 = vld [vmem:[%s1284_s25 + $0x560] sm:$0xff]  ;;  %v410_v6 = vld [vmem:[%s1284_s25 + $0x550] sm:$0xff]  ;;  %v455_v61 = vld [vmem:[%s1284_s25 + $0x6b8] sm:$0xff] }
  0x5b   : > { %1117 = vmatprep.subr.bf16.mxu1 %v1116_v10  ;;  %v421_v10 = vld [vmem:[%s1284_s25 + $0x5a8] sm:$0xff]  ;;  %v1010_v13 = vpack.c.bf16 %v412_v5, %v408_v4  ;;  %v1138_v15 = vpack.c.bf16 %v414_v8, %v410_v6  ;;  %v1156_v4 = vpack.c.bf16 %v455_v61, %v451_v60  ;;  %v454_v5 = vld [vmem:[%s1284_s25 + $0x6b0] sm:$0xff]  ;;  %v459_v8 = vld [vmem:[%s1284_s25 + $0x6d8] sm:$0xff] }
  0x5c   : > { %561 = vmatmul.mubr.f32.vlgmr.msra.gmra.mrb[0].mxu0 %v236_v16  ;;  %v457_v6 = vld [vmem:[%s1284_s25 + $0x6c8] sm:$0xff]  ;;  %v471_v21 = vld [vmem:[%s1284_s25 + $0x738] sm:$0xff]  ;;  %v472_v37 = vld [vmem:[%s1284_s25 + $0x740] sm:$0xff] }
  0x5d   : > { %991 = vmatpush1.bf16.msra.mxu0 %v990_v17  ;;  %703 = vmatmul.mubr.f32.vlgmr.msra.gmra.mrb[0].mxu1 %v236_v16  ;;  %v1012_v16 = vpack.c.bf16 %v421_v10, %v417_v9  ;;  %v420_v17 = vld [vmem:[%s1284_s25 + $0x5a0] sm:$0xff]  ;;  %v463_v9 = vld [vmem:[%s1284_s25 + $0x6f8] sm:$0xff] }
  0x5e   : > { %1119 = vmatpush1.bf16.msra.mxu1 %v1118_v18  ;;  %993 = vmatprep.subr.bf16.mxu0 %v992_v19  ;;  %v418_v18 = vld [vmem:[%s1284_s25 + $0x590] sm:$0xff]  ;;  %v1014_v26 = vpack.c.bf16 %v420_v17, %v416_v14  ;;  %v460_v14 = vld [vmem:[%s1284_s25 + $0x6e0] sm:$0xff] }
  0x5f   : > { %1121 = vmatprep.subr.bf16.mxu1 %v1120_v23  ;;  %v422_v19 = vld [vmem:[%s1284_s25 + $0x5b0] sm:$0xff]  ;;  %v239_v23 = vld [vmem:[%s1279_s21 + $0x18] sm:$0xff]  ;;  %v480_v49 = vld [vmem:[%s1284_s25 + $0x780] sm:$0xff] }
  0x60   : > { %631 = vmatprep.mubr.f32.mxu0 %v239_v23  ;;  %773 = vmatprep.mubr.f32.mxu1 %v239_v23  ;;  %v1142_v27 = vpack.c.bf16 %v422_v19, %v418_v18  ;;  %v462_v17 = vld [vmem:[%s1284_s25 + $0x6f0] sm:$0xff]  ;;  %v465_v18 = vld [vmem:[%s1284_s25 + $0x708] sm:$0xff]  ;;  %v488_v61 = vld [vmem:[%s1284_s25 + $0x7c0] sm:$0xff] }
  0x61   : > { %995 = vmatpush1.bf16.msra.mxu0 %v994_v29  ;;  %v424_v29 = vld [vmem:[%s1284_s25 + $0x5c0] sm:$0xff]  ;;  %v469_v19 = vld [vmem:[%s1284_s25 + $0x728] sm:$0xff] }
  0x62   : > { %1123 = vmatpush1.bf16.msra.mxu1 %v1122_v30  ;;  %997 = vmatprep.subr.bf16.mxu0 %v996_v31  ;;  %v428_v30 = vld [vmem:[%s1284_s25 + $0x5e0] sm:$0xff]  ;;  %v426_v31 = vld [vmem:[%s1284_s25 + $0x5d0] sm:$0xff]  ;;  %v1036_v24 = vpack.c.bf16 %v469_v19, %v465_v18 }
  0x63   : > { %1125 = vmatprep.subr.bf16.mxu1 %v1124_v35  ;;  %v437_v35 = vld [vmem:[%s1284_s25 + $0x628] sm:$0xff]  ;;  %v1018_v38 = vpack.c.bf16 %v428_v30, %v424_v29  ;;  %v1146_v39 = vpack.c.bf16 %v430_v33, %v426_v31  ;;  %v470_v29 = vld [vmem:[%s1284_s25 + $0x730] sm:$0xff]  ;;  %v479_v33 = vld [vmem:[%s1284_s25 + $0x778] sm:$0xff] }
  0x64   : > { %v1020_v40 = vpack.c.bf16 %v437_v35, %v433_v34  ;;  %v473_v30 = vld [vmem:[%s1284_s25 + $0x748] sm:$0xff]  ;;  %v796_v19 = vld [vmem:[%s1574_s2] sm:$0xf] (!%p919_p7) }
  0x65   : > { %999 = vmatpush1.bf16.msra.mxu0 %v998_v41  ;;  %v432_v41 = vld [vmem:[%s1284_s25 + $0x600] sm:$0xff]  ;;  %v477_v31 = vld [vmem:[%s1284_s25 + $0x768] sm:$0xff] }
  0x66   : > { %1127 = vmatpush1.bf16.msra.mxu1 %v1126_v42  ;;  %1001 = vmatprep.subr.bf16.mxu0 %v1000_v43  ;;  %v436_v42 = vld [vmem:[%s1284_s25 + $0x620] sm:$0xff]  ;;  %v434_v43 = vld [vmem:[%s1284_s25 + $0x610] sm:$0xff]  ;;  %v1040_v36 = vpack.c.bf16 %v477_v31, %v473_v30 }
  0x67   : > { %1129 = vmatprep.subr.bf16.mxu1 %v1128_v47  ;;  %v445_v47 = vld [vmem:[%s1284_s25 + $0x668] sm:$0xff]  ;;  %v1022_v50 = vpack.c.bf16 %v436_v42, %v432_v41  ;;  %v1150_v51 = vpack.c.bf16 %v438_v45, %v434_v43  ;;  %v478_v41 = vld [vmem:[%s1284_s25 + $0x770] sm:$0xff]  ;;  %v487_v45 = vld [vmem:[%s1284_s25 + $0x7b8] sm:$0xff] }
  0x68   : > { %v1024_v52 = vpack.c.bf16 %v445_v47, %v441_v46  ;;  %v481_v42 = vld [vmem:[%s1284_s25 + $0x788] sm:$0xff] }
  0x69   : > { %1003 = vmatpush1.bf16.msra.mxu0 %v1002_v53  ;;  %v440_v53 = vld [vmem:[%s1284_s25 + $0x640] sm:$0xff]  ;;  %v485_v43 = vld [vmem:[%s1284_s25 + $0x7a8] sm:$0xff] }
  0x6a   : > { %1131 = vmatpush1.bf16.msra.mxu1 %v1130_v54  ;;  %1005 = vmatprep.subr.bf16.mxu0 %v1004_v55  ;;  %v444_v54 = vld [vmem:[%s1284_s25 + $0x660] sm:$0xff]  ;;  %v442_v55 = vld [vmem:[%s1284_s25 + $0x650] sm:$0xff]  ;;  %v1044_v48 = vpack.c.bf16 %v485_v43, %v481_v42 }
  0x6b   : > { %1133 = vmatprep.subr.bf16.mxu1 %v1132_v59  ;;  %v453_v59 = vld [vmem:[%s1284_s25 + $0x6a8] sm:$0xff]  ;;  %v1026_v62 = vpack.c.bf16 %v444_v54, %v440_v53  ;;  %v1154_v63 = vpack.c.bf16 %v446_v57, %v442_v55  ;;  %v486_v53 = vld [vmem:[%s1284_s25 + $0x7b0] sm:$0xff]  ;;  %v495_v57 = vld [vmem:[%s1284_s25 + $0x7f8] sm:$0xff] }
  0x6c   : > { %v1028_v0 = vpack.c.bf16 %v453_v59, %v449_v58  ;;  %v489_v54 = vld [vmem:[%s1284_s25 + $0x7c8] sm:$0xff] }
  0x6d   : > { %1007 = vmatpush1.bf16.msra.mxu0 %v1006_v1  ;;  %v448_v1 = vld [vmem:[%s1284_s25 + $0x680] sm:$0xff]  ;;  %v493_v55 = vld [vmem:[%s1284_s25 + $0x7e8] sm:$0xff] }
  0x6e   : > { %1135 = vmatpush1.bf16.msra.mxu1 %v1134_v2  ;;  %1009 = vmatprep.subr.bf16.mxu0 %v1008_v3  ;;  %v452_v2 = vld [vmem:[%s1284_s25 + $0x6a0] sm:$0xff]  ;;  %v450_v3 = vld [vmem:[%s1284_s25 + $0x690] sm:$0xff]  ;;  %v1048_v60 = vpack.c.bf16 %v493_v55, %v489_v54 }
  0x6f   : > { %1137 = vmatprep.subr.bf16.mxu1 %v1136_v7  ;;  %v461_v7 = vld [vmem:[%s1284_s25 + $0x6e8] sm:$0xff]  ;;  %v1030_v10 = vpack.c.bf16 %v452_v2, %v448_v1  ;;  %v1158_v11 = vpack.c.bf16 %v454_v5, %v450_v3  ;;  %v494_v1 = vld [vmem:[%s1284_s25 + $0x7f0] sm:$0xff]  ;;  %v232_v5 = vld [vmem:[#allocation2] sm:$0xff] }
  0x70   : > { %v1032_v12 = vpack.c.bf16 %v461_v7, %v457_v6  ;;  %v234_v6 = vld [vmem:[#allocation2 + $0x10] sm:$0xff]  ;;  %v233_v7 = vld [vmem:[#allocation2 + $0x8] sm:$0xff] }
  0x71   : > { %1011 = vmatpush1.bf16.msra.mxu0 %v1010_v13  ;;  %v456_v13 = vld [vmem:[%s1284_s25 + $0x6c0] sm:$0xff] }
  0x72   : > { %1139 = vmatpush1.bf16.msra.mxu1 %v1138_v15  ;;  %1013 = vmatprep.subr.bf16.mxu0 %v1012_v16  ;;  %v458_v15 = vld [vmem:[%s1284_s25 + $0x6d0] sm:$0xff]  ;;  %v1160_v16 = vpack.c.bf16 %v463_v9, %v459_v8  ;;  %v1034_v22 = vpack.c.bf16 %v460_v14, %v456_v13  ;;  %v235_v9 = vld [vmem:[#allocation2 + $0x18] sm:$0xff] }
  0x73   : > { %1141 = vmatprep.subr.bf16.mxu1 %v1140_v20  ;;  %v467_v20 = vld [vmem:[%s1284_s25 + $0x718] sm:$0xff]  ;;  %v1162_v23 = vpack.c.bf16 %v462_v17, %v458_v15  ;;  %v798_v17 = vlaneseq (!%p919_p7) }
  0x75   : > { %1015 = vmatpush1.bf16.msra.mxu0 %v1014_v26  ;;  %v468_v26 = vld [vmem:[%s1284_s25 + $0x720] sm:$0xff]  ;;  %v799_v18 = vshrl.u32 (!%p919_p7), %v798_v17, 7 }
  0x76   : > { %1143 = vmatpush1.bf16.msra.mxu1 %v1142_v27  ;;  %1017 = vmatprep.subr.bf16.mxu0 %v1016_v28  ;;  %v466_v27 = vld [vmem:[%s1284_s25 + $0x710] sm:$0xff]  ;;  %v1164_v28 = vpack.c.bf16 %v471_v21, %v467_v20  ;;  %v1038_v34 = vpack.c.bf16 %v468_v26, %v464_v25 }
  0x77   : > { %1145 = vmatprep.subr.bf16.mxu1 %v1144_v32  ;;  %v475_v32 = vld [vmem:[%s1284_s25 + $0x758] sm:$0xff]  ;;  %v1166_v35 = vpack.c.bf16 %v470_v29, %v466_v27  ;;  %v800_v21 = vsub.s32 (!%p919_p7), 0, %v799_v18 }
  0x79   : > { %1019 = vmatpush1.bf16.msra.mxu0 %v1018_v38  ;;  %v476_v38 = vld [vmem:[%s1284_s25 + $0x760] sm:$0xff] }
  0x7a   : > { %1147 = vmatpush1.bf16.msra.mxu1 %v1146_v39  ;;  %1021 = vmatprep.subr.bf16.mxu0 %v1020_v40  ;;  %v474_v39 = vld [vmem:[%s1284_s25 + $0x750] sm:$0xff]  ;;  %v1168_v40 = vpack.c.bf16 %v479_v33, %v475_v32  ;;  %v1042_v46 = vpack.c.bf16 %v476_v38, %v472_v37 }
  0x7b   : > { %1149 = vmatprep.subr.bf16.mxu1 %v1148_v44  ;;  %v483_v44 = vld [vmem:[%s1284_s25 + $0x798] sm:$0xff]  ;;  %v1170_v47 = vpack.c.bf16 %v478_v41, %v474_v39 }
  0x7d   : > { %1023 = vmatpush1.bf16.msra.mxu0 %v1022_v50  ;;  %v484_v50 = vld [vmem:[%s1284_s25 + $0x7a0] sm:$0xff] }
  0x7e   : > { %1151 = vmatpush1.bf16.msra.mxu1 %v1150_v51  ;;  %1025 = vmatprep.subr.bf16.mxu0 %v1024_v52  ;;  %v482_v51 = vld [vmem:[%s1284_s25 + $0x790] sm:$0xff]  ;;  %v1172_v52 = vpack.c.bf16 %v487_v45, %v483_v44  ;;  %v1046_v58 = vpack.c.bf16 %v484_v50, %v480_v49 }
  0x7f   : > { %1153 = vmatprep.subr.bf16.mxu1 %v1152_v56  ;;  %v491_v56 = vld [vmem:[%s1284_s25 + $0x7d8] sm:$0xff]  ;;  %v1174_v59 = vpack.c.bf16 %v486_v53, %v482_v51 }
  0x81   : > { %1027 = vmatpush1.bf16.msra.mxu0 %v1026_v62  ;;  %v492_v62 = vld [vmem:[%s1284_s25 + $0x7e0] sm:$0xff] }
  0x82   : > { %1155 = vmatpush1.bf16.msra.mxu1 %v1154_v63  ;;  %1029 = vmatprep.subr.bf16.mxu0 %v1028_v0  ;;  %v1176_v63 = vpack.c.bf16 %v495_v57, %v491_v56  ;;  %v490_v0 = vld [vmem:[%s1284_s25 + $0x7d0] sm:$0xff]  ;;  %v1050_v2 = vpack.c.bf16 %v492_v62, %v488_v61 }
  0x83   : > { %1157 = vmatprep.subr.bf16.mxu1 %v1156_v4  ;;  %v1178_v3 = vpack.c.bf16 %v494_v1, %v490_v0  ;;  %v238_v4 = vld [vmem:[%s1279_s21 + $0x10] sm:$0xff] }
  0x85   : > { %1031 = vmatpush1.bf16.msra.mxu0 %v1030_v10 }
  0x86   : > { %1159 = vmatpush1.bf16.msra.mxu1 %v1158_v11  ;;  %1033 = vmatprep.subr.bf16.mxu0 %v1032_v12 }
  0x87   : > { %1161 = vmatprep.subr.bf16.mxu1 %v1160_v16 }
  0x89   : > { %1035 = vmatpush1.bf16.msra.mxu0 %v1034_v22  ;;  %v804_v22 = vsub.s32 (!%p919_p7), 1, %v799_v18 }
  0x8a   : > { %1163 = vmatpush1.bf16.msra.mxu1 %v1162_v23  ;;  %1037 = vmatprep.subr.bf16.mxu0 %v1036_v24  ;;  %v808_v23 = vsub.s32 (!%p919_p7), 2, %v799_v18  ;;  %v812_v24 = vsub.s32 (!%p919_p7), 3, %v799_v18 }
  0x8b   : > { %1165 = vmatprep.subr.bf16.mxu1 %v1164_v28  ;;  %v801_v28 = vrot.slane (!%p919_p7), %v796_v19, %v800_v21  ;;  %v805_v29 = vrot.slane (!%p919_p7), %v796_v19, %v804_v22 }
  0x8c   : > { %v809_v30 = vrot.slane (!%p919_p7), %v796_v19, %v808_v23  ;;  %v813_v31 = vrot.slane (!%p919_p7), %v796_v19, %v812_v24 }
  0x8d   : > { %1039 = vmatpush1.bf16.msra.mxu0 %v1038_v34 }
  0x8e   : > { %1167 = vmatpush1.bf16.msra.mxu1 %v1166_v35  ;;  %1041 = vmatprep.subr.bf16.mxu0 %v1040_v36 }
  0x8f   : > { %1169 = vmatprep.subr.bf16.mxu1 %v1168_v40 }
  0x91   : > { %1043 = vmatpush1.bf16.msra.mxu0 %v1042_v46 }
  0x92   : > { %1171 = vmatpush1.bf16.msra.mxu1 %v1170_v47  ;;  %1045 = vmatprep.subr.bf16.mxu0 %v1044_v48 }
  0x93   : > { %1173 = vmatprep.subr.bf16.mxu1 %v1172_v52 }
  0x95   : > { %1047 = vmatpush1.bf16.msra.mxu0 %v1046_v58 }
  0x96   : > { %1175 = vmatpush1.bf16.msra.mxu1 %v1174_v59  ;;  %1049 = vmatprep.subr.bf16.mxu0 %v1048_v60 }
  0x97   : > { %1177 = vmatprep.subr.bf16.mxu1 %v1176_v63 }
  0x99   : > { %1051 = vmatpush1.bf16.msra.mxu0 %v1050_v2 }
  0x9a   : > { %1179 = vmatpush1.bf16.msra.mxu1 %v1178_v3 }
  0x9c   : > { %632 = vmatmul.mubr.f32.vlgmr.msra.gmra.mrb[0].mxu0 %v238_v4 }
  0x9d   : > { %774 = vmatmul.mubr.f32.vlgmr.msra.gmra.mrb[0].mxu1 %v238_v4 }
 0x16e   : > { %791 = sbr.rel (%p919_p7) target bundleno = 385 (0x181), region = 40 }
 0x16f   : > { %v633_v8 = vpop.f32.mrb[0].mxu0 }
 0x170   : > { %v780_v10 = vadd.f32 %v633_v8, %v232_v5  ;;  %v775_v11 = vpop.f32.mrb[0].mxu1  ;;  %v635_v12 = vpop.f32.mrb[1].mxu0 }
 0x171   : > { %v782_v13 = vadd.f32 %v775_v11, %v234_v6  ;;  %v781_v14 = vadd.f32 %v635_v12, %v233_v7  ;;  %v777_v15 = vpop.f32.mrb[1].mxu1 }
 0x172   : > { %784 = vst [vmem:[#allocation2] sm:$0xff] %v780_v10  ;;  %v783_v16 = vadd.f32 %v777_v15, %v235_v9 }
 0x173   : > { %786 = vst [vmem:[#allocation2 + $0x10] sm:$0xff] %v782_v13  ;;  %785 = vst [vmem:[#allocation2 + $0x8] sm:$0xff] %v781_v14 }
 0x174   : > { %787 = vst [vmem:[#allocation2 + $0x18] sm:$0xff] %v783_v16 }
 0x179   : > { %v792_v20 = vld [vmem:[#allocation2] sm:$0xff] }
 0x17a   : > { %v793_v25 = vld [vmem:[#allocation2 + $0x8] sm:$0xff]  ;;  %v794_v26 = vld [vmem:[#allocation2 + $0x10] sm:$0xff]  ;;  %v818_v32 = vadd.f32 %v801_v28, %v792_v20 }
 0x17b   : > { %v795_v27 = vld [vmem:[#allocation2 + $0x18] sm:$0xff]  ;;  %v819_v33 = vadd.f32 %v805_v29, %v793_v25  ;;  %v820_v34 = vadd.f32 %v809_v30, %v794_v26 }
 0x17c   : > { %v821_v35 = vadd.f32 %v813_v31, %v795_v27  ;;  %v822_v36 = vmax.f32 %v818_v32, 0.0 }
 0x17d   : > { %v823_v37 = vmax.f32 %v819_v33, 0.0  ;;  %v824_v38 = vmax.f32 %v820_v34, 0.0 }
 0x17e   : > { %v825_v39 = vmax.f32 %v821_v35, 0.0  ;;  %826 = vst [vmem:[%s1575_s3] sm:$0xff] %v822_v36 }
 0x17f   : > { %827 = vst [vmem:[%s1575_s3 + $0x8] sm:$0xff] %v823_v37  ;;  %828 = vst [vmem:[%s1575_s3 + $0x10] sm:$0xff] %v824_v38 }
 0x180   : > { %829 = vst [vmem:[%s1575_s3 + $0x18] sm:$0xff] %v825_v39 }
 0x181 PF: > { %s13_s14 = sadd.s32 1, %s1231_s14   ;;  %s1576_s12 = smov %s1227_s13 }
 0x182   : > { %p10_p8 = scmp.ge.s32.totalorder %s13_s14, 10   ;;  %s1577_s13 = smov %s1579_s15 }
 0x184   :  { %12 = sbr.rel (!%p10_p8) target bundleno = 2 (0x2), region = 73 }

</bundles_post_ra>
